<compile_context>
chip_gen: v7x
topology: tpu7x:2x2x1
jax: 0.10.0
libtpu: 0.0.40
codegen_flags: <defaults>
</compile_context>

<pallas_src>
from functools import partial

import jax
import jax.numpy as jnp
import numpy as np
from jax.experimental import pallas as pl
from jax.experimental.pallas import tpu as pltpu

CNN_FEATURES = 1536   # EfficientNet-B3 classifier.in_features
VIT_FEATURES = 768    # vit_base_patch16_224 num_features
PATCH = 16
NUM_CLASSES = 2
OUT_LANES = 128       # lane-dense (zero-padded) classifier output width


# ---------------------------------------------------------------------------
# Fused forward kernel (one grid step == TB images).
# ---------------------------------------------------------------------------
def _fused_kernel(C, ph, pw,
                  x_ref, q_ref, wvit_ref, bvit_ref, wcnn_ref, bcnn_ref,
                  wa1c_ref, wa1v_ref, ba1_ref, wa2_ref, ba2_ref,
                  wf1c_ref, wf1v_ref, bf1_ref, bn1s_ref, bn1b_ref,
                  wf2_ref, bf2_ref, bn2s_ref, bn2b_ref,
                  wc1_ref, bc1_ref, bn3s_ref, bn3b_ref,
                  wc2_ref, bc2_ref,
                  out_ref, pooled_ref):
    f32 = jnp.float32
    bf16 = jnp.bfloat16
    PP = PATCH * PATCH
    tb = out_ref.shape[0]                            # images handled by this grid step
    inv_p = 1.0 / float(ph * pw)                     # 1 / num_patches
    inv_hw = 1.0 / float(ph * PATCH * pw * PATCH)    # 1 / (H*W)

    # ---- backbone stand-ins (C is tiny & static; ViT matmul fused across channels) ----
    # cnn accumulator starts at the bias, broadcast once (hoisted out of the channel loop).
    cnn = jnp.broadcast_to(bcnn_ref[...], (tb, CNN_FEATURES))          # [TB, 1536] f32
    for c in range(C):
        # per-channel sum over the ph patch-row blocks: plain [TB, PATCH*W] loads + VPU adds
        rch = x_ref[c * ph].astype(f32)                                # [TB, PATCH*W]
        for r in range(1, ph):
            rch = rch + x_ref[c * ph + r].astype(f32)
        # within-patch (i,j) sums over all patches via constant 0/1 matrix on the MXU
        spc = jnp.dot(rch.astype(bf16), q_ref[...],
                      preferred_element_type=f32)                      # [TB, 256]
        # stage per-channel patch means at lane offset c*256 for the fused ViT matmul
        pooled_ref[:, c * PP:(c + 1) * PP] = (spc * inv_p).astype(bf16)
        # CNN stand-in: global average pool -> linear C->1536 as a VPU FMA (K=C is tiny)
        ch_mean = jnp.sum(spc, axis=1, keepdims=True) * inv_hw         # [TB, 1]
        cnn = cnn + ch_mean * wcnn_ref[c:c + 1, :]                     # [TB, 1536]

    # ViT stand-in: ONE K=768 MXU pass instead of three dependent K=256 passes
    vit = jnp.dot(pooled_ref[...], wvit_ref[...],
                  preferred_element_type=f32) + bvit_ref[...]          # [TB, 768]

    cnn_bf = cnn.astype(bf16)
    vit_bf = vit.astype(bf16)

    # ---- attention: Linear(2304,64) -> ReLU -> Linear(64,2) -> Softmax ----------------
    # concat eliminated: comb @ wa1 == cnn @ wa1[:1536] + vit @ wa1[1536:]
    a = (jnp.dot(cnn_bf, wa1c_ref[...], preferred_element_type=f32) +
         jnp.dot(vit_bf, wa1v_ref[...], preferred_element_type=f32) + ba1_ref[...])
    a = jnp.maximum(a, 0.0)
    # second layer merged into one zero-padded [64,128] matmul; only lanes 0,1 are real
    logits = (jnp.dot(a.astype(bf16), wa2_ref[...],
                      preferred_element_type=f32) + ba2_ref[...])      # [TB, 128]
    l0 = logits[:, 0:1]
    l1 = logits[:, 1:2]
    m = jnp.maximum(l0, l1)
    e0 = jnp.exp(l0 - m)
    e1 = jnp.exp(l1 - m)
    inv = pl.reciprocal(e0 + e1, approx=True)        # EUP slot, off the VALU path
    att0 = e0 * inv
    att1 = e1 * inv

    wcnn = (cnn * att0).astype(bf16)
    wvit = (vit * att1).astype(bf16)

    # ---- feature_fusion: Linear->BN->ReLU->(Drop=id)->Linear->BN->ReLU ----------------
    h = (jnp.dot(wcnn, wf1c_ref[...], preferred_element_type=f32) +
         jnp.dot(wvit, wf1v_ref[...], preferred_element_type=f32) + bf1_ref[...])
    h = jnp.maximum(h * bn1s_ref[...] + bn1b_ref[...], 0.0)
    h = jnp.dot(h.astype(bf16), wf2_ref[...], preferred_element_type=f32) + bf2_ref[...]
    h = jnp.maximum(h * bn2s_ref[...] + bn2b_ref[...], 0.0)

    # ---- classifier: Linear->BN->ReLU->(Drop=id)->Linear (zero-padded to 128 lanes) ----
    h = jnp.dot(h.astype(bf16), wc1_ref[...], preferred_element_type=f32) + bc1_ref[...]
    h = jnp.maximum(h * bn3s_ref[...] + bn3b_ref[...], 0.0)
    out_ref[...] = (jnp.dot(h.astype(bf16), wc2_ref[...],
                            preferred_element_type=f32) + bc2_ref[...])  # [TB,128] lane-dense


def _resident_spec(shape):
    """Full-array block at a constant index -> resident in VMEM across the batch grid.

    Single-buffered (pl.Buffered(1)): constant-index blocks don't need double buffering,
    which frees VMEM headroom for larger batch blocks (most valuable on v7x's 64 MiB).
    """
    nd = len(shape)
    index_map = lambda b: (0,) * nd
    try:
        return pl.BlockSpec(tuple(shape), index_map, pipeline_mode=pl.Buffered(1))
    except (TypeError, AttributeError):   # older jax without pipeline_mode support
        return pl.BlockSpec(tuple(shape), index_map)


def _make_pool_matrix(W):
    """Q[i*W + s, i2*PATCH + j] = 1 iff i==i2 and s%PATCH==j (patch-pooling matrix)."""
    r = np.arange(PATCH * W)
    i_of_r = r // W
    s_of_r = r % W
    k = np.arange(PATCH * PATCH)
    i_of_k = k // PATCH
    j_of_k = k % PATCH
    q = ((i_of_r[:, None] == i_of_k[None, :]) &
         ((s_of_r % PATCH)[:, None] == j_of_k[None, :])).astype(np.float32)
    return jnp.asarray(q).astype(jnp.bfloat16)      # 0/1 values are exact in bf16


def cnn_transformer_hybrid_forward(x, p, tb=None):
    B, C, H, W = x.shape
    assert H % PATCH == 0 and W % PATCH == 0
    ph, pw = H // PATCH, W // PATCH

    # Lane-dense, kernel-friendly layout [C*ph, B, PATCH*W], streamed as bf16 (half the
    # HBM bytes of the only streamed operand). The cast+transpose is a single fused XLA
    # copy outside the kernel; in an end-to-end pipeline it fuses with the producer of x.
    x2 = jnp.transpose(x.reshape(B, C * ph, PATCH * W), (1, 0, 2)).astype(jnp.bfloat16)

    # ---- batch-block size: biggest block that keeps the image double-buffer modest -----
    if tb is None:
        img_block_bytes = C * ph * PATCH * W * 2                      # bf16 bytes / image
        budget = 20 * 1024 * 1024                                     # image double-buffer budget
        tb = min(256, max(8, budget // (2 * img_block_bytes)))
    tb = max(8, min(int(tb), -(-B // 8) * 8))                         # don't over-pad tiny batches
    tb = (tb // 8) * 8
    # v7x megacore: prefer >=2 grid steps so ("parallel",) can feed both TensorCores.
    if B > 8 and -(-B // tb) == 1 and tb >= 16:
        tb = max(8, (tb // 2 // 8) * 8)

    b_pad = -(-B // tb) * tb
    if b_pad != B:
        x2 = jnp.pad(x2, ((0, 0), (0, b_pad - B), (0, 0)))

    q_pool = _make_pool_matrix(W)

    weight_args = (q_pool, p["w_vit"], p["b_vit"], p["w_cnn"], p["b_cnn"],
                   p["wa1_c"], p["wa1_v"], p["ba1"], p["wa2_p"], p["ba2_p"],
                   p["wf1_c"], p["wf1_v"], p["bf1"], p["bn1s"], p["bn1b"],
                   p["wf2"], p["bf2"], p["bn2s"], p["bn2b"],
                   p["wc1"], p["bc1"], p["bn3s"], p["bn3b"],
                   p["wc2_p"], p["bc2_p"])

    in_specs = [pl.BlockSpec((C * ph, tb, PATCH * W), lambda b: (0, b, 0))]
    in_specs += [_resident_spec(w.shape) for w in weight_args]

    out = pl.pallas_call(
        partial(_fused_kernel, C, ph, pw),
        out_shape=jax.ShapeDtypeStruct((b_pad, OUT_LANES), jnp.float32),  # lane-dense output
        grid=(b_pad // tb,),
        in_specs=in_specs,
        out_specs=pl.BlockSpec((tb, OUT_LANES), lambda b: (b, 0)),
        scratch_shapes=[pltpu.VMEM((tb, C * PATCH * PATCH), jnp.bfloat16)],
        compiler_params=pltpu.CompilerParams(
            dimension_semantics=("parallel",),        # batch steps split across TCs (v7x)
            vmem_limit_bytes=48 * 1024 * 1024,        # < 64 MiB (v7x); plenty on v5e/v6e
        ),
    )(x2, *weight_args)
    return out[:B, :NUM_CLASSES]


# ---------------------------------------------------------------------------
# Parameter init (deterministic, PyTorch-style uniform(-1/sqrt(fan_in), ...)).
# MXU-facing weights are stored bf16; biases / BN params stay f32.
# ---------------------------------------------------------------------------
def _linear_init(key, fan_in, fan_out):
    kw, kb = jax.random.split(key)
    bound = 1.0 / float(np.sqrt(fan_in))
    w = jax.random.uniform(kw, (fan_in, fan_out), jnp.float32, -bound, bound)
    b = jax.random.uniform(kb, (1, fan_out), jnp.float32, -bound, bound)
    return w, b


def _bn_fold(key, n, eps=1e-5):
    k1, k2, k3, k4 = jax.random.split(key, 4)
    gamma = jax.random.uniform(k1, (1, n), jnp.float32, 0.5, 1.5)
    beta = jax.random.uniform(k2, (1, n), jnp.float32, -0.1, 0.1)
    mean = jax.random.uniform(k3, (1, n), jnp.float32, -0.1, 0.1)
    var = jax.random.uniform(k4, (1, n), jnp.float32, 0.5, 1.5)
    scale = gamma / jnp.sqrt(var + eps)
    shift = beta - mean * scale
    return scale, shift


def init_params(key, in_channels=3):
    bf16 = jnp.bfloat16
    keys = jax.random.split(key, 11)
    p = {}
    # backbone stand-ins
    p["w_cnn"], p["b_cnn"] = _linear_init(keys[0], in_channels, CNN_FEATURES)   # K=3: f32 (VPU)
    w_vit, p["b_vit"] = _linear_init(keys[1], in_channels * PATCH * PATCH, VIT_FEATURES)
    p["w_vit"] = w_vit.astype(bf16)
    comb = CNN_FEATURES + VIT_FEATURES
    # attention head (wa1 split to remove the concat; wa2 zero-padded to 128 lanes)
    wa1, p["ba1"] = _linear_init(keys[2], comb, 64)
    p["wa1_c"] = wa1[:CNN_FEATURES].astype(bf16)
    p["wa1_v"] = wa1[CNN_FEATURES:].astype(bf16)
    wa2, ba2 = _linear_init(keys[3], 64, 2)
    p["wa2_p"] = jnp.zeros((64, OUT_LANES), jnp.float32).at[:, :2].set(wa2).astype(bf16)
    p["ba2_p"] = jnp.zeros((1, OUT_LANES), jnp.float32).at[:, :2].set(ba2)
    # feature_fusion
    wf1, p["bf1"] = _linear_init(keys[4], comb, 512)
    p["wf1_c"] = wf1[:CNN_FEATURES].astype(bf16)
    p["wf1_v"] = wf1[CNN_FEATURES:].astype(bf16)
    p["bn1s"], p["bn1b"] = _bn_fold(keys[5], 512)
    wf2, p["bf2"] = _linear_init(keys[6], 512, 256)
    p["wf2"] = wf2.astype(bf16)
    p["bn2s"], p["bn2b"] = _bn_fold(keys[7], 256)
    # classifier (final layer zero-padded to 128 lanes for unmasked lane-dense stores)
    wc1, p["bc1"] = _linear_init(keys[8], 256, 128)
    p["wc1"] = wc1.astype(bf16)
    p["bn3s"], p["bn3b"] = _bn_fold(keys[9], 128)
    wc2, bc2 = _linear_init(keys[10], 128, NUM_CLASSES)
    p["wc2_p"] = jnp.zeros((128, OUT_LANES), jnp.float32).at[:, :NUM_CLASSES].set(wc2).astype(bf16)
    p["bc2_p"] = jnp.zeros((1, OUT_LANES), jnp.float32).at[:, :NUM_CLASSES].set(bc2)
    return p


# ---------------------------------------------------------------------------
# Pure-JAX semantic reference (f32 math, same stored weights) for sanity check.
# ---------------------------------------------------------------------------
def reference_forward(x, p):
    f32 = jnp.float32
    B, C, H, W = x.shape
    ph, pw = H // PATCH, W // PATCH
    # CNN stand-in: global average pool + linear C -> 1536
    cnn = jnp.mean(x, axis=(2, 3)) @ p["w_cnn"] + p["b_cnn"]
    # ViT stand-in: 16x16 patches flattened in (C, i, j) order, mean over patches, linear
    xp = x.reshape(B, C, ph, PATCH, pw, PATCH)
    xp = jnp.transpose(xp, (0, 2, 4, 1, 3, 5)).reshape(B, ph * pw, C * PATCH * PATCH)
    vit = jnp.mean(xp, axis=1) @ p["w_vit"].astype(f32) + p["b_vit"]
    # attention gating
    comb = jnp.concatenate([cnn, vit], axis=1)
    wa1 = jnp.concatenate([p["wa1_c"], p["wa1_v"]], axis=0).astype(f32)
    a = jnp.maximum(comb @ wa1 + p["ba1"], 0.0)
    logits = a @ p["wa2_p"][:, :NUM_CLASSES].astype(f32) + p["ba2_p"][:, :NUM_CLASSES]
    attw = jax.nn.softmax(logits, axis=1)
    final = jnp.concatenate([cnn * attw[:, 0:1], vit * attw[:, 1:2]], axis=1)
    # feature_fusion + classifier (folded BN, eval-mode dropout = identity)
    wf1 = jnp.concatenate([p["wf1_c"], p["wf1_v"]], axis=0).astype(f32)
    h = jnp.maximum((final @ wf1 + p["bf1"]) * p["bn1s"] + p["bn1b"], 0.0)
    h = jnp.maximum((h @ p["wf2"].astype(f32) + p["bf2"]) * p["bn2s"] + p["bn2b"], 0.0)
    h = jnp.maximum((h @ p["wc1"].astype(f32) + p["bc1"]) * p["bn3s"] + p["bn3b"], 0.0)
    return h @ p["wc2_p"][:, :NUM_CLASSES].astype(f32) + p["bc2_p"][:, :NUM_CLASSES]


if __name__ == "__main__":
    key = jax.random.PRNGKey(0)
    kx, kp = jax.random.split(key)
    x = jax.random.normal(kx, (2, 3, 32, 32), dtype=jnp.float32)   # small NCHW input
    params = init_params(kp, in_channels=3)

    out = cnn_transformer_hybrid_forward(x, params)
    out = jax.block_until_ready(out)
    assert out.shape == (2, NUM_CLASSES) and out.dtype == jnp.float32

    # Reference sees the same bf16-rounded image the kernel streams; f32 math otherwise.
    xq = x.astype(jnp.bfloat16).astype(jnp.float32)
    ref = jax.block_until_ready(reference_forward(xq, params))
    # bf16 MXU operands + approx reciprocal vs f32 reference -> loose-ish tolerance
    if not np.allclose(np.asarray(out), np.asarray(ref), rtol=3e-2, atol=3e-2):
        raise AssertionError("Pallas output does not match JAX reference")

    print("KERNEL_OK")
</pallas_src>

<mosaic_0001>
module attributes {stable_mosaic.version = 11 : i64} {
  func.func @_fused_kernel(%arg0: i32, %arg1: memref<6x8x512xbf16, #tpu.memory_space<vmem>>, %arg2: memref<512x256xbf16, #tpu.memory_space<vmem>>, %arg3: memref<768x768xbf16, #tpu.memory_space<vmem>>, %arg4: memref<1x768xf32, #tpu.memory_space<vmem>>, %arg5: memref<3x1536xf32, #tpu.memory_space<vmem>>, %arg6: memref<1x1536xf32, #tpu.memory_space<vmem>>, %arg7: memref<1536x64xbf16, #tpu.memory_space<vmem>>, %arg8: memref<768x64xbf16, #tpu.memory_space<vmem>>, %arg9: memref<1x64xf32, #tpu.memory_space<vmem>>, %arg10: memref<64x128xbf16, #tpu.memory_space<vmem>>, %arg11: memref<1x128xf32, #tpu.memory_space<vmem>>, %arg12: memref<1536x512xbf16, #tpu.memory_space<vmem>>, %arg13: memref<768x512xbf16, #tpu.memory_space<vmem>>, %arg14: memref<1x512xf32, #tpu.memory_space<vmem>>, %arg15: memref<1x512xf32, #tpu.memory_space<vmem>>, %arg16: memref<1x512xf32, #tpu.memory_space<vmem>>, %arg17: memref<512x256xbf16, #tpu.memory_space<vmem>>, %arg18: memref<1x256xf32, #tpu.memory_space<vmem>>, %arg19: memref<1x256xf32, #tpu.memory_space<vmem>>, %arg20: memref<1x256xf32, #tpu.memory_space<vmem>>, %arg21: memref<256x128xbf16, #tpu.memory_space<vmem>>, %arg22: memref<1x128xf32, #tpu.memory_space<vmem>>, %arg23: memref<1x128xf32, #tpu.memory_space<vmem>>, %arg24: memref<1x128xf32, #tpu.memory_space<vmem>>, %arg25: memref<128x128xbf16, #tpu.memory_space<vmem>>, %arg26: memref<1x128xf32, #tpu.memory_space<vmem>>, %arg27: memref<8x128xf32, #tpu.memory_space<vmem>>, %arg28: memref<8x768xbf16, #tpu.memory_space<vmem>>) attributes {dimension_semantics = [#tpu.dimension_semantics<parallel>], iteration_bounds = array<i64: 1>, scalar_prefetch = 0 : i64, scratch_operands = 1 : i64, tpu.core_type = #tpu.core_type<tc>, window_params = [{transform_indices = @transform_0, window_bounds = array<i64: 6, 8, 512>}, {pipeline_mode = #tpu.pipeline_mode<synchronous>, transform_indices = @transform_1, window_bounds = array<i64: 512, 256>}, {pipeline_mode = #tpu.pipeline_mode<synchronous>, transform_indices = @transform_2, window_bounds = array<i64: 768, 768>}, {pipeline_mode = #tpu.pipeline_mode<synchronous>, transform_indices = @transform_3, window_bounds = array<i64: 1, 768>}, {pipeline_mode = #tpu.pipeline_mode<synchronous>, transform_indices = @transform_4, window_bounds = array<i64: 3, 1536>}, {pipeline_mode = #tpu.pipeline_mode<synchronous>, transform_indices = @transform_5, window_bounds = array<i64: 1, 1536>}, {pipeline_mode = #tpu.pipeline_mode<synchronous>, transform_indices = @transform_6, window_bounds = array<i64: 1536, 64>}, {pipeline_mode = #tpu.pipeline_mode<synchronous>, transform_indices = @transform_7, window_bounds = array<i64: 768, 64>}, {pipeline_mode = #tpu.pipeline_mode<synchronous>, transform_indices = @transform_8, window_bounds = array<i64: 1, 64>}, {pipeline_mode = #tpu.pipeline_mode<synchronous>, transform_indices = @transform_9, window_bounds = array<i64: 64, 128>}, {pipeline_mode = #tpu.pipeline_mode<synchronous>, transform_indices = @transform_10, window_bounds = array<i64: 1, 128>}, {pipeline_mode = #tpu.pipeline_mode<synchronous>, transform_indices = @transform_11, window_bounds = array<i64: 1536, 512>}, {pipeline_mode = #tpu.pipeline_mode<synchronous>, transform_indices = @transform_12, window_bounds = array<i64: 768, 512>}, {pipeline_mode = #tpu.pipeline_mode<synchronous>, transform_indices = @transform_13, window_bounds = array<i64: 1, 512>}, {pipeline_mode = #tpu.pipeline_mode<synchronous>, transform_indices = @transform_14, window_bounds = array<i64: 1, 512>}, {pipeline_mode = #tpu.pipeline_mode<synchronous>, transform_indices = @transform_15, window_bounds = array<i64: 1, 512>}, {pipeline_mode = #tpu.pipeline_mode<synchronous>, transform_indices = @transform_16, window_bounds = array<i64: 512, 256>}, {pipeline_mode = #tpu.pipeline_mode<synchronous>, transform_indices = @transform_17, window_bounds = array<i64: 1, 256>}, {pipeline_mode = #tpu.pipeline_mode<synchronous>, transform_indices = @transform_18, window_bounds = array<i64: 1, 256>}, {pipeline_mode = #tpu.pipeline_mode<synchronous>, transform_indices = @transform_19, window_bounds = array<i64: 1, 256>}, {pipeline_mode = #tpu.pipeline_mode<synchronous>, transform_indices = @transform_20, window_bounds = array<i64: 256, 128>}, {pipeline_mode = #tpu.pipeline_mode<synchronous>, transform_indices = @transform_21, window_bounds = array<i64: 1, 128>}, {pipeline_mode = #tpu.pipeline_mode<synchronous>, transform_indices = @transform_22, window_bounds = array<i64: 1, 128>}, {pipeline_mode = #tpu.pipeline_mode<synchronous>, transform_indices = @transform_23, window_bounds = array<i64: 1, 128>}, {pipeline_mode = #tpu.pipeline_mode<synchronous>, transform_indices = @transform_24, window_bounds = array<i64: 128, 128>}, {pipeline_mode = #tpu.pipeline_mode<synchronous>, transform_indices = @transform_25, window_bounds = array<i64: 1, 128>}, {transform_indices = @transform_26, window_bounds = array<i64: 8, 128>}]} {
    %c0 = arith.constant 0 : index
    %c0_0 = arith.constant 0 : index
    %0 = vector.load %arg6[%c0, %c0_0] : memref<1x1536xf32, #tpu.memory_space<vmem>>, vector<1x1536xf32>
    %1 = vector.shape_cast %0 : vector<1x1536xf32> to vector<1x1536xf32>
    %2 = vector.broadcast %1 : vector<1x1536xf32> to vector<8x1536xf32>
    %c0_1 = arith.constant 0 : index
    %c0_2 = arith.constant 0 : index
    %c0_3 = arith.constant 0 : index
    %3 = vector.load %arg1[%c0_1, %c0_2, %c0_3] : memref<6x8x512xbf16, #tpu.memory_space<vmem>>, vector<1x8x512xbf16>
    %4 = vector.shape_cast %3 : vector<1x8x512xbf16> to vector<8x512xbf16>
    %5 = arith.extf %4 : vector<8x512xbf16> to vector<8x512xf32>
    %c1 = arith.constant 1 : index
    %c0_4 = arith.constant 0 : index
    %c0_5 = arith.constant 0 : index
    %6 = vector.load %arg1[%c1, %c0_4, %c0_5] : memref<6x8x512xbf16, #tpu.memory_space<vmem>>, vector<1x8x512xbf16>
    %7 = vector.shape_cast %6 : vector<1x8x512xbf16> to vector<8x512xbf16>
    %8 = arith.extf %7 : vector<8x512xbf16> to vector<8x512xf32>
    %9 = arith.addf %5, %8 : vector<8x512xf32>
    %10 = arith.truncf %9 : vector<8x512xf32> to vector<8x512xbf16>
    %c0_6 = arith.constant 0 : index
    %c0_7 = arith.constant 0 : index
    %11 = vector.load %arg2[%c0_6, %c0_7] : memref<512x256xbf16, #tpu.memory_space<vmem>>, vector<512x256xbf16>
    %cst = arith.constant dense<0.000000e+00> : vector<8x256xf32>
    %12 = tpu.matmul %10, %11, %cst {dimension_numbers = #tpu.dot_dimension_numbers<[1], [0], [0], [1], [0, 0, 1, 1], [], []>} : vector<8x512xbf16>, vector<512x256xbf16>, vector<8x256xf32> -> vector<8x256xf32>
    %cst_8 = arith.constant 2.500000e-01 : f32
    %13 = vector.broadcast %cst_8 : f32 to vector<8x256xf32>
    %14 = arith.mulf %12, %13 : vector<8x256xf32>
    %15 = arith.truncf %14 : vector<8x256xf32> to vector<8x256xbf16>
    %c0_9 = arith.constant 0 : index
    %c0_10 = arith.constant 0 : index
    %16 = vector.load %arg28[%c0_9, %c0_10] : memref<8x768xbf16, #tpu.memory_space<vmem>>, vector<8x256xbf16>
    tpu.vector_store %arg28[%c0_9, %c0_10], %15 {strides = array<i32>} : memref<8x768xbf16, #tpu.memory_space<vmem>>, vector<8x256xbf16>,
    %cst_11 = arith.constant dense<0.000000e+00> : vector<8xf32>
    %17 = vector.multi_reduction <add>, %12, %cst_11 [1] : vector<8x256xf32> to vector<8xf32>
    %18 = vector.shape_cast %17 : vector<8xf32> to vector<8x1xf32>
    %cst_12 = arith.constant 9.765625E-4 : f32
    %19 = vector.broadcast %cst_12 : f32 to vector<8x1xf32>
    %20 = arith.mulf %18, %19 : vector<8x1xf32>
    %c0_13 = arith.constant 0 : index
    %c0_14 = arith.constant 0 : index
    %21 = vector.load %arg5[%c0_13, %c0_14] : memref<3x1536xf32, #tpu.memory_space<vmem>>, vector<1x1536xf32>
    %22 = vector.broadcast %20 : vector<8x1xf32> to vector<8x1536xf32>
    %23 = vector.broadcast %21 : vector<1x1536xf32> to vector<8x1536xf32>
    %24 = arith.mulf %22, %23 : vector<8x1536xf32>
    %25 = arith.addf %2, %24 : vector<8x1536xf32>
    %c2 = arith.constant 2 : index
    %c0_15 = arith.constant 0 : index
    %c0_16 = arith.constant 0 : index
    %26 = vector.load %arg1[%c2, %c0_15, %c0_16] : memref<6x8x512xbf16, #tpu.memory_space<vmem>>, vector<1x8x512xbf16>
    %27 = vector.shape_cast %26 : vector<1x8x512xbf16> to vector<8x512xbf16>
    %28 = arith.extf %27 : vector<8x512xbf16> to vector<8x512xf32>
    %c3 = arith.constant 3 : index
    %c0_17 = arith.constant 0 : index
    %c0_18 = arith.constant 0 : index
    %29 = vector.load %arg1[%c3, %c0_17, %c0_18] : memref<6x8x512xbf16, #tpu.memory_space<vmem>>, vector<1x8x512xbf16>
    %30 = vector.shape_cast %29 : vector<1x8x512xbf16> to vector<8x512xbf16>
    %31 = arith.extf %30 : vector<8x512xbf16> to vector<8x512xf32>
    %32 = arith.addf %28, %31 : vector<8x512xf32>
    %33 = arith.truncf %32 : vector<8x512xf32> to vector<8x512xbf16>
    %c0_19 = arith.constant 0 : index
    %c0_20 = arith.constant 0 : index
    %34 = vector.load %arg2[%c0_19, %c0_20] : memref<512x256xbf16, #tpu.memory_space<vmem>>, vector<512x256xbf16>
    %cst_21 = arith.constant dense<0.000000e+00> : vector<8x256xf32>
    %35 = tpu.matmul %33, %34, %cst_21 {dimension_numbers = #tpu.dot_dimension_numbers<[1], [0], [0], [1], [0, 0, 1, 1], [], []>} : vector<8x512xbf16>, vector<512x256xbf16>, vector<8x256xf32> -> vector<8x256xf32>
    %cst_22 = arith.constant 2.500000e-01 : f32
    %36 = vector.broadcast %cst_22 : f32 to vector<8x256xf32>
    %37 = arith.mulf %35, %36 : vector<8x256xf32>
    %38 = arith.truncf %37 : vector<8x256xf32> to vector<8x256xbf16>
    %c0_23 = arith.constant 0 : index
    %c256 = arith.constant 256 : index
    %39 = vector.load %arg28[%c0_23, %c256] : memref<8x768xbf16, #tpu.memory_space<vmem>>, vector<8x256xbf16>
    tpu.vector_store %arg28[%c0_23, %c256], %38 {strides = array<i32>} : memref<8x768xbf16, #tpu.memory_space<vmem>>, vector<8x256xbf16>,
    %cst_24 = arith.constant dense<0.000000e+00> : vector<8xf32>
    %40 = vector.multi_reduction <add>, %35, %cst_24 [1] : vector<8x256xf32> to vector<8xf32>
    %41 = vector.shape_cast %40 : vector<8xf32> to vector<8x1xf32>
    %cst_25 = arith.constant 9.765625E-4 : f32
    %42 = vector.broadcast %cst_25 : f32 to vector<8x1xf32>
    %43 = arith.mulf %41, %42 : vector<8x1xf32>
    %c1_26 = arith.constant 1 : index
    %c0_27 = arith.constant 0 : index
    %44 = vector.load %arg5[%c1_26, %c0_27] : memref<3x1536xf32, #tpu.memory_space<vmem>>, vector<1x1536xf32>
    %45 = vector.broadcast %43 : vector<8x1xf32> to vector<8x1536xf32>
    %46 = vector.broadcast %44 : vector<1x1536xf32> to vector<8x1536xf32>
    %47 = arith.mulf %45, %46 : vector<8x1536xf32>
    %48 = arith.addf %25, %47 : vector<8x1536xf32>
    %c4 = arith.constant 4 : index
    %c0_28 = arith.constant 0 : index
    %c0_29 = arith.constant 0 : index
    %49 = vector.load %arg1[%c4, %c0_28, %c0_29] : memref<6x8x512xbf16, #tpu.memory_space<vmem>>, vector<1x8x512xbf16>
    %50 = vector.shape_cast %49 : vector<1x8x512xbf16> to vector<8x512xbf16>
    %51 = arith.extf %50 : vector<8x512xbf16> to vector<8x512xf32>
    %c5 = arith.constant 5 : index
    %c0_30 = arith.constant 0 : index
    %c0_31 = arith.constant 0 : index
    %52 = vector.load %arg1[%c5, %c0_30, %c0_31] : memref<6x8x512xbf16, #tpu.memory_space<vmem>>, vector<1x8x512xbf16>
    %53 = vector.shape_cast %52 : vector<1x8x512xbf16> to vector<8x512xbf16>
    %54 = arith.extf %53 : vector<8x512xbf16> to vector<8x512xf32>
    %55 = arith.addf %51, %54 : vector<8x512xf32>
    %56 = arith.truncf %55 : vector<8x512xf32> to vector<8x512xbf16>
    %c0_32 = arith.constant 0 : index
    %c0_33 = arith.constant 0 : index
    %57 = vector.load %arg2[%c0_32, %c0_33] : memref<512x256xbf16, #tpu.memory_space<vmem>>, vector<512x256xbf16>
    %cst_34 = arith.constant dense<0.000000e+00> : vector<8x256xf32>
    %58 = tpu.matmul %56, %57, %cst_34 {dimension_numbers = #tpu.dot_dimension_numbers<[1], [0], [0], [1], [0, 0, 1, 1], [], []>} : vector<8x512xbf16>, vector<512x256xbf16>, vector<8x256xf32> -> vector<8x256xf32>
    %cst_35 = arith.constant 2.500000e-01 : f32
    %59 = vector.broadcast %cst_35 : f32 to vector<8x256xf32>
    %60 = arith.mulf %58, %59 : vector<8x256xf32>
    %61 = arith.truncf %60 : vector<8x256xf32> to vector<8x256xbf16>
    %c0_36 = arith.constant 0 : index
    %c512 = arith.constant 512 : index
    %62 = vector.load %arg28[%c0_36, %c512] : memref<8x768xbf16, #tpu.memory_space<vmem>>, vector<8x256xbf16>
    tpu.vector_store %arg28[%c0_36, %c512], %61 {strides = array<i32>} : memref<8x768xbf16, #tpu.memory_space<vmem>>, vector<8x256xbf16>,
    %cst_37 = arith.constant dense<0.000000e+00> : vector<8xf32>
    %63 = vector.multi_reduction <add>, %58, %cst_37 [1] : vector<8x256xf32> to vector<8xf32>
    %64 = vector.shape_cast %63 : vector<8xf32> to vector<8x1xf32>
    %cst_38 = arith.constant 9.765625E-4 : f32
    %65 = vector.broadcast %cst_38 : f32 to vector<8x1xf32>
    %66 = arith.mulf %64, %65 : vector<8x1xf32>
    %c2_39 = arith.constant 2 : index
    %c0_40 = arith.constant 0 : index
    %67 = vector.load %arg5[%c2_39, %c0_40] : memref<3x1536xf32, #tpu.memory_space<vmem>>, vector<1x1536xf32>
    %68 = vector.broadcast %66 : vector<8x1xf32> to vector<8x1536xf32>
    %69 = vector.broadcast %67 : vector<1x1536xf32> to vector<8x1536xf32>
    %70 = arith.mulf %68, %69 : vector<8x1536xf32>
    %71 = arith.addf %48, %70 : vector<8x1536xf32>
    %c0_41 = arith.constant 0 : index
    %c0_42 = arith.constant 0 : index
    %72 = vector.load %arg28[%c0_41, %c0_42] : memref<8x768xbf16, #tpu.memory_space<vmem>>, vector<8x768xbf16>
    %c0_43 = arith.constant 0 : index
    %c0_44 = arith.constant 0 : index
    %73 = vector.load %arg3[%c0_43, %c0_44] : memref<768x768xbf16, #tpu.memory_space<vmem>>, vector<768x768xbf16>
    %cst_45 = arith.constant dense<0.000000e+00> : vector<8x768xf32>
    %74 = tpu.matmul %72, %73, %cst_45 {dimension_numbers = #tpu.dot_dimension_numbers<[1], [0], [0], [1], [0, 0, 1, 1], [], []>} : vector<8x768xbf16>, vector<768x768xbf16>, vector<8x768xf32> -> vector<8x768xf32>
    %c0_46 = arith.constant 0 : index
    %c0_47 = arith.constant 0 : index
    %75 = vector.load %arg4[%c0_46, %c0_47] : memref<1x768xf32, #tpu.memory_space<vmem>>, vector<1x768xf32>
    %76 = vector.broadcast %75 : vector<1x768xf32> to vector<8x768xf32>
    %77 = arith.addf %74, %76 : vector<8x768xf32>
    %78 = arith.truncf %71 : vector<8x1536xf32> to vector<8x1536xbf16>
    %79 = arith.truncf %77 : vector<8x768xf32> to vector<8x768xbf16>
    %c0_48 = arith.constant 0 : index
    %c0_49 = arith.constant 0 : index
    %80 = vector.load %arg7[%c0_48, %c0_49] : memref<1536x64xbf16, #tpu.memory_space<vmem>>, vector<1536x64xbf16>
    %cst_50 = arith.constant dense<0.000000e+00> : vector<8x64xf32>
    %81 = tpu.matmul %78, %80, %cst_50 {dimension_numbers = #tpu.dot_dimension_numbers<[1], [0], [0], [1], [0, 0, 1, 1], [], []>} : vector<8x1536xbf16>, vector<1536x64xbf16>, vector<8x64xf32> -> vector<8x64xf32>
    %c0_51 = arith.constant 0 : index
    %c0_52 = arith.constant 0 : index
    %82 = vector.load %arg8[%c0_51, %c0_52] : memref<768x64xbf16, #tpu.memory_space<vmem>>, vector<768x64xbf16>
    %cst_53 = arith.constant dense<0.000000e+00> : vector<8x64xf32>
    %83 = tpu.matmul %79, %82, %cst_53 {dimension_numbers = #tpu.dot_dimension_numbers<[1], [0], [0], [1], [0, 0, 1, 1], [], []>} : vector<8x768xbf16>, vector<768x64xbf16>, vector<8x64xf32> -> vector<8x64xf32>
    %84 = arith.addf %81, %83 : vector<8x64xf32>
    %c0_54 = arith.constant 0 : index
    %c0_55 = arith.constant 0 : index
    %85 = vector.load %arg9[%c0_54, %c0_55] : memref<1x64xf32, #tpu.memory_space<vmem>>, vector<1x64xf32>
    %86 = vector.broadcast %85 : vector<1x64xf32> to vector<8x64xf32>
    %87 = arith.addf %84, %86 : vector<8x64xf32>
    %cst_56 = arith.constant 0.000000e+00 : f32
    %88 = vector.broadcast %cst_56 : f32 to vector<8x64xf32>
    %89 = arith.maximumf %87, %88 : vector<8x64xf32>
    %90 = arith.truncf %89 : vector<8x64xf32> to vector<8x64xbf16>
    %c0_57 = arith.constant 0 : index
    %c0_58 = arith.constant 0 : index
    %91 = vector.load %arg10[%c0_57, %c0_58] : memref<64x128xbf16, #tpu.memory_space<vmem>>, vector<64x128xbf16>
    %cst_59 = arith.constant dense<0.000000e+00> : vector<8x128xf32>
    %92 = tpu.matmul %90, %91, %cst_59 {dimension_numbers = #tpu.dot_dimension_numbers<[1], [0], [0], [1], [0, 0, 1, 1], [], []>} : vector<8x64xbf16>, vector<64x128xbf16>, vector<8x128xf32> -> vector<8x128xf32>
    %c0_60 = arith.constant 0 : index
    %c0_61 = arith.constant 0 : index
    %93 = vector.load %arg11[%c0_60, %c0_61] : memref<1x128xf32, #tpu.memory_space<vmem>>, vector<1x128xf32>
    %94 = vector.broadcast %93 : vector<1x128xf32> to vector<8x128xf32>
    %95 = arith.addf %92, %94 : vector<8x128xf32>
    %96 = vector.extract_strided_slice %95 {offsets = [0, 0], sizes = [8, 1], strides = [1, 1]} : vector<8x128xf32> to vector<8x1xf32>
    %97 = vector.extract_strided_slice %95 {offsets = [0, 1], sizes = [8, 1], strides = [1, 1]} : vector<8x128xf32> to vector<8x1xf32>
    %98 = arith.maximumf %96, %97 : vector<8x1xf32>
    %99 = arith.subf %96, %98 : vector<8x1xf32>
    %100 = math.exp %99 : vector<8x1xf32>
    %101 = arith.subf %97, %98 : vector<8x1xf32>
    %102 = math.exp %101 : vector<8x1xf32>
    %103 = arith.addf %100, %102 : vector<8x1xf32>
    %104 = tpu.reciprocal %103 {approx = true} : vector<8x1xf32> -> vector<8x1xf32>
    %105 = arith.mulf %100, %104 : vector<8x1xf32>
    %106 = arith.mulf %102, %104 : vector<8x1xf32>
    %107 = vector.broadcast %105 : vector<8x1xf32> to vector<8x1536xf32>
    %108 = arith.mulf %71, %107 : vector<8x1536xf32>
    %109 = arith.truncf %108 : vector<8x1536xf32> to vector<8x1536xbf16>
    %110 = vector.broadcast %106 : vector<8x1xf32> to vector<8x768xf32>
    %111 = arith.mulf %77, %110 : vector<8x768xf32>
    %112 = arith.truncf %111 : vector<8x768xf32> to vector<8x768xbf16>
    %c0_62 = arith.constant 0 : index
    %c0_63 = arith.constant 0 : index
    %113 = vector.load %arg12[%c0_62, %c0_63] : memref<1536x512xbf16, #tpu.memory_space<vmem>>, vector<1536x512xbf16>
    %cst_64 = arith.constant dense<0.000000e+00> : vector<8x512xf32>
    %114 = tpu.matmul %109, %113, %cst_64 {dimension_numbers = #tpu.dot_dimension_numbers<[1], [0], [0], [1], [0, 0, 1, 1], [], []>} : vector<8x1536xbf16>, vector<1536x512xbf16>, vector<8x512xf32> -> vector<8x512xf32>
    %c0_65 = arith.constant 0 : index
    %c0_66 = arith.constant 0 : index
    %115 = vector.load %arg13[%c0_65, %c0_66] : memref<768x512xbf16, #tpu.memory_space<vmem>>, vector<768x512xbf16>
    %cst_67 = arith.constant dense<0.000000e+00> : vector<8x512xf32>
    %116 = tpu.matmul %112, %115, %cst_67 {dimension_numbers = #tpu.dot_dimension_numbers<[1], [0], [0], [1], [0, 0, 1, 1], [], []>} : vector<8x768xbf16>, vector<768x512xbf16>, vector<8x512xf32> -> vector<8x512xf32>
    %117 = arith.addf %114, %116 : vector<8x512xf32>
    %c0_68 = arith.constant 0 : index
    %c0_69 = arith.constant 0 : index
    %118 = vector.load %arg14[%c0_68, %c0_69] : memref<1x512xf32, #tpu.memory_space<vmem>>, vector<1x512xf32>
    %119 = vector.broadcast %118 : vector<1x512xf32> to vector<8x512xf32>
    %120 = arith.addf %117, %119 : vector<8x512xf32>
    %c0_70 = arith.constant 0 : index
    %c0_71 = arith.constant 0 : index
    %121 = vector.load %arg15[%c0_70, %c0_71] : memref<1x512xf32, #tpu.memory_space<vmem>>, vector<1x512xf32>
    %122 = vector.broadcast %121 : vector<1x512xf32> to vector<8x512xf32>
    %123 = arith.mulf %120, %122 : vector<8x512xf32>
    %c0_72 = arith.constant 0 : index
    %c0_73 = arith.constant 0 : index
    %124 = vector.load %arg16[%c0_72, %c0_73] : memref<1x512xf32, #tpu.memory_space<vmem>>, vector<1x512xf32>
    %125 = vector.broadcast %124 : vector<1x512xf32> to vector<8x512xf32>
    %126 = arith.addf %123, %125 : vector<8x512xf32>
    %cst_74 = arith.constant 0.000000e+00 : f32
    %127 = vector.broadcast %cst_74 : f32 to vector<8x512xf32>
    %128 = arith.maximumf %126, %127 : vector<8x512xf32>
    %129 = arith.truncf %128 : vector<8x512xf32> to vector<8x512xbf16>
    %c0_75 = arith.constant 0 : index
    %c0_76 = arith.constant 0 : index
    %130 = vector.load %arg17[%c0_75, %c0_76] : memref<512x256xbf16, #tpu.memory_space<vmem>>, vector<512x256xbf16>
    %cst_77 = arith.constant dense<0.000000e+00> : vector<8x256xf32>
    %131 = tpu.matmul %129, %130, %cst_77 {dimension_numbers = #tpu.dot_dimension_numbers<[1], [0], [0], [1], [0, 0, 1, 1], [], []>} : vector<8x512xbf16>, vector<512x256xbf16>, vector<8x256xf32> -> vector<8x256xf32>
    %c0_78 = arith.constant 0 : index
    %c0_79 = arith.constant 0 : index
    %132 = vector.load %arg18[%c0_78, %c0_79] : memref<1x256xf32, #tpu.memory_space<vmem>>, vector<1x256xf32>
    %133 = vector.broadcast %132 : vector<1x256xf32> to vector<8x256xf32>
    %134 = arith.addf %131, %133 : vector<8x256xf32>
    %c0_80 = arith.constant 0 : index
    %c0_81 = arith.constant 0 : index
    %135 = vector.load %arg19[%c0_80, %c0_81] : memref<1x256xf32, #tpu.memory_space<vmem>>, vector<1x256xf32>
    %136 = vector.broadcast %135 : vector<1x256xf32> to vector<8x256xf32>
    %137 = arith.mulf %134, %136 : vector<8x256xf32>
    %c0_82 = arith.constant 0 : index
    %c0_83 = arith.constant 0 : index
    %138 = vector.load %arg20[%c0_82, %c0_83] : memref<1x256xf32, #tpu.memory_space<vmem>>, vector<1x256xf32>
    %139 = vector.broadcast %138 : vector<1x256xf32> to vector<8x256xf32>
    %140 = arith.addf %137, %139 : vector<8x256xf32>
    %cst_84 = arith.constant 0.000000e+00 : f32
    %141 = vector.broadcast %cst_84 : f32 to vector<8x256xf32>
    %142 = arith.maximumf %140, %141 : vector<8x256xf32>
    %143 = arith.truncf %142 : vector<8x256xf32> to vector<8x256xbf16>
    %c0_85 = arith.constant 0 : index
    %c0_86 = arith.constant 0 : index
    %144 = vector.load %arg21[%c0_85, %c0_86] : memref<256x128xbf16, #tpu.memory_space<vmem>>, vector<256x128xbf16>
    %cst_87 = arith.constant dense<0.000000e+00> : vector<8x128xf32>
    %145 = tpu.matmul %143, %144, %cst_87 {dimension_numbers = #tpu.dot_dimension_numbers<[1], [0], [0], [1], [0, 0, 1, 1], [], []>} : vector<8x256xbf16>, vector<256x128xbf16>, vector<8x128xf32> -> vector<8x128xf32>
    %c0_88 = arith.constant 0 : index
    %c0_89 = arith.constant 0 : index
    %146 = vector.load %arg22[%c0_88, %c0_89] : memref<1x128xf32, #tpu.memory_space<vmem>>, vector<1x128xf32>
    %147 = vector.broadcast %146 : vector<1x128xf32> to vector<8x128xf32>
    %148 = arith.addf %145, %147 : vector<8x128xf32>
    %c0_90 = arith.constant 0 : index
    %c0_91 = arith.constant 0 : index
    %149 = vector.load %arg23[%c0_90, %c0_91] : memref<1x128xf32, #tpu.memory_space<vmem>>, vector<1x128xf32>
    %150 = vector.broadcast %149 : vector<1x128xf32> to vector<8x128xf32>
    %151 = arith.mulf %148, %150 : vector<8x128xf32>
    %c0_92 = arith.constant 0 : index
    %c0_93 = arith.constant 0 : index
    %152 = vector.load %arg24[%c0_92, %c0_93] : memref<1x128xf32, #tpu.memory_space<vmem>>, vector<1x128xf32>
    %153 = vector.broadcast %152 : vector<1x128xf32> to vector<8x128xf32>
    %154 = arith.addf %151, %153 : vector<8x128xf32>
    %cst_94 = arith.constant 0.000000e+00 : f32
    %155 = vector.broadcast %cst_94 : f32 to vector<8x128xf32>
    %156 = arith.maximumf %154, %155 : vector<8x128xf32>
    %157 = arith.truncf %156 : vector<8x128xf32> to vector<8x128xbf16>
    %c0_95 = arith.constant 0 : index
    %c0_96 = arith.constant 0 : index
    %158 = vector.load %arg25[%c0_95, %c0_96] : memref<128x128xbf16, #tpu.memory_space<vmem>>, vector<128x128xbf16>
    %cst_97 = arith.constant dense<0.000000e+00> : vector<8x128xf32>
    %159 = tpu.matmul %157, %158, %cst_97 {dimension_numbers = #tpu.dot_dimension_numbers<[1], [0], [0], [1], [0, 0, 1, 1], [], []>} : vector<8x128xbf16>, vector<128x128xbf16>, vector<8x128xf32> -> vector<8x128xf32>
    %c0_98 = arith.constant 0 : index
    %c0_99 = arith.constant 0 : index
    %160 = vector.load %arg26[%c0_98, %c0_99] : memref<1x128xf32, #tpu.memory_space<vmem>>, vector<1x128xf32>
    %161 = vector.broadcast %160 : vector<1x128xf32> to vector<8x128xf32>
    %162 = arith.addf %159, %161 : vector<8x128xf32>
    %c0_100 = arith.constant 0 : index
    %c0_101 = arith.constant 0 : index
    %163 = vector.load %arg27[%c0_100, %c0_101] : memref<8x128xf32, #tpu.memory_space<vmem>>, vector<8x128xf32>
    tpu.vector_store %arg27[%c0_100, %c0_101], %162 {strides = array<i32>} : memref<8x128xf32, #tpu.memory_space<vmem>>, vector<8x128xf32>,
    return
  }
  func.func @transform_0(%arg0: i32) -> (i32, i32, i32) {
    %c0_i32 = arith.constant 0 : i32
    %c0_i32_0 = arith.constant 0 : i32
    %c0_i32_1 = arith.constant 0 : i32
    return %c0_i32, %arg0, %c0_i32_0 : i32, i32, i32
  }
  func.func @transform_1(%arg0: i32) -> (i32, i32) {
    %c0_i32 = arith.constant 0 : i32
    %c0_i32_0 = arith.constant 0 : i32
    %c0_i32_1 = arith.constant 0 : i32
    return %c0_i32, %c0_i32_0 : i32, i32
  }
  func.func @transform_2(%arg0: i32) -> (i32, i32) {
    %c0_i32 = arith.constant 0 : i32
    %c0_i32_0 = arith.constant 0 : i32
    %c0_i32_1 = arith.constant 0 : i32
    return %c0_i32, %c0_i32_0 : i32, i32
  }
  func.func @transform_3(%arg0: i32) -> (i32, i32) {
    %c0_i32 = arith.constant 0 : i32
    %c0_i32_0 = arith.constant 0 : i32
    %c0_i32_1 = arith.constant 0 : i32
    return %c0_i32, %c0_i32_0 : i32, i32
  }
  func.func @transform_4(%arg0: i32) -> (i32, i32) {
    %c0_i32 = arith.constant 0 : i32
    %c0_i32_0 = arith.constant 0 : i32
    %c0_i32_1 = arith.constant 0 : i32
    return %c0_i32, %c0_i32_0 : i32, i32
  }
  func.func @transform_5(%arg0: i32) -> (i32, i32) {
    %c0_i32 = arith.constant 0 : i32
    %c0_i32_0 = arith.constant 0 : i32
    %c0_i32_1 = arith.constant 0 : i32
    return %c0_i32, %c0_i32_0 : i32, i32
  }
  func.func @transform_6(%arg0: i32) -> (i32, i32) {
    %c0_i32 = arith.constant 0 : i32
    %c0_i32_0 = arith.constant 0 : i32
    %c0_i32_1 = arith.constant 0 : i32
    return %c0_i32, %c0_i32_0 : i32, i32
  }
  func.func @transform_7(%arg0: i32) -> (i32, i32) {
    %c0_i32 = arith.constant 0 : i32
    %c0_i32_0 = arith.constant 0 : i32
    %c0_i32_1 = arith.constant 0 : i32
    return %c0_i32, %c0_i32_0 : i32, i32
  }
  func.func @transform_8(%arg0: i32) -> (i32, i32) {
    %c0_i32 = arith.constant 0 : i32
    %c0_i32_0 = arith.constant 0 : i32
    %c0_i32_1 = arith.constant 0 : i32
    return %c0_i32, %c0_i32_0 : i32, i32
  }
  func.func @transform_9(%arg0: i32) -> (i32, i32) {
    %c0_i32 = arith.constant 0 : i32
    %c0_i32_0 = arith.constant 0 : i32
    %c0_i32_1 = arith.constant 0 : i32
    return %c0_i32, %c0_i32_0 : i32, i32
  }
  func.func @transform_10(%arg0: i32) -> (i32, i32) {
    %c0_i32 = arith.constant 0 : i32
    %c0_i32_0 = arith.constant 0 : i32
    %c0_i32_1 = arith.constant 0 : i32
    return %c0_i32, %c0_i32_0 : i32, i32
  }
  func.func @transform_11(%arg0: i32) -> (i32, i32) {
    %c0_i32 = arith.constant 0 : i32
    %c0_i32_0 = arith.constant 0 : i32
    %c0_i32_1 = arith.constant 0 : i32
    return %c0_i32, %c0_i32_0 : i32, i32
  }
  func.func @transform_12(%arg0: i32) -> (i32, i32) {
    %c0_i32 = arith.constant 0 : i32
    %c0_i32_0 = arith.constant 0 : i32
    %c0_i32_1 = arith.constant 0 : i32
    return %c0_i32, %c0_i32_0 : i32, i32
  }
  func.func @transform_13(%arg0: i32) -> (i32, i32) {
    %c0_i32 = arith.constant 0 : i32
    %c0_i32_0 = arith.constant 0 : i32
    %c0_i32_1 = arith.constant 0 : i32
    return %c0_i32, %c0_i32_0 : i32, i32
  }
  func.func @transform_14(%arg0: i32) -> (i32, i32) {
    %c0_i32 = arith.constant 0 : i32
    %c0_i32_0 = arith.constant 0 : i32
    %c0_i32_1 = arith.constant 0 : i32
    return %c0_i32, %c0_i32_0 : i32, i32
  }
  func.func @transform_15(%arg0: i32) -> (i32, i32) {
    %c0_i32 = arith.constant 0 : i32
    %c0_i32_0 = arith.constant 0 : i32
    %c0_i32_1 = arith.constant 0 : i32
    return %c0_i32, %c0_i32_0 : i32, i32
  }
  func.func @transform_16(%arg0: i32) -> (i32, i32) {
    %c0_i32 = arith.constant 0 : i32
    %c0_i32_0 = arith.constant 0 : i32
    %c0_i32_1 = arith.constant 0 : i32
    return %c0_i32, %c0_i32_0 : i32, i32
  }
  func.func @transform_17(%arg0: i32) -> (i32, i32) {
    %c0_i32 = arith.constant 0 : i32
    %c0_i32_0 = arith.constant 0 : i32
    %c0_i32_1 = arith.constant 0 : i32
    return %c0_i32, %c0_i32_0 : i32, i32
  }
  func.func @transform_18(%arg0: i32) -> (i32, i32) {
    %c0_i32 = arith.constant 0 : i32
    %c0_i32_0 = arith.constant 0 : i32
    %c0_i32_1 = arith.constant 0 : i32
    return %c0_i32, %c0_i32_0 : i32, i32
  }
  func.func @transform_19(%arg0: i32) -> (i32, i32) {
    %c0_i32 = arith.constant 0 : i32
    %c0_i32_0 = arith.constant 0 : i32
    %c0_i32_1 = arith.constant 0 : i32
    return %c0_i32, %c0_i32_0 : i32, i32
  }
  func.func @transform_20(%arg0: i32) -> (i32, i32) {
    %c0_i32 = arith.constant 0 : i32
    %c0_i32_0 = arith.constant 0 : i32
    %c0_i32_1 = arith.constant 0 : i32
    return %c0_i32, %c0_i32_0 : i32, i32
  }
  func.func @transform_21(%arg0: i32) -> (i32, i32) {
    %c0_i32 = arith.constant 0 : i32
    %c0_i32_0 = arith.constant 0 : i32
    %c0_i32_1 = arith.constant 0 : i32
    return %c0_i32, %c0_i32_0 : i32, i32
  }
  func.func @transform_22(%arg0: i32) -> (i32, i32) {
    %c0_i32 = arith.constant 0 : i32
    %c0_i32_0 = arith.constant 0 : i32
    %c0_i32_1 = arith.constant 0 : i32
    return %c0_i32, %c0_i32_0 : i32, i32
  }
  func.func @transform_23(%arg0: i32) -> (i32, i32) {
    %c0_i32 = arith.constant 0 : i32
    %c0_i32_0 = arith.constant 0 : i32
    %c0_i32_1 = arith.constant 0 : i32
    return %c0_i32, %c0_i32_0 : i32, i32
  }
  func.func @transform_24(%arg0: i32) -> (i32, i32) {
    %c0_i32 = arith.constant 0 : i32
    %c0_i32_0 = arith.constant 0 : i32
    %c0_i32_1 = arith.constant 0 : i32
    return %c0_i32, %c0_i32_0 : i32, i32
  }
  func.func @transform_25(%arg0: i32) -> (i32, i32) {
    %c0_i32 = arith.constant 0 : i32
    %c0_i32_0 = arith.constant 0 : i32
    %c0_i32_1 = arith.constant 0 : i32
    return %c0_i32, %c0_i32_0 : i32, i32
  }
  func.func @transform_26(%arg0: i32) -> (i32, i32) {
    %c0_i32 = arith.constant 0 : i32
    %c0_i32_0 = arith.constant 0 : i32
    return %arg0, %c0_i32 : i32, i32
  }
}

</mosaic_0001>

<bundles_post_ra>
// kernel: tpu_custom_call.1
= control target key start
LH: loop header
LB: loop body
LE: loop exit
PB: predicated region body
PF: predicated region fallthrough
CT: control target
= control target key end

     0   :  { %s16779_s0 = inlined_call_operand.hbm [shape: bf16[6,8,512], index: 0, kind: input, shape index: {}]   ;;  %s16780_s1 = inlined_call_operand.hbm [shape: bf16[512,256], index: 1, kind: input, shape index: {}]   ;;  %s16781_s2 = inlined_call_operand.hbm [shape: bf16[768,768], index: 2, kind: input, shape index: {}]   ;;  %s16782_s3 = inlined_call_operand.hbm [shape: f32[1,768], index: 3, kind: input, shape index: {}]   ;;  %s16783_s4 = inlined_call_operand.hbm [shape: f32[3,1536], index: 4, kind: input, shape index: {}]   ;;  %s16784_s5 = inlined_call_operand.hbm [shape: f32[1,1536], index: 5, kind: input, shape index: {}]   ;;  %s16785_s6 = inlined_call_operand.vmem [shape: bf16[1536,64], index: 6, kind: input, shape index: {}]   ;;  %s16786_s7 = inlined_call_operand.vmem [shape: bf16[768,64], index: 7, kind: input, shape index: {}]   ;;  %s16787_s8 = inlined_call_operand.hbm [shape: f32[1,64], index: 8, kind: input, shape index: {}]   ;;  %s16788_s9 = inlined_call_operand.hbm [shape: bf16[64,128], index: 9, kind: input, shape index: {}]   ;;  %s16789_s10 = inlined_call_operand.hbm [shape: f32[1,128], index: 10, kind: input, shape index: {}]   ;;  %s16790_s11 = inlined_call_operand.hbm [shape: bf16[1536,512], index: 11, kind: input, shape index: {}]   ;;  %s16791_s12 = inlined_call_operand.hbm [shape: bf16[768,512], index: 12, kind: input, shape index: {}]   ;;  %s16792_s13 = inlined_call_operand.hbm [shape: f32[1,512], index: 13, kind: input, shape index: {}]   ;;  %s16793_s14 = inlined_call_operand.hbm [shape: f32[1,512], index: 14, kind: input, shape index: {}]   ;;  %s16794_s15 = inlined_call_operand.hbm [shape: f32[1,512], index: 15, kind: input, shape index: {}]   ;;  %s16795_s16 = inlined_call_operand.hbm [shape: bf16[512,256], index: 16, kind: input, shape index: {}]   ;;  %s16796_s17 = inlined_call_operand.hbm [shape: f32[1,256], index: 17, kind: input, shape index: {}]   ;;  %s16797_s18 = inlined_call_operand.hbm [shape: f32[1,256], index: 18, kind: input, shape index: {}]   ;;  %s16798_s19 = inlined_call_operand.hbm [shape: f32[1,256], index: 19, kind: input, shape index: {}]   ;;  %s16799_s20 = inlined_call_operand.hbm [shape: bf16[256,128], index: 20, kind: input, shape index: {}]   ;;  %s16800_s21 = inlined_call_operand.hbm [shape: f32[1,128], index: 21, kind: input, shape index: {}]   ;;  %s16801_s22 = inlined_call_operand.hbm [shape: f32[1,128], index: 22, kind: input, shape index: {}]   ;;  %s16802_s23 = inlined_call_operand.hbm [shape: f32[1,128], index: 23, kind: input, shape index: {}]   ;;  %s16803_s24 = inlined_call_operand.hbm [shape: bf16[128,128], index: 24, kind: input, shape index: {}]   ;;  %s16804_s25 = inlined_call_operand.hbm [shape: f32[1,128], index: 25, kind: input, shape index: {}]   ;;  %s16805_s26 = inlined_call_operand.hbm [shape: f32[8,128], index: 26, kind: output, shape index: {}]  }
   0x1   :  { %16821 = sst [smem:[#allocation56_spill]] %s16779_s0 }
   0x2   :  { %16822 = sst [smem:[#allocation57_spill]] %s16780_s1 }
   0x3   :  { %16823 = sst [smem:[#allocation58_spill]] %s16781_s2 }
   0x4   :  { %16824 = sst [smem:[#allocation59_spill]] %s16782_s3 }
   0x5   :  { %16825 = sst [smem:[#allocation60_spill]] %s16783_s4 }
   0x6   :  { %16826 = sst [smem:[#allocation61_spill]] %s16784_s5 }
   0x7   :  { %16827 = sst [smem:[#allocation62_spill]] %s16785_s6 }
   0x8   :  { %16828 = sst [smem:[#allocation63_spill]] %s16786_s7 }
   0x9   :  { %16829 = sst [smem:[#allocation64_spill]] %s16787_s8 }
   0xa   :  { %16830 = sst [smem:[#allocation65_spill]] %s16788_s9 }
   0xb   :  { %16831 = sst [smem:[#allocation66_spill]] %s16789_s10 }
   0xc   :  { %16832 = sst [smem:[#allocation67_spill]] %s16803_s24 }
   0xd   :  { %16833 = sst [smem:[#allocation68_spill]] %s16804_s25 }
   0xe   :  { %16834 = sst [smem:[#allocation69_spill]] %s16805_s26 }
   0xf   :  { %31 = vsyncpa [#allocation4], 0 }
  0x10   :  { %32 = vsyncpa [#allocation7], 0 }
  0x11   :  { %33 = vsyncpa [#allocation10], 0 }
  0x12   :  { %34 = vsyncpa [#allocation13], 0 }
  0x13   :  { %35 = vsyncpa [#allocation16], 0 }
  0x14   :  { %36 = vsyncpa [#allocation19], 0 }
  0x15   :  { %37 = vsyncpa [#allocation22], 0 }
  0x16   :  { %38 = vsyncpa [#allocation25], 0 }
  0x17   :  { %39 = vsyncpa [#allocation28], 0 }
  0x18   :  { %40 = vsyncpa [#allocation31], 0 }
  0x19   :  { %41 = vsyncpa [#allocation34], 0 }
  0x1a   :  { %42 = vsyncpa [#allocation37], 0 }
  0x1b   :  { %43 = vsyncpa [#allocation40], 0 }
  0x1c   :  { %44 = vsyncpa [#allocation5], 0  ;;  %s15170_s27 = smov [#allocation6]   ;;  %s16835_s8 = sld [smem:[#allocation57_spill]] }
  0x1d   :  { %s62_s3 = sshll.u32 %s15170_s27, 4  ;;  %s63_s3 = int_to_ptr.vmem [resolvable:$true] %s62_s3 }
  0x22   :  { %s14592_s4 = scalar_lea.hbm %s16835_s8, 8192 }
  0x23   :  { %p14593_p0 = scmp.ne.s32.totalorder %s16835_s8, %s14592_s4  ;;  %p14596_p1 = scmp.lt.u32.totalorder %s14592_s4, %s16835_s8 }
  0x25   :  { %p14598_p2 = pnand %p14596_p1, %p14593_p0 }
  0x27   :  { %14601 = shalt.err (!%p14598_p2)
}
  0x28   :  { %s14602_s2 = scalar_lea.vmem %s63_s3, 8192  ;;  %p14607_p4 = scmp.lt.s32.totalorder %s63_s3, %s63_s3 }
  0x29   :  { %p14603_p3 = scmp.ne.s32.totalorder %s63_s3, %s14602_s2  ;;  %p14608_p5 = scmp.lt.s32.totalorder %s14602_s2, %s14602_s2 }
  0x2b   :  { %p14609_p6 = por %p14608_p5, %p14607_p4 }
  0x2d   :  { %p14610_p7 = pnand %p14609_p6, %p14603_p3 }
  0x2f   :  { %14613 = shalt.err (!%p14610_p7)
}
  0x30   :  { %s16820_s5 = smov 128   ;;  %s15172_s10 = smov 8  }
  0x31   :  { %68 = dma.hbm_to_vmem [thread:$0]  %s16835_s8, 8192, %s63_s3, [#allocation7], %s16820_s5, %s16820_s5, %s15172_s10  }
  0x32   :  { %s15173_s27 = smov [#allocation9]   ;;  %s15174_s28 = smov [#allocation12]  }
  0x33   :  { %s87_s7 = sshll.u32 %s15173_s27, 4  ;;  %s107_s4 = sshll.u32 %s15174_s28, 4  ;;  %s88_s7 = int_to_ptr.vmem [resolvable:$true] %s87_s7  ;;  %s108_s4 = int_to_ptr.vmem [resolvable:$true] %s107_s4 }
  0x34   :  { %s16836_s9 = sld [smem:[#allocation59_spill]] }
  0x3a   :  { %s14614_s30 = scalar_lea.hbm %s16836_s9, 96 }
  0x3b   :  { %p14615_p8 = scmp.ne.s32.totalorder %s16836_s9, %s14614_s30  ;;  %p14618_p9 = scmp.lt.u32.totalorder %s14614_s30, %s16836_s9 }
  0x3d   :  { %p14620_p10 = pnand %p14618_p9, %p14615_p8 }
  0x3f   :  { %14623 = shalt.err (!%p14620_p10)
}
  0x40   :  { %s14624_s3 = scalar_lea.vmem %s88_s7, 96  ;;  %p14629_p12 = scmp.lt.s32.totalorder %s88_s7, %s88_s7 }
  0x41   :  { %p14625_p11 = scmp.ne.s32.totalorder %s88_s7, %s14624_s3  ;;  %p14630_p13 = scmp.lt.s32.totalorder %s14624_s3, %s14624_s3 }
  0x43   :  { %p14631_p0 = por %p14630_p13, %p14629_p12 }
  0x45   :  { %p14632_p1 = pnand %p14631_p0, %p14625_p11 }
  0x47   :  { %14635 = shalt.err (!%p14632_p1)
}
  0x48   :  { %90 = dma.hbm_to_vmem [thread:$0]  %s16836_s9, 96, %s88_s7, [#allocation10]  }
  0x49   :  { %s16837_s27 = sld [smem:[#allocation61_spill]] }
  0x4f   :  { %s14636_s28 = scalar_lea.hbm %s16837_s27, 192 }
  0x50   :  { %p14637_p2 = scmp.ne.s32.totalorder %s16837_s27, %s14636_s28  ;;  %p14640_p3 = scmp.lt.u32.totalorder %s14636_s28, %s16837_s27 }
  0x52   :  { %p14642_p4 = pnand %p14640_p3, %p14637_p2 }
  0x54   :  { %14645 = shalt.err (!%p14642_p4)
}
  0x55   :  { %s14646_s30 = scalar_lea.vmem %s108_s4, 192  ;;  %p14651_p6 = scmp.lt.s32.totalorder %s108_s4, %s108_s4 }
  0x56   :  { %p14647_p5 = scmp.ne.s32.totalorder %s108_s4, %s14646_s30  ;;  %p14652_p7 = scmp.lt.s32.totalorder %s14646_s30, %s14646_s30 }
  0x58   :  { %p14653_p8 = por %p14652_p7, %p14651_p6 }
  0x5a   :  { %p14654_p9 = pnand %p14653_p8, %p14647_p5 }
  0x5c   :  { %14657 = shalt.err (!%p14654_p9)
}
  0x5d   :  { %110 = dma.hbm_to_vmem [thread:$0]  %s16837_s27, 192, %s108_s4, [#allocation13]  }
  0x5e   :  { %s15175_s2 = smov [#allocation15]   ;;  %s16838_s26 = sld [smem:[#allocation65_spill]] }
  0x5f   :  { %s130_s3 = sshll.u32 %s15175_s2, 4  ;;  %s131_s3 = int_to_ptr.vmem [resolvable:$true] %s130_s3 }
  0x64   :  { %s14658_s1 = scalar_lea.hbm %s16838_s26, 512 }
  0x65   :  { %p14659_p10 = scmp.ne.s32.totalorder %s16838_s26, %s14658_s1  ;;  %p14662_p11 = scmp.lt.u32.totalorder %s14658_s1, %s16838_s26 }
  0x67   :  { %p14664_p12 = pnand %p14662_p11, %p14659_p10 }
  0x69   :  { %14667 = shalt.err (!%p14664_p12)
}
  0x6a   :  { %s14668_s0 = scalar_lea.vmem %s131_s3, 512  ;;  %p14673_p0 = scmp.lt.s32.totalorder %s131_s3, %s131_s3 }
  0x6b   :  { %p14669_p13 = scmp.ne.s32.totalorder %s131_s3, %s14668_s0  ;;  %p14674_p1 = scmp.lt.s32.totalorder %s14668_s0, %s14668_s0 }
  0x6d   :  { %p14675_p2 = por %p14674_p1, %p14673_p0 }
  0x6f   :  { %p14676_p3 = pnand %p14675_p2, %p14669_p13 }
  0x71   :  { %14679 = shalt.err (!%p14676_p3)
}
  0x72   :  { %s15176_s4 = smov 64   ;;  %s15177_s27 = smov 4  }
  0x73   :  { %136 = dma.hbm_to_vmem [thread:$0]  %s16838_s26, 512, %s131_s3, [#allocation16], %s15176_s4, %s15176_s4, %s15177_s27  }
  0x74   :  { %s15178_s9 = smov [#allocation18]   ;;  %s15179_s8 = smov [#allocation21]  }
  0x75   :  { %s152_s2 = sshll.u32 %s15178_s9, 4  ;;  %s177_s6 = sshll.u32 %s15179_s8, 4  ;;  %s153_s2 = int_to_ptr.vmem [resolvable:$true] %s152_s2  ;;  %s178_s6 = int_to_ptr.vmem [resolvable:$true] %s177_s6 }
  0x76   :  { %s14680_s24 = scalar_lea.hbm %s16790_s11, 49152 }
  0x77   :  { %p14681_p4 = scmp.ne.s32.totalorder %s16790_s11, %s14680_s24  ;;  %p14684_p5 = scmp.lt.u32.totalorder %s14680_s24, %s16790_s11 }
  0x79   :  { %p14686_p6 = pnand %p14684_p5, %p14681_p4 }
  0x7b   :  { %14689 = shalt.err (!%p14686_p6)
}
  0x7c   :  { %s14690_s3 = scalar_lea.vmem %s153_s2, 49152  ;;  %p14695_p8 = scmp.lt.s32.totalorder %s153_s2, %s153_s2 }
  0x7d   :  { %p14691_p7 = scmp.ne.s32.totalorder %s153_s2, %s14690_s3  ;;  %p14696_p9 = scmp.lt.s32.totalorder %s14690_s3, %s14690_s3 }
  0x7f   :  { %p14697_p10 = por %p14696_p9, %p14695_p8 }
  0x81   :  { %p14698_p11 = pnand %p14697_p10, %p14691_p7 }
  0x83   :  { %14701 = shalt.err (!%p14698_p11)
}
  0x84   :  { %s15180_s26 = smov 256   ;;  %s15181_s30 = smov 16  }
  0x85   :  { %158 = dma.hbm_to_vmem [thread:$0]  %s16790_s11, 49152, %s153_s2, [#allocation19], %s15180_s26, %s15180_s26, %s15181_s30  }
  0x86   :  { %s14702_s1 = scalar_lea.hbm %s16792_s13, 64 }
  0x87   :  { %p14703_p12 = scmp.ne.s32.totalorder %s16792_s13, %s14702_s1  ;;  %p14706_p13 = scmp.lt.u32.totalorder %s14702_s1, %s16792_s13 }
  0x89   :  { %p14708_p0 = pnand %p14706_p13, %p14703_p12 }
  0x8b   :  { %14711 = shalt.err (!%p14708_p0)
}
  0x8c   :  { %s14712_s0 = scalar_lea.vmem %s178_s6, 64  ;;  %p14717_p2 = scmp.lt.s32.totalorder %s178_s6, %s178_s6 }
  0x8d   :  { %p14713_p1 = scmp.ne.s32.totalorder %s178_s6, %s14712_s0  ;;  %p14718_p3 = scmp.lt.s32.totalorder %s14712_s0, %s14712_s0 }
  0x8f   :  { %p14719_p4 = por %p14718_p3, %p14717_p2 }
  0x91   :  { %p14720_p5 = pnand %p14719_p4, %p14713_p1 }
  0x93   :  { %14723 = shalt.err (!%p14720_p5)
}
  0x94   :  { %180 = dma.hbm_to_vmem [thread:$0]  %s16792_s13, 64, %s178_s6, [#allocation22]  }
  0x95   :  { %s15182_s3 = smov [#allocation24]   ;;  %s15183_s9 = smov [#allocation27]  }
  0x96   :  { %s197_s7 = sshll.u32 %s15182_s3, 4  ;;  %s219_s5 = sshll.u32 %s15183_s9, 4  ;;  %s198_s7 = int_to_ptr.vmem [resolvable:$true] %s197_s7  ;;  %s220_s5 = int_to_ptr.vmem [resolvable:$true] %s219_s5 }
  0x97   :  { %s14724_s28 = scalar_lea.hbm %s16794_s15, 64 }
  0x98   :  { %p14725_p6 = scmp.ne.s32.totalorder %s16794_s15, %s14724_s28  ;;  %p14728_p7 = scmp.lt.u32.totalorder %s14724_s28, %s16794_s15 }
  0x9a   :  { %p14730_p8 = pnand %p14728_p7, %p14725_p6 }
  0x9c   :  { %14733 = shalt.err (!%p14730_p8)
}
  0x9d   :  { %s14734_s13 = scalar_lea.vmem %s198_s7, 64  ;;  %p14739_p10 = scmp.lt.s32.totalorder %s198_s7, %s198_s7 }
  0x9e   :  { %p14735_p9 = scmp.ne.s32.totalorder %s198_s7, %s14734_s13  ;;  %p14740_p11 = scmp.lt.s32.totalorder %s14734_s13, %s14734_s13 }
  0xa0   :  { %p14741_p12 = por %p14740_p11, %p14739_p10 }
  0xa2   :  { %p14742_p13 = pnand %p14741_p12, %p14735_p9 }
  0xa4   :  { %14745 = shalt.err (!%p14742_p13)
}
  0xa5   :  { %200 = dma.hbm_to_vmem [thread:$0]  %s16794_s15, 64, %s198_s7, [#allocation25]  }
  0xa6   :  { %s14746_s9 = scalar_lea.hbm %s16796_s17, 32 }
  0xa7   :  { %p14747_p0 = scmp.ne.s32.totalorder %s16796_s17, %s14746_s9  ;;  %p14750_p1 = scmp.lt.u32.totalorder %s14746_s9, %s16796_s17 }
  0xa9   :  { %p14752_p2 = pnand %p14750_p1, %p14747_p0 }
  0xab   :  { %14755 = shalt.err (!%p14752_p2)
}
  0xac   :  { %s14756_s25 = scalar_lea.vmem %s220_s5, 32  ;;  %p14761_p4 = scmp.lt.s32.totalorder %s220_s5, %s220_s5 }
  0xad   :  { %p14757_p3 = scmp.ne.s32.totalorder %s220_s5, %s14756_s25  ;;  %p14762_p5 = scmp.lt.s32.totalorder %s14756_s25, %s14756_s25 }
  0xaf   :  { %p14763_p6 = por %p14762_p5, %p14761_p4 }
  0xb1   :  { %p14764_p7 = pnand %p14763_p6, %p14757_p3 }
  0xb3   :  { %14767 = shalt.err (!%p14764_p7)
}
  0xb4   :  { %222 = dma.hbm_to_vmem [thread:$0]  %s16796_s17, 32, %s220_s5, [#allocation28]  }
  0xb5   :  { %s15184_s29 = smov [#allocation30]   ;;  %s15185_s13 = smov [#allocation33]  }
  0xb6   :  { %s239_s0 = sshll.u32 %s15184_s29, 4  ;;  %s261_s6 = sshll.u32 %s15185_s13, 4  ;;  %s240_s0 = int_to_ptr.vmem [resolvable:$true] %s239_s0  ;;  %s262_s6 = int_to_ptr.vmem [resolvable:$true] %s261_s6 }
  0xb7   :  { %s14768_s3 = scalar_lea.hbm %s16798_s19, 32 }
  0xb8   :  { %p14769_p8 = scmp.ne.s32.totalorder %s16798_s19, %s14768_s3  ;;  %p14772_p9 = scmp.lt.u32.totalorder %s14768_s3, %s16798_s19 }
  0xba   :  { %p14774_p10 = pnand %p14772_p9, %p14769_p8 }
  0xbc   :  { %14777 = shalt.err (!%p14774_p10)
}
  0xbd   :  { %s14778_s17 = scalar_lea.vmem %s240_s0, 32  ;;  %p14783_p12 = scmp.lt.s32.totalorder %s240_s0, %s240_s0 }
  0xbe   :  { %p14779_p11 = scmp.ne.s32.totalorder %s240_s0, %s14778_s17  ;;  %p14784_p13 = scmp.lt.s32.totalorder %s14778_s17, %s14778_s17 }
  0xc0   :  { %p14785_p0 = por %p14784_p13, %p14783_p12 }
  0xc2   :  { %p14786_p1 = pnand %p14785_p0, %p14779_p11 }
  0xc4   :  { %14789 = shalt.err (!%p14786_p1)
}
  0xc5   :  { %242 = dma.hbm_to_vmem [thread:$0]  %s16798_s19, 32, %s240_s0, [#allocation31]  }
  0xc6   :  { %s14790_s7 = scalar_lea.hbm %s16800_s21, 16 }
  0xc7   :  { %p14791_p2 = scmp.ne.s32.totalorder %s16800_s21, %s14790_s7  ;;  %p14794_p3 = scmp.lt.u32.totalorder %s14790_s7, %s16800_s21 }
  0xc9   :  { %p14796_p4 = pnand %p14794_p3, %p14791_p2 }
  0xcb   :  { %14799 = shalt.err (!%p14796_p4)
}
  0xcc   :  { %s14800_s3 = scalar_lea.vmem %s262_s6, 16  ;;  %s14804_s9 = scalar_lea.vmem %s262_s6, 32 }
  0xcd   :  { %p14801_p5 = scmp.ne.s32.totalorder %s262_s6, %s14800_s3  ;;  %p14805_p6 = scmp.lt.s32.totalorder %s262_s6, %s262_s6 }
  0xce   :  { %p14806_p7 = scmp.lt.s32.totalorder %s14804_s9, %s14800_s3 }
  0xd0   :  { %p14807_p8 = por %p14806_p7, %p14805_p6 }
  0xd2   :  { %p14808_p9 = pnand %p14807_p8, %p14801_p5 }
  0xd4   :  { %14811 = shalt.err (!%p14808_p9)
}
  0xd5   :  { %264 = dma.hbm_to_vmem [thread:$0]  %s16800_s21, 16, %s262_s6, [#allocation34]  }
  0xd6   :  { %s15186_s8 = smov [#allocation36]   ;;  %s15187_s28 = smov [#allocation3]  }
  0xd7   :  { %s281_s1 = sshll.u32 %s15186_s8, 4  ;;  %s50_s17 = sshll.u32 %s15187_s28, 4  ;;  %s282_s1 = int_to_ptr.vmem [resolvable:$true] %s281_s1  ;;  %s15473_s17 = int_to_ptr.vmem [resolvable:$true] %s50_s17 }
  0xd8   :  { %s14812_s25 = scalar_lea.hbm %s16802_s23, 16 }
  0xd9   :  { %p14813_p10 = scmp.ne.s32.totalorder %s16802_s23, %s14812_s25  ;;  %p14816_p11 = scmp.lt.u32.totalorder %s14812_s25, %s16802_s23 }
  0xdb   :  { %p14818_p12 = pnand %p14816_p11, %p14813_p10 }
  0xdd   :  { %14821 = shalt.err (!%p14818_p12)
}
  0xde   :  { %s14822_s21 = scalar_lea.vmem %s282_s1, 16  ;;  %s14826_s6 = scalar_lea.vmem %s282_s1, 32 }
  0xdf   :  { %p14823_p13 = scmp.ne.s32.totalorder %s282_s1, %s14822_s21  ;;  %p14827_p0 = scmp.lt.s32.totalorder %s282_s1, %s282_s1 }
  0xe0   :  { %p14828_p1 = scmp.lt.s32.totalorder %s14826_s6, %s14822_s21 }
  0xe2   :  { %p14829_p2 = por %p14828_p1, %p14827_p0 }
  0xe4   :  { %p14830_p3 = pnand %p14829_p2, %p14823_p13 }
  0xe6   :  { %14833 = shalt.err (!%p14830_p3)
}
  0xe7   :  { %284 = dma.hbm_to_vmem [thread:$0]  %s16802_s23, 16, %s282_s1, [#allocation37]  }
  0xe8   :  { %s16839_s19 = sld [smem:[#allocation56_spill]] }
  0xee   :  { %s14834_s0 = scalar_lea.hbm %s16839_s19, 1536 }
  0xef   :  { %p14835_p4 = scmp.ne.s32.totalorder %s16839_s19, %s14834_s0  ;;  %p14838_p5 = scmp.lt.u32.totalorder %s14834_s0, %s16839_s19 }
  0xf1   :  { %p14840_p6 = pnand %p14838_p5, %p14835_p4 }
  0xf3   :  { %14843 = shalt.err (!%p14840_p6)
}
  0xf4   :  { %s14844_s25 = scalar_lea.vmem %s15473_s17, 1536  ;;  %p14849_p8 = scmp.lt.s32.totalorder %s15473_s17, %s15473_s17 }
  0xf5   :  { %p14845_p7 = scmp.ne.s32.totalorder %s15473_s17, %s14844_s25  ;;  %p14850_p9 = scmp.lt.s32.totalorder %s14844_s25, %s14844_s25 }
  0xf7   :  { %p14851_p10 = por %p14850_p9, %p14849_p8 }
  0xf9   :  { %p14852_p11 = pnand %p14851_p10, %p14845_p7 }
  0xfb   :  { %14855 = shalt.err (!%p14852_p11)
}
  0xfc   :  { %56 = dma.hbm_to_vmem [thread:$0]  %s16839_s19, 1536, %s15473_s17, [#allocation4], %s15180_s26, %s15180_s26, %s15181_s30  }
  0xfd   :  { %s15188_s15 = smov [#allocation8]   ;;  %s16840_s21 = sld [smem:[#allocation58_spill]] }
  0xfe   :  { %s74_s7 = sshll.u32 %s15188_s15, 4  ;;  %s75_s7 = int_to_ptr.vmem [resolvable:$true] %s74_s7 }
 0x103   :  { %s14856_s6 = scalar_lea.hbm %s16840_s21, 36864 }
 0x104   :  { %p14857_p12 = scmp.ne.s32.totalorder %s16840_s21, %s14856_s6  ;;  %p14860_p13 = scmp.lt.u32.totalorder %s14856_s6, %s16840_s21 }
 0x106   :  { %p14862_p0 = pnand %p14860_p13, %p14857_p12 }
 0x108   :  { %14865 = shalt.err (!%p14862_p0)
}
 0x109   :  { %s14866_s0 = scalar_lea.vmem %s75_s7, 36864  ;;  %p14871_p2 = scmp.lt.s32.totalorder %s75_s7, %s75_s7 }
 0x10a   :  { %p14867_p1 = scmp.ne.s32.totalorder %s75_s7, %s14866_s0  ;;  %p14872_p3 = scmp.lt.s32.totalorder %s14866_s0, %s14866_s0 }
 0x10c   :  { %p14873_p4 = por %p14872_p3, %p14871_p2 }
 0x10e   :  { %p14874_p5 = pnand %p14873_p4, %p14867_p1 }
 0x110   :  { %14877 = shalt.err (!%p14874_p5)
}
 0x111   :  { %s15189_s17 = smov 384   ;;  %s15190_s19 = smov 24  }
 0x112   :  { %80 = dma.hbm_to_vmem [thread:$0]  %s16840_s21, 36864, %s75_s7, [#allocation7], %s15189_s17, %s15189_s17, %s15190_s19  }
 0x113   :  { %s15191_s5 = smov [#allocation11]   ;;  %s15192_s25 = smov [#allocation14]  }
 0x114   :  { %s97_s24 = sshll.u32 %s15191_s5, 4  ;;  %s121_s23 = sshll.u32 %s15192_s25, 4  ;;  %s98_s24 = int_to_ptr.vmem [resolvable:$true] %s97_s24  ;;  %s122_s23 = int_to_ptr.vmem [resolvable:$true] %s121_s23 }
 0x115   :  { %s16841_s29 = sld [smem:[#allocation60_spill]] }
 0x11b   :  { %s14878_s13 = scalar_lea.hbm %s16841_s29, 768 }
 0x11c   :  { %p14879_p6 = scmp.ne.s32.totalorder %s16841_s29, %s14878_s13  ;;  %p14882_p7 = scmp.lt.u32.totalorder %s14878_s13, %s16841_s29 }
 0x11e   :  { %p14884_p8 = pnand %p14882_p7, %p14879_p6 }
 0x120   :  { %14887 = shalt.err (!%p14884_p8)
}
 0x121   :  { %s14888_s7 = scalar_lea.vmem %s98_s24, 768  ;;  %p14893_p10 = scmp.lt.s32.totalorder %s98_s24, %s98_s24 }
 0x122   :  { %p14889_p9 = scmp.ne.s32.totalorder %s98_s24, %s14888_s7  ;;  %p14894_p11 = scmp.lt.s32.totalorder %s14888_s7, %s14888_s7 }
 0x124   :  { %p14895_p12 = por %p14894_p11, %p14893_p10 }
 0x126   :  { %p14896_p13 = pnand %p14895_p12, %p14889_p9 }
 0x128   :  { %14899 = shalt.err (!%p14896_p13)
}
 0x129   :  { %100 = dma.hbm_to_vmem [thread:$0]  %s16841_s29, 768, %s98_s24, [#allocation10]  }
 0x12a   :  { %s16842_s19 = sld [smem:[#allocation64_spill]] }
 0x130   :  { %s14900_s8 = scalar_lea.hbm %s16842_s19, 16 }
 0x131   :  { %p14901_p0 = scmp.ne.s32.totalorder %s16842_s19, %s14900_s8  ;;  %p14904_p1 = scmp.lt.u32.totalorder %s14900_s8, %s16842_s19 }
 0x133   :  { %p14906_p2 = pnand %p14904_p1, %p14901_p0 }
 0x135   :  { %14909 = shalt.err (!%p14906_p2)
}
 0x136   :  { %s14910_s15 = scalar_lea.vmem %s122_s23, 16  ;;  %s14914_s13 = scalar_lea.vmem %s122_s23, 32 }
 0x137   :  { %p14911_p3 = scmp.ne.s32.totalorder %s122_s23, %s14910_s15  ;;  %p14915_p4 = scmp.lt.s32.totalorder %s122_s23, %s122_s23 }
 0x138   :  { %p14916_p5 = scmp.lt.s32.totalorder %s14914_s13, %s14910_s15 }
 0x13a   :  { %p14917_p6 = por %p14916_p5, %p14915_p4 }
 0x13c   :  { %p14918_p7 = pnand %p14917_p6, %p14911_p3 }
 0x13e   :  { %14921 = shalt.err (!%p14918_p7)
}
 0x13f   :  { %124 = dma.hbm_to_vmem [thread:$0]  %s16842_s19, 16, %s122_s23, [#allocation13]  }
 0x140   :  { %s15193_s6 = smov [#allocation17]   ;;  %s15194_s2 = smov [#allocation20]  }
 0x141   :  { %s143_s11 = sshll.u32 %s15193_s6, 4  ;;  %s164_s3 = sshll.u32 %s15194_s2, 4  ;;  %s144_s11 = int_to_ptr.vmem [resolvable:$true] %s143_s11  ;;  %s165_s3 = int_to_ptr.vmem [resolvable:$true] %s164_s3 }
 0x142   :  { %s16843_s9 = sld [smem:[#allocation66_spill]] }
 0x148   :  { %s14922_s0 = scalar_lea.hbm %s16843_s9, 16 }
 0x149   :  { %p14923_p8 = scmp.ne.s32.totalorder %s16843_s9, %s14922_s0  ;;  %p14926_p9 = scmp.lt.u32.totalorder %s14922_s0, %s16843_s9 }
 0x14b   :  { %p14928_p10 = pnand %p14926_p9, %p14923_p8 }
 0x14d   :  { %14931 = shalt.err (!%p14928_p10)
}
 0x14e   :  { %s14932_s23 = scalar_lea.vmem %s144_s11, 16  ;;  %s14936_s19 = scalar_lea.vmem %s144_s11, 32 }
 0x14f   :  { %p14933_p11 = scmp.ne.s32.totalorder %s144_s11, %s14932_s23  ;;  %p14937_p12 = scmp.lt.s32.totalorder %s144_s11, %s144_s11 }
 0x150   :  { %p14938_p13 = scmp.lt.s32.totalorder %s14936_s19, %s14932_s23 }
 0x152   :  { %p14939_p0 = por %p14938_p13, %p14937_p12 }
 0x154   :  { %p14940_p1 = pnand %p14939_p0, %p14933_p11 }
 0x156   :  { %14943 = shalt.err (!%p14940_p1)
}
 0x157   :  { %146 = dma.hbm_to_vmem [thread:$0]  %s16843_s9, 16, %s144_s11, [#allocation16]  }
 0x158   :  { %s14944_s24 = scalar_lea.hbm %s16791_s12, 24576 }
 0x159   :  { %p14945_p2 = scmp.ne.s32.totalorder %s16791_s12, %s14944_s24  ;;  %p14948_p3 = scmp.lt.u32.totalorder %s14944_s24, %s16791_s12 }
 0x15b   :  { %p14950_p4 = pnand %p14948_p3, %p14945_p2 }
 0x15d   :  { %14953 = shalt.err (!%p14950_p4)
}
 0x15e   :  { %s14954_s21 = scalar_lea.vmem %s165_s3, 24576  ;;  %p14959_p6 = scmp.lt.s32.totalorder %s165_s3, %s165_s3 }
 0x15f   :  { %p14955_p5 = scmp.ne.s32.totalorder %s165_s3, %s14954_s21  ;;  %p14960_p7 = scmp.lt.s32.totalorder %s14954_s21, %s14954_s21 }
 0x161   :  { %p14961_p8 = por %p14960_p7, %p14959_p6 }
 0x163   :  { %p14962_p9 = pnand %p14961_p8, %p14955_p5 }
 0x165   :  { %14965 = shalt.err (!%p14962_p9)
}
 0x166   :  { %170 = dma.hbm_to_vmem [thread:$0]  %s16791_s12, 24576, %s165_s3, [#allocation19], %s15180_s26, %s15180_s26, %s15181_s30  }
 0x167   :  { %s15195_s0 = smov [#allocation23]   ;;  %s15196_s8 = smov [#allocation26]  }
 0x168   :  { %s187_s17 = sshll.u32 %s15195_s0, 4  ;;  %s206_s28 = sshll.u32 %s15196_s8, 4  ;;  %s188_s17 = int_to_ptr.vmem [resolvable:$true] %s187_s17  ;;  %s207_s28 = int_to_ptr.vmem [resolvable:$true] %s206_s28 }
 0x169   :  { %s14966_s19 = scalar_lea.hbm %s16793_s14, 64 }
 0x16a   :  { %p14967_p10 = scmp.ne.s32.totalorder %s16793_s14, %s14966_s19  ;;  %p14970_p11 = scmp.lt.u32.totalorder %s14966_s19, %s16793_s14 }
 0x16c   :  { %p14972_p12 = pnand %p14970_p11, %p14967_p10 }
 0x16e   :  { %14975 = shalt.err (!%p14972_p12)
}
 0x16f   :  { %s14976_s12 = scalar_lea.vmem %s188_s17, 64  ;;  %p14981_p0 = scmp.lt.s32.totalorder %s188_s17, %s188_s17 }
 0x170   :  { %p14977_p13 = scmp.ne.s32.totalorder %s188_s17, %s14976_s12  ;;  %p14982_p1 = scmp.lt.s32.totalorder %s14976_s12, %s14976_s12 }
 0x172   :  { %p14983_p2 = por %p14982_p1, %p14981_p0 }
 0x174   :  { %p14984_p3 = pnand %p14983_p2, %p14977_p13 }
 0x176   :  { %14987 = shalt.err (!%p14984_p3)
}
 0x177   :  { %190 = dma.hbm_to_vmem [thread:$0]  %s16793_s14, 64, %s188_s17, [#allocation22]  }
 0x178   :  { %s14988_s29 = scalar_lea.hbm %s16795_s16, 8192 }
 0x179   :  { %p14989_p4 = scmp.ne.s32.totalorder %s16795_s16, %s14988_s29  ;;  %p14992_p5 = scmp.lt.u32.totalorder %s14988_s29, %s16795_s16 }
 0x17b   :  { %p14994_p6 = pnand %p14992_p5, %p14989_p4 }
 0x17d   :  { %14997 = shalt.err (!%p14994_p6)
}
 0x17e   :  { %s14998_s11 = scalar_lea.vmem %s207_s28, 8192  ;;  %p15003_p8 = scmp.lt.s32.totalorder %s207_s28, %s207_s28 }
 0x17f   :  { %p14999_p7 = scmp.ne.s32.totalorder %s207_s28, %s14998_s11  ;;  %p15004_p9 = scmp.lt.s32.totalorder %s14998_s11, %s14998_s11 }
 0x181   :  { %p15005_p10 = por %p15004_p9, %p15003_p8 }
 0x183   :  { %p15006_p11 = pnand %p15005_p10, %p14999_p7 }
 0x185   :  { %15009 = shalt.err (!%p15006_p11)
}
 0x186   :  { %s16844_s14 = smov 128   ;;  %s15197_s17 = smov [#allocation29]  }
 0x187   :  { %212 = dma.hbm_to_vmem [thread:$0]  %s16795_s16, 8192, %s207_s28, [#allocation25], %s16844_s14, %s16844_s14, %s15172_s10  }
 0x188   :  { %s229_s8 = sshll.u32 %s15197_s17, 4  ;;  %s15198_s5 = smov [#allocation32]   ;;  %s230_s8 = int_to_ptr.vmem [resolvable:$true] %s229_s8 }
 0x189   :  { %s248_s23 = sshll.u32 %s15198_s5, 4  ;;  %s15010_s1 = scalar_lea.hbm %s16797_s18, 32  ;;  %s249_s23 = int_to_ptr.vmem [resolvable:$true] %s248_s23 }
 0x18a   :  { %p15011_p12 = scmp.ne.s32.totalorder %s16797_s18, %s15010_s1  ;;  %p15014_p13 = scmp.lt.u32.totalorder %s15010_s1, %s16797_s18 }
 0x18c   :  { %p15016_p0 = pnand %p15014_p13, %p15011_p12 }
 0x18e   :  { %15019 = shalt.err (!%p15016_p0)
}
 0x18f   :  { %s15020_s16 = scalar_lea.vmem %s230_s8, 32  ;;  %p15025_p2 = scmp.lt.s32.totalorder %s230_s8, %s230_s8 }
 0x190   :  { %p15021_p1 = scmp.ne.s32.totalorder %s230_s8, %s15020_s16  ;;  %p15026_p3 = scmp.lt.s32.totalorder %s15020_s16, %s15020_s16 }
 0x192   :  { %p15027_p4 = por %p15026_p3, %p15025_p2 }
 0x194   :  { %p15028_p5 = pnand %p15027_p4, %p15021_p1 }
 0x196   :  { %15031 = shalt.err (!%p15028_p5)
}
 0x197   :  { %232 = dma.hbm_to_vmem [thread:$0]  %s16797_s18, 32, %s230_s8, [#allocation28]  }
 0x198   :  { %s15032_s24 = scalar_lea.hbm %s16799_s20, 2048 }
 0x199   :  { %p15033_p6 = scmp.ne.s32.totalorder %s16799_s20, %s15032_s24  ;;  %p15036_p7 = scmp.lt.u32.totalorder %s15032_s24, %s16799_s20 }
 0x19b   :  { %p15038_p8 = pnand %p15036_p7, %p15033_p6 }
 0x19d   :  { %15041 = shalt.err (!%p15038_p8)
}
 0x19e   :  { %s15042_s21 = scalar_lea.vmem %s249_s23, 2048  ;;  %p15047_p10 = scmp.lt.s32.totalorder %s249_s23, %s249_s23 }
 0x19f   :  { %p15043_p9 = scmp.ne.s32.totalorder %s249_s23, %s15042_s21  ;;  %p15048_p11 = scmp.lt.s32.totalorder %s15042_s21, %s15042_s21 }
 0x1a1   :  { %p15049_p12 = por %p15048_p11, %p15047_p10 }
 0x1a3   :  { %p15050_p13 = pnand %p15049_p12, %p15043_p9 }
 0x1a5   :  { %15053 = shalt.err (!%p15050_p13)
}
 0x1a6   :  { %254 = dma.hbm_to_vmem [thread:$0]  %s16799_s20, 2048, %s249_s23, [#allocation31], %s15176_s4, %s15176_s4, %s15177_s27  }
 0x1a7   :  { %s15199_s14 = smov [#allocation35]   ;;  %s15200_s0 = smov [#allocation38]  }
 0x1a8   :  { %s271_s9 = sshll.u32 %s15199_s14, 4  ;;  %s290_s17 = sshll.u32 %s15200_s0, 4  ;;  %s272_s9 = int_to_ptr.vmem [resolvable:$true] %s271_s9  ;;  %s291_s17 = int_to_ptr.vmem [resolvable:$true] %s290_s17 }
 0x1a9   :  { %s15054_s19 = scalar_lea.hbm %s16801_s22, 16 }
 0x1aa   :  { %p15055_p0 = scmp.ne.s32.totalorder %s16801_s22, %s15054_s19  ;;  %p15058_p1 = scmp.lt.u32.totalorder %s15054_s19, %s16801_s22 }
 0x1ac   :  { %p15060_p2 = pnand %p15058_p1, %p15055_p0 }
 0x1ae   :  { %15063 = shalt.err (!%p15060_p2)
}
 0x1af   :  { %s15064_s20 = scalar_lea.vmem %s272_s9, 16  ;;  %s15068_s23 = scalar_lea.vmem %s272_s9, 32 }
 0x1b0   :  { %p15065_p3 = scmp.ne.s32.totalorder %s272_s9, %s15064_s20  ;;  %p15069_p4 = scmp.lt.s32.totalorder %s272_s9, %s272_s9 }
 0x1b1   :  { %p15070_p5 = scmp.lt.s32.totalorder %s15068_s23, %s15064_s20 }
 0x1b3   :  { %p15071_p6 = por %p15070_p5, %p15069_p4 }
 0x1b5   :  { %p15072_p7 = pnand %p15071_p6, %p15065_p3 }
 0x1b7   :  { %15075 = shalt.err (!%p15072_p7)
}
 0x1b8   :  { %274 = dma.hbm_to_vmem [thread:$0]  %s16801_s22, 16, %s272_s9, [#allocation34]  }
 0x1b9   :  { %s16845_s28 = sld [smem:[#allocation67_spill]] }
 0x1bf   :  { %s15076_s30 = scalar_lea.hbm %s16845_s28, 1024 }
 0x1c0   :  { %p15077_p8 = scmp.ne.s32.totalorder %s16845_s28, %s15076_s30  ;;  %p15080_p9 = scmp.lt.u32.totalorder %s15076_s30, %s16845_s28 }
 0x1c2   :  { %p15082_p10 = pnand %p15080_p9, %p15077_p8 }
 0x1c4   :  { %15085 = shalt.err (!%p15082_p10)
}
 0x1c5   :  { %s15086_s2 = scalar_lea.vmem %s291_s17, 1024  ;;  %p15091_p12 = scmp.lt.s32.totalorder %s291_s17, %s291_s17 }
 0x1c6   :  { %p15087_p11 = scmp.ne.s32.totalorder %s291_s17, %s15086_s2  ;;  %p15092_p13 = scmp.lt.s32.totalorder %s15086_s2, %s15086_s2 }
 0x1c8   :  { %p15093_p0 = por %p15092_p13, %p15091_p12 }
 0x1ca   :  { %p15094_p1 = pnand %p15093_p0, %p15087_p11 }
 0x1cc   :  { %15097 = shalt.err (!%p15094_p1)
}
 0x1cd   :  { %296 = dma.hbm_to_vmem [thread:$0]  %s16845_s28, 1024, %s291_s17, [#allocation37], %s15176_s4, %s15176_s4, %s15177_s27  }
 0x1ce   :  { %s15201_s21 = smov [#allocation39]   ;;  %s16846_s9 = sld [smem:[#allocation68_spill]] }
 0x1cf   :  { %s303_s18 = sshll.u32 %s15201_s21, 4  ;;  %s304_s18 = int_to_ptr.vmem [resolvable:$true] %s303_s18 }
 0x1d4   :  { %s15098_s0 = scalar_lea.hbm %s16846_s9, 16 }
 0x1d5   :  { %p15099_p2 = scmp.ne.s32.totalorder %s16846_s9, %s15098_s0  ;;  %p15102_p3 = scmp.lt.u32.totalorder %s15098_s0, %s16846_s9 }
 0x1d7   :  { %p15104_p4 = pnand %p15102_p3, %p15099_p2 }
 0x1d9   :  { %15107 = shalt.err (!%p15104_p4)
}
 0x1da   :  { %s15108_s1 = scalar_lea.vmem %s304_s18, 16  ;;  %s15112_s4 = scalar_lea.vmem %s304_s18, 32 }
 0x1db   :  { %p15109_p5 = scmp.ne.s32.totalorder %s304_s18, %s15108_s1  ;;  %p15113_p6 = scmp.lt.s32.totalorder %s304_s18, %s304_s18 }
 0x1dc   :  { %p15114_p7 = scmp.lt.s32.totalorder %s15112_s4, %s15108_s1 }
 0x1de   :  { %p15115_p8 = por %p15114_p7, %p15113_p6 }
 0x1e0   :  { %p15116_p9 = pnand %p15115_p8, %p15109_p5 }
 0x1e2   :  { %15119 = shalt.err (!%p15116_p9)
}
 0x1e3   :  { %306 = dma.hbm_to_vmem [thread:$0]  %s16846_s9, 16, %s304_s18, [#allocation40]  }
 0x1e4   :  { %15142 = dma.done.wait [#allocation4], 1536  }
 0x1e5   :  { %15143 = vsyncadd [#allocation4], 4294965760 }
 0x1e6   :  { %15144 = dma.done.wait [#allocation7], 45056  }
 0x1e7   :  { %15145 = vsyncadd [#allocation7], 4294922240 }
 0x1e8   :  { %15146 = dma.done.wait [#allocation10], 864  }
 0x1e9   :  { %15147 = vsyncadd [#allocation10], 4294966432 }
 0x1ea   :  { %15148 = dma.done.wait [#allocation13], 208  }
 0x1eb   :  { %15149 = vsyncadd [#allocation13], 4294967088 }
 0x1ec   :  { %15150 = dma.done.wait [#allocation16], 528  }
 0x1ed   :  { %15151 = vsyncadd [#allocation16], 4294966768 }
 0x1ee   :  { %15152 = dma.done.wait [#allocation19], 73728  }
 0x1ef   :  { %15153 = vsyncadd [#allocation19], 4294893568 }
 0x1f0   :  { %15154 = dma.done.wait [#allocation22], 128  }
 0x1f1   :  { %15155 = vsyncadd [#allocation22], 4294967168 }
 0x1f2   :  { %15156 = dma.done.wait [#allocation25], 8256  }
 0x1f3   :  { %15157 = vsyncadd [#allocation25], 4294959040 }
 0x1f4   :  { %15158 = dma.done.wait [#allocation28], 64  }
 0x1f5   :  { %15159 = vsyncadd [#allocation28], 4294967232 }
 0x1f6   :  { %15160 = dma.done.wait [#allocation31], 2080  }
 0x1f7   :  { %15161 = vsyncadd [#allocation31], 4294965216 }
 0x1f8   :  { %15162 = dma.done.wait [#allocation34], 32  }
 0x1f9   :  { %15163 = vsyncadd [#allocation34], 4294967264 }
 0x1fa   :  { %15164 = dma.done.wait [#allocation37], 1040  }
 0x1fb   :  { %15165 = vsyncadd [#allocation37], 4294966256 }
 0x1fc   :  { %15166 = dma.done.wait [#allocation40], 16  }
 0x1fd   :  { %15167 = vsyncadd [#allocation40], 4294967280  ;;  %v12865_v0 = vld [vmem:[#allocation6 + $0x4] ss:$8 sps:$4 sm:$0xff]   ;;  %v12867_v1 = vld [vmem:[#allocation6] ss:$8 sps:$4 sm:$0xff]  }
 0x1fe   :  { %849 = vmatprep.subr.bf16.mxu0 %v12865_v0  ;;  %1441 = vmatprep.subr.bf16.mxu1 %v12865_v0  ;;  %v12868_v2 = vld [vmem:[#allocation6 + $0x14] ss:$8 sps:$4 sm:$0xff]   ;;  %v12870_v3 = vld [vmem:[#allocation6 + $0x10] ss:$8 sps:$4 sm:$0xff]   ;;  %v12871_v4 = vld [vmem:[#allocation6 + $0x24] ss:$8 sps:$4 sm:$0xff]  }
 0x1ff   :  { %850 = vmatpush1.bf16.msra.mxu0 %v12867_v1  ;;  %1442 = vmatpush1.bf16.msra.mxu1 %v12867_v1  ;;  %v12873_v5 = vld [vmem:[#allocation6 + $0x20] ss:$8 sps:$4 sm:$0xff]   ;;  %v12874_v6 = vld [vmem:[#allocation6 + $0x34] ss:$8 sps:$4 sm:$0xff]   ;;  %v12876_v7 = vld [vmem:[#allocation6 + $0x30] ss:$8 sps:$4 sm:$0xff]  }
 0x200   :  { %851 = vmatprep.subr.bf16.mxu0 %v12868_v2  ;;  %1443 = vmatprep.subr.bf16.mxu1 %v12868_v2  ;;  %v12877_v8 = vld [vmem:[#allocation6 + $0x44] ss:$8 sps:$4 sm:$0xff]   ;;  %v12879_v9 = vld [vmem:[#allocation6 + $0x40] ss:$8 sps:$4 sm:$0xff]   ;;  %v12880_v10 = vld [vmem:[#allocation6 + $0x54] ss:$8 sps:$4 sm:$0xff]  }
 0x201   :  { %v12882_v11 = vld [vmem:[#allocation6 + $0x50] ss:$8 sps:$4 sm:$0xff]   ;;  %v12883_v12 = vld [vmem:[#allocation6 + $0x64] ss:$8 sps:$4 sm:$0xff]   ;;  %v12885_v17 = vld [vmem:[#allocation6 + $0x60] ss:$8 sps:$4 sm:$0xff]  }
 0x202   :  { %v15663_v13 = vld [vmem:[#allocation3] sm:$0xff]  ;;  %v15665_v14 = vld [vmem:[#allocation3 + $0x10] sm:$0xff]  ;;  %v15675_v41 = vld [vmem:[#allocation3 + $0x8] sm:$0xff]  ;;  %s16847_s20 = sld [smem:[#allocation63_spill]]  ;;  %s16848_s10 = sld [smem:[#allocation62_spill]]  ;;  %vm15203_vm0 = vmmov 0  }
 0x203   :  { %852 = vmatpush1.bf16.msra.mxu0 %v12870_v3  ;;  %1444 = vmatpush1.bf16.msra.mxu1 %v12870_v3  ;;  %v447_v15 = vunpack.c.h.bf16 %v15663_v13  ;;  %v454_v16 = vunpack.c.h.bf16 %v15665_v14  ;;  %v15669_v18 = vld [vmem:[#allocation3 + $0x20] sm:$0xff]  ;;  %v15671_v19 = vld [vmem:[#allocation3 + $0x30] sm:$0xff]  ;;  %v15677_v42 = vld [vmem:[#allocation3 + $0x18] sm:$0xff]  ;;  %v446_v47 = vunpack.c.l.bf16 %v15663_v13  ;;  %v453_v48 = vunpack.c.l.bf16 %v15665_v14  ;;  %s15205_s8 = smov 1   ;;  %s15208_s5 = smov [#allocation41]  }
 0x204   :  { %853 = vmatprep.subr.bf16.mxu0 %v12871_v4  ;;  %1445 = vmatprep.subr.bf16.mxu1 %v12871_v4  ;;  %v12886_v20 = vld [vmem:[#allocation6 + $0x74] ss:$8 sps:$4 sm:$0xff]   ;;  %v1039_v22 = vunpack.c.h.bf16 %v15669_v18  ;;  %v1046_v23 = vunpack.c.h.bf16 %v15671_v19  ;;  %v12888_v25 = vld [vmem:[#allocation6 + $0x70] ss:$8 sps:$4 sm:$0xff]   ;;  %v12889_v27 = vld [vmem:[#allocation6 + $0x84] ss:$8 sps:$4 sm:$0xff]   ;;  %v1038_v49 = vunpack.c.l.bf16 %v15669_v18  ;;  %v1045_v50 = vunpack.c.l.bf16 %v15671_v19 }
 0x205   :  { %v458_v21 = vadd.f32 %v454_v16, %v447_v15  ;;  %v12891_v29 = vld [vmem:[#allocation6 + $0x80] ss:$8 sps:$4 sm:$0xff]   ;;  %v12892_v30 = vld [vmem:[#allocation6 + $0x94] ss:$8 sps:$4 sm:$0xff]   ;;  %v12894_v31 = vld [vmem:[#allocation6 + $0x90] ss:$8 sps:$4 sm:$0xff]   ;;  %v449_v51 = vunpack.c.h.bf16 %v15675_v41  ;;  %v456_v52 = vunpack.c.h.bf16 %v15677_v42  ;;  %v457_v55 = vadd.f32 %v453_v48, %v446_v47 }
 0x206   :  { %v1050_v26 = vadd.f32 %v1046_v23, %v1039_v22  ;;  %v12895_v32 = vld [vmem:[#allocation6 + $0xa4] ss:$8 sps:$4 sm:$0xff]   ;;  %v12897_v33 = vld [vmem:[#allocation6 + $0xa0] ss:$8 sps:$4 sm:$0xff]   ;;  %v12898_v34 = vld [vmem:[#allocation6 + $0xb4] ss:$8 sps:$4 sm:$0xff]   ;;  %v1049_v56 = vadd.f32 %v1045_v50, %v1038_v49 }
 0x207   :  { %854 = vmatpush1.bf16.msra.mxu0 %v12873_v5  ;;  %1446 = vmatpush1.bf16.msra.mxu1 %v12873_v5  ;;  %v462_v24 = vpack.c.bf16 %v458_v21, %v458_v21  ;;  %v12900_v35 = vld [vmem:[#allocation6 + $0xb0] ss:$8 sps:$4 sm:$0xff]   ;;  %v12901_v36 = vld [vmem:[#allocation6 + $0xc4] ss:$8 sps:$4 sm:$0xff]   ;;  %v12903_v37 = vld [vmem:[#allocation6 + $0xc0] ss:$8 sps:$4 sm:$0xff]   ;;  %v460_v60 = vadd.f32 %v456_v52, %v449_v51  ;;  %v461_v62 = vpack.c.bf16 %v457_v55, %v457_v55 }
 0x208   :  { %855 = vmatprep.subr.bf16.mxu0 %v12874_v6  ;;  %1447 = vmatprep.subr.bf16.mxu1 %v12874_v6  ;;  %v1054_v28 = vpack.c.bf16 %v1050_v26, %v1050_v26  ;;  %v12904_v38 = vld [vmem:[#allocation6 + $0xd4] ss:$8 sps:$4 sm:$0xff]   ;;  %v12906_v39 = vld [vmem:[#allocation6 + $0xd0] ss:$8 sps:$4 sm:$0xff]   ;;  %v12907_v40 = vld [vmem:[#allocation6 + $0xe4] ss:$8 sps:$4 sm:$0xff]   ;;  %v1053_v63 = vpack.c.bf16 %v1049_v56, %v1049_v56 }
 0x209   :  { %881 = vmatprep.mubr.bf16.mxu0 %v462_v24  ;;  %v15679_v43 = vld [vmem:[#allocation3 + $0x28] sm:$0xff]  ;;  %v15681_v44 = vld [vmem:[#allocation3 + $0x38] sm:$0xff]  ;;  %v464_v2 = vpack.c.bf16 %v460_v60, %v460_v60  ;;  %vm5953_vm1 = vcmask 523264   ;;  %s11171_s19 = sshll.u32 %s15208_s5, 4  ;;  %s11172_s19 = int_to_ptr.vmem [resolvable:$true] %s11171_s19 }
 0x20a   :  { %1473 = vmatprep.mubr.bf16.mxu1 %v1054_v28  ;;  %v12909_v45 = vld [vmem:[#allocation6 + $0xe0] ss:$8 sps:$4 sm:$0xff]   ;;  %v12910_v46 = vld [vmem:[#allocation6 + $0xf4] ss:$8 sps:$4 sm:$0xff]   ;;  %v1041_v53 = vunpack.c.h.bf16 %v15679_v43  ;;  %v1048_v54 = vunpack.c.h.bf16 %v15681_v44  ;;  %v12912_v57 = vld [vmem:[#allocation6 + $0xf0] ss:$8 sps:$4 sm:$0xff]   ;;  %p15125_p11 = scmp.lt.s32.totalorder %s11172_s19, %s11172_s19 }
 0x20b   :  { %856 = vmatpush1.bf16.msra.mxu0 %v12876_v7  ;;  %1448 = vmatpush1.bf16.msra.mxu1 %v12876_v7  ;;  %v12915_v58 = vld [vmem:[#allocation6 + $0x104] ss:$8 sps:$4 sm:$0xff]   ;;  %v12913_v59 = vld [vmem:[#allocation6 + $0x100] ss:$8 sps:$4 sm:$0xff]   ;;  %v12918_v0 = vld [vmem:[#allocation6 + $0x114] ss:$8 sps:$4 sm:$0xff]  }
 0x20c   :  { %857 = vmatprep.subr.bf16.mxu0 %v12877_v8  ;;  %1449 = vmatprep.subr.bf16.mxu1 %v12877_v8  ;;  %v1052_v61 = vadd.f32 %v1048_v54, %v1041_v53  ;;  %v12916_v1 = vld [vmem:[#allocation6 + $0x110] ss:$8 sps:$4 sm:$0xff]   ;;  %v12921_v4 = vld [vmem:[#allocation6 + $0x124] ss:$8 sps:$4 sm:$0xff]   ;;  %v12919_v5 = vld [vmem:[#allocation6 + $0x120] ss:$8 sps:$4 sm:$0xff]  }
 0x20d   :  { %v12924_v6 = vld [vmem:[#allocation6 + $0x134] ss:$8 sps:$4 sm:$0xff]   ;;  %v12922_v7 = vld [vmem:[#allocation6 + $0x130] ss:$8 sps:$4 sm:$0xff]   ;;  %v12927_v8 = vld [vmem:[#allocation6 + $0x144] ss:$8 sps:$4 sm:$0xff]  }
 0x20e   :  { %v1056_v3 = vpack.c.bf16 %v1052_v61, %v1052_v61  ;;  %v12931_v13 = vld [vmem:[#allocation6 + $0x160] ss:$8 sps:$4 sm:$0xff]   ;;  %v12936_v14 = vld [vmem:[#allocation6 + $0x174] ss:$8 sps:$4 sm:$0xff]   ;;  %v12934_v15 = vld [vmem:[#allocation6 + $0x170] ss:$8 sps:$4 sm:$0xff]  }
 0x20f   :  { %858 = vmatpush1.bf16.msra.mxu0 %v12879_v9  ;;  %1450 = vmatpush1.bf16.msra.mxu1 %v12879_v9  ;;  %v12925_v9 = vld [vmem:[#allocation6 + $0x140] ss:$8 sps:$4 sm:$0xff]   ;;  %v12939_v16 = vld [vmem:[#allocation6 + $0x184] ss:$8 sps:$4 sm:$0xff]   ;;  %v12942_v18 = vld [vmem:[#allocation6 + $0x194] ss:$8 sps:$4 sm:$0xff]  }
 0x210   :  { %859 = vmatprep.subr.bf16.mxu0 %v12880_v10  ;;  %1451 = vmatprep.subr.bf16.mxu1 %v12880_v10  ;;  %v12930_v10 = vld [vmem:[#allocation6 + $0x154] ss:$8 sps:$4 sm:$0xff]   ;;  %v15691_v19 = vld [vmem:[#allocation6 + $0x190] ss:$8 sps:$4 sm:$0xff]   ;;  %v15695_v21 = vld [vmem:[#allocation6 + $0x1a0] ss:$8 sps:$4 sm:$0xff]  }
 0x211   :  { %v15697_v22 = vld [vmem:[#allocation6 + $0x1b4] ss:$8 sps:$4 sm:$0xff]   ;;  %v15703_v23 = vld [vmem:[#allocation6 + $0x1b0] ss:$8 sps:$4 sm:$0xff]   ;;  %v15705_v24 = vld [vmem:[#allocation6 + $0x1c4] ss:$8 sps:$4 sm:$0xff]  }
 0x212   :  { %v15713_v26 = vld [vmem:[#allocation6 + $0x1d4] ss:$8 sps:$4 sm:$0xff]   ;;  %v15721_v28 = vld [vmem:[#allocation6 + $0x1e4] ss:$8 sps:$4 sm:$0xff]   ;;  %v12961_v47 = vld [vmem:[#allocation8] ss:$24 sps:$4 sm:$0xff]  }
 0x213   :  { %860 = vmatpush1.bf16.msra.mxu0 %v12882_v11  ;;  %1452 = vmatpush1.bf16.msra.mxu1 %v12882_v11  ;;  %v12928_v11 = vld [vmem:[#allocation6 + $0x150] ss:$8 sps:$4 sm:$0xff]   ;;  %v12963_v48 = vld [vmem:[#allocation8 + $0x4] ss:$24 sps:$4 sm:$0xff]   ;;  %v14532_v49 = vld [vmem:[#allocation6] ss:$8 sps:$4 sm:$0xff]  }
 0x214   :  { %861 = vmatprep.subr.bf16.mxu0 %v12883_v12  ;;  %1453 = vmatprep.subr.bf16.mxu1 %v12883_v12  ;;  %v12933_v12 = vld [vmem:[#allocation6 + $0x164] ss:$8 sps:$4 sm:$0xff]   ;;  %v14533_v51 = vld [vmem:[#allocation6 + $0x14] ss:$8 sps:$4 sm:$0xff]   ;;  %v12967_v52 = vld [vmem:[#allocation8 + $0x30] ss:$24 sps:$4 sm:$0xff]  }
 0x215   :  { %v12969_v50 = vld [vmem:[#allocation8 + $0x34] ss:$24 sps:$4 sm:$0xff]   ;;  %v14534_v53 = vld [vmem:[#allocation6 + $0x10] ss:$8 sps:$4 sm:$0xff]   ;;  %v12975_v54 = vld [vmem:[#allocation8 + $0x64] ss:$24 sps:$4 sm:$0xff]  }
 0x216   :  { %v14535_v55 = vld [vmem:[#allocation6 + $0x24] ss:$8 sps:$4 sm:$0xff]   ;;  %v12973_v56 = vld [vmem:[#allocation8 + $0x60] ss:$24 sps:$4 sm:$0xff]   ;;  %v12979_v60 = vld [vmem:[#allocation8 + $0x90] ss:$24 sps:$4 sm:$0xff]  }
 0x217   :  { %862 = vmatpush1.bf16.msra.mxu0 %v12885_v17  ;;  %1454 = vmatpush1.bf16.msra.mxu1 %v12885_v17  ;;  %v12937_v17 = vld [vmem:[#allocation6 + $0x180] ss:$8 sps:$4 sm:$0xff]   ;;  %v14538_v61 = vld [vmem:[#allocation6 + $0x30] ss:$8 sps:$4 sm:$0xff]   ;;  %s15120_s25 = scalar_lea.vmem %s11172_s19, 128 }
 0x218   :  { %863 = vmatprep.subr.bf16.mxu0 %v12886_v20  ;;  %1455 = vmatprep.subr.bf16.mxu1 %v12886_v20  ;;  %v15693_v20 = vld [vmem:[#allocation6 + $0x1a4] ss:$8 sps:$4 sm:$0xff]   ;;  %p15121_p10 = scmp.ne.s32.totalorder %s11172_s19, %s15120_s25  ;;  %p15126_p12 = scmp.lt.s32.totalorder %s15120_s25, %s15120_s25 }
 0x21a   :  { %p15127_p13 = por %p15126_p12, %p15125_p11 }
 0x21b   :  { %864 = vmatpush1.bf16.msra.mxu0 %v12888_v25  ;;  %1456 = vmatpush1.bf16.msra.mxu1 %v12888_v25  ;;  %v15711_v25 = vld [vmem:[#allocation6 + $0x1c0] ss:$8 sps:$4 sm:$0xff]  }
 0x21c   :  { %865 = vmatprep.subr.bf16.mxu0 %v12889_v27  ;;  %1457 = vmatprep.subr.bf16.mxu1 %v12889_v27  ;;  %v15719_v27 = vld [vmem:[#allocation6 + $0x1d0] ss:$8 sps:$4 sm:$0xff]   ;;  %p15128_p0 = pnand %p15127_p13, %p15121_p10 }
 0x21f   :  { %866 = vmatpush1.bf16.msra.mxu0 %v12891_v29  ;;  %1458 = vmatpush1.bf16.msra.mxu1 %v12891_v29  ;;  %v15723_v29 = vld [vmem:[#allocation3 + $0x40] sm:$0xff] }
 0x220   :  { %867 = vmatprep.subr.bf16.mxu0 %v12892_v30  ;;  %1459 = vmatprep.subr.bf16.mxu1 %v12892_v30  ;;  %v15725_v30 = vld [vmem:[#allocation3 + $0x50] sm:$0xff] }
 0x223   :  { %868 = vmatpush1.bf16.msra.mxu0 %v12894_v31  ;;  %1460 = vmatpush1.bf16.msra.mxu1 %v12894_v31  ;;  %v15731_v31 = vld [vmem:[#allocation6 + $0x1e0] ss:$8 sps:$4 sm:$0xff]  }
 0x224   :  { %869 = vmatprep.subr.bf16.mxu0 %v12895_v32  ;;  %1461 = vmatprep.subr.bf16.mxu1 %v12895_v32  ;;  %v15733_v32 = vld [vmem:[#allocation6 + $0x1f4] ss:$8 sps:$4 sm:$0xff]  }
 0x227   :  { %870 = vmatpush1.bf16.msra.mxu0 %v12897_v33  ;;  %1462 = vmatpush1.bf16.msra.mxu1 %v12897_v33  ;;  %v448_v33 = vunpack.c.l.bf16 %v15675_v41 }
 0x228   :  { %871 = vmatprep.subr.bf16.mxu0 %v12898_v34  ;;  %1463 = vmatprep.subr.bf16.mxu1 %v12898_v34  ;;  %v455_v34 = vunpack.c.l.bf16 %v15677_v42 }
 0x22b   :  { %872 = vmatpush1.bf16.msra.mxu0 %v12900_v35  ;;  %1464 = vmatpush1.bf16.msra.mxu1 %v12900_v35  ;;  %v1040_v35 = vunpack.c.l.bf16 %v15679_v43 }
 0x22c   :  { %873 = vmatprep.subr.bf16.mxu0 %v12901_v36  ;;  %1465 = vmatprep.subr.bf16.mxu1 %v12901_v36  ;;  %v1047_v36 = vunpack.c.l.bf16 %v15681_v44 }
 0x22e   :  { %v1051_v41 = vadd.f32 %v1047_v36, %v1040_v35  ;;  %v14550_v35 = vld [vmem:[#allocation6 + $0x90] ss:$8 sps:$4 sm:$0xff]   ;;  %v13023_v36 = vld [vmem:[#allocation8 + $0x1e4] ss:$24 sps:$4 sm:$0xff]  }
 0x22f   :  { %874 = vmatpush1.bf16.msra.mxu0 %v12903_v37  ;;  %1466 = vmatpush1.bf16.msra.mxu1 %v12903_v37  ;;  %v1632_v37 = vunpack.c.h.bf16 %v15723_v29 }
 0x230   :  { %875 = vmatprep.subr.bf16.mxu0 %v12904_v38  ;;  %1467 = vmatprep.subr.bf16.mxu1 %v12904_v38  ;;  %v1639_v38 = vunpack.c.h.bf16 %v15725_v30  ;;  %v1055_v44 = vpack.c.bf16 %v1051_v41, %v1051_v41  ;;  %v13029_v41 = vld [vmem:[#allocation8 + $0x214] ss:$24 sps:$4 sm:$0xff]  }
 0x232   :  { %v1643_v42 = vadd.f32 %v1639_v38, %v1632_v37  ;;  %v14551_v37 = vld [vmem:[#allocation6 + $0xa4] ss:$8 sps:$4 sm:$0xff]   ;;  %v13021_v38 = vld [vmem:[#allocation8 + $0x1e0] ss:$24 sps:$4 sm:$0xff]  }
 0x233   :  { %876 = vmatpush1.bf16.msra.mxu0 %v12906_v39  ;;  %1468 = vmatpush1.bf16.msra.mxu1 %v12906_v39  ;;  %v15745_v39 = vld [vmem:[#allocation6 + $0x1f0] ss:$8 sps:$4 sm:$0xff]  }
 0x234   :  { %877 = vmatprep.subr.bf16.mxu0 %v12907_v40  ;;  %1469 = vmatprep.subr.bf16.mxu1 %v12907_v40  ;;  %v459_v40 = vadd.f32 %v455_v34, %v448_v33  ;;  %v14549_v33 = vld [vmem:[#allocation6 + $0x94] ss:$8 sps:$4 sm:$0xff]   ;;  %v13015_v34 = vld [vmem:[#allocation8 + $0x1b0] ss:$24 sps:$4 sm:$0xff]  }
 0x236   :  { %v463_v43 = vpack.c.bf16 %v459_v40, %v459_v40  ;;  %v14552_v40 = vld [vmem:[#allocation6 + $0xa0] ss:$8 sps:$4 sm:$0xff]  }
 0x237   :  { %878 = vmatpush1.bf16.msra.mxu0 %v12909_v45  ;;  %1470 = vmatpush1.bf16.msra.mxu1 %v12909_v45  ;;  %v1647_v45 = vpack.c.bf16 %v1643_v42, %v1643_v42  ;;  %v14553_v42 = vld [vmem:[#allocation6 + $0xb4] ss:$8 sps:$4 sm:$0xff]  }
 0x238   :  { %879 = vmatprep.subr.bf16.mxu0 %v12910_v46  ;;  %1471 = vmatprep.subr.bf16.mxu1 %v12910_v46  ;;  %v14531_v46 = vld [vmem:[#allocation6 + $0x4] ss:$8 sps:$4 sm:$0xff]  }
 0x23b   :  { %880 = vmatpush1.bf16.msra.mxu0 %v12912_v57  ;;  %1472 = vmatpush1.bf16.msra.mxu1 %v12912_v57  ;;  %v14536_v57 = vld [vmem:[#allocation6 + $0x20] ss:$8 sps:$4 sm:$0xff]  }
 0x23c   :  { %890 = vmatprep.subr.bf16.mxu0 %v12915_v58  ;;  %1482 = vmatprep.subr.bf16.mxu1 %v12915_v58  ;;  %v12981_v58 = vld [vmem:[#allocation8 + $0x94] ss:$24 sps:$4 sm:$0xff]  }
 0x23e   :  { %882 = vmatmul.mubr.bf16.vlgmr.msra.gmra.mrb[0].mxu0 %v461_v62  ;;  %1474 = vmatmul.mubr.bf16.vlgmr.msra.gmra.mrb[0].mxu1 %v1053_v63  ;;  %v12987_v62 = vld [vmem:[#allocation8 + $0xc4] ss:$24 sps:$4 sm:$0xff]  }
 0x23f   :  { %891 = vmatpush1.bf16.msra.mxu0 %v12913_v59  ;;  %1483 = vmatpush1.bf16.msra.mxu1 %v12913_v59  ;;  %v14537_v59 = vld [vmem:[#allocation6 + $0x34] ss:$8 sps:$4 sm:$0xff]   ;;  %v14539_v63 = vld [vmem:[#allocation6 + $0x44] ss:$8 sps:$4 sm:$0xff]  }
 0x240   :  { %892 = vmatprep.subr.bf16.mxu0 %v12918_v0  ;;  %1484 = vmatprep.subr.bf16.mxu1 %v12918_v0  ;;  %v12985_v0 = vld [vmem:[#allocation8 + $0xc0] ss:$24 sps:$4 sm:$0xff]  }
 0x241   :  { %922 = vmatprep.mubr.bf16.mxu0 %v464_v2  ;;  %1514 = vmatprep.mubr.bf16.mxu1 %v1056_v3  ;;  %v12993_v2 = vld [vmem:[#allocation8 + $0xf4] ss:$24 sps:$4 sm:$0xff]  }
 0x242   :  { %v14541_v3 = vld [vmem:[#allocation6 + $0x54] ss:$8 sps:$4 sm:$0xff]  }
 0x243   :  { %893 = vmatpush1.bf16.msra.mxu0 %v12916_v1  ;;  %1485 = vmatpush1.bf16.msra.mxu1 %v12916_v1  ;;  %v14540_v1 = vld [vmem:[#allocation6 + $0x40] ss:$8 sps:$4 sm:$0xff]  }
 0x244   :  { %894 = vmatprep.subr.bf16.mxu0 %v12921_v4  ;;  %1486 = vmatprep.subr.bf16.mxu1 %v12921_v4  ;;  %v12991_v4 = vld [vmem:[#allocation8 + $0xf0] ss:$24 sps:$4 sm:$0xff]  }
 0x247   :  { %895 = vmatpush1.bf16.msra.mxu0 %v12919_v5  ;;  %1487 = vmatpush1.bf16.msra.mxu1 %v12919_v5  ;;  %v14542_v5 = vld [vmem:[#allocation6 + $0x50] ss:$8 sps:$4 sm:$0xff]  }
 0x248   :  { %896 = vmatprep.subr.bf16.mxu0 %v12924_v6  ;;  %1488 = vmatprep.subr.bf16.mxu1 %v12924_v6  ;;  %v12999_v6 = vld [vmem:[#allocation8 + $0x124] ss:$24 sps:$4 sm:$0xff]  }
 0x24b   :  { %897 = vmatpush1.bf16.msra.mxu0 %v12922_v7  ;;  %1489 = vmatpush1.bf16.msra.mxu1 %v12922_v7  ;;  %v14543_v7 = vld [vmem:[#allocation6 + $0x64] ss:$8 sps:$4 sm:$0xff]  }
 0x24c   :  { %898 = vmatprep.subr.bf16.mxu0 %v12927_v8  ;;  %1490 = vmatprep.subr.bf16.mxu1 %v12927_v8  ;;  %v12997_v8 = vld [vmem:[#allocation8 + $0x120] ss:$24 sps:$4 sm:$0xff]  }
 0x24f   :  { %899 = vmatpush1.bf16.msra.mxu0 %v12925_v9  ;;  %1491 = vmatpush1.bf16.msra.mxu1 %v12925_v9  ;;  %v14544_v9 = vld [vmem:[#allocation6 + $0x60] ss:$8 sps:$4 sm:$0xff]  }
 0x250   :  { %900 = vmatprep.subr.bf16.mxu0 %v12930_v10  ;;  %1492 = vmatprep.subr.bf16.mxu1 %v12930_v10  ;;  %v13005_v10 = vld [vmem:[#allocation8 + $0x154] ss:$24 sps:$4 sm:$0xff]  }
 0x253   :  { %901 = vmatpush1.bf16.msra.mxu0 %v12928_v11  ;;  %1493 = vmatpush1.bf16.msra.mxu1 %v12928_v11  ;;  %v14545_v11 = vld [vmem:[#allocation6 + $0x74] ss:$8 sps:$4 sm:$0xff]  }
 0x254   :  { %902 = vmatprep.subr.bf16.mxu0 %v12933_v12  ;;  %1494 = vmatprep.subr.bf16.mxu1 %v12933_v12  ;;  %v13003_v12 = vld [vmem:[#allocation8 + $0x150] ss:$24 sps:$4 sm:$0xff]  }
 0x257   :  { %903 = vmatpush1.bf16.msra.mxu0 %v12931_v13  ;;  %1495 = vmatpush1.bf16.msra.mxu1 %v12931_v13  ;;  %v14546_v13 = vld [vmem:[#allocation6 + $0x70] ss:$8 sps:$4 sm:$0xff]  }
 0x258   :  { %904 = vmatprep.subr.bf16.mxu0 %v12936_v14  ;;  %1496 = vmatprep.subr.bf16.mxu1 %v12936_v14  ;;  %v13011_v14 = vld [vmem:[#allocation8 + $0x184] ss:$24 sps:$4 sm:$0xff]  }
 0x25b   :  { %905 = vmatpush1.bf16.msra.mxu0 %v12934_v15  ;;  %1497 = vmatpush1.bf16.msra.mxu1 %v12934_v15  ;;  %v14547_v15 = vld [vmem:[#allocation6 + $0x84] ss:$8 sps:$4 sm:$0xff]  }
 0x25c   :  { %906 = vmatprep.subr.bf16.mxu0 %v12939_v16  ;;  %1498 = vmatprep.subr.bf16.mxu1 %v12939_v16  ;;  %v13009_v16 = vld [vmem:[#allocation8 + $0x180] ss:$24 sps:$4 sm:$0xff]  }
 0x25f   :  { %907 = vmatpush1.bf16.msra.mxu0 %v12937_v17  ;;  %1499 = vmatpush1.bf16.msra.mxu1 %v12937_v17  ;;  %v14548_v17 = vld [vmem:[#allocation6 + $0x80] ss:$8 sps:$4 sm:$0xff]  }
 0x260   :  { %908 = vmatprep.subr.bf16.mxu0 %v12942_v18  ;;  %1500 = vmatprep.subr.bf16.mxu1 %v12942_v18  ;;  %v13017_v18 = vld [vmem:[#allocation8 + $0x1b4] ss:$24 sps:$4 sm:$0xff]  }
 0x263   :  { %909 = vmatpush1.bf16.msra.mxu0 %v15691_v19  ;;  %1501 = vmatpush1.bf16.msra.mxu1 %v15691_v19 }
 0x264   :  { %910 = vmatprep.subr.bf16.mxu0 %v15693_v20  ;;  %1502 = vmatprep.subr.bf16.mxu1 %v15693_v20 }
 0x267   :  { %911 = vmatpush1.bf16.msra.mxu0 %v15695_v21  ;;  %1503 = vmatpush1.bf16.msra.mxu1 %v15695_v21 }
 0x268   :  { %912 = vmatprep.subr.bf16.mxu0 %v15697_v22  ;;  %1504 = vmatprep.subr.bf16.mxu1 %v15697_v22 }
 0x26b   :  { %913 = vmatpush1.bf16.msra.mxu0 %v15703_v23  ;;  %1505 = vmatpush1.bf16.msra.mxu1 %v15703_v23 }
 0x26c   :  { %914 = vmatprep.subr.bf16.mxu0 %v15705_v24  ;;  %1506 = vmatprep.subr.bf16.mxu1 %v15705_v24 }
 0x26f   :  { %915 = vmatpush1.bf16.msra.mxu0 %v15711_v25  ;;  %1507 = vmatpush1.bf16.msra.mxu1 %v15711_v25 }
 0x270   :  { %916 = vmatprep.subr.bf16.mxu0 %v15713_v26  ;;  %1508 = vmatprep.subr.bf16.mxu1 %v15713_v26 }
 0x273   :  { %917 = vmatpush1.bf16.msra.mxu0 %v15719_v27  ;;  %1509 = vmatpush1.bf16.msra.mxu1 %v15719_v27 }
 0x274   :  { %918 = vmatprep.subr.bf16.mxu0 %v15721_v28  ;;  %1510 = vmatprep.subr.bf16.mxu1 %v15721_v28 }
 0x277   :  { %919 = vmatpush1.bf16.msra.mxu0 %v15731_v31  ;;  %1511 = vmatpush1.bf16.msra.mxu1 %v15731_v31 }
 0x278   :  { %920 = vmatprep.subr.bf16.mxu0 %v15733_v32  ;;  %1512 = vmatprep.subr.bf16.mxu1 %v15733_v32 }
 0x27b   :  { %921 = vmatpush1.bf16.msra.mxu0 %v15745_v39  ;;  %1513 = vmatpush1.bf16.msra.mxu1 %v15745_v39 }
 0x27c   :  { %2034 = vmatprep.subr.bf16.mxu0 %v14531_v46  ;;  %4005 = vmatprep.subr.bf16.mxu1 %v12963_v48  ;;  %v14555_v46 = vld [vmem:[#allocation6 + $0xc4] ss:$8 sps:$4 sm:$0xff]   ;;  %v14556_v48 = vld [vmem:[#allocation6 + $0xc0] ss:$8 sps:$4 sm:$0xff]  }
 0x27e   :  { %923 = vmatmul.mubr.bf16.vlgmr.msra.gmra.mrb[0].mxu0 %v463_v43  ;;  %1515 = vmatmul.mubr.bf16.vlgmr.msra.gmra.mrb[0].mxu1 %v1055_v44  ;;  %v13027_v43 = vld [vmem:[#allocation8 + $0x210] ss:$24 sps:$4 sm:$0xff]  }
 0x27f   :  { %2035 = vmatpush1.bf16.msra.mxu0 %v14532_v49  ;;  %2066 = vmatprep.mubr.bf16.mxu0 %v1647_v45  ;;  %v14554_v44 = vld [vmem:[#allocation6 + $0xb0] ss:$8 sps:$4 sm:$0xff]   ;;  %v13035_v45 = vld [vmem:[#allocation8 + $0x244] ss:$24 sps:$4 sm:$0xff]   ;;  %v15753_v49 = vld [vmem:[#allocation3 + $0x48] sm:$0xff] }
 0x280   :  { %2036 = vmatprep.subr.bf16.mxu0 %v14533_v51  ;;  %4006 = vmatpush1.bf16.msra.mxu1 %v12961_v47  ;;  %v13033_v47 = vld [vmem:[#allocation8 + $0x240] ss:$24 sps:$4 sm:$0xff]   ;;  %v13041_v51 = vld [vmem:[#allocation8 + $0x274] ss:$24 sps:$4 sm:$0xff]  }
 0x281   :  { %4007 = vmatprep.subr.bf16.mxu1 %v12969_v50  ;;  %v15755_v50 = vld [vmem:[#allocation3 + $0x58] sm:$0xff] }
 0x283   :  { %2037 = vmatpush1.bf16.msra.mxu0 %v14534_v53  ;;  %v13039_v53 = vld [vmem:[#allocation8 + $0x270] ss:$24 sps:$4 sm:$0xff]  }
 0x284   :  { %2038 = vmatprep.subr.bf16.mxu0 %v14535_v55  ;;  %4008 = vmatpush1.bf16.msra.mxu1 %v12967_v52  ;;  %v14557_v52 = vld [vmem:[#allocation6 + $0xd4] ss:$8 sps:$4 sm:$0xff]   ;;  %v1638_v55 = vunpack.c.l.bf16 %v15725_v30 }
 0x285   :  { %4009 = vmatprep.subr.bf16.mxu1 %v12975_v54  ;;  %v1631_v54 = vunpack.c.l.bf16 %v15723_v29  ;;  %v14561_v29 = vld [vmem:[#allocation6 + $0xf4] ss:$8 sps:$4 sm:$0xff]  }
 0x287   :  { %2039 = vmatpush1.bf16.msra.mxu0 %v14536_v57  ;;  %v1634_v57 = vunpack.c.h.bf16 %v15753_v49 }
 0x288   :  { %2040 = vmatprep.subr.bf16.mxu0 %v14537_v59  ;;  %4010 = vmatpush1.bf16.msra.mxu1 %v12973_v56  ;;  %v14558_v56 = vld [vmem:[#allocation6 + $0xd0] ss:$8 sps:$4 sm:$0xff]   ;;  %v13047_v59 = vld [vmem:[#allocation8 + $0x2a4] ss:$24 sps:$4 sm:$0xff]  }
 0x289   :  { %4011 = vmatprep.subr.bf16.mxu1 %v12981_v58  ;;  %v1641_v58 = vunpack.c.h.bf16 %v15755_v50 }
 0x28b   :  { %2041 = vmatpush1.bf16.msra.mxu0 %v14538_v61  ;;  %v13045_v61 = vld [vmem:[#allocation8 + $0x2a0] ss:$24 sps:$4 sm:$0xff]  }
 0x28c   :  { %2042 = vmatprep.subr.bf16.mxu0 %v14539_v63  ;;  %4012 = vmatpush1.bf16.msra.mxu1 %v12979_v60  ;;  %v14559_v60 = vld [vmem:[#allocation6 + $0xe4] ss:$8 sps:$4 sm:$0xff]   ;;  %v14560_v63 = vld [vmem:[#allocation6 + $0xe0] ss:$8 sps:$4 sm:$0xff]  }
 0x28d   :  { %4013 = vmatprep.subr.bf16.mxu1 %v12987_v62  ;;  %v1642_v62 = vadd.f32 %v1638_v55, %v1631_v54  ;;  %v13030_v54 = vld [vmem:[#allocation8 + $0x218] ss:$24 sps:$4 sm:$0xff]   ;;  %v13038_v55 = vld [vmem:[#allocation8 + $0x24c] ss:$24 sps:$4 sm:$0xff]  }
 0x28f   :  { %2043 = vmatpush1.bf16.msra.mxu0 %v14540_v1  ;;  %v1646_v30 = vpack.c.bf16 %v1642_v62, %v1642_v62  ;;  %v14562_v1 = vld [vmem:[#allocation6 + $0xf0] ss:$8 sps:$4 sm:$0xff]  }
 0x290   :  { %2044 = vmatprep.subr.bf16.mxu0 %v14541_v3  ;;  %4014 = vmatpush1.bf16.msra.mxu1 %v12985_v0  ;;  %v1645_v0 = vadd.f32 %v1641_v58, %v1634_v57  ;;  %v14563_v3 = vld [vmem:[#allocation6 + $0x104] ss:$8 sps:$4 sm:$0xff]   ;;  %v13044_v57 = vld [vmem:[#allocation8 + $0x27c] ss:$24 sps:$4 sm:$0xff]   ;;  %v13042_v58 = vld [vmem:[#allocation8 + $0x278] ss:$24 sps:$4 sm:$0xff]  }
 0x291   :  { %4015 = vmatprep.subr.bf16.mxu1 %v12993_v2  ;;  %v13054_v62 = vld [vmem:[#allocation8 + $0x2d8] ss:$24 sps:$4 sm:$0xff]  }
 0x292   :  { %v1649_v2 = vpack.c.bf16 %v1645_v0, %v1645_v0 }
 0x293   :  { %2045 = vmatpush1.bf16.msra.mxu0 %v14542_v5  ;;  %v14565_v5 = vld [vmem:[#allocation6 + $0x114] ss:$8 sps:$4 sm:$0xff]  }
 0x294   :  { %2046 = vmatprep.subr.bf16.mxu0 %v14543_v7  ;;  %4016 = vmatpush1.bf16.msra.mxu1 %v12991_v4  ;;  %v14564_v4 = vld [vmem:[#allocation6 + $0x100] ss:$8 sps:$4 sm:$0xff]   ;;  %v14567_v7 = vld [vmem:[#allocation6 + $0x124] ss:$8 sps:$4 sm:$0xff]  }
 0x295   :  { %4017 = vmatprep.subr.bf16.mxu1 %v12999_v6  ;;  %v14566_v6 = vld [vmem:[#allocation6 + $0x110] ss:$8 sps:$4 sm:$0xff]  }
 0x297   :  { %2047 = vmatpush1.bf16.msra.mxu0 %v14544_v9  ;;  %v14569_v9 = vld [vmem:[#allocation6 + $0x134] ss:$8 sps:$4 sm:$0xff]  }
 0x298   :  { %2048 = vmatprep.subr.bf16.mxu0 %v14545_v11  ;;  %4018 = vmatpush1.bf16.msra.mxu1 %v12997_v8  ;;  %v14568_v8 = vld [vmem:[#allocation6 + $0x120] ss:$8 sps:$4 sm:$0xff]   ;;  %v14571_v11 = vld [vmem:[#allocation6 + $0x144] ss:$8 sps:$4 sm:$0xff]  }
 0x299   :  { %4019 = vmatprep.subr.bf16.mxu1 %v13005_v10  ;;  %v14570_v10 = vld [vmem:[#allocation6 + $0x130] ss:$8 sps:$4 sm:$0xff]  }
 0x29b   :  { %2049 = vmatpush1.bf16.msra.mxu0 %v14546_v13  ;;  %v14573_v13 = vld [vmem:[#allocation6 + $0x154] ss:$8 sps:$4 sm:$0xff]  }
 0x29c   :  { %2050 = vmatprep.subr.bf16.mxu0 %v14547_v15  ;;  %4020 = vmatpush1.bf16.msra.mxu1 %v13003_v12  ;;  %v14572_v12 = vld [vmem:[#allocation6 + $0x140] ss:$8 sps:$4 sm:$0xff]  }
 0x29d   :  { %4021 = vmatprep.subr.bf16.mxu1 %v13011_v14  ;;  %v13053_v14 = vld [vmem:[#allocation8 + $0x2d4] ss:$24 sps:$4 sm:$0xff]   ;;  %v13051_v15 = vld [vmem:[#allocation8 + $0x2d0] ss:$24 sps:$4 sm:$0xff]  }
 0x29f   :  { %2051 = vmatpush1.bf16.msra.mxu0 %v14548_v17  ;;  %v14575_v17 = vld [vmem:[#allocation6 + $0x164] ss:$8 sps:$4 sm:$0xff]  }
 0x2a0   :  { %2052 = vmatprep.subr.bf16.mxu0 %v14549_v33  ;;  %4022 = vmatpush1.bf16.msra.mxu1 %v13009_v16  ;;  %v14574_v16 = vld [vmem:[#allocation6 + $0x150] ss:$8 sps:$4 sm:$0xff]   ;;  %v14576_v33 = vld [vmem:[#allocation6 + $0x160] ss:$8 sps:$4 sm:$0xff]  }
 0x2a1   :  { %4023 = vmatprep.subr.bf16.mxu1 %v13017_v18  ;;  %v13059_v18 = vld [vmem:[#allocation8 + $0x304] ss:$24 sps:$4 sm:$0xff]  }
 0x2a3   :  { %2053 = vmatpush1.bf16.msra.mxu0 %v14550_v35  ;;  %v14578_v35 = vld [vmem:[#allocation6 + $0x170] ss:$8 sps:$4 sm:$0xff]  }
 0x2a4   :  { %2054 = vmatprep.subr.bf16.mxu0 %v14551_v37  ;;  %4024 = vmatpush1.bf16.msra.mxu1 %v13015_v34  ;;  %v14577_v34 = vld [vmem:[#allocation6 + $0x174] ss:$8 sps:$4 sm:$0xff]   ;;  %v14580_v37 = vld [vmem:[#allocation6 + $0x180] ss:$8 sps:$4 sm:$0xff]  }
 0x2a5   :  { %4025 = vmatprep.subr.bf16.mxu1 %v13023_v36  ;;  %v14579_v36 = vld [vmem:[#allocation6 + $0x184] ss:$8 sps:$4 sm:$0xff]  }
 0x2a7   :  { %2055 = vmatpush1.bf16.msra.mxu0 %v14552_v40  ;;  %v1633_v40 = vunpack.c.l.bf16 %v15753_v49  ;;  %v13020_v49 = vld [vmem:[#allocation8 + $0x1bc] ss:$24 sps:$4 sm:$0xff]  }
 0x2a8   :  { %2056 = vmatprep.subr.bf16.mxu0 %v14553_v42  ;;  %4026 = vmatpush1.bf16.msra.mxu1 %v13021_v38  ;;  %v14581_v38 = vld [vmem:[#allocation6 + $0x194] ss:$8 sps:$4 sm:$0xff]   ;;  %v12990_v42 = vld [vmem:[#allocation8 + $0xcc] ss:$24 sps:$4 sm:$0xff]  }
 0x2a9   :  { %4027 = vmatprep.subr.bf16.mxu1 %v13029_v41  ;;  %v1640_v41 = vunpack.c.l.bf16 %v15755_v50  ;;  %v13018_v50 = vld [vmem:[#allocation8 + $0x1b8] ss:$24 sps:$4 sm:$0xff]  }
 0x2ab   :  { %2057 = vmatpush1.bf16.msra.mxu0 %v14554_v44  ;;  %v13000_v44 = vld [vmem:[#allocation8 + $0x128] ss:$24 sps:$4 sm:$0xff]  }
 0x2ac   :  { %2058 = vmatprep.subr.bf16.mxu0 %v14555_v46  ;;  %4028 = vmatpush1.bf16.msra.mxu1 %v13027_v43  ;;  %v12994_v43 = vld [vmem:[#allocation8 + $0xf8] ss:$24 sps:$4 sm:$0xff]  }
 0x2ad   :  { %4029 = vmatprep.subr.bf16.mxu1 %v13035_v45  ;;  %v13008_v45 = vld [vmem:[#allocation8 + $0x15c] ss:$24 sps:$4 sm:$0xff]   ;;  %v13006_v46 = vld [vmem:[#allocation8 + $0x158] ss:$24 sps:$4 sm:$0xff]  }
 0x2af   :  { %2059 = vmatpush1.bf16.msra.mxu0 %v14556_v48  ;;  %v13012_v48 = vld [vmem:[#allocation8 + $0x188] ss:$24 sps:$4 sm:$0xff]  }
 0x2b0   :  { %2060 = vmatprep.subr.bf16.mxu0 %v14557_v52  ;;  %4030 = vmatpush1.bf16.msra.mxu1 %v13033_v47  ;;  %v13014_v47 = vld [vmem:[#allocation8 + $0x18c] ss:$24 sps:$4 sm:$0xff]   ;;  %v13024_v52 = vld [vmem:[#allocation8 + $0x1e8] ss:$24 sps:$4 sm:$0xff]  }
 0x2b1   :  { %4031 = vmatprep.subr.bf16.mxu1 %v13041_v51  ;;  %v13026_v51 = vld [vmem:[#allocation8 + $0x1ec] ss:$24 sps:$4 sm:$0xff]  }
 0x2b3   :  { %2061 = vmatpush1.bf16.msra.mxu0 %v14558_v56  ;;  %v13036_v56 = vld [vmem:[#allocation8 + $0x248] ss:$24 sps:$4 sm:$0xff]  }
 0x2b4   :  { %2062 = vmatprep.subr.bf16.mxu0 %v14559_v60  ;;  %4032 = vmatpush1.bf16.msra.mxu1 %v13039_v53  ;;  %v13032_v53 = vld [vmem:[#allocation8 + $0x21c] ss:$24 sps:$4 sm:$0xff]   ;;  %v13048_v60 = vld [vmem:[#allocation8 + $0x2a8] ss:$24 sps:$4 sm:$0xff]  }
 0x2b5   :  { %4033 = vmatprep.subr.bf16.mxu1 %v13047_v59  ;;  %v13050_v59 = vld [vmem:[#allocation8 + $0x2ac] ss:$24 sps:$4 sm:$0xff]  }
 0x2b7   :  { %2063 = vmatpush1.bf16.msra.mxu0 %v14560_v63  ;;  %v13062_v63 = vld [vmem:[#allocation8 + $0x30c] ss:$24 sps:$4 sm:$0xff]  }
 0x2b8   :  { %2064 = vmatprep.subr.bf16.mxu0 %v14561_v29  ;;  %4034 = vmatpush1.bf16.msra.mxu1 %v13045_v61  ;;  %v13056_v61 = vld [vmem:[#allocation8 + $0x2dc] ss:$24 sps:$4 sm:$0xff]  }
 0x2b9   :  { %4035 = vmatprep.subr.bf16.mxu1 %v13053_v14  ;;  %v13065_v14 = vld [vmem:[#allocation8 + $0x334] ss:$24 sps:$4 sm:$0xff]  }
 0x2bb   :  { %2065 = vmatpush1.bf16.msra.mxu0 %v14562_v1 }
 0x2bc   :  { %2075 = vmatprep.subr.bf16.mxu0 %v14563_v3  ;;  %4036 = vmatpush1.bf16.msra.mxu1 %v13051_v15 }
 0x2bd   :  { %4046 = vmatprep.subr.bf16.mxu1 %v13059_v18  ;;  %v13068_v18 = vld [vmem:[#allocation8 + $0x33c] ss:$24 sps:$4 sm:$0xff]  }
 0x2be   :  { %2067 = vmatmul.mubr.bf16.vlgmr.msra.gmra.mrb[4].mxu0 %v1646_v30 }
 0x2bf   :  { %2076 = vmatpush1.bf16.msra.mxu0 %v14564_v4  ;;  %2107 = vmatprep.mubr.bf16.mxu0 %v1649_v2 }
 0x2c0   :  { %2077 = vmatprep.subr.bf16.mxu0 %v14565_v5 }
 0x2c3   :  { %2078 = vmatpush1.bf16.msra.mxu0 %v14566_v6 }
 0x2c4   :  { %2079 = vmatprep.subr.bf16.mxu0 %v14567_v7  ;;  %v13057_v7 = vld [vmem:[#allocation8 + $0x300] ss:$24 sps:$4 sm:$0xff]  }
 0x2c7   :  { %2080 = vmatpush1.bf16.msra.mxu0 %v14568_v8 }
 0x2c8   :  { %2081 = vmatprep.subr.bf16.mxu0 %v14569_v9 }
 0x2cb   :  { %2082 = vmatpush1.bf16.msra.mxu0 %v14570_v10 }
 0x2cc   :  { %2083 = vmatprep.subr.bf16.mxu0 %v14571_v11 }
 0x2cf   :  { %2084 = vmatpush1.bf16.msra.mxu0 %v14572_v12  ;;  %v13060_v12 = vld [vmem:[#allocation8 + $0x308] ss:$24 sps:$4 sm:$0xff]  }
 0x2d0   :  { %2085 = vmatprep.subr.bf16.mxu0 %v14573_v13 }
 0x2d3   :  { %2086 = vmatpush1.bf16.msra.mxu0 %v14574_v16  ;;  %v13063_v16 = vld [vmem:[#allocation8 + $0x330] ss:$24 sps:$4 sm:$0xff]  }
 0x2d4   :  { %2087 = vmatprep.subr.bf16.mxu0 %v14575_v17  ;;  %v13066_v17 = vld [vmem:[#allocation8 + $0x338] ss:$24 sps:$4 sm:$0xff]  }
 0x2d7   :  { %2088 = vmatpush1.bf16.msra.mxu0 %v14576_v33 }
 0x2d8   :  { %2089 = vmatprep.subr.bf16.mxu0 %v14577_v34  ;;  %v13071_v34 = vld [vmem:[#allocation8 + $0x364] ss:$24 sps:$4 sm:$0xff]  }
 0x2db   :  { %2090 = vmatpush1.bf16.msra.mxu0 %v14578_v35  ;;  %v13074_v35 = vld [vmem:[#allocation8 + $0x36c] ss:$24 sps:$4 sm:$0xff]  }
 0x2dc   :  { %2091 = vmatprep.subr.bf16.mxu0 %v14579_v36  ;;  %v13069_v36 = vld [vmem:[#allocation8 + $0x360] ss:$24 sps:$4 sm:$0xff]  }
 0x2df   :  { %2092 = vmatpush1.bf16.msra.mxu0 %v14580_v37  ;;  %v13072_v37 = vld [vmem:[#allocation8 + $0x368] ss:$24 sps:$4 sm:$0xff]  }
 0x2e0   :  { %2093 = vmatprep.subr.bf16.mxu0 %v14581_v38  ;;  %v13077_v38 = vld [vmem:[#allocation8 + $0x394] ss:$24 sps:$4 sm:$0xff]  }
 0x2e3   :  { %2094 = vmatpush1.bf16.msra.mxu0 %v15691_v19  ;;  %v1644_v19 = vadd.f32 %v1640_v41, %v1633_v40  ;;  %v13080_v40 = vld [vmem:[#allocation8 + $0x39c] ss:$24 sps:$4 sm:$0xff]   ;;  %v13075_v41 = vld [vmem:[#allocation8 + $0x390] ss:$24 sps:$4 sm:$0xff]  }
 0x2e4   :  { %2095 = vmatprep.subr.bf16.mxu0 %v15693_v20  ;;  %v12966_v20 = vld [vmem:[#allocation8 + $0xc] ss:$24 sps:$4 sm:$0xff]  }
 0x2e7   :  { %2096 = vmatpush1.bf16.msra.mxu0 %v15695_v21  ;;  %v1648_v21 = vpack.c.bf16 %v1644_v19, %v1644_v19  ;;  %v13078_v19 = vld [vmem:[#allocation8 + $0x398] ss:$24 sps:$4 sm:$0xff]  }
 0x2e8   :  { %2097 = vmatprep.subr.bf16.mxu0 %v15697_v22  ;;  %v12964_v22 = vld [vmem:[#allocation8 + $0x8] ss:$24 sps:$4 sm:$0xff]  }
 0x2eb   :  { %2098 = vmatpush1.bf16.msra.mxu0 %v15703_v23  ;;  %v12972_v23 = vld [vmem:[#allocation8 + $0x3c] ss:$24 sps:$4 sm:$0xff]  }
 0x2ec   :  { %2099 = vmatprep.subr.bf16.mxu0 %v15705_v24  ;;  %v12970_v24 = vld [vmem:[#allocation8 + $0x38] ss:$24 sps:$4 sm:$0xff]  }
 0x2ef   :  { %2100 = vmatpush1.bf16.msra.mxu0 %v15711_v25  ;;  %v12978_v25 = vld [vmem:[#allocation8 + $0x6c] ss:$24 sps:$4 sm:$0xff]  }
 0x2f0   :  { %2101 = vmatprep.subr.bf16.mxu0 %v15713_v26  ;;  %v12976_v26 = vld [vmem:[#allocation8 + $0x68] ss:$24 sps:$4 sm:$0xff]  }
 0x2f3   :  { %2102 = vmatpush1.bf16.msra.mxu0 %v15719_v27  ;;  %v12984_v27 = vld [vmem:[#allocation8 + $0x9c] ss:$24 sps:$4 sm:$0xff]  }
 0x2f4   :  { %2103 = vmatprep.subr.bf16.mxu0 %v15721_v28  ;;  %v12982_v28 = vld [vmem:[#allocation8 + $0x98] ss:$24 sps:$4 sm:$0xff]  }
 0x2f7   :  { %2104 = vmatpush1.bf16.msra.mxu0 %v15731_v31  ;;  %v12988_v31 = vld [vmem:[#allocation8 + $0xc8] ss:$24 sps:$4 sm:$0xff]  }
 0x2f8   :  { %2105 = vmatprep.subr.bf16.mxu0 %v15733_v32  ;;  %v12996_v32 = vld [vmem:[#allocation8 + $0xfc] ss:$24 sps:$4 sm:$0xff]  }
 0x2fb   :  { %2106 = vmatpush1.bf16.msra.mxu0 %v15745_v39  ;;  %v13002_v39 = vld [vmem:[#allocation8 + $0x12c] ss:$24 sps:$4 sm:$0xff]  }
 0x2fc   :  { %4128 = vmatprep.subr.bf16.mxu0 %v12966_v20  ;;  %v13083_v20 = vld [vmem:[#allocation8 + $0x3c4] ss:$24 sps:$4 sm:$0xff]  }
 0x2fe   :  { %2108 = vmatmul.mubr.bf16.vlgmr.msra.gmra.mrb[4].mxu0 %v1648_v21  ;;  %v13086_v21 = vld [vmem:[#allocation8 + $0x3cc] ss:$24 sps:$4 sm:$0xff]  }
 0x2ff   :  { %4129 = vmatpush1.bf16.msra.mxu0 %v12964_v22  ;;  %v384_v22 = vlaneseq }
 0x300   :  { %4130 = vmatprep.subr.bf16.mxu0 %v12972_v23  ;;  %v13081_v23 = vld [vmem:[#allocation8 + $0x3c0] ss:$24 sps:$4 sm:$0xff]  }
 0x303   :  { %4131 = vmatpush1.bf16.msra.mxu0 %v12970_v24  ;;  %v13084_v24 = vld [vmem:[#allocation8 + $0x3c8] ss:$24 sps:$4 sm:$0xff]  }
 0x304   :  { %4132 = vmatprep.subr.bf16.mxu0 %v12978_v25  ;;  %v15791_v25 = vshrl.u32 %v384_v22, 7  ;;  %v13158_v22 = vld [vmem:[#allocation8 + $0x60c] ss:$24 sps:$4 sm:$0xff]  }
 0x307   :  { %4133 = vmatpush1.bf16.msra.mxu0 %v12976_v26  ;;  %v13089_v26 = vld [vmem:[#allocation8 + $0x3f4] ss:$24 sps:$4 sm:$0xff]  }
 0x308   :  { %4134 = vmatprep.subr.bf16.mxu0 %v12984_v27  ;;  %v13092_v27 = vld [vmem:[#allocation8 + $0x3fc] ss:$24 sps:$4 sm:$0xff]  }
 0x30b   :  { %4135 = vmatpush1.bf16.msra.mxu0 %v12982_v28  ;;  %v13087_v28 = vld [vmem:[#allocation8 + $0x3f0] ss:$24 sps:$4 sm:$0xff]  }
 0x30c   :  { %4136 = vmatprep.subr.bf16.mxu0 %v12990_v42  ;;  %v13090_v42 = vld [vmem:[#allocation8 + $0x3f8] ss:$24 sps:$4 sm:$0xff]  }
 0x30f   :  { %4137 = vmatpush1.bf16.msra.mxu0 %v12988_v31  ;;  %v13095_v31 = vld [vmem:[#allocation8 + $0x424] ss:$24 sps:$4 sm:$0xff]  }
 0x310   :  { %4138 = vmatprep.subr.bf16.mxu0 %v12996_v32  ;;  %v13098_v32 = vld [vmem:[#allocation8 + $0x42c] ss:$24 sps:$4 sm:$0xff]  }
 0x313   :  { %4139 = vmatpush1.bf16.msra.mxu0 %v12994_v43  ;;  %v15793_v43 = vld [vmem:[#allocation11] ss:$4 sm:$0xff] }
 0x314   :  { %4140 = vmatprep.subr.bf16.mxu0 %v13002_v39  ;;  %v15796_v39 = vsub.s32 7, %v15791_v25 }
 0x317   :  { %4141 = vmatpush1.bf16.msra.mxu0 %v13000_v44  ;;  %v15798_v44 = vld [vmem:[#allocation12] sm:$0xff] }
 0x318   :  { %4142 = vmatprep.subr.bf16.mxu0 %v13008_v45  ;;  %v15801_v45 = vsub.s32 6, %v15791_v25 }
 0x31b   :  { %4143 = vmatpush1.bf16.msra.mxu0 %v13006_v46  ;;  %v13093_v46 = vld [vmem:[#allocation8 + $0x420] ss:$24 sps:$4 sm:$0xff]  }
 0x31c   :  { %4144 = vmatprep.subr.bf16.mxu0 %v13014_v47  ;;  %v13096_v47 = vld [vmem:[#allocation8 + $0x428] ss:$24 sps:$4 sm:$0xff]  }
 0x31f   :  { %4145 = vmatpush1.bf16.msra.mxu0 %v13012_v48  ;;  %v13101_v48 = vld [vmem:[#allocation8 + $0x454] ss:$24 sps:$4 sm:$0xff]  }
 0x320   :  { %4146 = vmatprep.subr.bf16.mxu0 %v13020_v49  ;;  %v982_v49 = vrot.slane %v15793_v43, %v15796_v39 }
 0x323   :  { %4147 = vmatpush1.bf16.msra.mxu0 %v13018_v50  ;;  %v978_v50 = vrot.slane %v15793_v43, %v15801_v45 }
 0x324   :  { %4148 = vmatprep.subr.bf16.mxu0 %v13026_v51  ;;  %v13104_v51 = vld [vmem:[#allocation8 + $0x45c] ss:$24 sps:$4 sm:$0xff]  }
 0x327   :  { %4149 = vmatpush1.bf16.msra.mxu0 %v13024_v52  ;;  %v15807_v52 = vld [vmem:[#allocation11 + $0x1] ss:$4 sm:$0xff] }
 0x328   :  { %4150 = vmatprep.subr.bf16.mxu0 %v13032_v53  ;;  %v415_v53 = vrot.slane %v15798_v44, %v15796_v39 }
 0x32b   :  { %4151 = vmatpush1.bf16.msra.mxu0 %v13030_v54  ;;  %v411_v54 = vrot.slane %v15798_v44, %v15801_v45 }
 0x32c   :  { %4152 = vmatprep.subr.bf16.mxu0 %v13038_v55  ;;  %v13099_v55 = vld [vmem:[#allocation8 + $0x450] ss:$24 sps:$4 sm:$0xff]  }
 0x32f   :  { %4153 = vmatpush1.bf16.msra.mxu0 %v13036_v56  ;;  %v13102_v56 = vld [vmem:[#allocation8 + $0x458] ss:$24 sps:$4 sm:$0xff]  }
 0x330   :  { %4154 = vmatprep.subr.bf16.mxu0 %v13044_v57  ;;  %v1575_v57 = vrot.slane %v15807_v52, %v15796_v39 }
 0x333   :  { %4155 = vmatpush1.bf16.msra.mxu0 %v13042_v58  ;;  %v13107_v58 = vld [vmem:[#allocation8 + $0x484] ss:$24 sps:$4 sm:$0xff]  }
 0x334   :  { %4156 = vmatprep.subr.bf16.mxu0 %v13050_v59  ;;  %v13110_v59 = vld [vmem:[#allocation8 + $0x48c] ss:$24 sps:$4 sm:$0xff]  }
 0x337   :  { %4157 = vmatpush1.bf16.msra.mxu0 %v13048_v60  ;;  %v1571_v60 = vrot.slane %v15807_v52, %v15801_v45 }
 0x338   :  { %4158 = vmatprep.subr.bf16.mxu0 %v13056_v61  ;;  %v13105_v61 = vld [vmem:[#allocation8 + $0x480] ss:$24 sps:$4 sm:$0xff]  }
 0x33b   :  { %4159 = vmatpush1.bf16.msra.mxu0 %v13054_v62  ;;  %v13108_v62 = vld [vmem:[#allocation8 + $0x488] ss:$24 sps:$4 sm:$0xff]  }
 0x33c   :  { %4169 = vmatprep.subr.bf16.mxu0 %v13062_v63  ;;  %v13113_v63 = vld [vmem:[#allocation8 + $0x4b4] ss:$24 sps:$4 sm:$0xff]  }
 0x351   :  { %v924_v0 = vpop.f32.mrb[0].mxu0  ;;  %v15776_v29 = vpop.f32.mrb[0].mxu1 }
 0x352   :  { %v931_v30 = vmul.f32 0.25, %v924_v0  ;;  %v926_v1 = vpop.f32.mrb[1].mxu0  ;;  %v1518_v2 = vpop.f32.mrb[1].mxu1 }
 0x353   :  { %v932_v3 = vmul.f32 0.25, %v926_v1  ;;  %v928_v4 = vpop.f32.mrb[2].mxu0  ;;  %v1520_v5 = vpop.f32.mrb[2].mxu1  ;;  %v942_v6 = vadd.f32 %v926_v1, %v924_v0  ;;  %v1534_v8 = vadd.f32 %v1518_v2, %v15776_v29  ;;  %v1524_v9 = vmul.f32 0.25, %v1518_v2  ;;  %v13116_v0 = vld [vmem:[#allocation8 + $0x4bc] ss:$24 sps:$4 sm:$0xff]  }
 0x354   :  { %v929_v10 = vpop.f32.mrb[3].mxu0  ;;  %v1521_v11 = vpop.f32.mrb[3].mxu1  ;;  %v15781_v15 = vpack.c.bf16 %v931_v30, %v931_v30  ;;  %v13111_v30 = vld [vmem:[#allocation8 + $0x4b0] ss:$24 sps:$4 sm:$0xff]   ;;  %v13119_v2 = vld [vmem:[#allocation8 + $0x4e4] ss:$24 sps:$4 sm:$0xff]  }
 0x355   :  { %v15779_v13 = vpack.c.bf16 %v932_v3, %v932_v3  ;;  %943 = vadd.xlane.f32.xlu0 %v942_v6  ;;  %v15785_v33 = vpack.c.bf16 %v1524_v9, %v1524_v9  ;;  %v13114_v1 = vld [vmem:[#allocation8 + $0x4b8] ss:$24 sps:$4 sm:$0xff]   ;;  %v13122_v3 = vld [vmem:[#allocation8 + $0x4ec] ss:$24 sps:$4 sm:$0xff]   ;;  %v13120_v5 = vld [vmem:[#allocation8 + $0x4e8] ss:$24 sps:$4 sm:$0xff]  }
 0x356   :  { %v13117_v4 = vld [vmem:[#allocation8 + $0x4e0] ss:$24 sps:$4 sm:$0xff]   ;;  %v13125_v6 = vld [vmem:[#allocation8 + $0x514] ss:$24 sps:$4 sm:$0xff]   ;;  %v13131_v10 = vld [vmem:[#allocation8 + $0x544] ss:$24 sps:$4 sm:$0xff]  }
 0x357   :  { %4037 = vmatprep.mubr.bf16.mxu1 %v15779_v13  ;;  %4160 = vmatprep.mubr.bf16.mxu0 %v15779_v13  ;;  %v13126_v9 = vld [vmem:[#allocation8 + $0x518] ss:$24 sps:$4 sm:$0xff]   ;;  %v13134_v11 = vld [vmem:[#allocation8 + $0x54c] ss:$24 sps:$4 sm:$0xff]  }
 0x358   :  { %4038 = vmatmul.mubr.bf16.vlgmr.msra.gmra.mrb[4].mxu1 %v15781_v15  ;;  %4161 = vmatmul.mubr.bf16.vlgmr.msra.gmra.mrb[8].mxu0 %v15781_v15 }
 0x359   :  { %4047 = vmatpush1.bf16.msra.mxu1 %v13057_v7  ;;  %4170 = vmatpush1.bf16.msra.mxu0 %v13060_v12  ;;  %v13128_v7 = vld [vmem:[#allocation8 + $0x51c] ss:$24 sps:$4 sm:$0xff]   ;;  %v13129_v12 = vld [vmem:[#allocation8 + $0x540] ss:$24 sps:$4 sm:$0xff]  }
 0x35a   :  { %1535 = vadd.xlane.f32.xlu0 %v1534_v8  ;;  %4078 = vmatprep.mubr.bf16.mxu1 %v15785_v33  ;;  %v13123_v8 = vld [vmem:[#allocation8 + $0x510] ss:$24 sps:$4 sm:$0xff]  }
 0x35b   :  { %4201 = vmatprep.mubr.bf16.mxu0 %v15785_v33  ;;  %4048 = vmatprep.subr.bf16.mxu1 %v13065_v14  ;;  %v13132_v14 = vld [vmem:[#allocation8 + $0x548] ss:$24 sps:$4 sm:$0xff]  }
 0x35c   :  { %4171 = vmatprep.subr.bf16.mxu0 %v13068_v18  ;;  %v13135_v18 = vld [vmem:[#allocation8 + $0x570] ss:$24 sps:$4 sm:$0xff]  }
 0x35d   :  { %4049 = vmatpush1.bf16.msra.mxu1 %v13063_v16  ;;  %4172 = vmatpush1.bf16.msra.mxu0 %v13066_v17  ;;  %v13137_v16 = vld [vmem:[#allocation8 + $0x574] ss:$24 sps:$4 sm:$0xff]  }
 0x35e   :  { %4050 = vmatprep.subr.bf16.mxu1 %v13071_v34  ;;  %4173 = vmatprep.subr.bf16.mxu0 %v13074_v35  ;;  %v13140_v17 = vld [vmem:[#allocation8 + $0x57c] ss:$24 sps:$4 sm:$0xff]   ;;  %v13138_v34 = vld [vmem:[#allocation8 + $0x578] ss:$24 sps:$4 sm:$0xff]  }
 0x35f   :  { %v13143_v35 = vld [vmem:[#allocation8 + $0x5a4] ss:$24 sps:$4 sm:$0xff]  }
 0x361   :  { %4051 = vmatpush1.bf16.msra.mxu1 %v13069_v36  ;;  %4174 = vmatpush1.bf16.msra.mxu0 %v13072_v37  ;;  %v13146_v36 = vld [vmem:[#allocation8 + $0x5ac] ss:$24 sps:$4 sm:$0xff]   ;;  %v13141_v37 = vld [vmem:[#allocation8 + $0x5a0] ss:$24 sps:$4 sm:$0xff]  }
 0x362   :  { %4052 = vmatprep.subr.bf16.mxu1 %v13077_v38  ;;  %4175 = vmatprep.subr.bf16.mxu0 %v13080_v40  ;;  %v13144_v38 = vld [vmem:[#allocation8 + $0x5a8] ss:$24 sps:$4 sm:$0xff]   ;;  %v13149_v40 = vld [vmem:[#allocation8 + $0x5d4] ss:$24 sps:$4 sm:$0xff]  }
 0x365   :  { %4053 = vmatpush1.bf16.msra.mxu1 %v13075_v41  ;;  %4176 = vmatpush1.bf16.msra.mxu0 %v13078_v19  ;;  %v13152_v41 = vld [vmem:[#allocation8 + $0x5dc] ss:$24 sps:$4 sm:$0xff]   ;;  %v13147_v19 = vld [vmem:[#allocation8 + $0x5d0] ss:$24 sps:$4 sm:$0xff]  }
 0x366   :  { %4054 = vmatprep.subr.bf16.mxu1 %v13083_v20  ;;  %4177 = vmatprep.subr.bf16.mxu0 %v13086_v21  ;;  %v13150_v20 = vld [vmem:[#allocation8 + $0x5d8] ss:$24 sps:$4 sm:$0xff]   ;;  %v13155_v21 = vld [vmem:[#allocation8 + $0x604] ss:$24 sps:$4 sm:$0xff]  }
 0x369   :  { %4055 = vmatpush1.bf16.msra.mxu1 %v13081_v23  ;;  %4178 = vmatpush1.bf16.msra.mxu0 %v13084_v24  ;;  %v1523_v23 = vmul.f32 0.25, %v15776_v29  ;;  %v13153_v24 = vld [vmem:[#allocation8 + $0x600] ss:$24 sps:$4 sm:$0xff]   ;;  %v13167_v29 = vld [vmem:[#allocation8 + $0x664] ss:$24 sps:$4 sm:$0xff]  }
 0x36a   :  { %4056 = vmatprep.subr.bf16.mxu1 %v13089_v26  ;;  %4179 = vmatprep.subr.bf16.mxu0 %v13092_v27  ;;  %v13156_v26 = vld [vmem:[#allocation8 + $0x608] ss:$24 sps:$4 sm:$0xff]   ;;  %v13161_v27 = vld [vmem:[#allocation8 + $0x634] ss:$24 sps:$4 sm:$0xff]  }
 0x36d   :  { %4057 = vmatpush1.bf16.msra.mxu1 %v13087_v28  ;;  %4180 = vmatpush1.bf16.msra.mxu0 %v13090_v42  ;;  %v13164_v28 = vld [vmem:[#allocation8 + $0x63c] ss:$24 sps:$4 sm:$0xff]   ;;  %v15818_v42 = vpack.c.bf16 %v1523_v23, %v1523_v23  ;;  %v13230_v23 = vld [vmem:[#allocation8 + $0x84c] ss:$24 sps:$4 sm:$0xff]  }
 0x36e   :  { %4058 = vmatprep.subr.bf16.mxu1 %v13095_v31  ;;  %4181 = vmatprep.subr.bf16.mxu0 %v13098_v32  ;;  %v13159_v31 = vld [vmem:[#allocation8 + $0x630] ss:$24 sps:$4 sm:$0xff]  }
 0x36f   :  { %v13162_v32 = vld [vmem:[#allocation8 + $0x638] ss:$24 sps:$4 sm:$0xff]  }
 0x371   :  { %4059 = vmatpush1.bf16.msra.mxu1 %v13093_v46  ;;  %4182 = vmatpush1.bf16.msra.mxu0 %v13096_v47  ;;  %v13170_v46 = vld [vmem:[#allocation8 + $0x66c] ss:$24 sps:$4 sm:$0xff]   ;;  %v13165_v47 = vld [vmem:[#allocation8 + $0x660] ss:$24 sps:$4 sm:$0xff]  }
 0x372   :  { %4060 = vmatprep.subr.bf16.mxu1 %v13101_v48  ;;  %4183 = vmatprep.subr.bf16.mxu0 %v13104_v51  ;;  %v13168_v48 = vld [vmem:[#allocation8 + $0x668] ss:$24 sps:$4 sm:$0xff]   ;;  %v13173_v51 = vld [vmem:[#allocation8 + $0x694] ss:$24 sps:$4 sm:$0xff]  }
 0x375   :  { %4061 = vmatpush1.bf16.msra.mxu1 %v13099_v55  ;;  %4184 = vmatpush1.bf16.msra.mxu0 %v13102_v56  ;;  %v13176_v55 = vld [vmem:[#allocation8 + $0x69c] ss:$24 sps:$4 sm:$0xff]   ;;  %v13171_v56 = vld [vmem:[#allocation8 + $0x690] ss:$24 sps:$4 sm:$0xff]  }
 0x376   :  { %4062 = vmatprep.subr.bf16.mxu1 %v13107_v58  ;;  %4185 = vmatprep.subr.bf16.mxu0 %v13110_v59  ;;  %v13174_v58 = vld [vmem:[#allocation8 + $0x698] ss:$24 sps:$4 sm:$0xff]   ;;  %v13179_v59 = vld [vmem:[#allocation8 + $0x6c4] ss:$24 sps:$4 sm:$0xff]  }
 0x379   :  { %4063 = vmatpush1.bf16.msra.mxu1 %v13105_v61  ;;  %4186 = vmatpush1.bf16.msra.mxu0 %v13108_v62  ;;  %v13182_v61 = vld [vmem:[#allocation8 + $0x6cc] ss:$24 sps:$4 sm:$0xff]   ;;  %v13177_v62 = vld [vmem:[#allocation8 + $0x6c0] ss:$24 sps:$4 sm:$0xff]  }
 0x37a   :  { %4064 = vmatprep.subr.bf16.mxu1 %v13113_v63  ;;  %4187 = vmatprep.subr.bf16.mxu0 %v13116_v0  ;;  %v13180_v63 = vld [vmem:[#allocation8 + $0x6c8] ss:$24 sps:$4 sm:$0xff]   ;;  %v13185_v0 = vld [vmem:[#allocation8 + $0x6f4] ss:$24 sps:$4 sm:$0xff]  }
 0x37d   :  { %4065 = vmatpush1.bf16.msra.mxu1 %v13111_v30  ;;  %4188 = vmatpush1.bf16.msra.mxu0 %v13114_v1  ;;  %v13188_v30 = vld [vmem:[#allocation8 + $0x6fc] ss:$24 sps:$4 sm:$0xff]   ;;  %v13183_v1 = vld [vmem:[#allocation8 + $0x6f0] ss:$24 sps:$4 sm:$0xff]  }
 0x37e   :  { %4066 = vmatprep.subr.bf16.mxu1 %v13119_v2  ;;  %4189 = vmatprep.subr.bf16.mxu0 %v13122_v3  ;;  %v13186_v2 = vld [vmem:[#allocation8 + $0x6f8] ss:$24 sps:$4 sm:$0xff]   ;;  %v13191_v3 = vld [vmem:[#allocation8 + $0x724] ss:$24 sps:$4 sm:$0xff]  }
 0x381   :  { %4067 = vmatpush1.bf16.msra.mxu1 %v13117_v4  ;;  %4190 = vmatpush1.bf16.msra.mxu0 %v13120_v5  ;;  %v13194_v4 = vld [vmem:[#allocation8 + $0x72c] ss:$24 sps:$4 sm:$0xff]   ;;  %v13189_v5 = vld [vmem:[#allocation8 + $0x720] ss:$24 sps:$4 sm:$0xff]  }
 0x382   :  { %4068 = vmatprep.subr.bf16.mxu1 %v13125_v6  ;;  %4191 = vmatprep.subr.bf16.mxu0 %v13128_v7  ;;  %v13192_v6 = vld [vmem:[#allocation8 + $0x728] ss:$24 sps:$4 sm:$0xff]   ;;  %v13197_v7 = vld [vmem:[#allocation8 + $0x754] ss:$24 sps:$4 sm:$0xff]  }
 0x385   :  { %4069 = vmatpush1.bf16.msra.mxu1 %v13123_v8  ;;  %4192 = vmatpush1.bf16.msra.mxu0 %v13126_v9  ;;  %v13200_v8 = vld [vmem:[#allocation8 + $0x75c] ss:$24 sps:$4 sm:$0xff]   ;;  %v13195_v9 = vld [vmem:[#allocation8 + $0x750] ss:$24 sps:$4 sm:$0xff]  }
 0x386   :  { %4070 = vmatprep.subr.bf16.mxu1 %v13131_v10  ;;  %4193 = vmatprep.subr.bf16.mxu0 %v13134_v11  ;;  %v13198_v10 = vld [vmem:[#allocation8 + $0x758] ss:$24 sps:$4 sm:$0xff]   ;;  %v13203_v11 = vld [vmem:[#allocation8 + $0x784] ss:$24 sps:$4 sm:$0xff]  }
 0x389   :  { %4071 = vmatpush1.bf16.msra.mxu1 %v13129_v12  ;;  %4194 = vmatpush1.bf16.msra.mxu0 %v13132_v14  ;;  %v13206_v12 = vld [vmem:[#allocation8 + $0x78c] ss:$24 sps:$4 sm:$0xff]   ;;  %v13201_v14 = vld [vmem:[#allocation8 + $0x780] ss:$24 sps:$4 sm:$0xff]  }
 0x38a   :  { %4072 = vmatprep.subr.bf16.mxu1 %v13137_v16  ;;  %4195 = vmatprep.subr.bf16.mxu0 %v13140_v17  ;;  %v13204_v16 = vld [vmem:[#allocation8 + $0x788] ss:$24 sps:$4 sm:$0xff]   ;;  %v13209_v17 = vld [vmem:[#allocation8 + $0x7b4] ss:$24 sps:$4 sm:$0xff]  }
 0x38d   :  { %4073 = vmatpush1.bf16.msra.mxu1 %v13135_v18  ;;  %4196 = vmatpush1.bf16.msra.mxu0 %v13138_v34  ;;  %v13212_v18 = vld [vmem:[#allocation8 + $0x7bc] ss:$24 sps:$4 sm:$0xff]   ;;  %v13207_v34 = vld [vmem:[#allocation8 + $0x7b0] ss:$24 sps:$4 sm:$0xff]  }
 0x38e   :  { %4074 = vmatprep.subr.bf16.mxu1 %v13143_v35  ;;  %4197 = vmatprep.subr.bf16.mxu0 %v13146_v36  ;;  %v13210_v35 = vld [vmem:[#allocation8 + $0x7b8] ss:$24 sps:$4 sm:$0xff]   ;;  %v13215_v36 = vld [vmem:[#allocation8 + $0x7e4] ss:$24 sps:$4 sm:$0xff]  }
 0x391   :  { %4075 = vmatpush1.bf16.msra.mxu1 %v13141_v37  ;;  %4198 = vmatpush1.bf16.msra.mxu0 %v13144_v38  ;;  %v13218_v37 = vld [vmem:[#allocation8 + $0x7ec] ss:$24 sps:$4 sm:$0xff]   ;;  %v13213_v38 = vld [vmem:[#allocation8 + $0x7e0] ss:$24 sps:$4 sm:$0xff]  }
 0x392   :  { %4076 = vmatprep.subr.bf16.mxu1 %v13149_v40  ;;  %4199 = vmatprep.subr.bf16.mxu0 %v13152_v41  ;;  %v13216_v40 = vld [vmem:[#allocation8 + $0x7e8] ss:$24 sps:$4 sm:$0xff]   ;;  %v13221_v41 = vld [vmem:[#allocation8 + $0x814] ss:$24 sps:$4 sm:$0xff]  }
 0x395   :  { %4077 = vmatpush1.bf16.msra.mxu1 %v13147_v19  ;;  %4200 = vmatpush1.bf16.msra.mxu0 %v13150_v20  ;;  %v13224_v19 = vld [vmem:[#allocation8 + $0x81c] ss:$24 sps:$4 sm:$0xff]   ;;  %v13219_v20 = vld [vmem:[#allocation8 + $0x810] ss:$24 sps:$4 sm:$0xff]  }
 0x396   :  { %4087 = vmatprep.subr.bf16.mxu1 %v13155_v21  ;;  %4210 = vmatprep.subr.bf16.mxu0 %v13158_v22  ;;  %v13222_v21 = vld [vmem:[#allocation8 + $0x818] ss:$24 sps:$4 sm:$0xff]   ;;  %v13227_v22 = vld [vmem:[#allocation8 + $0x844] ss:$24 sps:$4 sm:$0xff]  }
 0x398   :  { %4079 = vmatmul.mubr.bf16.vlgmr.msra.gmra.mrb[4].mxu1 %v15818_v42  ;;  %4202 = vmatmul.mubr.bf16.vlgmr.msra.gmra.mrb[8].mxu0 %v15818_v42 }
 0x399   :  { %4088 = vmatpush1.bf16.msra.mxu1 %v13153_v24  ;;  %4211 = vmatpush1.bf16.msra.mxu0 %v13156_v26  ;;  %v13225_v24 = vld [vmem:[#allocation8 + $0x840] ss:$24 sps:$4 sm:$0xff]  }
 0x39a   :  { %4089 = vmatprep.subr.bf16.mxu1 %v13161_v27  ;;  %4212 = vmatprep.subr.bf16.mxu0 %v13164_v28  ;;  %v13228_v26 = vld [vmem:[#allocation8 + $0x848] ss:$24 sps:$4 sm:$0xff]   ;;  %v13233_v27 = vld [vmem:[#allocation8 + $0x874] ss:$24 sps:$4 sm:$0xff]  }
 0x39b   :  { %v13236_v28 = vld [vmem:[#allocation8 + $0x87c] ss:$24 sps:$4 sm:$0xff]  }
 0x39d   :  { %4090 = vmatpush1.bf16.msra.mxu1 %v13159_v31  ;;  %4213 = vmatpush1.bf16.msra.mxu0 %v13162_v32  ;;  %v13231_v31 = vld [vmem:[#allocation8 + $0x870] ss:$24 sps:$4 sm:$0xff]  }
 0x39e   :  { %4091 = vmatprep.subr.bf16.mxu1 %v13167_v29  ;;  %4214 = vmatprep.subr.bf16.mxu0 %v13170_v46  ;;  %v13234_v32 = vld [vmem:[#allocation8 + $0x878] ss:$24 sps:$4 sm:$0xff]   ;;  %v13239_v29 = vld [vmem:[#allocation8 + $0x8a4] ss:$24 sps:$4 sm:$0xff]  }
 0x39f   :  { %v13242_v46 = vld [vmem:[#allocation8 + $0x8ac] ss:$24 sps:$4 sm:$0xff]  }
 0x3a1   :  { %4092 = vmatpush1.bf16.msra.mxu1 %v13165_v47  ;;  %4215 = vmatpush1.bf16.msra.mxu0 %v13168_v48  ;;  %v13237_v47 = vld [vmem:[#allocation8 + $0x8a0] ss:$24 sps:$4 sm:$0xff]  }
 0x3a2   :  { %4093 = vmatprep.subr.bf16.mxu1 %v13173_v51  ;;  %4216 = vmatprep.subr.bf16.mxu0 %v13176_v55  ;;  %v13240_v48 = vld [vmem:[#allocation8 + $0x8a8] ss:$24 sps:$4 sm:$0xff]   ;;  %v13245_v51 = vld [vmem:[#allocation8 + $0x8d4] ss:$24 sps:$4 sm:$0xff]  }
 0x3a3   :  { %v13248_v55 = vld [vmem:[#allocation8 + $0x8dc] ss:$24 sps:$4 sm:$0xff]  }
 0x3a5   :  { %4094 = vmatpush1.bf16.msra.mxu1 %v13171_v56  ;;  %4217 = vmatpush1.bf16.msra.mxu0 %v13174_v58  ;;  %v13243_v56 = vld [vmem:[#allocation8 + $0x8d0] ss:$24 sps:$4 sm:$0xff]  }
 0x3a6   :  { %4095 = vmatprep.subr.bf16.mxu1 %v13179_v59  ;;  %4218 = vmatprep.subr.bf16.mxu0 %v13182_v61  ;;  %v13246_v59 = vld [vmem:[#allocation8 + $0x8d8] ss:$24 sps:$4 sm:$0xff]   ;;  %v13251_v61 = vld [vmem:[#allocation8 + $0x14] ss:$24 sps:$4 sm:$0xff]  }
 0x3a9   :  { %4096 = vmatpush1.bf16.msra.mxu1 %v13177_v62  ;;  %4219 = vmatpush1.bf16.msra.mxu0 %v13180_v63 }
 0x3aa   :  { %4097 = vmatprep.subr.bf16.mxu1 %v13185_v0  ;;  %4220 = vmatprep.subr.bf16.mxu0 %v13188_v30 }
 0x3ad   :  { %4098 = vmatpush1.bf16.msra.mxu1 %v13183_v1  ;;  %4221 = vmatpush1.bf16.msra.mxu0 %v13186_v2  ;;  %v13249_v2 = vld [vmem:[#allocation8 + $0x10] ss:$24 sps:$4 sm:$0xff]  }
 0x3ae   :  { %4099 = vmatprep.subr.bf16.mxu1 %v13191_v3  ;;  %4222 = vmatprep.subr.bf16.mxu0 %v13194_v4  ;;  %v13254_v4 = vld [vmem:[#allocation8 + $0x44] ss:$24 sps:$4 sm:$0xff]  }
 0x3b1   :  { %4100 = vmatpush1.bf16.msra.mxu1 %v13189_v5  ;;  %4223 = vmatpush1.bf16.msra.mxu0 %v13192_v6 }
 0x3b2   :  { %4101 = vmatprep.subr.bf16.mxu1 %v13197_v7  ;;  %4224 = vmatprep.subr.bf16.mxu0 %v13200_v8  ;;  %v13252_v7 = vld [vmem:[#allocation8 + $0x40] ss:$24 sps:$4 sm:$0xff]   ;;  %v13257_v8 = vld [vmem:[#allocation8 + $0x74] ss:$24 sps:$4 sm:$0xff]  }
 0x3b5   :  { %4102 = vmatpush1.bf16.msra.mxu1 %v13195_v9  ;;  %4225 = vmatpush1.bf16.msra.mxu0 %v13198_v10  ;;  %v13255_v9 = vld [vmem:[#allocation8 + $0x70] ss:$24 sps:$4 sm:$0xff]   ;;  %v13260_v10 = vld [vmem:[#allocation8 + $0xa4] ss:$24 sps:$4 sm:$0xff]  }
 0x3b6   :  { %4103 = vmatprep.subr.bf16.mxu1 %v13203_v11  ;;  %4226 = vmatprep.subr.bf16.mxu0 %v13206_v12  ;;  %v15831_v11 = vld [vmem:[#allocation11 + $0x20] ss:$4 sm:$0xf]  ;;  %v15834_v12 = vsub.s32 0, %v15791_v25 }
 0x3b9   :  { %4104 = vmatpush1.bf16.msra.mxu1 %v13201_v14  ;;  %4227 = vmatpush1.bf16.msra.mxu0 %v13204_v16  ;;  %v15837_v14 = vsub.s32 1, %v15791_v25  ;;  %v13258_v16 = vld [vmem:[#allocation8 + $0xa0] ss:$24 sps:$4 sm:$0xff]  }
 0x3ba   :  { %4105 = vmatprep.subr.bf16.mxu1 %v13209_v17  ;;  %4228 = vmatprep.subr.bf16.mxu0 %v13212_v18  ;;  %v13263_v17 = vld [vmem:[#allocation8 + $0xd4] ss:$24 sps:$4 sm:$0xff]   ;;  %v15842_v18 = vld [vmem:[#allocation12 + $0x8] sm:$0xf] }
 0x3bd   :  { %4106 = vmatpush1.bf16.msra.mxu1 %v13207_v34  ;;  %4229 = vmatpush1.bf16.msra.mxu0 %v13210_v35  ;;  %v986_v35 = vrot.slane %v15831_v11, %v15834_v12 }
 0x3be   :  { %4107 = vmatprep.subr.bf16.mxu1 %v13215_v36  ;;  %4230 = vmatprep.subr.bf16.mxu0 %v13218_v37  ;;  %v14582_v36 = vld [vmem:[#allocation11] ss:$4 sm:$0xff] }
 0x3bf   :  { %v958_v37 = vrot.slane %v14582_v36, %v15837_v14 }
 0x3c1   :  { %4108 = vmatpush1.bf16.msra.mxu1 %v13213_v38  ;;  %4231 = vmatpush1.bf16.msra.mxu0 %v13216_v40  ;;  %v15849_v40 = vld [vmem:[#allocation11 + $0x21] ss:$4 sm:$0xf] }
 0x3c2   :  { %4109 = vmatprep.subr.bf16.mxu1 %v13221_v41  ;;  %4232 = vmatprep.subr.bf16.mxu0 %v13224_v19  ;;  %v15852_v41 = vsub.s32 2, %v15791_v25  ;;  %v14583_v19 = vld [vmem:[#allocation12] sm:$0xff] }
 0x3c5   :  { %4110 = vmatpush1.bf16.msra.mxu1 %v13219_v20  ;;  %4233 = vmatpush1.bf16.msra.mxu0 %v13222_v21  ;;  %v391_v20 = vrot.slane %v14583_v19, %v15837_v14  ;;  %v13261_v21 = vld [vmem:[#allocation8 + $0xd0] ss:$24 sps:$4 sm:$0xff]  }
 0x3c6   :  { %4111 = vmatprep.subr.bf16.mxu1 %v13227_v22  ;;  %4234 = vmatprep.subr.bf16.mxu0 %v13230_v23  ;;  %v954_v22 = vrot.slane %v14582_v36, %v15834_v12 }
 0x3c9   :  { %4112 = vmatpush1.bf16.msra.mxu1 %v13225_v24  ;;  %4235 = vmatpush1.bf16.msra.mxu0 %v13228_v26  ;;  %v13266_v24 = vld [vmem:[#allocation8 + $0x104] ss:$24 sps:$4 sm:$0xff]   ;;  %v419_v26 = vrot.slane %v15842_v18, %v15834_v12 }
 0x3ca   :  { %4113 = vmatprep.subr.bf16.mxu1 %v13233_v27  ;;  %4236 = vmatprep.subr.bf16.mxu0 %v13236_v28  ;;  %v1579_v28 = vrot.slane %v15849_v40, %v15834_v12 }
 0x3cd   :  { %4114 = vmatpush1.bf16.msra.mxu1 %v13231_v31  ;;  %4237 = vmatpush1.bf16.msra.mxu0 %v13234_v32 }
 0x3ce   :  { %4115 = vmatprep.subr.bf16.mxu1 %v13239_v29  ;;  %4238 = vmatprep.subr.bf16.mxu0 %v13242_v46  ;;  %v15863_v29 = vld [vmem:[#allocation11 + $0x1] ss:$4 sm:$0xff] }
 0x3cf   :  { %v1551_v46 = vrot.slane %v15863_v29, %v15837_v14 }
 0x3d1   :  { %4116 = vmatpush1.bf16.msra.mxu1 %v13237_v47  ;;  %v2109_v58 = vpop.f32.mrb[4].mxu0  ;;  %4239 = vmatpush1.bf16.msra.mxu0 %v13240_v48  ;;  %v387_v47 = vrot.slane %v14583_v19, %v15834_v12  ;;  %v1547_v48 = vrot.slane %v15863_v29, %v15834_v12 }
 0x3d2   :  { %v2116_v62 = vmul.f32 0.25, %v2109_v58  ;;  %v2111_v63 = vpop.f32.mrb[5].mxu0  ;;  %4117 = vmatprep.subr.bf16.mxu1 %v13245_v51  ;;  %4240 = vmatprep.subr.bf16.mxu0 %v13248_v55 }
 0x3d3   :  { %v2117_v0 = vmul.f32 0.25, %v2111_v63  ;;  %v2113_v30 = vpop.f32.mrb[6].mxu0  ;;  %v2127_v1 = vadd.f32 %v2111_v63, %v2109_v58  ;;  %v395_v58 = vrot.slane %v14583_v19, %v15852_v41 }
 0x3d4   :  { %v2114_v3 = vpop.f32.mrb[7].mxu0  ;;  %v15824_v6 = vpack.c.bf16 %v2116_v62, %v2116_v62  ;;  %v13269_v62 = vld [vmem:[#allocation8 + $0x134] ss:$24 sps:$4 sm:$0xff]  }
 0x3d5   :  { %v15822_v5 = vpack.c.bf16 %v2117_v0, %v2117_v0  ;;  %4118 = vmatpush1.bf16.msra.mxu1 %v13243_v56  ;;  %4241 = vmatpush1.bf16.msra.mxu0 %v13246_v59  ;;  %v962_v59 = vrot.slane %v14582_v36, %v15852_v41 }
 0x3d6   :  { %2128 = vadd.xlane.f32.xlu1 %v2127_v1  ;;  %4251 = vmatprep.subr.bf16.mxu1 %v13251_v61  ;;  %v13264_v61 = vld [vmem:[#allocation8 + $0x100] ss:$24 sps:$4 sm:$0xff]  }
 0x3d7   :  { %4119 = vmatprep.mubr.bf16.mxu1 %v15822_v5  ;;  %4242 = vmatprep.mubr.bf16.mxu0 %v15822_v5 }
 0x3d8   :  { %4120 = vmatmul.mubr.bf16.vlgmr.msra.gmra.mrb[4].mxu1 %v15824_v6  ;;  %4243 = vmatmul.mubr.bf16.vlgmr.msra.gmra.mrb[8].mxu0 %v15824_v6 }
 0x3d9   :  { %4252 = vmatpush1.bf16.msra.mxu1 %v13249_v2  ;;  %4283 = vmatprep.mubr.bf16.mxu1 %v15779_v13  ;;  %v15840_v13 = vsub.s32 3, %v15791_v25  ;;  %v15881_v2 = vld [vmem:[#allocation11 + $0x2] ss:$4 sm:$0xff] }
 0x3da   :  { %4253 = vmatprep.subr.bf16.mxu1 %v13254_v4 }
 0x3db   :  { %v966_v23 = vrot.slane %v14582_v36, %v15840_v13  ;;  %v399_v51 = vrot.slane %v14583_v19, %v15840_v13  ;;  %v1559_v30 = vrot.slane %v15863_v29, %v15840_v13  ;;  %v998_v1 = vrot.slane %v15831_v11, %v15840_v13  ;;  %v13267_v19 = vld [vmem:[#allocation8 + $0x130] ss:$24 sps:$4 sm:$0xff]  }
 0x3dc   :  { %v1591_v36 = vrot.slane %v15849_v40, %v15840_v13 }
 0x3dd   :  { %4254 = vmatpush1.bf16.msra.mxu1 %v13252_v7  ;;  %v1555_v7 = vrot.slane %v15863_v29, %v15852_v41 }
 0x3de   :  { %4255 = vmatprep.subr.bf16.mxu1 %v13257_v8  ;;  %v994_v8 = vrot.slane %v15831_v11, %v15852_v41  ;;  %v13272_v11 = vld [vmem:[#allocation8 + $0x164] ss:$24 sps:$4 sm:$0xff]  }
 0x3e1   :  { %4256 = vmatpush1.bf16.msra.mxu1 %v13255_v9 }
 0x3e2   :  { %v944_v34 = vpop.xlane.xlu0 %943  ;;  %4257 = vmatprep.subr.bf16.mxu1 %v13260_v10 }
 0x3e3   :  { %v15847_v38 = vmul.f32 0.0009765625, %v944_v34 }
 0x3e5   :  { %4258 = vmatpush1.bf16.msra.mxu1 %v13258_v16  ;;  %v1019_v27 = vmul.f32 %v986_v35, %v15847_v38  ;;  %v1012_v31 = vmul.f32 %v958_v37, %v15847_v38  ;;  %v1011_v63 = vmul.f32 %v954_v22, %v15847_v38  ;;  %v1014_v0 = vmul.f32 %v966_v23, %v15847_v38 }
 0x3e6   :  { %4259 = vmatprep.subr.bf16.mxu1 %v13263_v17  ;;  %v431_v35 = vrot.slane %v15842_v18, %v15840_v13  ;;  %v427_v37 = vrot.slane %v15842_v18, %v15852_v41  ;;  %v1013_v23 = vmul.f32 %v962_v59, %v15847_v38 }
 0x3e7   :  { %v1536_v32 = vpop.xlane.xlu0 %1535  ;;  %v1024_v56 = vadd.f32 %v1012_v31, %v391_v20  ;;  %v1031_v3 = vadd.f32 %v1019_v27, %v419_v26  ;;  %v1023_v10 = vadd.f32 %v1011_v63, %v387_v47  ;;  %v1026_v17 = vadd.f32 %v1014_v0, %v399_v51  ;;  %v13275_v51 = vld [vmem:[#allocation8 + $0x194] ss:$24 sps:$4 sm:$0xff]   ;;  %v13273_v63 = vld [vmem:[#allocation8 + $0x190] ss:$24 sps:$4 sm:$0xff]   ;;  %v13278_v0 = vld [vmem:[#allocation8 + $0x1c4] ss:$24 sps:$4 sm:$0xff]  }
 0x3e8   :  { %v15871_v55 = vmul.f32 0.0009765625, %v1536_v32  ;;  %v1018_v26 = vmul.f32 %v982_v49, %v15847_v38  ;;  %v1587_v27 = vrot.slane %v15849_v40, %v15852_v41  ;;  %v1025_v31 = vadd.f32 %v1013_v23, %v395_v58  ;;  %v13302_v23 = vld [vmem:[#allocation8 + $0x344] ss:$24 sps:$4 sm:$0xff]  }
 0x3e9   :  { %4260 = vmatpush1.bf16.msra.mxu1 %v13261_v21  ;;  %v2168_v32 = vrot.slane %v15881_v2, %v15796_v39  ;;  %v2164_v40 = vrot.slane %v15881_v2, %v15801_v45  ;;  %v1022_v47 = vmul.f32 %v998_v1, %v15847_v38  ;;  %v13279_v1 = vld [vmem:[#allocation8 + $0x1f0] ss:$24 sps:$4 sm:$0xff]  }
 0x3ea   :  { %4261 = vmatprep.subr.bf16.mxu1 %v13266_v24  ;;  %v1612_v4 = vmul.f32 %v1579_v28, %v15871_v55  ;;  %v1605_v9 = vmul.f32 %v1551_v46, %v15871_v55  ;;  %v1604_v16 = vmul.f32 %v1547_v48, %v15871_v55  ;;  %v1607_v22 = vmul.f32 %v1559_v30, %v15871_v55  ;;  %v13270_v48 = vld [vmem:[#allocation8 + $0x160] ss:$24 sps:$4 sm:$0xff]   ;;  %v13281_v30 = vld [vmem:[#allocation8 + $0x1f4] ss:$24 sps:$4 sm:$0xff]  }
 0x3eb   :  { %v1606_v24 = vmul.f32 %v1555_v7, %v15871_v55  ;;  %v1611_v18 = vmul.f32 %v1575_v57, %v15871_v55  ;;  %v1017_v46 = vmul.f32 %v978_v50, %v15847_v38  ;;  %v1030_v49 = vadd.f32 %v1018_v26, %v415_v53  ;;  %v13287_v7 = vld [vmem:[#allocation8 + $0x254] ss:$24 sps:$4 sm:$0xff]  }
 0x3ec   :  { %v15890_v34 = vadd.f32 %v1612_v4, %v1031_v3  ;;  %v15898_v20 = vadd.f32 %v1605_v9, %v1024_v56  ;;  %v15900_v21 = vadd.f32 %v1604_v16, %v1023_v10  ;;  %v15915_v28 = vadd.f32 %v1607_v22, %v1026_v17  ;;  %v13284_v3 = vld [vmem:[#allocation8 + $0x224] ss:$24 sps:$4 sm:$0xff]   ;;  %v13282_v4 = vld [vmem:[#allocation8 + $0x220] ss:$24 sps:$4 sm:$0xff]   ;;  %v13293_v16 = vld [vmem:[#allocation8 + $0x2b4] ss:$24 sps:$4 sm:$0xff]  }
 0x3ed   :  { %4262 = vmatpush1.bf16.msra.mxu1 %v13264_v61  ;;  %v1610_v57 = vmul.f32 %v1571_v60, %v15871_v55  ;;  %v15933_v56 = vadd.f32 %v1606_v24, %v1025_v31  ;;  %v1029_v43 = vadd.f32 %v1017_v46, %v411_v54  ;;  %v1615_v50 = vmul.f32 %v1591_v36, %v15871_v55  ;;  %v13276_v54 = vld [vmem:[#allocation8 + $0x1c0] ss:$24 sps:$4 sm:$0xff]   ;;  %v13290_v9 = vld [vmem:[#allocation8 + $0x284] ss:$24 sps:$4 sm:$0xff]   ;;  %v13291_v17 = vld [vmem:[#allocation8 + $0x2b0] ss:$24 sps:$4 sm:$0xff]  }
 0x3ee   :  { %4263 = vmatprep.subr.bf16.mxu1 %v13269_v62  ;;  %v15939_v53 = vadd.f32 %v1611_v18, %v1030_v49  ;;  %v1034_v52 = vadd.f32 %v1022_v47, %v431_v35  ;;  %v1021_v60 = vmul.f32 %v994_v8, %v15847_v38  ;;  %v1614_v58 = vmul.f32 %v1587_v27, %v15871_v55  ;;  %v13285_v8 = vld [vmem:[#allocation8 + $0x250] ss:$24 sps:$4 sm:$0xff]   ;;  %v13288_v10 = vld [vmem:[#allocation8 + $0x280] ss:$24 sps:$4 sm:$0xff]   ;;  %v13296_v35 = vld [vmem:[#allocation8 + $0x2e4] ss:$24 sps:$4 sm:$0xff]  }
 0x3ef   :  { %v15943_v59 = vadd.f32 %v1610_v57, %v1029_v43  ;;  %v13294_v36 = vld [vmem:[#allocation8 + $0x2e0] ss:$24 sps:$4 sm:$0xff]   ;;  %v13297_v22 = vld [vmem:[#allocation8 + $0x310] ss:$24 sps:$4 sm:$0xff]   ;;  %v13305_v46 = vld [vmem:[#allocation8 + $0x374] ss:$24 sps:$4 sm:$0xff]  }
 0x3f0   :  { %v15945_v61 = vadd.f32 %v1615_v50, %v1034_v52  ;;  %v1033_v62 = vadd.f32 %v1021_v60, %v427_v37  ;;  %v13390_v37 = vld [vmem:[%s16847_s20 + $0x40] sm:$0xff]   ;;  %v13395_v24 = vld [vmem:[%s16847_s20 + $0x48] sm:$0xff]   ;;  %v13399_v27 = vld [vmem:[%s16847_s20 + $0x50] sm:$0xff]  }
 0x3f1   :  { %4264 = vmatpush1.bf16.msra.mxu1 %v13267_v19  ;;  %v13391_v19 = vld [vmem:[%s16847_s20] sm:$0xff]   ;;  %12509 = vmatprep.subr.bf16.mxu0 %v13390_v37  ;;  %v13396_v26 = vld [vmem:[%s16847_s20 + $0x8] sm:$0xff]   ;;  %v13400_v31 = vld [vmem:[%s16847_s20 + $0x10] sm:$0xff]  }
 0x3f2   :  { %4265 = vmatprep.subr.bf16.mxu1 %v13272_v11  ;;  %v15947_v44 = vadd.f32 %v1614_v58, %v1033_v62  ;;  %v13299_v11 = vld [vmem:[#allocation8 + $0x314] ss:$24 sps:$4 sm:$0xff]   ;;  %12510 = vmatpush3.bf16.msra.mxu0 %v13391_v19  ;;  %v13300_v18 = vld [vmem:[#allocation8 + $0x340] ss:$24 sps:$4 sm:$0xff]   ;;  %v13303_v49 = vld [vmem:[#allocation8 + $0x370] ss:$24 sps:$4 sm:$0xff]  }
 0x3f3   :  { %12511 = vmatprep.subr.bf16.mxu0 %v13395_v24  ;;  %v13308_v57 = vld [vmem:[#allocation8 + $0x3a4] ss:$24 sps:$4 sm:$0xff]   ;;  %v13306_v47 = vld [vmem:[#allocation8 + $0x3a0] ss:$24 sps:$4 sm:$0xff]   ;;  %v13311_v43 = vld [vmem:[#allocation8 + $0x3d4] ss:$24 sps:$4 sm:$0xff]  }
 0x3f4   :  { %v13309_v50 = vld [vmem:[#allocation8 + $0x3d0] ss:$24 sps:$4 sm:$0xff]   ;;  %v13314_v58 = vld [vmem:[#allocation8 + $0x404] ss:$24 sps:$4 sm:$0xff]   ;;  %v13312_v62 = vld [vmem:[#allocation8 + $0x400] ss:$24 sps:$4 sm:$0xff]  }
 0x3f5   :  { %4266 = vmatpush1.bf16.msra.mxu1 %v13270_v48  ;;  %v13407_v48 = vld [vmem:[%s16847_s20 + $0x60] sm:$0xff]   ;;  %v13411_v52 = vld [vmem:[%s16847_s20 + $0x68] sm:$0xff]  }
 0x3f6   :  { %4267 = vmatprep.subr.bf16.mxu1 %v13275_v51  ;;  %12512 = vmatpush3.bf16.msra.mxu0 %v13396_v26  ;;  %v13408_v51 = vld [vmem:[%s16847_s20 + $0x20] sm:$0xff]   ;;  %v13412_v60 = vld [vmem:[%s16847_s20 + $0x28] sm:$0xff]  }
 0x3f7   :  { %12513 = vmatprep.subr.bf16.mxu0 %v13399_v27  ;;  %v13332_v37 = vld [vmem:[#allocation8 + $0x524] ss:$24 sps:$4 sm:$0xff]   ;;  %v13330_v19 = vld [vmem:[#allocation8 + $0x520] ss:$24 sps:$4 sm:$0xff]   ;;  %v13341_v26 = vld [vmem:[#allocation8 + $0x5b4] ss:$24 sps:$4 sm:$0xff]  }
 0x3f8   :  { %v13336_v24 = vld [vmem:[#allocation8 + $0x580] ss:$24 sps:$4 sm:$0xff]   ;;  %v13344_v27 = vld [vmem:[#allocation8 + $0x5e4] ss:$24 sps:$4 sm:$0xff]  }
 0x3f9   :  { %4268 = vmatpush1.bf16.msra.mxu1 %v13273_v63  ;;  %v13317_v63 = vld [vmem:[#allocation8 + $0x434] ss:$24 sps:$4 sm:$0xff]  }
 0x3fa   :  { %4269 = vmatprep.subr.bf16.mxu1 %v13278_v0  ;;  %12514 = vmatpush3.bf16.msra.mxu0 %v13400_v31  ;;  %v13415_v0 = vld [vmem:[%s16847_s20 + $0x70] sm:$0xff]   ;;  %v13342_v31 = vld [vmem:[#allocation8 + $0x5e0] ss:$24 sps:$4 sm:$0xff]  }
 0x3fd   :  { %4270 = vmatpush1.bf16.msra.mxu1 %v13276_v54  ;;  %v13416_v54 = vld [vmem:[%s16847_s20 + $0x30] sm:$0xff]  }
 0x3fe   :  { %4271 = vmatprep.subr.bf16.mxu1 %v13281_v30  ;;  %v13315_v30 = vld [vmem:[#allocation8 + $0x430] ss:$24 sps:$4 sm:$0xff]  }
 0x401   :  { %4272 = vmatpush1.bf16.msra.mxu1 %v13279_v1  ;;  %v13320_v1 = vld [vmem:[#allocation8 + $0x464] ss:$24 sps:$4 sm:$0xff]  }
 0x402   :  { %4273 = vmatprep.subr.bf16.mxu1 %v13284_v3  ;;  %v13419_v3 = vld [vmem:[%s16847_s20 + $0x78] sm:$0xff]  }
 0x405   :  { %4274 = vmatpush1.bf16.msra.mxu1 %v13282_v4  ;;  %v13420_v4 = vld [vmem:[%s16847_s20 + $0x38] sm:$0xff]  }
 0x406   :  { %4275 = vmatprep.subr.bf16.mxu1 %v13287_v7  ;;  %v13318_v7 = vld [vmem:[#allocation8 + $0x460] ss:$24 sps:$4 sm:$0xff]  }
 0x409   :  { %4276 = vmatpush1.bf16.msra.mxu1 %v13285_v8  ;;  %v13423_v8 = vld [vmem:[%s16847_s20 + $0xc0] sm:$0xff]  }
 0x40a   :  { %4277 = vmatprep.subr.bf16.mxu1 %v13290_v9  ;;  %v13323_v9 = vld [vmem:[#allocation8 + $0x494] ss:$24 sps:$4 sm:$0xff]  }
 0x40d   :  { %4278 = vmatpush1.bf16.msra.mxu1 %v13288_v10  ;;  %v13321_v10 = vld [vmem:[#allocation8 + $0x490] ss:$24 sps:$4 sm:$0xff]  }
 0x40e   :  { %4279 = vmatprep.subr.bf16.mxu1 %v13293_v16  ;;  %v13326_v16 = vld [vmem:[#allocation8 + $0x4c4] ss:$24 sps:$4 sm:$0xff]  }
 0x411   :  { %4280 = vmatpush1.bf16.msra.mxu1 %v13291_v17  ;;  %v13324_v17 = vld [vmem:[#allocation8 + $0x4c0] ss:$24 sps:$4 sm:$0xff]  }
 0x412   :  { %4281 = vmatprep.subr.bf16.mxu1 %v13296_v35  ;;  %v13329_v35 = vld [vmem:[#allocation8 + $0x4f4] ss:$24 sps:$4 sm:$0xff]  }
 0x415   :  { %4282 = vmatpush1.bf16.msra.mxu1 %v13294_v36  ;;  %v13327_v36 = vld [vmem:[#allocation8 + $0x4f0] ss:$24 sps:$4 sm:$0xff]  }
 0x416   :  { %4292 = vmatprep.subr.bf16.mxu1 %v13299_v11  ;;  %v13335_v11 = vld [vmem:[#allocation8 + $0x554] ss:$24 sps:$4 sm:$0xff]  }
 0x418   :  { %4284 = vmatmul.mubr.bf16.vlgmr.msra.gmra.mrb[8].mxu1 %v15781_v15  ;;  %v13403_v15 = vld [vmem:[%s16847_s20 + $0x58] sm:$0xff]  }
 0x419   :  { %4293 = vmatpush1.bf16.msra.mxu1 %v13297_v22  ;;  %4324 = vmatprep.mubr.bf16.mxu1 %v15785_v33  ;;  %v13404_v33 = vld [vmem:[%s16847_s20 + $0x18] sm:$0xff]   ;;  %v13333_v22 = vld [vmem:[#allocation8 + $0x550] ss:$24 sps:$4 sm:$0xff]  }
 0x41a   :  { %4294 = vmatprep.subr.bf16.mxu1 %v13302_v23  ;;  %12515 = vmatprep.subr.bf16.mxu0 %v13403_v15  ;;  %v13338_v23 = vld [vmem:[#allocation8 + $0x584] ss:$24 sps:$4 sm:$0xff]  }
 0x41b   :  { %12516 = vmatpush3.bf16.msra.mxu0 %v13404_v33  ;;  %v13350_v15 = vld [vmem:[#allocation8 + $0x644] ss:$24 sps:$4 sm:$0xff]   ;;  %v13348_v33 = vld [vmem:[#allocation8 + $0x640] ss:$24 sps:$4 sm:$0xff]  }
 0x41c   :  { %12517 = vmatprep.subr.bf16.mxu0 %v13407_v48  ;;  %v13356_v48 = vld [vmem:[#allocation8 + $0x6a4] ss:$24 sps:$4 sm:$0xff]  }
 0x41d   :  { %4295 = vmatpush1.bf16.msra.mxu1 %v13300_v18  ;;  %v13339_v18 = vld [vmem:[#allocation8 + $0x5b0] ss:$24 sps:$4 sm:$0xff]  }
 0x41e   :  { %4296 = vmatprep.subr.bf16.mxu1 %v13305_v46  ;;  %v13347_v46 = vld [vmem:[#allocation8 + $0x614] ss:$24 sps:$4 sm:$0xff]  }
 0x41f   :  { %12518 = vmatpush3.bf16.msra.mxu0 %v13408_v51  ;;  %v16004_v51 = vld [vmem:[#allocation11 + $0x22] ss:$4 sm:$0xf] }
 0x420   :  { %12519 = vmatprep.subr.bf16.mxu0 %v13411_v52  ;;  %v2172_v52 = vrot.slane %v16004_v51, %v15834_v12 }
 0x421   :  { %4297 = vmatpush1.bf16.msra.mxu1 %v13303_v49  ;;  %v13345_v49 = vld [vmem:[#allocation8 + $0x610] ss:$24 sps:$4 sm:$0xff]  }
 0x422   :  { %4298 = vmatprep.subr.bf16.mxu1 %v13308_v57  ;;  %v13353_v57 = vld [vmem:[#allocation8 + $0x674] ss:$24 sps:$4 sm:$0xff]  }
 0x423   :  { %12520 = vmatpush3.bf16.msra.mxu0 %v13412_v60  ;;  %v2140_v60 = vrot.slane %v15881_v2, %v15834_v12 }
 0x424   :  { %12521 = vmatprep.subr.bf16.mxu0 %v13415_v0  ;;  %v13357_v0 = vld [vmem:[#allocation8 + $0x6d0] ss:$24 sps:$4 sm:$0xff]  }
 0x425   :  { %4299 = vmatpush1.bf16.msra.mxu1 %v13306_v47  ;;  %v13351_v47 = vld [vmem:[#allocation8 + $0x670] ss:$24 sps:$4 sm:$0xff]  }
 0x426   :  { %4300 = vmatprep.subr.bf16.mxu1 %v13311_v43  ;;  %v13354_v43 = vld [vmem:[#allocation8 + $0x6a0] ss:$24 sps:$4 sm:$0xff]  }
 0x427   :  { %12522 = vmatpush3.bf16.msra.mxu0 %v13416_v54  ;;  %v13362_v54 = vld [vmem:[#allocation8 + $0x704] ss:$24 sps:$4 sm:$0xff]  }
 0x428   :  { %12523 = vmatprep.subr.bf16.mxu0 %v13419_v3 }
 0x429   :  { %4301 = vmatpush1.bf16.msra.mxu1 %v13309_v50  ;;  %v13359_v50 = vld [vmem:[#allocation8 + $0x6d4] ss:$24 sps:$4 sm:$0xff]  }
 0x42a   :  { %4302 = vmatprep.subr.bf16.mxu1 %v13314_v58  ;;  %v2152_v58 = vrot.slane %v15881_v2, %v15840_v13 }
 0x42b   :  { %12524 = vmatpush3.bf16.msra.mxu0 %v13420_v4 }
 0x42c   :  { %12531 = vmatprep.subr.bf16.mxu0 %v13423_v8 }
 0x42d   :  { %4303 = vmatpush1.bf16.msra.mxu1 %v13312_v62  ;;  %v2148_v62 = vrot.slane %v15881_v2, %v15852_v41 }
 0x42e   :  { %4304 = vmatprep.subr.bf16.mxu1 %v13317_v63 }
 0x431   :  { %4305 = vmatpush1.bf16.msra.mxu1 %v13315_v30 }
 0x432   :  { %4306 = vmatprep.subr.bf16.mxu1 %v13320_v1 }
 0x435   :  { %4307 = vmatpush1.bf16.msra.mxu1 %v13318_v7 }
 0x436   :  { %4308 = vmatprep.subr.bf16.mxu1 %v13323_v9  ;;  %v2184_v9 = vrot.slane %v16004_v51, %v15840_v13 }
 0x439   :  { %4309 = vmatpush1.bf16.msra.mxu1 %v13321_v10  ;;  %v2180_v10 = vrot.slane %v16004_v51, %v15852_v41 }
 0x43a   :  { %4310 = vmatprep.subr.bf16.mxu1 %v13326_v16  ;;  %v13360_v16 = vld [vmem:[#allocation8 + $0x700] ss:$24 sps:$4 sm:$0xff]  }
 0x43d   :  { %4311 = vmatpush1.bf16.msra.mxu1 %v13324_v17 }
 0x43e   :  { %4312 = vmatprep.subr.bf16.mxu1 %v13329_v35 }
 0x441   :  { %4313 = vmatpush1.bf16.msra.mxu1 %v13327_v36 }
 0x442   :  { %4314 = vmatprep.subr.bf16.mxu1 %v13332_v37  ;;  %v13365_v37 = vld [vmem:[#allocation8 + $0x734] ss:$24 sps:$4 sm:$0xff]  }
 0x445   :  { %4315 = vmatpush1.bf16.msra.mxu1 %v13330_v19 }
 0x446   :  { %4316 = vmatprep.subr.bf16.mxu1 %v13335_v11 }
 0x449   :  { %4317 = vmatpush1.bf16.msra.mxu1 %v13333_v22 }
 0x44a   :  { %4318 = vmatprep.subr.bf16.mxu1 %v13338_v23 }
 0x44d   :  { %4319 = vmatpush1.bf16.msra.mxu1 %v13336_v24  ;;  %v13369_v24 = vld [vmem:[#allocation8 + $0x790] ss:$24 sps:$4 sm:$0xff]  }
 0x44e   :  { %4320 = vmatprep.subr.bf16.mxu1 %v13341_v26  ;;  %v13374_v26 = vld [vmem:[#allocation8 + $0x7c4] ss:$24 sps:$4 sm:$0xff]  }
 0x451   :  { %4321 = vmatpush1.bf16.msra.mxu1 %v13339_v18  ;;  %v13377_v18 = vld [vmem:[#allocation8 + $0x7f4] ss:$24 sps:$4 sm:$0xff]  }
 0x452   :  { %4322 = vmatprep.subr.bf16.mxu1 %v13344_v27  ;;  %v13378_v27 = vld [vmem:[#allocation8 + $0x820] ss:$24 sps:$4 sm:$0xff]  }
 0x455   :  { %4323 = vmatpush1.bf16.msra.mxu1 %v13342_v31  ;;  %v16065_v31 = vsub.s32 5, %v15791_v25 }
 0x456   :  { %4333 = vmatprep.subr.bf16.mxu1 %v13347_v46  ;;  %v13381_v46 = vld [vmem:[#allocation8 + $0x850] ss:$24 sps:$4 sm:$0xff]  }
 0x458   :  { %4325 = vmatmul.mubr.bf16.vlgmr.msra.gmra.mrb[8].mxu1 %v15818_v42 }
 0x459   :  { %4334 = vmatpush1.bf16.msra.mxu1 %v13345_v49  ;;  %4365 = vmatprep.mubr.bf16.mxu1 %v15822_v5  ;;  %v2144_v5 = vrot.slane %v15881_v2, %v15837_v14  ;;  %v13386_v49 = vld [vmem:[#allocation8 + $0x884] ss:$24 sps:$4 sm:$0xff]  }
 0x45a   :  { %4335 = vmatprep.subr.bf16.mxu1 %v13350_v15  ;;  %v16067_v15 = vld [vmem:[#allocation11] ss:$4 sm:$0xff] }
 0x45d   :  { %4336 = vmatpush1.bf16.msra.mxu1 %v13348_v33  ;;  %v974_v33 = vrot.slane %v16067_v15, %v16065_v31 }
 0x45e   :  { %4337 = vmatprep.subr.bf16.mxu1 %v13353_v57  ;;  %v13384_v57 = vld [vmem:[#allocation8 + $0x880] ss:$24 sps:$4 sm:$0xff]  }
 0x461   :  { %4338 = vmatpush1.bf16.msra.mxu1 %v13351_v47  ;;  %v1567_v47 = vrot.slane %v15863_v29, %v16065_v31 }
 0x462   :  { %4339 = vmatprep.subr.bf16.mxu1 %v13356_v48  ;;  %v13389_v48 = vld [vmem:[#allocation8 + $0x8b4] ss:$24 sps:$4 sm:$0xff]  }
 0x463   :  { %v2129_v42 = vpop.xlane.xlu1 %2128 }
 0x464   :  { %v16016_v63 = vmul.f32 0.0009765625, %v2129_v42  ;;  %v2160_v42 = vrot.slane %v15881_v2, %v16065_v31  ;;  %v13398_v2 = vld [vmem:[%s16848_s10 + $0x100] sm:$0xff]  }
 0x465   :  { %4340 = vmatpush1.bf16.msra.mxu1 %v13354_v43  ;;  %v16073_v43 = vld [vmem:[#allocation12] sm:$0xff] }
 0x466   :  { %4341 = vmatprep.subr.bf16.mxu1 %v13359_v50  ;;  %v2205_v30 = vmul.f32 %v2172_v52, %v16016_v63  ;;  %v2198_v1 = vmul.f32 %v2144_v5, %v16016_v63  ;;  %v2197_v3 = vmul.f32 %v2140_v60, %v16016_v63  ;;  %v2200_v4 = vmul.f32 %v2152_v58, %v16016_v63  ;;  %v13387_v5 = vld [vmem:[#allocation8 + $0x8b0] ss:$24 sps:$4 sm:$0xff]   ;;  %v13394_v58 = vld [vmem:[#allocation8 + $0x8e4] ss:$24 sps:$4 sm:$0xff]  }
 0x467   :  { %v2199_v7 = vmul.f32 %v2148_v62, %v16016_v63  ;;  %v2204_v19 = vmul.f32 %v2168_v32, %v16016_v63  ;;  %v2207_v11 = vmul.f32 %v2180_v10, %v16016_v63  ;;  %v13366_v32 = vld [vmem:[#allocation8 + $0x760] ss:$24 sps:$4 sm:$0xff]   ;;  %v407_v50 = vrot.slane %v16073_v43, %v16065_v31  ;;  %v13406_v10 = vld [vmem:[%s16848_s10 + $0x110] sm:$0xff]  }
 0x468   :  { %v16024_v8 = vadd.f32 %v2205_v30, %v15890_v34  ;;  %v16031_v17 = vadd.f32 %v2198_v1, %v15898_v20  ;;  %v16034_v35 = vadd.f32 %v2197_v3, %v15900_v21  ;;  %v16037_v36 = vadd.f32 %v2200_v4, %v15915_v28  ;;  %v13363_v28 = vld [vmem:[#allocation8 + $0x730] ss:$24 sps:$4 sm:$0xff]   ;;  %v13397_v30 = vld [vmem:[%s16848_s10 + $0x140] sm:$0xff]  }
 0x469   :  { %4342 = vmatpush1.bf16.msra.mxu1 %v13357_v0  ;;  %v16040_v34 = vadd.f32 %v2199_v7, %v15933_v56  ;;  %v2203_v20 = vmul.f32 %v2164_v40, %v16016_v63  ;;  %v2208_v21 = vmul.f32 %v2184_v9, %v16016_v63  ;;  %v13368_v56 = vld [vmem:[#allocation8 + $0x764] ss:$24 sps:$4 sm:$0xff]   ;;  %v16053_v22 = vadd.f32 %v2204_v19, %v15939_v53  ;;  %v13371_v40 = vld [vmem:[#allocation8 + $0x794] ss:$24 sps:$4 sm:$0xff]   ;;  %v13372_v53 = vld [vmem:[#allocation8 + $0x7c0] ss:$24 sps:$4 sm:$0xff]  }
 0x46a   :  { %4343 = vmatprep.subr.bf16.mxu1 %v13362_v54  ;;  %v16062_v45 = vadd.f32 %v2207_v11, %v15947_v44  ;;  %v13383_v44 = vld [vmem:[#allocation8 + $0x854] ss:$24 sps:$4 sm:$0xff]   ;;  %v1016_v52 = vmul.f32 %v974_v33, %v15847_v38  ;;  %v1609_v60 = vmul.f32 %v1567_v47, %v15871_v55  ;;  %v2202_v29 = vmul.f32 %v2160_v42, %v16016_v63  ;;  %v13392_v0 = vld [vmem:[#allocation8 + $0x8e0] ss:$24 sps:$4 sm:$0xff]  }
 0x46b   :  { %v16056_v23 = vadd.f32 %v2203_v20, %v15943_v59  ;;  %v16059_v39 = vadd.f32 %v2208_v21, %v15945_v61  ;;  %v13375_v59 = vld [vmem:[#allocation8 + $0x7f0] ss:$24 sps:$4 sm:$0xff]   ;;  %v13380_v61 = vld [vmem:[#allocation8 + $0x824] ss:$24 sps:$4 sm:$0xff]   ;;  %v16115_v19 = vsub.s32 4, %v15791_v25 }
 0x46c   :  { %v1028_v62 = vadd.f32 %v1016_v52, %v407_v50  ;;  %v13401_v3 = vld [vmem:[%s16848_s10 + $0x148] sm:$0xff]   ;;  %v13405_v9 = vld [vmem:[%s16848_s10 + $0x150] sm:$0xff]   ;;  %v13414_v20 = vld [vmem:[%s16848_s10 + $0x120] sm:$0xff]   ;;  %v2176_v52 = vrot.slane %v16004_v51, %v15837_v14 }
 0x46d   :  { %4344 = vmatpush1.bf16.msra.mxu1 %v13360_v16  ;;  %v13402_v7 = vld [vmem:[%s16848_s10 + $0x108] sm:$0xff]   ;;  %v13410_v16 = vld [vmem:[%s16848_s10 + $0x118] sm:$0xff]   ;;  %v16120_v21 = vld [vmem:[#allocation9] sm:$0x3f]  ;;  %v970_v11 = vrot.slane %v16067_v15, %v16115_v19 }
 0x46e   :  { %4345 = vmatprep.subr.bf16.mxu1 %v13365_v37  ;;  %v1621_v54 = vadd.f32 %v1609_v60, %v1028_v62  ;;  %v13413_v37 = vld [vmem:[%s16848_s10 + $0x160] sm:$0xff]   ;;  %v2517_v25 = vrot.slane %v16120_v21, %v15834_v12 }
 0x46f   :  { %v14591_v47 = vld [vmem:[#allocation12 + $0x8] sm:$0xf] }
 0x470   :  { %v16085_v1 = vadd.f32 %v2202_v29, %v1621_v54 }
 0x471   :  { %4346 = vmatpush1.bf16.msra.mxu1 %v13363_v28  ;;  %v13417_v28 = vld [vmem:[%s16848_s10 + $0x168] sm:$0xff]  }
 0x472   :  { %4347 = vmatprep.subr.bf16.mxu1 %v13368_v56  ;;  %v4379_v4 = vpack.c.bf16 %v16085_v1, %v16085_v1  ;;  %v14587_v56 = vld [vmem:[#allocation11 + $0x20] ss:$4 sm:$0xf] }
 0x475   :  { %4348 = vmatpush1.bf16.msra.mxu1 %v13366_v32  ;;  %v990_v32 = vrot.slane %v14587_v56, %v15837_v14  ;;  %v13429_v56 = vld [vmem:[%s16848_s10 + $0x240] sm:$0xff]  }
 0x476   :  { %4349 = vmatprep.subr.bf16.mxu1 %v13371_v40  ;;  %v14588_v40 = vld [vmem:[#allocation11 + $0x1] ss:$4 sm:$0xff] }
 0x477   :  { %v1020_v50 = vmul.f32 %v990_v32, %v15847_v38  ;;  %v13428_v32 = vld [vmem:[%s16847_s20 + $0x88] sm:$0xff]  }
 0x479   :  { %4350 = vmatpush1.bf16.msra.mxu1 %v13369_v24  ;;  %v1563_v24 = vrot.slane %v14588_v40, %v16115_v19  ;;  %v13431_v40 = vld [vmem:[%s16847_s20 + $0xd0] sm:$0xff]  }
 0x47a   :  { %4351 = vmatprep.subr.bf16.mxu1 %v13374_v26  ;;  %v2521_v26 = vrot.slane %v16120_v21, %v15837_v14 }
 0x47b   :  { %v1608_v60 = vmul.f32 %v1563_v24, %v15871_v55  ;;  %v13430_v24 = vld [vmem:[%s16848_s10 + $0x200] sm:$0xff]  }
 0x47d   :  { %4352 = vmatpush1.bf16.msra.mxu1 %v13372_v53  ;;  %v2529_v53 = vrot.slane %v16120_v21, %v15840_v13 }
 0x47e   :  { %4353 = vmatprep.subr.bf16.mxu1 %v13377_v18  ;;  %v13418_v18 = vld [vmem:[%s16848_s10 + $0x128] sm:$0xff]  }
 0x481   :  { %4354 = vmatpush1.bf16.msra.mxu1 %v13375_v59  ;;  %v14589_v59 = vld [vmem:[#allocation11 + $0x21] ss:$4 sm:$0xf] }
 0x482   :  { %4355 = vmatprep.subr.bf16.mxu1 %v13380_v61  ;;  %v1583_v61 = vrot.slane %v14589_v59, %v15837_v14  ;;  %v13432_v59 = vld [vmem:[%s16847_s20 + $0x90] sm:$0xff]  }
 0x484   :  { %v1613_v54 = vmul.f32 %v1583_v61, %v15871_v55  ;;  %v2206_v55 = vmul.f32 %v2176_v52, %v16016_v63  ;;  %v13435_v61 = vld [vmem:[%s16847_s20 + $0xd8] sm:$0xff]   ;;  %v13445_v52 = vld [vmem:[%s16848_s10 + $0x260] sm:$0xff]  }
 0x485   :  { %4356 = vmatpush1.bf16.msra.mxu1 %v13378_v27  ;;  %v13421_v27 = vld [vmem:[%s16848_s10 + $0x170] sm:$0xff]  }
 0x486   :  { %4357 = vmatprep.subr.bf16.mxu1 %v13383_v44  ;;  %v403_v44 = vrot.slane %v16073_v43, %v16115_v19 }
 0x489   :  { %4358 = vmatpush1.bf16.msra.mxu1 %v13381_v46  ;;  %v1015_v46 = vmul.f32 %v970_v11, %v15847_v38  ;;  %v13422_v38 = vld [vmem:[%s16848_s10 + $0x130] sm:$0xff]  }
 0x48a   :  { %4359 = vmatprep.subr.bf16.mxu1 %v13386_v49  ;;  %v14590_v49 = vld [vmem:[#allocation11 + $0x2] ss:$4 sm:$0xff] }
 0x48b   :  { %v2156_v15 = vrot.slane %v14590_v49, %v16115_v19  ;;  %v13439_v49 = vld [vmem:[%s16847_s20 + $0xe0] sm:$0xff]  }
 0x48d   :  { %4360 = vmatpush1.bf16.msra.mxu1 %v13384_v57 }
 0x48e   :  { %4361 = vmatprep.subr.bf16.mxu1 %v13389_v48  ;;  %v423_v48 = vrot.slane %v14591_v47, %v15837_v14  ;;  %v13440_v47 = vld [vmem:[%s16847_s20 + $0xa0] sm:$0xff]  }
 0x491   :  { %4362 = vmatpush1.bf16.msra.mxu1 %v13387_v5 }
 0x492   :  { %4363 = vmatprep.subr.bf16.mxu1 %v13394_v58 }
 0x495   :  { %4364 = vmatpush1.bf16.msra.mxu1 %v13392_v0 }
 0x496   :  { %12619 = vmatprep.subr.bf16.mxu1 %v13397_v30 }
 0x498   :  { %4366 = vmatmul.mubr.bf16.vlgmr.msra.gmra.mrb[8].mxu1 %v15824_v6  ;;  %v13409_v6 = vld [vmem:[%s16848_s10 + $0x158] sm:$0xff]  }
 0x499   :  { %12620 = vmatpush3.bf16.msra.mxu1 %v13398_v2  ;;  %5776 = vmatprep.mubr.bf16.mxu1 %v4379_v4  ;;  %v13425_v2 = vld [vmem:[%s16848_s10 + $0x178] sm:$0xff]   ;;  %v2201_v4 = vmul.f32 %v2156_v15, %v16016_v63  ;;  %v13438_v15 = vld [vmem:[%s16848_s10 + $0x210] sm:$0xff]  }
 0x49a   :  { %12621 = vmatprep.subr.bf16.mxu1 %v13401_v3  ;;  %v1027_v3 = vadd.f32 %v1015_v46, %v403_v44  ;;  %v13437_v44 = vld [vmem:[%s16848_s10 + $0x250] sm:$0xff]   ;;  %v13436_v46 = vld [vmem:[%s16847_s20 + $0x98] sm:$0xff]  }
 0x49d   :  { %12622 = vmatpush3.bf16.msra.mxu1 %v13402_v7 }
 0x49e   :  { %12623 = vmatprep.subr.bf16.mxu1 %v13405_v9  ;;  %v13424_v9 = vld [vmem:[%s16847_s20 + $0x80] sm:$0xff]  }
 0x4a1   :  { %12624 = vmatpush3.bf16.msra.mxu1 %v13406_v10  ;;  %v1032_v10 = vadd.f32 %v1020_v50, %v423_v48  ;;  %v13443_v48 = vld [vmem:[%s16847_s20 + $0xe8] sm:$0xff]   ;;  %v13442_v50 = vld [vmem:[%s16848_s10 + $0x218] sm:$0xff]  }
 0x4a2   :  { %12625 = vmatprep.subr.bf16.mxu1 %v13409_v6 }
 0x4a3   :  { %v1625_v11 = vadd.f32 %v1613_v54, %v1032_v10  ;;  %v13451_v54 = vld [vmem:[%s16847_s20 + $0xf8] sm:$0xff]  }
 0x4a5   :  { %12626 = vmatpush3.bf16.msra.mxu1 %v13410_v16  ;;  %v13427_v16 = vld [vmem:[%s16847_s20 + $0xc8] sm:$0xff]  }
 0x4a6   :  { %12627 = vmatprep.subr.bf16.mxu1 %v13413_v37  ;;  %v1620_v37 = vadd.f32 %v1608_v60, %v1027_v3  ;;  %v13446_v60 = vld [vmem:[%s16848_s10 + $0x220] sm:$0xff]  }
 0x4a8   :  { %v16183_v63 = vadd.f32 %v2201_v4, %v1620_v37  ;;  %v13457_v4 = vld [vmem:[%s16847_s20 + $0x140] sm:$0xff]   ;;  %v13461_v37 = vld [vmem:[%s16847_s20 + $0x150] sm:$0xff]  }
 0x4a9   :  { %12628 = vmatpush3.bf16.msra.mxu1 %v13414_v20 }
 0x4aa   :  { %12629 = vmatprep.subr.bf16.mxu1 %v13417_v28  ;;  %v13426_v28 = vld [vmem:[%s16848_s10 + $0x138] sm:$0xff]  }
 0x4ab   :  { %v4121_v33 = vpop.f32.mrb[4].mxu1  ;;  %v16146_v57 = vpop.f32.mrb[8].mxu0 }
 0x4ac   :  { %v16152_v42 = vadd.f32 %v4121_v33, %v2517_v25  ;;  %v4123_v5 = vpop.f32.mrb[5].mxu1  ;;  %v4246_v43 = vpop.f32.mrb[9].mxu0  ;;  %v16191_v25 = vadd.f32 %v2206_v55, %v1625_v11  ;;  %v13441_v33 = vld [vmem:[%s16848_s10 + $0x258] sm:$0xff]   ;;  %v13459_v55 = vld [vmem:[%s16847_s20 + $0x148] sm:$0xff]  }
 0x4ad   :  { %v16155_v58 = vadd.f32 %v4123_v5, %v2521_v26  ;;  %v16157_v62 = vadd.f32 %v4246_v43, %v2529_v53  ;;  %12630 = vmatpush3.bf16.msra.mxu1 %v13418_v18  ;;  %v4125_v29 = vpop.f32.mrb[6].mxu1  ;;  %v4248_v0 = vpop.f32.mrb[10].mxu0  ;;  %v4378_v26 = vpack.c.bf16 %v16183_v63, %v16183_v63  ;;  %v13433_v53 = vld [vmem:[%s16848_s10 + $0x248] sm:$0xff]   ;;  %v13447_v43 = vld [vmem:[%s16847_s20 + $0xf0] sm:$0xff]   ;;  %v13463_v11 = vld [vmem:[%s16847_s20 + $0x158] sm:$0xff]  }
 0x4ae   :  { %v4126_v51 = vpop.f32.mrb[7].mxu1  ;;  %v4249_v30 = vpop.f32.mrb[11].mxu0  ;;  %12631 = vmatprep.subr.bf16.mxu1 %v13421_v27  ;;  %v4386_v6 = vpack.c.bf16 %v16152_v42, %v16152_v42  ;;  %v4383_v18 = vpack.c.bf16 %v16191_v25, %v16191_v25  ;;  %v13434_v27 = vld [vmem:[%s16848_s10 + $0x208] sm:$0xff]   ;;  %v13448_v0 = vld [vmem:[%s16847_s20 + $0xb0] sm:$0xff]  }
 0x4af   :  { %v4387_v7 = vpack.c.bf16 %v16155_v58, %v16155_v58  ;;  %v4389_v20 = vpack.c.bf16 %v16157_v62, %v16157_v62  ;;  %v13444_v5 = vld [vmem:[%s16847_s20 + $0xa8] sm:$0xff]   ;;  %v13453_v30 = vld [vmem:[%s16848_s10 + $0x270] sm:$0xff]  }
 0x4b0   :  { %v13449_v29 = vld [vmem:[%s16848_s10 + $0x268] sm:$0xff]  }
 0x4b1   :  { %12632 = vmatpush3.bf16.msra.mxu1 %v13422_v38  ;;  %5000 = vmatprep.mubr.bf16.mxu0 %v4387_v7  ;;  %v2525_v38 = vrot.slane %v16120_v21, %v15852_v41  ;;  %v13450_v51 = vld [vmem:[%s16848_s10 + $0x228] sm:$0xff]   ;;  %v13454_v7 = vld [vmem:[%s16848_s10 + $0x230] sm:$0xff]  }
 0x4b2   :  { %5001 = vmatmul.mubr.bf16.vlgmr.msra.gmra.mrb[12].mxu0 %v4386_v6  ;;  %12633 = vmatprep.subr.bf16.mxu1 %v13425_v2  ;;  %v13452_v2 = vld [vmem:[%s16847_s20 + $0xb8] sm:$0xff]  }
 0x4b3   :  { %12532 = vmatpush3.bf16.msra.mxu0 %v13424_v9  ;;  %5040 = vmatprep.mubr.bf16.mxu0 %v4389_v20  ;;  %v16272_v3 = vadd.f32 %v16146_v57, %v2525_v38  ;;  %v13455_v9 = vld [vmem:[%s16848_s10 + $0x278] sm:$0xff]   ;;  %v13458_v57 = vld [vmem:[%s16847_s20 + $0x100] sm:$0xff]   ;;  %v4382_v20 = vpack.c.bf16 %v16024_v8, %v16024_v8 }
 0x4b4   :  { %12533 = vmatprep.subr.bf16.mxu0 %v13427_v16  ;;  %v13456_v6 = vld [vmem:[%s16848_s10 + $0x238] sm:$0xff]   ;;  %v13460_v16 = vld [vmem:[%s16847_s20 + $0x108] sm:$0xff]  }
 0x4b5   :  { %12634 = vmatpush3.bf16.msra.mxu1 %v13426_v28  ;;  %v4388_v10 = vpack.c.bf16 %v16272_v3, %v16272_v3  ;;  %v13462_v28 = vld [vmem:[%s16847_s20 + $0x110] sm:$0xff]   ;;  %v13480_v38 = vld [vmem:[%s16848_s10 + $0x18] sm:$0xff]  }
 0x4b6   :  { %12663 = vmatprep.subr.bf16.mxu1 %v13429_v56  ;;  %v13464_v56 = vld [vmem:[%s16847_s20 + $0x118] sm:$0xff]  }
 0x4b7   :  { %12534 = vmatpush3.bf16.msra.mxu0 %v13428_v32  ;;  %v13465_v32 = vld [vmem:[%s16847_s20 + $0x160] sm:$0xff]  }
 0x4b8   :  { %5777 = vmatmul.mubr.bf16.vlgmr.msra.gmra.mrb[12].mxu1 %v4378_v26  ;;  %12535 = vmatprep.subr.bf16.mxu0 %v13431_v40  ;;  %v13466_v40 = vld [vmem:[%s16847_s20 + $0x120] sm:$0xff]   ;;  %v13468_v26 = vld [vmem:[%s16847_s20 + $0x128] sm:$0xff]  }
 0x4b9   :  { %12664 = vmatpush3.bf16.msra.mxu1 %v13430_v24  ;;  %5856 = vmatprep.mubr.bf16.mxu1 %v4383_v18  ;;  %v13467_v24 = vld [vmem:[%s16847_s20 + $0x168] sm:$0xff]   ;;  %v13470_v18 = vld [vmem:[%s16847_s20 + $0x130] sm:$0xff]  }
 0x4ba   :  { %12665 = vmatprep.subr.bf16.mxu1 %v13433_v53  ;;  %v13469_v53 = vld [vmem:[%s16847_s20 + $0x170] sm:$0xff]  }
 0x4bb   :  { %12536 = vmatpush3.bf16.msra.mxu0 %v13432_v59  ;;  %v13471_v59 = vld [vmem:[%s16847_s20 + $0x178] sm:$0xff]  }
 0x4bc   :  { %12537 = vmatprep.subr.bf16.mxu0 %v13435_v61  ;;  %v13472_v61 = vld [vmem:[%s16847_s20 + $0x138] sm:$0xff]  }
 0x4bd   :  { %12666 = vmatpush3.bf16.msra.mxu1 %v13434_v27  ;;  %v13473_v27 = vld [vmem:[%s16848_s10 + $0x40] sm:$0xff]  }
 0x4be   :  { %12667 = vmatprep.subr.bf16.mxu1 %v13437_v44  ;;  %v2533_v44 = vrot.slane %v16120_v21, %v16115_v19 }
 0x4bf   :  { %12538 = vmatpush3.bf16.msra.mxu0 %v13436_v46  ;;  %v2537_v46 = vrot.slane %v16120_v21, %v16065_v31  ;;  %v13475_v31 = vld [vmem:[%s16848_s10 + $0x48] sm:$0xff]   ;;  %v4375_v21 = vpack.c.bf16 %v16031_v17, %v16031_v17 }
 0x4c0   :  { %12539 = vmatprep.subr.bf16.mxu0 %v13439_v49 }
 0x4c1   :  { %12668 = vmatpush3.bf16.msra.mxu1 %v13438_v15 }
 0x4c2   :  { %12669 = vmatprep.subr.bf16.mxu1 %v13441_v33 }
 0x4c3   :  { %12540 = vmatpush3.bf16.msra.mxu0 %v13440_v47 }
 0x4c4   :  { %12541 = vmatprep.subr.bf16.mxu0 %v13443_v48 }
 0x4c5   :  { %12670 = vmatpush3.bf16.msra.mxu1 %v13442_v50 }
 0x4c6   :  { %12671 = vmatprep.subr.bf16.mxu1 %v13445_v52 }
 0x4c7   :  { %12542 = vmatpush3.bf16.msra.mxu0 %v13444_v5  ;;  %v13474_v5 = vld [vmem:[%s16848_s10] sm:$0xff]  }
 0x4c8   :  { %12543 = vmatprep.subr.bf16.mxu0 %v13447_v43  ;;  %v13476_v43 = vld [vmem:[%s16848_s10 + $0x8] sm:$0xff]  }
 0x4c9   :  { %12672 = vmatpush3.bf16.msra.mxu1 %v13446_v60  ;;  %v13477_v60 = vld [vmem:[%s16848_s10 + $0x50] sm:$0xff]  }
 0x4ca   :  { %12673 = vmatprep.subr.bf16.mxu1 %v13449_v29  ;;  %v13478_v29 = vld [vmem:[%s16848_s10 + $0x10] sm:$0xff]  }
 0x4cb   :  { %12544 = vmatpush3.bf16.msra.mxu0 %v13448_v0  ;;  %v13479_v0 = vld [vmem:[%s16848_s10 + $0x58] sm:$0xff]  }
 0x4cc   :  { %12545 = vmatprep.subr.bf16.mxu0 %v13451_v54  ;;  %v13481_v54 = vld [vmem:[%s16848_s10 + $0x60] sm:$0xff]  }
 0x4cd   :  { %12674 = vmatpush3.bf16.msra.mxu1 %v13450_v51  ;;  %v13482_v51 = vld [vmem:[%s16848_s10 + $0x20] sm:$0xff]  }
 0x4ce   :  { %12675 = vmatprep.subr.bf16.mxu1 %v13453_v30  ;;  %v13483_v30 = vld [vmem:[%s16848_s10 + $0x68] sm:$0xff]  }
 0x4cf   :  { %12546 = vmatpush3.bf16.msra.mxu0 %v13452_v2  ;;  %v13484_v2 = vld [vmem:[%s16848_s10 + $0x28] sm:$0xff]  }
 0x4d0   :  { %12553 = vmatprep.subr.bf16.mxu0 %v13457_v4  ;;  %v13485_v4 = vld [vmem:[%s16848_s10 + $0x70] sm:$0xff]  }
 0x4d1   :  { %12676 = vmatpush3.bf16.msra.mxu1 %v13454_v7 }
 0x4d2   :  { %5041 = vmatmul.mubr.bf16.vlgmr.msra.gmra.mrb[16].mxu0 %v4388_v10  ;;  %12677 = vmatprep.subr.bf16.mxu1 %v13455_v9 }
 0x4d3   :  { %12554 = vmatpush3.bf16.msra.mxu0 %v13458_v57 }
 0x4d4   :  { %12555 = vmatprep.subr.bf16.mxu0 %v13459_v55  ;;  %v13486_v55 = vld [vmem:[%s16848_s10 + $0x30] sm:$0xff]  }
 0x4d5   :  { %12678 = vmatpush3.bf16.msra.mxu1 %v13456_v6 }
 0x4d7   :  { %12556 = vmatpush3.bf16.msra.mxu0 %v13460_v16  ;;  %v13487_v16 = vld [vmem:[%s16848_s10 + $0x78] sm:$0xff]  }
 0x4d8   :  { %5857 = vmatmul.mubr.bf16.vlgmr.msra.gmra.mrb[16].mxu1 %v4382_v20  ;;  %12557 = vmatprep.subr.bf16.mxu0 %v13461_v37  ;;  %v13488_v20 = vld [vmem:[%s16848_s10 + $0x38] sm:$0xff]  }
 0x4db   :  { %12558 = vmatpush3.bf16.msra.mxu0 %v13462_v28 }
 0x4dc   :  { %12559 = vmatprep.subr.bf16.mxu0 %v13463_v11  ;;  %v13489_v11 = vld [vmem:[%s16848_s10 + $0xc0] sm:$0xff]  }
 0x4df   :  { %12560 = vmatpush3.bf16.msra.mxu0 %v13464_v56 }
 0x4e0   :  { %12561 = vmatprep.subr.bf16.mxu0 %v13465_v32 }
 0x4e3   :  { %12562 = vmatpush3.bf16.msra.mxu0 %v13466_v40 }
 0x4e4   :  { %12563 = vmatprep.subr.bf16.mxu0 %v13467_v24  ;;  %v13490_v24 = vld [vmem:[%s16848_s10 + $0x80] sm:$0xff]  }
 0x4e7   :  { %12564 = vmatpush3.bf16.msra.mxu0 %v13468_v26  ;;  %v4374_v26 = vpack.c.bf16 %v16034_v35, %v16034_v35 }
 0x4e8   :  { %12565 = vmatprep.subr.bf16.mxu0 %v13469_v53  ;;  %v13491_v53 = vld [vmem:[%s16848_s10 + $0xc8] sm:$0xff]  }
 0x4eb   :  { %12566 = vmatpush3.bf16.msra.mxu0 %v13470_v18  ;;  %v4377_v18 = vpack.c.bf16 %v16037_v36, %v16037_v36 }
 0x4ec   :  { %12567 = vmatprep.subr.bf16.mxu0 %v13471_v59  ;;  %v13492_v59 = vld [vmem:[%s16848_s10 + $0x88] sm:$0xff]  }
 0x4ef   :  { %12568 = vmatpush3.bf16.msra.mxu0 %v13472_v61  ;;  %v13493_v61 = vld [vmem:[%s16848_s10 + $0xd0] sm:$0xff]  }
 0x4f0   :  { %12575 = vmatprep.subr.bf16.mxu0 %v13473_v27  ;;  %v13494_v27 = vld [vmem:[%s16848_s10 + $0x90] sm:$0xff]  }
 0x56b   :  { %v4367_v49 = vpop.f32.mrb[8].mxu1 }
 0x56c   :  { %v16342_v15 = vadd.f32 %v4367_v49, %v2533_v44  ;;  %v4369_v33 = vpop.f32.mrb[9].mxu1  ;;  %v13495_v44 = vld [vmem:[%s16848_s10 + $0xd8] sm:$0xff]   ;;  %v13497_v49 = vld [vmem:[%s16848_s10 + $0xe0] sm:$0xff]  }
 0x56d   :  { %v16344_v47 = vadd.f32 %v4369_v33, %v2537_v46  ;;  %v4371_v48 = vpop.f32.mrb[10].mxu1  ;;  %v13496_v46 = vld [vmem:[%s16848_s10 + $0x98] sm:$0xff]   ;;  %v13498_v33 = vld [vmem:[%s16848_s10 + $0xa0] sm:$0xff]  }
 0x56e   :  { %v4372_v50 = vpop.f32.mrb[11].mxu1  ;;  %v4390_v19 = vpack.c.bf16 %v16342_v15, %v16342_v15  ;;  %v13499_v48 = vld [vmem:[%s16848_s10 + $0xe8] sm:$0xff]  }
 0x56f   :  { %v4391_v52 = vpack.c.bf16 %v16344_v47, %v16344_v47  ;;  %v13500_v50 = vld [vmem:[%s16848_s10 + $0xa8] sm:$0xff]  }
 0x571   :  { %5080 = vmatprep.mubr.bf16.mxu0 %v4391_v52  ;;  %v13501_v52 = vld [vmem:[%s16848_s10 + $0xf0] sm:$0xff]  }
 0x572   :  { %5081 = vmatmul.mubr.bf16.vlgmr.msra.gmra.mrb[20].mxu0 %v4390_v19 }
 0x573   :  { %12576 = vmatpush3.bf16.msra.mxu0 %v13474_v5  ;;  %5696 = vmatprep.mubr.bf16.mxu0 %v4375_v21 }
 0x574   :  { %12577 = vmatprep.subr.bf16.mxu0 %v13475_v31 }
 0x577   :  { %12578 = vmatpush3.bf16.msra.mxu0 %v13476_v43  ;;  %v13502_v43 = vld [vmem:[%s16848_s10 + $0xb0] sm:$0xff]  }
 0x578   :  { %12579 = vmatprep.subr.bf16.mxu0 %v13477_v60 }
 0x57b   :  { %12580 = vmatpush3.bf16.msra.mxu0 %v13478_v29  ;;  %v13503_v29 = vld [vmem:[%s16848_s10 + $0xf8] sm:$0xff]  }
 0x57c   :  { %12581 = vmatprep.subr.bf16.mxu0 %v13479_v0 }
 0x57f   :  { %12582 = vmatpush3.bf16.msra.mxu0 %v13480_v38 }
 0x580   :  { %12583 = vmatprep.subr.bf16.mxu0 %v13481_v54  ;;  %v13504_v54 = vld [vmem:[%s16848_s10 + $0xb8] sm:$0xff]  }
 0x583   :  { %12584 = vmatpush3.bf16.msra.mxu0 %v13482_v51 }
 0x584   :  { %12585 = vmatprep.subr.bf16.mxu0 %v13483_v30  ;;  %v13505_v30 = vld [vmem:[%s16848_s10 + $0x1c0] sm:$0xff]  }
 0x585   :  { %v12525_v7 = vpop.f32.mrb[12].mxu0 }
 0x586   :  { %v12526_v9 = vpop.f32.mrb[13].mxu0 }
 0x587   :  { %12586 = vmatpush3.bf16.msra.mxu0 %v13484_v2  ;;  %v12527_v57 = vadd.f32 %v12526_v9, %v12525_v7  ;;  %v12528_v10 = vpop.f32.mrb[14].mxu0  ;;  %v13506_v9 = vld [vmem:[%s16848_s10 + $0x180] sm:$0xff]  }
 0x588   :  { %v12529_v6 = vpop.f32.mrb[15].mxu0  ;;  %12587 = vmatprep.subr.bf16.mxu0 %v13485_v4  ;;  %v13507_v10 = vld [vmem:[%s16848_s10 + $0x1c8] sm:$0xff]  }
 0x589   :  { %v13508_v6 = vld [vmem:[%s16848_s10 + $0x188] sm:$0xff]  }
 0x58b   :  { %12588 = vmatpush3.bf16.msra.mxu0 %v13486_v55  ;;  %v12635_v37 = vpop.f32.mrb[12].mxu1  ;;  %v4381_v55 = vpack.c.bf16 %v16053_v22, %v16053_v22 }
 0x58c   :  { %v12636_v28 = vpop.f32.mrb[13].mxu1  ;;  %12589 = vmatprep.subr.bf16.mxu0 %v13487_v16  ;;  %v13509_v16 = vld [vmem:[%s16848_s10 + $0x1d0] sm:$0xff]  }
 0x58d   :  { %v16400_v56 = vadd.f32 %v12636_v28, %v12635_v37  ;;  %v12638_v32 = vpop.f32.mrb[14].mxu1  ;;  %v13510_v37 = vld [vmem:[%s16848_s10 + $0x190] sm:$0xff]   ;;  %v13512_v28 = vld [vmem:[%s16848_s10 + $0x198] sm:$0xff]  }
 0x58e   :  { %v12639_v40 = vpop.f32.mrb[15].mxu1  ;;  %v13514_v32 = vld [vmem:[%s16848_s10 + $0x1a0] sm:$0xff]  }
 0x58f   :  { %12590 = vmatpush3.bf16.msra.mxu0 %v13488_v20  ;;  %v13511_v20 = vld [vmem:[%s16848_s10 + $0x1d8] sm:$0xff]   ;;  %v13515_v40 = vld [vmem:[%s16848_s10 + $0x1e8] sm:$0xff]  }
 0x590   :  { %12597 = vmatprep.subr.bf16.mxu0 %v13489_v11  ;;  %v13513_v11 = vld [vmem:[%s16848_s10 + $0x1e0] sm:$0xff]  }
 0x592   :  { %5697 = vmatmul.mubr.bf16.vlgmr.msra.gmra.mrb[24].mxu0 %v4374_v26  ;;  %v13517_v26 = vld [vmem:[%s16848_s10 + $0x1f0] sm:$0xff]  }
 0x593   :  { %12598 = vmatpush3.bf16.msra.mxu0 %v13490_v24  ;;  %5736 = vmatprep.mubr.bf16.mxu0 %v4377_v18  ;;  %v13516_v24 = vld [vmem:[%s16848_s10 + $0x1a8] sm:$0xff]   ;;  %v13519_v18 = vld [vmem:[%s16848_s10 + $0x1f8] sm:$0xff]  }
 0x594   :  { %12599 = vmatprep.subr.bf16.mxu0 %v13491_v53  ;;  %v13518_v53 = vld [vmem:[%s16848_s10 + $0x1b0] sm:$0xff]  }
 0x597   :  { %12600 = vmatpush3.bf16.msra.mxu0 %v13492_v59  ;;  %v13520_v59 = vld [vmem:[%s16848_s10 + $0x1b8] sm:$0xff]  }
 0x598   :  { %12601 = vmatprep.subr.bf16.mxu0 %v13493_v61  ;;  %v13521_v61 = vld [vmem:[%s16848_s10 + $0x2c0] sm:$0xff]  }
 0x59b   :  { %12602 = vmatpush3.bf16.msra.mxu0 %v13494_v27  ;;  %v13522_v27 = vld [vmem:[%s16848_s10 + $0x280] sm:$0xff]  }
 0x59c   :  { %12603 = vmatprep.subr.bf16.mxu0 %v13495_v44  ;;  %v4380_v44 = vpack.c.bf16 %v16056_v23, %v16056_v23 }
 0x59f   :  { %12604 = vmatpush3.bf16.msra.mxu0 %v13496_v46  ;;  %v13523_v46 = vld [vmem:[%s16848_s10 + $0x2c8] sm:$0xff]  }
 0x5a0   :  { %12605 = vmatprep.subr.bf16.mxu0 %v13497_v49  ;;  %v4385_v49 = vpack.c.bf16 %v16059_v39, %v16059_v39 }
 0x5a3   :  { %12606 = vmatpush3.bf16.msra.mxu0 %v13498_v33  ;;  %v13524_v33 = vld [vmem:[%s16848_s10 + $0x288] sm:$0xff]  }
 0x5a4   :  { %12607 = vmatprep.subr.bf16.mxu0 %v13499_v48  ;;  %v13525_v48 = vld [vmem:[%s16848_s10 + $0x2d0] sm:$0xff]  }
 0x5a5   :  { %v12547_v5 = vpop.f32.mrb[16].mxu0 }
 0x5a6   :  { %v12548_v19 = vpop.f32.mrb[17].mxu0 }
 0x5a7   :  { %v12549_v31 = vadd.f32 %v12548_v19, %v12547_v5  ;;  %12608 = vmatpush3.bf16.msra.mxu0 %v13500_v50  ;;  %v12550_v21 = vpop.f32.mrb[18].mxu0  ;;  %v13526_v50 = vld [vmem:[%s16848_s10 + $0x290] sm:$0xff]   ;;  %v13528_v5 = vld [vmem:[%s16848_s10 + $0x298] sm:$0xff]   ;;  %v13529_v19 = vld [vmem:[%s16848_s10 + $0x2e0] sm:$0xff]  }
 0x5a8   :  { %v12551_v60 = vpop.f32.mrb[19].mxu0  ;;  %12609 = vmatprep.subr.bf16.mxu0 %v13501_v52  ;;  %v13527_v52 = vld [vmem:[%s16848_s10 + $0x2d8] sm:$0xff]   ;;  %v13531_v21 = vld [vmem:[%s16848_s10 + $0x2e8] sm:$0xff]  }
 0x5a9   :  { %v16448_v0 = vadd.f32 %v12549_v31, %v12527_v57  ;;  %v4376_v57 = vpack.c.bf16 %v16040_v34, %v16040_v34  ;;  %v13530_v31 = vld [vmem:[%s16848_s10 + $0x2a0] sm:$0xff]   ;;  %v13533_v60 = vld [vmem:[%s16848_s10 + $0x2f0] sm:$0xff]  }
 0x5ab   :  { %12610 = vmatpush3.bf16.msra.mxu0 %v13502_v43  ;;  %v12679_v38 = vpop.f32.mrb[16].mxu1  ;;  %v13532_v43 = vld [vmem:[%s16848_s10 + $0x2a8] sm:$0xff]  }
 0x5ac   :  { %v12680_v51 = vpop.f32.mrb[17].mxu1  ;;  %12611 = vmatprep.subr.bf16.mxu0 %v13503_v29  ;;  %v13534_v29 = vld [vmem:[%s16848_s10 + $0x2b0] sm:$0xff]  }
 0x5ad   :  { %v16456_v2 = vadd.f32 %v12680_v51, %v12679_v38  ;;  %v12682_v4 = vpop.f32.mrb[18].mxu1  ;;  %v13535_v38 = vld [vmem:[%s16848_s10 + $0x2f8] sm:$0xff]   ;;  %v4384_v51 = vpack.c.bf16 %v16062_v45, %v16062_v45 }
 0x5ae   :  { %v12683_v7 = vpop.f32.mrb[19].mxu1  ;;  %v15202_v4 = vmov 0.0  }
 0x5af   :  { %12612 = vmatpush3.bf16.msra.mxu0 %v13504_v54  ;;  %v13536_v54 = vld [vmem:[%s16848_s10 + $0x2b8] sm:$0xff]   ;;  %12743 = vmatprep.subr.bf16.mxu1 %v15202_v4  ;;  %s15204_s10 = smov 127  }
 0x5b0   :  { %12641 = vmatprep.subr.bf16.mxu0 %v13505_v30  ;;  %v13537_v30 = vld [vmem:[#allocation15] sm:$0xff]   ;;  %12751 = vmatprep.mubr.msk.bf16.mxu1 %vm15203_vm0, %v15202_v4 }
 0x5b1   :  { %12744 = vmatpush3.bf16.msra.mxu1 %v13537_v30 }
 0x5b2   :  { %5737 = vmatmul.mubr.bf16.vlgmr.msra.gmra.mrb[28].mxu0 %v4376_v57  ;;  %12745 = vmatprep.subr.bf16.mxu1 %v15202_v4 }
 0x5b3   :  { %12642 = vmatpush3.bf16.msra.mxu0 %v13506_v9  ;;  %5816 = vmatprep.mubr.bf16.mxu0 %v4381_v55 }
 0x5b4   :  { %12643 = vmatprep.subr.bf16.mxu0 %v13507_v10 }
 0x5b7   :  { %12644 = vmatpush3.bf16.msra.mxu0 %v13508_v6 }
 0x5b8   :  { %12645 = vmatprep.subr.bf16.mxu0 %v13509_v16  ;;  %v13538_v16 = vld [vmem:[#allocation15 + $0x8] sm:$0xff]  }
 0x5b9   :  { %12746 = vmatpush3.bf16.msra.mxu1 %v13538_v16 }
 0x5ba   :  { %12747 = vmatprep.subr.bf16.mxu1 %v15202_v4 }
 0x5bb   :  { %12646 = vmatpush3.bf16.msra.mxu0 %v13510_v37  ;;  %v13539_v37 = vld [vmem:[#allocation15 + $0x10] sm:$0xff]  }
 0x5bc   :  { %12647 = vmatprep.subr.bf16.mxu0 %v13511_v20  ;;  %v13540_v20 = vld [vmem:[#allocation15 + $0x18] sm:$0xff]  }
 0x5bd   :  { %12748 = vmatpush3.bf16.msra.mxu1 %v13539_v37 }
 0x5be   :  { %12749 = vmatprep.subr.bf16.mxu1 %v15202_v4 }
 0x5bf   :  { %12648 = vmatpush3.bf16.msra.mxu0 %v13512_v28 }
 0x5c0   :  { %12649 = vmatprep.subr.bf16.mxu0 %v13513_v11 }
 0x5c1   :  { %12750 = vmatpush3.bf16.msra.mxu1 %v13540_v20 }
 0x5c3   :  { %12650 = vmatpush3.bf16.msra.mxu0 %v13514_v32 }
 0x5c4   :  { %12651 = vmatprep.subr.bf16.mxu0 %v13515_v40 }
 0x5c7   :  { %12652 = vmatpush3.bf16.msra.mxu0 %v13516_v24 }
 0x5c8   :  { %12653 = vmatprep.subr.bf16.mxu0 %v13517_v26 }
 0x5cb   :  { %12654 = vmatpush3.bf16.msra.mxu0 %v13518_v53 }
 0x5cc   :  { %12655 = vmatprep.subr.bf16.mxu0 %v13519_v18 }
 0x5cf   :  { %12656 = vmatpush3.bf16.msra.mxu0 %v13520_v59 }
 0x5d0   :  { %12685 = vmatprep.subr.bf16.mxu0 %v13521_v61 }
 0x5d2   :  { %5817 = vmatmul.mubr.bf16.vlgmr.msra.gmra.mrb[32].mxu0 %v4380_v44 }
 0x5d3   :  { %12686 = vmatpush3.bf16.msra.mxu0 %v13522_v27  ;;  %5896 = vmatprep.mubr.bf16.mxu0 %v4385_v49 }
 0x5d4   :  { %12687 = vmatprep.subr.bf16.mxu0 %v13523_v46 }
 0x5d7   :  { %12688 = vmatpush3.bf16.msra.mxu0 %v13524_v33 }
 0x5d8   :  { %12689 = vmatprep.subr.bf16.mxu0 %v13525_v48 }
 0x5db   :  { %12690 = vmatpush3.bf16.msra.mxu0 %v13526_v50 }
 0x5dc   :  { %12691 = vmatprep.subr.bf16.mxu0 %v13527_v52 }
 0x5df   :  { %12692 = vmatpush3.bf16.msra.mxu0 %v13528_v5 }
 0x5e0   :  { %12693 = vmatprep.subr.bf16.mxu0 %v13529_v19 }
 0x5e3   :  { %12694 = vmatpush3.bf16.msra.mxu0 %v13530_v31 }
 0x5e4   :  { %12695 = vmatprep.subr.bf16.mxu0 %v13531_v21 }
 0x5e7   :  { %12696 = vmatpush3.bf16.msra.mxu0 %v13532_v43 }
 0x5e8   :  { %12697 = vmatprep.subr.bf16.mxu0 %v13533_v60  ;;  %v11825_v60 = vld [vmem:[#allocation14] ss:$0 sm:$0xff] }
 0x5eb   :  { %12698 = vmatpush3.bf16.msra.mxu0 %v13534_v29 }
 0x5ec   :  { %12699 = vmatprep.subr.bf16.mxu0 %v13535_v38 }
 0x5ef   :  { %12700 = vmatpush3.bf16.msra.mxu0 %v13536_v54 }
 0x5f2   :  { %5897 = vmatmul.mubr.bf16.vlgmr.msra.gmra.mrb[36].mxu0 %v4384_v51 }
 0x645   :  { %v12569_v7 = vpop.f32.mrb[20].mxu0 }
 0x646   :  { %v12570_v9 = vpop.f32.mrb[21].mxu0 }
 0x647   :  { %v12571_v57 = vadd.f32 %v12570_v9, %v12569_v7  ;;  %v12572_v10 = vpop.f32.mrb[22].mxu0 }
 0x648   :  { %v12573_v55 = vpop.f32.mrb[23].mxu0 }
 0x649   :  { %v5083_v6 = vadd.f32 %v12571_v57, %v16448_v0 }
 0x665   :  { %v12591_v28 = vpop.f32.mrb[24].mxu0 }
 0x666   :  { %v12592_v11 = vpop.f32.mrb[25].mxu0 }
 0x667   :  { %v12593_v32 = vadd.f32 %v12592_v11, %v12591_v28  ;;  %v12594_v40 = vpop.f32.mrb[26].mxu0  ;;  %v15206_v11 = vmov 0  }
 0x668   :  { %v12595_v24 = vpop.f32.mrb[27].mxu0  ;;  %12863 = vset.pattern.permute.xlu0 %v15206_v11  ;;  %v13586_v11 = vld [vmem:[#allocation20 + $0x2e0] ss:$16 sps:$4 sm:$0xff]  }
 0x669   :  { %v5699_v0 = vadd.f32 %v12593_v32, %v5083_v6 }
 0x685   :  { %v12613_v26 = vpop.f32.mrb[28].mxu0 }
 0x686   :  { %v12614_v53 = vpop.f32.mrb[29].mxu0 }
 0x687   :  { %v12615_v18 = vadd.f32 %v12614_v53, %v12613_v26  ;;  %v12616_v59 = vpop.f32.mrb[30].mxu0  ;;  %v15207_v53 = vmov 1  }
 0x688   :  { %v12617_v61 = vpop.f32.mrb[31].mxu0  ;;  %12862 = vset.pattern.permute.xlu1 %v15207_v53 }
 0x689   :  { %v5739_v27 = vadd.f32 %v12615_v18, %v5699_v0  ;;  %v13541_v61 = vld [vmem:[#allocation20] ss:$16 sps:$4 sm:$0xff]  }
 0x68b   :  { %v5779_v44 = vadd.f32 %v16400_v56, %v5739_v27  ;;  %v11826_v56 = vld [vmem:[#allocation17] ss:$0 sm:$0xff]  ;;  %v13543_v27 = vld [vmem:[#allocation20 + $0x4] ss:$16 sps:$4 sm:$0xff]  }
 0x68c   :  { %7606 = vmatprep.subr.bf16.mxu1 %v13543_v27  ;;  %v13606_v27 = vld [vmem:[#allocation20 + $0x344] ss:$16 sps:$4 sm:$0xff]  }
 0x6a5   :  { %v12657_v46 = vpop.f32.mrb[32].mxu0 }
 0x6a6   :  { %v12658_v49 = vpop.f32.mrb[33].mxu0 }
 0x6a7   :  { %v12659_v33 = vadd.f32 %v12658_v49, %v12657_v46  ;;  %v12660_v48 = vpop.f32.mrb[34].mxu0  ;;  %v13546_v46 = vld [vmem:[#allocation20 + $0x204] ss:$16 sps:$4 sm:$0xff]  }
 0x6a8   :  { %v12661_v50 = vpop.f32.mrb[35].mxu0  ;;  %v13549_v49 = vld [vmem:[#allocation20 + $0x24] ss:$16 sps:$4 sm:$0xff]   ;;  %7647 = vmatprep.subr.bf16.mxu0 %v13546_v46  ;;  %v13547_v48 = vld [vmem:[#allocation20 + $0x20] ss:$16 sps:$4 sm:$0xff]  }
 0x6a9   :  { %v5819_v52 = vadd.f32 %v12659_v33, %v5779_v44  ;;  %v13544_v44 = vld [vmem:[#allocation20 + $0x200] ss:$16 sps:$4 sm:$0xff]   ;;  %v13552_v33 = vld [vmem:[#allocation20 + $0x224] ss:$16 sps:$4 sm:$0xff]  }
 0x6aa   :  { %7648 = vmatpush1.bf16.msra.mxu0 %v13544_v44  ;;  %v13550_v50 = vld [vmem:[#allocation20 + $0x220] ss:$16 sps:$4 sm:$0xff]  }
 0x6ab   :  { %v5859_v5 = vadd.f32 %v16456_v2, %v5819_v52  ;;  %v13555_v52 = vld [vmem:[#allocation20 + $0x44] ss:$16 sps:$4 sm:$0xff]   ;;  %7649 = vmatprep.subr.bf16.mxu0 %v13552_v33  ;;  %v13601_v44 = vld [vmem:[#allocation20 + $0x140] ss:$16 sps:$4 sm:$0xff]  }
 0x6ac   :  { %v13604_v46 = vld [vmem:[#allocation20 + $0x340] ss:$16 sps:$4 sm:$0xff]   ;;  %v13612_v33 = vld [vmem:[#allocation20 + $0x364] ss:$16 sps:$4 sm:$0xff]  }
 0x6ae   :  { %7650 = vmatpush1.bf16.msra.mxu0 %v13550_v50  ;;  %v13610_v50 = vld [vmem:[#allocation20 + $0x360] ss:$16 sps:$4 sm:$0xff]  }
 0x6c5   :  { %v12701_v19 = vpop.f32.mrb[36].mxu0 }
 0x6c6   :  { %v12702_v31 = vpop.f32.mrb[37].mxu0 }
 0x6c7   :  { %v12703_v21 = vadd.f32 %v12702_v31, %v12701_v19  ;;  %v12704_v43 = vpop.f32.mrb[38].mxu0  ;;  %v13553_v19 = vld [vmem:[#allocation20 + $0x40] ss:$16 sps:$4 sm:$0xff]  }
 0x6c8   :  { %v12705_v29 = vpop.f32.mrb[39].mxu0  ;;  %v13556_v31 = vld [vmem:[#allocation20 + $0x240] ss:$16 sps:$4 sm:$0xff]   ;;  %v13564_v43 = vld [vmem:[#allocation20 + $0x264] ss:$16 sps:$4 sm:$0xff]  }
 0x6c9   :  { %v5899_v38 = vadd.f32 %v12703_v21, %v5859_v5  ;;  %v13558_v5 = vld [vmem:[#allocation20 + $0x244] ss:$16 sps:$4 sm:$0xff]   ;;  %v13562_v29 = vld [vmem:[#allocation20 + $0x260] ss:$16 sps:$4 sm:$0xff]  }
 0x6ca   :  { %v13561_v21 = vld [vmem:[#allocation20 + $0x64] ss:$16 sps:$4 sm:$0xff]   ;;  %7651 = vmatprep.subr.bf16.mxu0 %v13558_v5 }
 0x6cb   :  { %v5911_v54 = vadd.f32 %v11825_v60, %v5899_v38  ;;  %v13559_v60 = vld [vmem:[#allocation20 + $0x60] ss:$16 sps:$4 sm:$0xff]   ;;  %7652 = vmatpush1.bf16.msra.mxu0 %v13556_v31  ;;  %v13567_v38 = vld [vmem:[#allocation20 + $0x84] ss:$16 sps:$4 sm:$0xff]  }
 0x6cc   :  { %7653 = vmatprep.subr.bf16.mxu0 %v13564_v43  ;;  %v13618_v5 = vld [vmem:[#allocation20 + $0x384] ss:$16 sps:$4 sm:$0xff]   ;;  %v13616_v31 = vld [vmem:[#allocation20 + $0x380] ss:$16 sps:$4 sm:$0xff]  }
 0x6cd   :  { %v5912_v51 = vmax.f32 %v5911_v54, 0.0  ;;  %v13570_v54 = vld [vmem:[#allocation20 + $0x284] ss:$16 sps:$4 sm:$0xff]  }
 0x6ce   :  { %v13624_v43 = vld [vmem:[#allocation20 + $0x3a4] ss:$16 sps:$4 sm:$0xff]  }
 0x6cf   :  { %v5913_v30 = vpack.c.bf16 %v5912_v51, %v5912_v51  ;;  %v13565_v51 = vld [vmem:[#allocation20 + $0x80] ss:$16 sps:$4 sm:$0xff]   ;;  %7654 = vmatpush1.bf16.msra.mxu0 %v13562_v29 }
 0x6d0   :  { %7655 = vmatprep.subr.bf16.mxu0 %v13570_v54  ;;  %v13622_v29 = vld [vmem:[#allocation20 + $0x3a0] ss:$16 sps:$4 sm:$0xff]   ;;  %v13630_v54 = vld [vmem:[#allocation20 + $0x3c4] ss:$16 sps:$4 sm:$0xff]  }
 0x6d1   :  { %12752 = vmatmul.mubr.msk.bf16.vlgmr.msra.gmra.mrb[20].mxu1 %vm5953_vm1, %v5913_v30  ;;  %v13568_v30 = vld [vmem:[#allocation20 + $0x280] ss:$16 sps:$4 sm:$0xff]  }
 0x6d2   :  { %7607 = vmatpush1.bf16.msra.mxu1 %v13541_v61  ;;  %v13603_v61 = vld [vmem:[#allocation20 + $0x144] ss:$16 sps:$4 sm:$0xff]  }
 0x6d3   :  { %7608 = vmatprep.subr.bf16.mxu1 %v13549_v49  ;;  %7656 = vmatpush1.bf16.msra.mxu0 %v13568_v30  ;;  %v13609_v49 = vld [vmem:[#allocation20 + $0x164] ss:$16 sps:$4 sm:$0xff]   ;;  %v13628_v30 = vld [vmem:[#allocation20 + $0x3c0] ss:$16 sps:$4 sm:$0xff]  }
 0x6d6   :  { %7609 = vmatpush1.bf16.msra.mxu1 %v13547_v48  ;;  %v13607_v48 = vld [vmem:[#allocation20 + $0x160] ss:$16 sps:$4 sm:$0xff]  }
 0x6d7   :  { %7610 = vmatprep.subr.bf16.mxu1 %v13555_v52  ;;  %v13615_v52 = vld [vmem:[#allocation20 + $0x184] ss:$16 sps:$4 sm:$0xff]  }
 0x6da   :  { %7611 = vmatpush1.bf16.msra.mxu1 %v13553_v19  ;;  %v13613_v19 = vld [vmem:[#allocation20 + $0x180] ss:$16 sps:$4 sm:$0xff]  }
 0x6db   :  { %7612 = vmatprep.subr.bf16.mxu1 %v13561_v21  ;;  %v13621_v21 = vld [vmem:[#allocation20 + $0x1a4] ss:$16 sps:$4 sm:$0xff]  }
 0x6de   :  { %7613 = vmatpush1.bf16.msra.mxu1 %v13559_v60  ;;  %v13619_v60 = vld [vmem:[#allocation20 + $0x1a0] ss:$16 sps:$4 sm:$0xff]  }
 0x6df   :  { %7614 = vmatprep.subr.bf16.mxu1 %v13567_v38  ;;  %v13627_v38 = vld [vmem:[#allocation20 + $0x1c4] ss:$16 sps:$4 sm:$0xff]  }
 0x6e2   :  { %7615 = vmatpush1.bf16.msra.mxu1 %v13565_v51  ;;  %v13625_v51 = vld [vmem:[#allocation20 + $0x1c0] ss:$16 sps:$4 sm:$0xff]  }
 0x7a4   :  { %v5991_v7 = vpop.f32.mrb[20].mxu1 }
 0x7a5   :  { %v5992_v9 = vadd.f32 %v11826_v56, %v5991_v7  ;;  %v12753_v57 = vpop.f32.mrb[21].mxu1  ;;  %v13573_v56 = vld [vmem:[#allocation20 + $0xa4] ss:$16 sps:$4 sm:$0xff]  }
 0x7a6   :  { %v5994_v10 = vpop.f32.mrb[22].mxu1  ;;  %v13576_v7 = vld [vmem:[#allocation20 + $0x2a4] ss:$16 sps:$4 sm:$0xff]   ;;  %7616 = vmatprep.subr.bf16.mxu1 %v13573_v56  ;;  %v13574_v57 = vld [vmem:[#allocation20 + $0x2a0] ss:$16 sps:$4 sm:$0xff]  }
 0x7a7   :  { %5998 = vrot.lane.b32.xlu1 %v5992_v9, %s15204_s10  ;;  %v12754_v2 = vpop.f32.mrb[23].mxu1  ;;  %v13579_v10 = vld [vmem:[#allocation20 + $0xc4] ss:$16 sps:$4 sm:$0xff]   ;;  %7657 = vmatprep.subr.bf16.mxu0 %v13576_v7 }
 0x7a8   :  { %v13582_v2 = vld [vmem:[#allocation20 + $0x2c4] ss:$16 sps:$4 sm:$0xff]   ;;  %7658 = vmatpush1.bf16.msra.mxu0 %v13574_v57 }
 0x7a9   :  { %7659 = vmatprep.subr.bf16.mxu0 %v13582_v2  ;;  %v13633_v57 = vld [vmem:[#allocation20 + $0x1e4] ss:$16 sps:$4 sm:$0xff]  }
 0x7aa   :  { %v13636_v2 = vld [vmem:[#allocation20 + $0x3e4] ss:$16 sps:$4 sm:$0xff]  }
 0x819   :  { %v5999_v55 = vpop.permute.xlu1 %5998 }
 0x81a   :  { %v6001_v6 = vmax.f32 %v5992_v9, %v5999_v55  ;;  %v13577_v55 = vld [vmem:[#allocation20 + $0xc0] ss:$16 sps:$4 sm:$0xff]  }
 0x81c   :  { %6006 = vrot.lane.b32.xlu0 %v6001_v6, %s15205_s8  ;;  %v6002_v32 = vsub.f32 %v5992_v9, %v6001_v6  ;;  %v13580_v6 = vld [vmem:[#allocation20 + $0x2c0] ss:$16 sps:$4 sm:$0xff]  }
 0x81d   :  { %7660 = vmatpush1.bf16.msra.mxu0 %v13580_v6  ;;  %v13642_v6 = vld [vmem:[#allocation20 + $0xc] ss:$16 sps:$4 sm:$0xff]  }
 0x81e   :  { %v6003_v40 = vmul.f32 1.442695, %v6002_v32  ;;  %v13591_v32 = vld [vmem:[#allocation20 + $0x104] ss:$16 sps:$4 sm:$0xff]  }
 0x88e   :  { %v6007_v16 = vpop.permute.xlu0 %6006 }
 0x88f   :  { %v6009_v37 = vsub.f32 %v5992_v9, %v6007_v16  ;;  %v13571_v9 = vld [vmem:[#allocation20 + $0xa0] ss:$16 sps:$4 sm:$0xff]   ;;  %v13585_v16 = vld [vmem:[#allocation20 + $0xe4] ss:$16 sps:$4 sm:$0xff]  }
 0x890   :  { %7617 = vmatpush1.bf16.msra.mxu1 %v13571_v9  ;;  %v13631_v9 = vld [vmem:[#allocation20 + $0x1e0] ss:$16 sps:$4 sm:$0xff]  }
 0x891   :  { %v6010_v20 = vmul.f32 1.442695, %v6009_v37  ;;  %7618 = vmatprep.subr.bf16.mxu1 %v13579_v10  ;;  %v13588_v37 = vld [vmem:[#allocation20 + $0x2e4] ss:$16 sps:$4 sm:$0xff]   ;;  %v13634_v10 = vld [vmem:[#allocation20 + $0x3e0] ss:$16 sps:$4 sm:$0xff]  }
 0x892   :  { %7661 = vmatprep.subr.bf16.mxu0 %v13588_v37 }
 0x893   :  { %14525 = vpow2.f32 %v6010_v20  ;;  %v13583_v20 = vld [vmem:[#allocation20 + $0xe0] ss:$16 sps:$4 sm:$0xff]   ;;  %7662 = vmatpush1.bf16.msra.mxu0 %v13586_v11 }
 0x894   :  { %14527 = vpow2.f32 %v6003_v40  ;;  %7619 = vmatpush1.bf16.msra.mxu1 %v13577_v55  ;;  %v13594_v40 = vld [vmem:[#allocation20 + $0x304] ss:$16 sps:$4 sm:$0xff]  }
 0x895   :  { %7620 = vmatprep.subr.bf16.mxu1 %v13585_v16  ;;  %7663 = vmatprep.subr.bf16.mxu0 %v13594_v40  ;;  %v13639_v55 = vld [vmem:[#allocation20 + $0x404] ss:$16 sps:$4 sm:$0xff]  }
 0x898   :  { %7621 = vmatpush1.bf16.msra.mxu1 %v13583_v20 }
 0x899   :  { %7622 = vmatprep.subr.bf16.mxu1 %v13591_v32 }
 0x89d   :  { %v16570_v28 = vpop.eup %14525 }
 0x89e   :  { %6013 = vrot.lane.b32.xlu1 %v16570_v28, %s15204_s10  ;;  %v14528_v24 = vpop.eup %14527 }
 0x910   :  { %v6014_v0 = vpop.permute.xlu1 %6013 }
 0x911   :  { %v6016_v26 = vadd.f32 %v14528_v24, %v6014_v0  ;;  %v13592_v0 = vld [vmem:[#allocation20 + $0x300] ss:$16 sps:$4 sm:$0xff]  }
 0x912   :  { %7664 = vmatpush1.bf16.msra.mxu0 %v13592_v0  ;;  %v13637_v0 = vld [vmem:[#allocation20 + $0x400] ss:$16 sps:$4 sm:$0xff]  }
 0x913   :  { %14529 = vrcp.f32 %v6016_v26  ;;  %v13597_v26 = vld [vmem:[#allocation20 + $0x124] ss:$16 sps:$4 sm:$0xff]  }
 0x91d   :  { %v14530_v18 = vpop.eup %14529 }
 0x91e   :  { %6020 = vrot.lane.b32.xlu1 %v14530_v18, %s15205_s8  ;;  %v6018_v59 = vmul.f32 %v14530_v18, %v14528_v24  ;;  %v13589_v24 = vld [vmem:[#allocation20 + $0x100] ss:$16 sps:$4 sm:$0xff]  }
 0x91f   :  { %7623 = vmatpush1.bf16.msra.mxu1 %v13589_v24  ;;  %v13595_v18 = vld [vmem:[#allocation20 + $0x120] ss:$16 sps:$4 sm:$0xff]  }
 0x920   :  { %6026 = vperm.xlu0 %12863, %v6018_v59   ;;  %7624 = vmatprep.subr.bf16.mxu1 %v13597_v26  ;;  %v13598_v59 = vld [vmem:[#allocation20 + $0x320] ss:$16 sps:$4 sm:$0xff]   ;;  %v13640_v26 = vld [vmem:[#allocation20 + $0x8] ss:$16 sps:$4 sm:$0xff]  }
 0x923   :  { %7625 = vmatpush1.bf16.msra.mxu1 %v13595_v18  ;;  %v13646_v18 = vld [vmem:[#allocation20 + $0x28] ss:$16 sps:$4 sm:$0xff]  }
 0x924   :  { %12864 = vset.pattern.permute.xlu0 %v15207_v53  ;;  %v13600_v53 = vld [vmem:[#allocation20 + $0x324] ss:$16 sps:$4 sm:$0xff]   ;;  %7626 = vmatprep.subr.bf16.mxu1 %v13603_v61  ;;  %v13654_v61 = vld [vmem:[#allocation20 + $0x4c] ss:$16 sps:$4 sm:$0xff]  }
 0x925   :  { %7665 = vmatprep.subr.bf16.mxu0 %v13600_v53 }
 0x926   :  { %7666 = vmatpush1.bf16.msra.mxu0 %v13598_v59  ;;  %v13651_v59 = vld [vmem:[#allocation20 + $0x444] ss:$16 sps:$4 sm:$0xff]  }
 0x927   :  { %7667 = vmatprep.subr.bf16.mxu0 %v13606_v27  ;;  %7627 = vmatpush1.bf16.msra.mxu1 %v13601_v44  ;;  %v13649_v27 = vld [vmem:[#allocation20 + $0x440] ss:$16 sps:$4 sm:$0xff]   ;;  %v13652_v44 = vld [vmem:[#allocation20 + $0x48] ss:$16 sps:$4 sm:$0xff]  }
 0x928   :  { %7628 = vmatprep.subr.bf16.mxu1 %v13609_v49  ;;  %v13660_v49 = vld [vmem:[#allocation20 + $0x6c] ss:$16 sps:$4 sm:$0xff]  }
 0x92a   :  { %7668 = vmatpush1.bf16.msra.mxu0 %v13604_v46  ;;  %v13657_v46 = vld [vmem:[#allocation20 + $0x464] ss:$16 sps:$4 sm:$0xff]  }
 0x92b   :  { %7669 = vmatprep.subr.bf16.mxu0 %v13612_v33  ;;  %7629 = vmatpush1.bf16.msra.mxu1 %v13607_v48  ;;  %v13655_v33 = vld [vmem:[#allocation20 + $0x460] ss:$16 sps:$4 sm:$0xff]   ;;  %v13658_v48 = vld [vmem:[#allocation20 + $0x68] ss:$16 sps:$4 sm:$0xff]  }
 0x92c   :  { %7630 = vmatprep.subr.bf16.mxu1 %v13615_v52  ;;  %v13666_v52 = vld [vmem:[#allocation20 + $0x8c] ss:$16 sps:$4 sm:$0xff]  }
 0x92e   :  { %7670 = vmatpush1.bf16.msra.mxu0 %v13610_v50  ;;  %v13663_v50 = vld [vmem:[#allocation20 + $0x484] ss:$16 sps:$4 sm:$0xff]  }
 0x92f   :  { %7671 = vmatprep.subr.bf16.mxu0 %v13618_v5  ;;  %7631 = vmatpush1.bf16.msra.mxu1 %v13613_v19  ;;  %v13661_v5 = vld [vmem:[#allocation20 + $0x480] ss:$16 sps:$4 sm:$0xff]   ;;  %v13664_v19 = vld [vmem:[#allocation20 + $0x88] ss:$16 sps:$4 sm:$0xff]  }
 0x930   :  { %7632 = vmatprep.subr.bf16.mxu1 %v13621_v21  ;;  %v13672_v21 = vld [vmem:[#allocation20 + $0xac] ss:$16 sps:$4 sm:$0xff]  }
 0x932   :  { %7672 = vmatpush1.bf16.msra.mxu0 %v13616_v31  ;;  %v13669_v31 = vld [vmem:[#allocation20 + $0x4a4] ss:$16 sps:$4 sm:$0xff]  }
 0x933   :  { %7673 = vmatprep.subr.bf16.mxu0 %v13624_v43  ;;  %7633 = vmatpush1.bf16.msra.mxu1 %v13619_v60  ;;  %v13667_v43 = vld [vmem:[#allocation20 + $0x4a0] ss:$16 sps:$4 sm:$0xff]   ;;  %v13670_v60 = vld [vmem:[#allocation20 + $0xa8] ss:$16 sps:$4 sm:$0xff]  }
 0x934   :  { %7634 = vmatprep.subr.bf16.mxu1 %v13627_v38  ;;  %v13678_v38 = vld [vmem:[#allocation20 + $0xcc] ss:$16 sps:$4 sm:$0xff]  }
 0x936   :  { %7674 = vmatpush1.bf16.msra.mxu0 %v13622_v29  ;;  %v13675_v29 = vld [vmem:[#allocation20 + $0x4c4] ss:$16 sps:$4 sm:$0xff]  }
 0x937   :  { %7675 = vmatprep.subr.bf16.mxu0 %v13630_v54  ;;  %7635 = vmatpush1.bf16.msra.mxu1 %v13625_v51  ;;  %v13673_v54 = vld [vmem:[#allocation20 + $0x4c0] ss:$16 sps:$4 sm:$0xff]   ;;  %v13676_v51 = vld [vmem:[#allocation20 + $0xc8] ss:$16 sps:$4 sm:$0xff]  }
 0x938   :  { %7636 = vmatprep.subr.bf16.mxu1 %v13633_v57  ;;  %v13687_v57 = vld [vmem:[#allocation20 + $0x504] ss:$16 sps:$4 sm:$0xff]  }
 0x93a   :  { %7676 = vmatpush1.bf16.msra.mxu0 %v13628_v30  ;;  %v13681_v30 = vld [vmem:[#allocation20 + $0x4e4] ss:$16 sps:$4 sm:$0xff]  }
 0x93b   :  { %7677 = vmatprep.subr.bf16.mxu0 %v13636_v2  ;;  %7637 = vmatpush1.bf16.msra.mxu1 %v13631_v9  ;;  %v13682_v9 = vld [vmem:[#allocation20 + $0xe8] ss:$16 sps:$4 sm:$0xff]   ;;  %v13685_v2 = vld [vmem:[#allocation20 + $0x500] ss:$16 sps:$4 sm:$0xff]  }
 0x93c   :  { %7688 = vmatprep.subr.bf16.mxu1 %v13639_v55  ;;  %v13688_v55 = vld [vmem:[#allocation20 + $0x108] ss:$16 sps:$4 sm:$0xff]  }
 0x93e   :  { %7678 = vmatpush1.bf16.msra.mxu0 %v13634_v10  ;;  %v13690_v10 = vld [vmem:[#allocation20 + $0x10c] ss:$16 sps:$4 sm:$0xff]  }
 0x93f   :  { %7729 = vmatprep.subr.bf16.mxu0 %v13642_v6  ;;  %v13693_v6 = vld [vmem:[#allocation20 + $0x524] ss:$16 sps:$4 sm:$0xff]  }
 0x990   :  { %v6021_v56 = vpop.permute.xlu1 %6020 }
 0x991   :  { %v6023_v7 = vmul.f32 %v16570_v28, %v6021_v56  ;;  %v13684_v56 = vld [vmem:[#allocation20 + $0xec] ss:$16 sps:$4 sm:$0xff]  }
 0x993   :  { %6055 = vperm.xlu1 %12862, %v6023_v7   ;;  %v13679_v7 = vld [vmem:[#allocation20 + $0x4e0] ss:$16 sps:$4 sm:$0xff]  }
 0xa12   :  { %v16574_v16 = vpop.permute.xlu1 %6055 }
 0xa13   :  { %v6059_v37 = vmul.f32 %v16155_v58, %v16574_v16  ;;  %v6061_v28 = vmul.f32 %v16157_v62, %v16574_v16  ;;  %v6058_v20 = vmul.f32 %v16152_v42, %v16574_v16  ;;  %v6060_v11 = vmul.f32 %v16272_v3, %v16574_v16  ;;  %v13645_v62 = vld [vmem:[#allocation20 + $0x424] ss:$16 sps:$4 sm:$0xff]   ;;  %v13648_v42 = vld [vmem:[#allocation20 + $0x2c] ss:$16 sps:$4 sm:$0xff]  }
 0xa14   :  { %v6063_v32 = vmul.f32 %v16344_v47, %v16574_v16  ;;  %v13643_v47 = vld [vmem:[#allocation20 + $0x420] ss:$16 sps:$4 sm:$0xff]  }
 0xa15   :  { %v6065_v40 = vpack.c.bf16 %v6059_v37, %v6059_v37  ;;  %v16586_v24 = vpack.c.bf16 %v6061_v28, %v6061_v28  ;;  %v16588_v53 = vpack.c.bf16 %v6058_v20, %v6058_v20  ;;  %v16590_v58 = vpack.c.bf16 %v6060_v11, %v6060_v11  ;;  %v13696_v37 = vld [vmem:[#allocation20 + $0x12c] ss:$16 sps:$4 sm:$0xff]   ;;  %v13691_v28 = vld [vmem:[#allocation20 + $0x520] ss:$16 sps:$4 sm:$0xff]   ;;  %v13694_v20 = vld [vmem:[#allocation20 + $0x128] ss:$16 sps:$4 sm:$0xff]  }
 0xa16   :  { %v16595_v3 = vpack.c.bf16 %v6063_v32, %v6063_v32  ;;  %v13699_v11 = vld [vmem:[#allocation20 + $0x544] ss:$16 sps:$4 sm:$0xff]   ;;  %v13702_v32 = vld [vmem:[#allocation20 + $0x14c] ss:$16 sps:$4 sm:$0xff]  }
 0xa17   :  { %7638 = vmatprep.mubr.bf16.mxu1 %v6065_v40  ;;  %7679 = vmatprep.mubr.bf16.mxu0 %v16586_v24 }
 0xa18   :  { %7639 = vmatmul.mubr.bf16.vlgmr.msra.gmra.mrb[24].mxu1 %v16588_v53  ;;  %7680 = vmatmul.mubr.bf16.vlgmr.msra.gmra.mrb[40].mxu0 %v16590_v58 }
 0xa19   :  { %7689 = vmatpush1.bf16.msra.mxu1 %v13637_v0  ;;  %7730 = vmatpush1.bf16.msra.mxu0 %v13640_v26  ;;  %v13700_v0 = vld [vmem:[#allocation20 + $0x148] ss:$16 sps:$4 sm:$0xff]   ;;  %v13705_v26 = vld [vmem:[#allocation20 + $0x564] ss:$16 sps:$4 sm:$0xff]  }
 0xa1a   :  { %7720 = vmatprep.mubr.bf16.mxu1 %v16595_v3  ;;  %7761 = vmatprep.mubr.bf16.mxu0 %v6065_v40  ;;  %v13697_v40 = vld [vmem:[#allocation20 + $0x540] ss:$16 sps:$4 sm:$0xff]  }
 0xa1b   :  { %7690 = vmatprep.subr.bf16.mxu1 %v13645_v62  ;;  %7731 = vmatprep.subr.bf16.mxu0 %v13648_v42  ;;  %v13708_v62 = vld [vmem:[#allocation20 + $0x16c] ss:$16 sps:$4 sm:$0xff]   ;;  %v13703_v42 = vld [vmem:[#allocation20 + $0x560] ss:$16 sps:$4 sm:$0xff]  }
 0xa1d   :  { %7691 = vmatpush1.bf16.msra.mxu1 %v13643_v47  ;;  %7732 = vmatpush1.bf16.msra.mxu0 %v13646_v18  ;;  %v13706_v47 = vld [vmem:[#allocation20 + $0x168] ss:$16 sps:$4 sm:$0xff]   ;;  %v13711_v18 = vld [vmem:[#allocation20 + $0x584] ss:$16 sps:$4 sm:$0xff]  }
 0xa1e   :  { %7692 = vmatprep.subr.bf16.mxu1 %v13651_v59  ;;  %7733 = vmatprep.subr.bf16.mxu0 %v13654_v61  ;;  %v13714_v59 = vld [vmem:[#allocation20 + $0x18c] ss:$16 sps:$4 sm:$0xff]   ;;  %v13709_v61 = vld [vmem:[#allocation20 + $0x580] ss:$16 sps:$4 sm:$0xff]  }
 0xa21   :  { %7693 = vmatpush1.bf16.msra.mxu1 %v13649_v27  ;;  %7734 = vmatpush1.bf16.msra.mxu0 %v13652_v44  ;;  %v13712_v27 = vld [vmem:[#allocation20 + $0x188] ss:$16 sps:$4 sm:$0xff]   ;;  %v13717_v44 = vld [vmem:[#allocation20 + $0x5a4] ss:$16 sps:$4 sm:$0xff]  }
 0xa22   :  { %7694 = vmatprep.subr.bf16.mxu1 %v13657_v46  ;;  %7735 = vmatprep.subr.bf16.mxu0 %v13660_v49  ;;  %v13720_v46 = vld [vmem:[#allocation20 + $0x1ac] ss:$16 sps:$4 sm:$0xff]   ;;  %v13715_v49 = vld [vmem:[#allocation20 + $0x5a0] ss:$16 sps:$4 sm:$0xff]  }
 0xa25   :  { %7695 = vmatpush1.bf16.msra.mxu1 %v13655_v33  ;;  %7736 = vmatpush1.bf16.msra.mxu0 %v13658_v48  ;;  %v13718_v33 = vld [vmem:[#allocation20 + $0x1a8] ss:$16 sps:$4 sm:$0xff]   ;;  %v13723_v48 = vld [vmem:[#allocation20 + $0x5c4] ss:$16 sps:$4 sm:$0xff]  }
 0xa26   :  { %7696 = vmatprep.subr.bf16.mxu1 %v13663_v50  ;;  %7737 = vmatprep.subr.bf16.mxu0 %v13666_v52  ;;  %v13726_v50 = vld [vmem:[#allocation20 + $0x1cc] ss:$16 sps:$4 sm:$0xff]   ;;  %v13721_v52 = vld [vmem:[#allocation20 + $0x5c0] ss:$16 sps:$4 sm:$0xff]  }
 0xa29   :  { %7697 = vmatpush1.bf16.msra.mxu1 %v13661_v5  ;;  %7738 = vmatpush1.bf16.msra.mxu0 %v13664_v19  ;;  %v13724_v5 = vld [vmem:[#allocation20 + $0x1c8] ss:$16 sps:$4 sm:$0xff]   ;;  %v13729_v19 = vld [vmem:[#allocation20 + $0x5e4] ss:$16 sps:$4 sm:$0xff]  }
 0xa2a   :  { %7698 = vmatprep.subr.bf16.mxu1 %v13669_v31  ;;  %7739 = vmatprep.subr.bf16.mxu0 %v13672_v21  ;;  %v13732_v31 = vld [vmem:[#allocation20 + $0x1ec] ss:$16 sps:$4 sm:$0xff]   ;;  %v13727_v21 = vld [vmem:[#allocation20 + $0x5e0] ss:$16 sps:$4 sm:$0xff]  }
 0xa2d   :  { %7699 = vmatpush1.bf16.msra.mxu1 %v13667_v43  ;;  %7740 = vmatpush1.bf16.msra.mxu0 %v13670_v60  ;;  %v13730_v43 = vld [vmem:[#allocation20 + $0x1e8] ss:$16 sps:$4 sm:$0xff]   ;;  %v6062_v60 = vmul.f32 %v16342_v15, %v16574_v16 }
 0xa2e   :  { %7700 = vmatprep.subr.bf16.mxu1 %v13675_v29  ;;  %7741 = vmatprep.subr.bf16.mxu0 %v13678_v38  ;;  %v13735_v29 = vld [vmem:[#allocation20 + $0x20c] ss:$16 sps:$4 sm:$0xff]   ;;  %v13739_v15 = vld [vmem:[#allocation20 + $0x228] ss:$16 sps:$4 sm:$0xff]  }
 0xa2f   :  { %v13738_v38 = vld [vmem:[#allocation20 + $0x40c] ss:$16 sps:$4 sm:$0xff]   ;;  %v13742_v16 = vld [vmem:[#allocation20 + $0x428] ss:$16 sps:$4 sm:$0xff]  }
 0xa31   :  { %7701 = vmatpush1.bf16.msra.mxu1 %v13673_v54  ;;  %7742 = vmatpush1.bf16.msra.mxu0 %v13676_v51  ;;  %v13733_v54 = vld [vmem:[#allocation20 + $0x208] ss:$16 sps:$4 sm:$0xff]   ;;  %v16600_v51 = vpack.c.bf16 %v6062_v60, %v6062_v60  ;;  %v13801_v60 = vld [vmem:[#allocation20 + $0x36c] ss:$16 sps:$4 sm:$0xff]  }
 0xa32   :  { %7702 = vmatprep.subr.bf16.mxu1 %v13681_v30  ;;  %7743 = vmatprep.subr.bf16.mxu0 %v13684_v56  ;;  %v13736_v30 = vld [vmem:[#allocation20 + $0x408] ss:$16 sps:$4 sm:$0xff]   ;;  %v13741_v56 = vld [vmem:[#allocation20 + $0x22c] ss:$16 sps:$4 sm:$0xff]  }
 0xa35   :  { %7703 = vmatpush1.bf16.msra.mxu1 %v13679_v7  ;;  %7744 = vmatpush1.bf16.msra.mxu0 %v13682_v9  ;;  %v13744_v7 = vld [vmem:[#allocation20 + $0x42c] ss:$16 sps:$4 sm:$0xff]  }
 0xa36   :  { %7704 = vmatprep.subr.bf16.mxu1 %v13687_v57  ;;  %7745 = vmatprep.subr.bf16.mxu0 %v13690_v10  ;;  %v13747_v9 = vld [vmem:[#allocation20 + $0x24c] ss:$16 sps:$4 sm:$0xff]   ;;  %v13745_v10 = vld [vmem:[#allocation20 + $0x248] ss:$16 sps:$4 sm:$0xff]  }
 0xa37   :  { %v13750_v57 = vld [vmem:[#allocation20 + $0x44c] ss:$16 sps:$4 sm:$0xff]  }
 0xa39   :  { %7705 = vmatpush1.bf16.msra.mxu1 %v13685_v2  ;;  %7746 = vmatpush1.bf16.msra.mxu0 %v13688_v55  ;;  %v13748_v2 = vld [vmem:[#allocation20 + $0x448] ss:$16 sps:$4 sm:$0xff]   ;;  %v13753_v55 = vld [vmem:[#allocation20 + $0x26c] ss:$16 sps:$4 sm:$0xff]  }
 0xa3a   :  { %7706 = vmatprep.subr.bf16.mxu1 %v13693_v6  ;;  %7747 = vmatprep.subr.bf16.mxu0 %v13696_v37  ;;  %v13751_v6 = vld [vmem:[#allocation20 + $0x268] ss:$16 sps:$4 sm:$0xff]   ;;  %v13759_v37 = vld [vmem:[#allocation20 + $0x28c] ss:$16 sps:$4 sm:$0xff]  }
 0xa3d   :  { %7707 = vmatpush1.bf16.msra.mxu1 %v13691_v28  ;;  %7748 = vmatpush1.bf16.msra.mxu0 %v13694_v20  ;;  %v13757_v28 = vld [vmem:[#allocation20 + $0x288] ss:$16 sps:$4 sm:$0xff]  }
 0xa3e   :  { %7708 = vmatprep.subr.bf16.mxu1 %v13699_v11  ;;  %7749 = vmatprep.subr.bf16.mxu0 %v13702_v32  ;;  %v13760_v20 = vld [vmem:[#allocation20 + $0x488] ss:$16 sps:$4 sm:$0xff]   ;;  %v13765_v11 = vld [vmem:[#allocation20 + $0x2ac] ss:$16 sps:$4 sm:$0xff]  }
 0xa3f   :  { %v13768_v32 = vld [vmem:[#allocation20 + $0x4ac] ss:$16 sps:$4 sm:$0xff]  }
 0xa41   :  { %7709 = vmatpush1.bf16.msra.mxu1 %v13697_v40  ;;  %7750 = vmatpush1.bf16.msra.mxu0 %v13700_v0  ;;  %v13763_v40 = vld [vmem:[#allocation20 + $0x2a8] ss:$16 sps:$4 sm:$0xff]  }
 0xa42   :  { %7710 = vmatprep.subr.bf16.mxu1 %v13705_v26  ;;  %7751 = vmatprep.subr.bf16.mxu0 %v13708_v62  ;;  %v13766_v0 = vld [vmem:[#allocation20 + $0x4a8] ss:$16 sps:$4 sm:$0xff]   ;;  %v13771_v26 = vld [vmem:[#allocation20 + $0x2cc] ss:$16 sps:$4 sm:$0xff]  }
 0xa43   :  { %v13774_v62 = vld [vmem:[#allocation20 + $0x4cc] ss:$16 sps:$4 sm:$0xff]  }
 0xa45   :  { %7711 = vmatpush1.bf16.msra.mxu1 %v13703_v42  ;;  %7752 = vmatpush1.bf16.msra.mxu0 %v13706_v47  ;;  %v13769_v42 = vld [vmem:[#allocation20 + $0x2c8] ss:$16 sps:$4 sm:$0xff]  }
 0xa46   :  { %7712 = vmatprep.subr.bf16.mxu1 %v13711_v18  ;;  %7753 = vmatprep.subr.bf16.mxu0 %v13714_v59  ;;  %v13772_v47 = vld [vmem:[#allocation20 + $0x4c8] ss:$16 sps:$4 sm:$0xff]   ;;  %v13777_v18 = vld [vmem:[#allocation20 + $0x2ec] ss:$16 sps:$4 sm:$0xff]  }
 0xa47   :  { %v13780_v59 = vld [vmem:[#allocation20 + $0x4ec] ss:$16 sps:$4 sm:$0xff]  }
 0xa49   :  { %7713 = vmatpush1.bf16.msra.mxu1 %v13709_v61  ;;  %7754 = vmatpush1.bf16.msra.mxu0 %v13712_v27  ;;  %v13775_v61 = vld [vmem:[#allocation20 + $0x2e8] ss:$16 sps:$4 sm:$0xff]  }
 0xa4a   :  { %7714 = vmatprep.subr.bf16.mxu1 %v13717_v44  ;;  %7755 = vmatprep.subr.bf16.mxu0 %v13720_v46  ;;  %v13778_v27 = vld [vmem:[#allocation20 + $0x4e8] ss:$16 sps:$4 sm:$0xff]   ;;  %v13783_v44 = vld [vmem:[#allocation20 + $0x30c] ss:$16 sps:$4 sm:$0xff]  }
 0xa4b   :  { %v13786_v46 = vld [vmem:[#allocation20 + $0x50c] ss:$16 sps:$4 sm:$0xff]  }
 0xa4d   :  { %7715 = vmatpush1.bf16.msra.mxu1 %v13715_v49  ;;  %7756 = vmatpush1.bf16.msra.mxu0 %v13718_v33  ;;  %v13781_v49 = vld [vmem:[#allocation20 + $0x308] ss:$16 sps:$4 sm:$0xff]  }
 0xa4e   :  { %7716 = vmatprep.subr.bf16.mxu1 %v13723_v48  ;;  %7757 = vmatprep.subr.bf16.mxu0 %v13726_v50  ;;  %v13784_v33 = vld [vmem:[#allocation20 + $0x508] ss:$16 sps:$4 sm:$0xff]   ;;  %v13789_v48 = vld [vmem:[#allocation20 + $0x32c] ss:$16 sps:$4 sm:$0xff]  }
 0xa4f   :  { %v13792_v50 = vld [vmem:[#allocation20 + $0x52c] ss:$16 sps:$4 sm:$0xff]  }
 0xa51   :  { %7717 = vmatpush1.bf16.msra.mxu1 %v13721_v52  ;;  %7758 = vmatpush1.bf16.msra.mxu0 %v13724_v5  ;;  %v13787_v52 = vld [vmem:[#allocation20 + $0x328] ss:$16 sps:$4 sm:$0xff]  }
 0xa52   :  { %7718 = vmatprep.subr.bf16.mxu1 %v13729_v19  ;;  %7759 = vmatprep.subr.bf16.mxu0 %v13732_v31  ;;  %v13790_v5 = vld [vmem:[#allocation20 + $0x528] ss:$16 sps:$4 sm:$0xff]   ;;  %v13795_v19 = vld [vmem:[#allocation20 + $0x34c] ss:$16 sps:$4 sm:$0xff]  }
 0xa53   :  { %v13798_v31 = vld [vmem:[#allocation20 + $0x54c] ss:$16 sps:$4 sm:$0xff]  }
 0xa55   :  { %7719 = vmatpush1.bf16.msra.mxu1 %v13727_v21  ;;  %7760 = vmatpush1.bf16.msra.mxu0 %v13730_v43  ;;  %v13793_v21 = vld [vmem:[#allocation20 + $0x348] ss:$16 sps:$4 sm:$0xff]  }
 0xa56   :  { %7770 = vmatprep.subr.bf16.mxu1 %v13735_v29  ;;  %7811 = vmatprep.subr.bf16.mxu0 %v13738_v38  ;;  %v13796_v43 = vld [vmem:[#allocation20 + $0x548] ss:$16 sps:$4 sm:$0xff]   ;;  %v13804_v29 = vld [vmem:[#allocation20 + $0x56c] ss:$16 sps:$4 sm:$0xff]  }
 0xa57   :  { %v13799_v38 = vld [vmem:[#allocation20 + $0x368] ss:$16 sps:$4 sm:$0xff]  }
 0xa58   :  { %7721 = vmatmul.mubr.bf16.vlgmr.msra.gmra.mrb[28].mxu1 %v16600_v51  ;;  %7762 = vmatmul.mubr.bf16.vlgmr.msra.gmra.mrb[44].mxu0 %v16588_v53  ;;  %v13756_v53 = vld [vmem:[#allocation20 + $0x46c] ss:$16 sps:$4 sm:$0xff]  }
 0xa59   :  { %7771 = vmatpush1.bf16.msra.mxu1 %v13733_v54  ;;  %7802 = vmatprep.mubr.bf16.mxu1 %v16586_v24  ;;  %v13754_v24 = vld [vmem:[#allocation20 + $0x468] ss:$16 sps:$4 sm:$0xff]  }
 0xa5a   :  { %7812 = vmatpush1.bf16.msra.mxu0 %v13736_v30  ;;  %7843 = vmatprep.mubr.bf16.mxu0 %v16595_v3  ;;  %v13762_v3 = vld [vmem:[#allocation20 + $0x48c] ss:$16 sps:$4 sm:$0xff]   ;;  %v13802_v54 = vld [vmem:[#allocation20 + $0x568] ss:$16 sps:$4 sm:$0xff]  }
 0xa5b   :  { %7772 = vmatprep.subr.bf16.mxu1 %v13741_v56  ;;  %7813 = vmatprep.subr.bf16.mxu0 %v13744_v7  ;;  %v13807_v30 = vld [vmem:[#allocation20 + $0x38c] ss:$16 sps:$4 sm:$0xff]   ;;  %v13805_v7 = vld [vmem:[#allocation20 + $0x388] ss:$16 sps:$4 sm:$0xff]  }
 0xa5c   :  { %v13810_v56 = vld [vmem:[#allocation20 + $0x58c] ss:$16 sps:$4 sm:$0xff]  }
 0xa5d   :  { %7773 = vmatpush1.bf16.msra.mxu1 %v13739_v15  ;;  %v13808_v15 = vld [vmem:[#allocation20 + $0x588] ss:$16 sps:$4 sm:$0xff]  }
 0xa5e   :  { %7814 = vmatpush1.bf16.msra.mxu0 %v13742_v16  ;;  %7774 = vmatprep.subr.bf16.mxu1 %v13747_v9  ;;  %v13813_v16 = vld [vmem:[#allocation20 + $0x3ac] ss:$16 sps:$4 sm:$0xff]  }
 0xa5f   :  { %7815 = vmatprep.subr.bf16.mxu0 %v13750_v57  ;;  %v13816_v9 = vld [vmem:[#allocation20 + $0x5ac] ss:$16 sps:$4 sm:$0xff]   ;;  %v13811_v57 = vld [vmem:[#allocation20 + $0x3a8] ss:$16 sps:$4 sm:$0xff]  }
 0xa61   :  { %7775 = vmatpush1.bf16.msra.mxu1 %v13745_v10  ;;  %v13814_v10 = vld [vmem:[#allocation20 + $0x5a8] ss:$16 sps:$4 sm:$0xff]  }
 0xa62   :  { %7816 = vmatpush1.bf16.msra.mxu0 %v13748_v2  ;;  %7776 = vmatprep.subr.bf16.mxu1 %v13753_v55  ;;  %v13819_v2 = vld [vmem:[#allocation20 + $0x3cc] ss:$16 sps:$4 sm:$0xff]  }
 0xa63   :  { %7817 = vmatprep.subr.bf16.mxu0 %v13756_v53  ;;  %v13822_v55 = vld [vmem:[#allocation20 + $0x5cc] ss:$16 sps:$4 sm:$0xff]   ;;  %v13817_v53 = vld [vmem:[#allocation20 + $0x3c8] ss:$16 sps:$4 sm:$0xff]  }
 0xa65   :  { %7777 = vmatpush1.bf16.msra.mxu1 %v13751_v6  ;;  %v13820_v6 = vld [vmem:[#allocation20 + $0x5c8] ss:$16 sps:$4 sm:$0xff]  }
 0xa66   :  { %7818 = vmatpush1.bf16.msra.mxu0 %v13754_v24  ;;  %7778 = vmatprep.subr.bf16.mxu1 %v13759_v37  ;;  %v13825_v24 = vld [vmem:[#allocation20 + $0x3ec] ss:$16 sps:$4 sm:$0xff]  }
 0xa67   :  { %7819 = vmatprep.subr.bf16.mxu0 %v13762_v3  ;;  %v13828_v37 = vld [vmem:[#allocation20 + $0x5ec] ss:$16 sps:$4 sm:$0xff]   ;;  %v16606_v3 = vpop.permute.xlu0 %6026 }
 0xa69   :  { %7779 = vmatpush1.bf16.msra.mxu1 %v13757_v28  ;;  %v13823_v28 = vld [vmem:[#allocation20 + $0x3e8] ss:$16 sps:$4 sm:$0xff]  }
 0xa6a   :  { %7820 = vmatpush1.bf16.msra.mxu0 %v13760_v20  ;;  %7780 = vmatprep.subr.bf16.mxu1 %v13765_v11  ;;  %v13826_v20 = vld [vmem:[#allocation20 + $0x5e8] ss:$16 sps:$4 sm:$0xff]   ;;  %v13831_v11 = vld [vmem:[#allocation18 + $0x4] ss:$16 sps:$4 sm:$0xff]  }
 0xa6b   :  { %7821 = vmatprep.subr.bf16.mxu0 %v13768_v32  ;;  %v13834_v32 = vld [vmem:[#allocation18 + $0x204] ss:$16 sps:$4 sm:$0xff]  }
 0xa6d   :  { %7781 = vmatpush1.bf16.msra.mxu1 %v13763_v40  ;;  %v6030_v40 = vmul.f32 %v16606_v3, %v16031_v17  ;;  %v13835_v17 = vld [vmem:[#allocation18 + $0x20] ss:$16 sps:$4 sm:$0xff]  }
 0xa6e   :  { %7822 = vmatpush1.bf16.msra.mxu0 %v13766_v0  ;;  %7782 = vmatprep.subr.bf16.mxu1 %v13771_v26  ;;  %v13829_v0 = vld [vmem:[#allocation18] ss:$16 sps:$4 sm:$0xff]   ;;  %v6032_v26 = vmul.f32 %v16606_v3, %v16037_v36 }
 0xa6f   :  { %7823 = vmatprep.subr.bf16.mxu0 %v13774_v62  ;;  %v13832_v62 = vld [vmem:[#allocation18 + $0x200] ss:$16 sps:$4 sm:$0xff]  }
 0xa70   :  { %v13838_v36 = vld [vmem:[#allocation18 + $0x220] ss:$16 sps:$4 sm:$0xff]  }
 0xa71   :  { %7783 = vmatpush1.bf16.msra.mxu1 %v13769_v42  ;;  %v13837_v42 = vld [vmem:[#allocation18 + $0x24] ss:$16 sps:$4 sm:$0xff]  }
 0xa72   :  { %7824 = vmatpush1.bf16.msra.mxu0 %v13772_v47  ;;  %7784 = vmatprep.subr.bf16.mxu1 %v13777_v18  ;;  %v16613_v47 = vpack.c.bf16 %v6030_v40, %v6030_v40  ;;  %v13840_v18 = vld [vmem:[#allocation18 + $0x224] ss:$16 sps:$4 sm:$0xff]   ;;  %v13895_v40 = vld [vmem:[#allocation18 + $0x160] ss:$16 sps:$4 sm:$0xff]  }
 0xa73   :  { %7825 = vmatprep.subr.bf16.mxu0 %v13780_v59  ;;  %v16616_v59 = vpack.c.bf16 %v6032_v26, %v6032_v26  ;;  %v13903_v26 = vld [vmem:[#allocation18 + $0x184] ss:$16 sps:$4 sm:$0xff]  }
 0xa75   :  { %7785 = vmatpush1.bf16.msra.mxu1 %v13775_v61  ;;  %v13843_v61 = vld [vmem:[#allocation18 + $0x44] ss:$16 sps:$4 sm:$0xff]  }
 0xa76   :  { %7826 = vmatpush1.bf16.msra.mxu0 %v13778_v27  ;;  %7786 = vmatprep.subr.bf16.mxu1 %v13783_v44  ;;  %v13846_v27 = vld [vmem:[#allocation18 + $0x244] ss:$16 sps:$4 sm:$0xff]   ;;  %v13844_v44 = vld [vmem:[#allocation18 + $0x240] ss:$16 sps:$4 sm:$0xff]  }
 0xa77   :  { %7827 = vmatprep.subr.bf16.mxu0 %v13786_v46  ;;  %v13852_v46 = vld [vmem:[#allocation18 + $0x264] ss:$16 sps:$4 sm:$0xff]  }
 0xa79   :  { %7787 = vmatpush1.bf16.msra.mxu1 %v13781_v49  ;;  %v13847_v49 = vld [vmem:[#allocation18 + $0x60] ss:$16 sps:$4 sm:$0xff]  }
 0xa7a   :  { %7828 = vmatpush1.bf16.msra.mxu0 %v13784_v33  ;;  %7788 = vmatprep.subr.bf16.mxu1 %v13789_v48  ;;  %v13850_v33 = vld [vmem:[#allocation18 + $0x260] ss:$16 sps:$4 sm:$0xff]   ;;  %v13855_v48 = vld [vmem:[#allocation18 + $0x84] ss:$16 sps:$4 sm:$0xff]  }
 0xa7b   :  { %7829 = vmatprep.subr.bf16.mxu0 %v13792_v50  ;;  %v13858_v50 = vld [vmem:[#allocation18 + $0x284] ss:$16 sps:$4 sm:$0xff]  }
 0xa7d   :  { %7789 = vmatpush1.bf16.msra.mxu1 %v13787_v52  ;;  %v13853_v52 = vld [vmem:[#allocation18 + $0x80] ss:$16 sps:$4 sm:$0xff]  }
 0xa7e   :  { %7830 = vmatpush1.bf16.msra.mxu0 %v13790_v5  ;;  %7790 = vmatprep.subr.bf16.mxu1 %v13795_v19  ;;  %v13856_v5 = vld [vmem:[#allocation18 + $0x280] ss:$16 sps:$4 sm:$0xff]   ;;  %v13861_v19 = vld [vmem:[#allocation18 + $0xa4] ss:$16 sps:$4 sm:$0xff]  }
 0xa7f   :  { %7831 = vmatprep.subr.bf16.mxu0 %v13798_v31  ;;  %v13864_v31 = vld [vmem:[#allocation18 + $0x2a4] ss:$16 sps:$4 sm:$0xff]  }
 0xa81   :  { %7791 = vmatpush1.bf16.msra.mxu1 %v13793_v21  ;;  %v13859_v21 = vld [vmem:[#allocation18 + $0xa0] ss:$16 sps:$4 sm:$0xff]  }
 0xa82   :  { %7832 = vmatpush1.bf16.msra.mxu0 %v13796_v43  ;;  %7792 = vmatprep.subr.bf16.mxu1 %v13801_v60  ;;  %v13862_v43 = vld [vmem:[#allocation18 + $0x2a0] ss:$16 sps:$4 sm:$0xff]   ;;  %v13867_v60 = vld [vmem:[#allocation18 + $0xc4] ss:$16 sps:$4 sm:$0xff]  }
 0xa83   :  { %7833 = vmatprep.subr.bf16.mxu0 %v13804_v29  ;;  %v13870_v29 = vld [vmem:[#allocation18 + $0x2c4] ss:$16 sps:$4 sm:$0xff]  }
 0xa85   :  { %7793 = vmatpush1.bf16.msra.mxu1 %v13799_v38  ;;  %v13865_v38 = vld [vmem:[#allocation18 + $0xc0] ss:$16 sps:$4 sm:$0xff]  }
 0xa86   :  { %7834 = vmatpush1.bf16.msra.mxu0 %v13802_v54  ;;  %7794 = vmatprep.subr.bf16.mxu1 %v13807_v30  ;;  %v13868_v54 = vld [vmem:[#allocation18 + $0x2c0] ss:$16 sps:$4 sm:$0xff]   ;;  %v13873_v30 = vld [vmem:[#allocation18 + $0xe4] ss:$16 sps:$4 sm:$0xff]  }
 0xa87   :  { %7835 = vmatprep.subr.bf16.mxu0 %v13810_v56  ;;  %v13876_v56 = vld [vmem:[#allocation18 + $0x2e4] ss:$16 sps:$4 sm:$0xff]  }
 0xa89   :  { %7795 = vmatpush1.bf16.msra.mxu1 %v13805_v7  ;;  %v13871_v7 = vld [vmem:[#allocation18 + $0xe0] ss:$16 sps:$4 sm:$0xff]  }
 0xa8a   :  { %7836 = vmatpush1.bf16.msra.mxu0 %v13808_v15  ;;  %7796 = vmatprep.subr.bf16.mxu1 %v13813_v16  ;;  %v13874_v15 = vld [vmem:[#allocation18 + $0x2e0] ss:$16 sps:$4 sm:$0xff]   ;;  %v13879_v16 = vld [vmem:[#allocation18 + $0x104] ss:$16 sps:$4 sm:$0xff]  }
 0xa8b   :  { %7837 = vmatprep.subr.bf16.mxu0 %v13816_v9  ;;  %v13882_v9 = vld [vmem:[#allocation18 + $0x304] ss:$16 sps:$4 sm:$0xff]  }
 0xa8d   :  { %7797 = vmatpush1.bf16.msra.mxu1 %v13811_v57  ;;  %v13877_v57 = vld [vmem:[#allocation18 + $0x100] ss:$16 sps:$4 sm:$0xff]  }
 0xa8e   :  { %7838 = vmatpush1.bf16.msra.mxu0 %v13814_v10  ;;  %7798 = vmatprep.subr.bf16.mxu1 %v13819_v2  ;;  %v13880_v10 = vld [vmem:[#allocation18 + $0x300] ss:$16 sps:$4 sm:$0xff]   ;;  %v13885_v2 = vld [vmem:[#allocation18 + $0x124] ss:$16 sps:$4 sm:$0xff]  }
 0xa8f   :  { %7839 = vmatprep.subr.bf16.mxu0 %v13822_v55  ;;  %v13888_v55 = vld [vmem:[#allocation18 + $0x324] ss:$16 sps:$4 sm:$0xff]  }
 0xa91   :  { %7799 = vmatpush1.bf16.msra.mxu1 %v13817_v53  ;;  %v13883_v53 = vld [vmem:[#allocation18 + $0x120] ss:$16 sps:$4 sm:$0xff]  }
 0xa92   :  { %7840 = vmatpush1.bf16.msra.mxu0 %v13820_v6  ;;  %7800 = vmatprep.subr.bf16.mxu1 %v13825_v24  ;;  %v13886_v6 = vld [vmem:[#allocation18 + $0x320] ss:$16 sps:$4 sm:$0xff]   ;;  %v13891_v24 = vld [vmem:[#allocation18 + $0x144] ss:$16 sps:$4 sm:$0xff]  }
 0xa93   :  { %7841 = vmatprep.subr.bf16.mxu0 %v13828_v37  ;;  %v13894_v37 = vld [vmem:[#allocation18 + $0x344] ss:$16 sps:$4 sm:$0xff]  }
 0xa95   :  { %7801 = vmatpush1.bf16.msra.mxu1 %v13823_v28  ;;  %v13889_v28 = vld [vmem:[#allocation18 + $0x140] ss:$16 sps:$4 sm:$0xff]  }
 0xa96   :  { %7842 = vmatpush1.bf16.msra.mxu0 %v13826_v20  ;;  %9772 = vmatprep.subr.bf16.mxu1 %v13831_v11  ;;  %v13892_v20 = vld [vmem:[#allocation18 + $0x340] ss:$16 sps:$4 sm:$0xff]   ;;  %v13897_v11 = vld [vmem:[#allocation18 + $0x164] ss:$16 sps:$4 sm:$0xff]  }
 0xa97   :  { %9813 = vmatprep.subr.bf16.mxu0 %v13834_v32  ;;  %v13900_v32 = vld [vmem:[#allocation18 + $0x364] ss:$16 sps:$4 sm:$0xff]  }
 0xa98   :  { %7803 = vmatmul.mubr.bf16.vlgmr.msra.gmra.mrb[32].mxu1 %v16590_v58  ;;  %v13841_v58 = vld [vmem:[#allocation18 + $0x40] ss:$16 sps:$4 sm:$0xff]  }
 0xa99   :  { %7844 = vmatmul.mubr.bf16.vlgmr.msra.gmra.mrb[48].mxu0 %v16600_v51  ;;  %9773 = vmatpush1.bf16.msra.mxu1 %v13829_v0  ;;  %v13849_v51 = vld [vmem:[#allocation18 + $0x64] ss:$16 sps:$4 sm:$0xff]   ;;  %v13898_v0 = vld [vmem:[#allocation18 + $0x360] ss:$16 sps:$4 sm:$0xff]  }
 0xa9a   :  { %9804 = vmatprep.mubr.bf16.mxu1 %v16613_v47  ;;  %9814 = vmatpush1.bf16.msra.mxu0 %v13832_v62  ;;  %v13906_v62 = vld [vmem:[#allocation18 + $0x384] ss:$16 sps:$4 sm:$0xff]  }
 0xa9b   :  { %9845 = vmatprep.mubr.bf16.mxu0 %v16616_v59  ;;  %9774 = vmatprep.subr.bf16.mxu1 %v13837_v42  ;;  %v13901_v42 = vld [vmem:[#allocation18 + $0x180] ss:$16 sps:$4 sm:$0xff]  }
 0xa9c   :  { %9815 = vmatprep.subr.bf16.mxu0 %v13840_v18  ;;  %v13904_v18 = vld [vmem:[#allocation18 + $0x380] ss:$16 sps:$4 sm:$0xff]  }
 0xa9d   :  { %9775 = vmatpush1.bf16.msra.mxu1 %v13835_v17  ;;  %v13909_v17 = vld [vmem:[#allocation18 + $0x1a4] ss:$16 sps:$4 sm:$0xff]  }
 0xa9e   :  { %9816 = vmatpush1.bf16.msra.mxu0 %v13838_v36  ;;  %9776 = vmatprep.subr.bf16.mxu1 %v13843_v61  ;;  %v13912_v36 = vld [vmem:[#allocation18 + $0x3a4] ss:$16 sps:$4 sm:$0xff]   ;;  %v13907_v61 = vld [vmem:[#allocation18 + $0x1a0] ss:$16 sps:$4 sm:$0xff]  }
 0xa9f   :  { %9817 = vmatprep.subr.bf16.mxu0 %v13846_v27  ;;  %v13910_v27 = vld [vmem:[#allocation18 + $0x3a0] ss:$16 sps:$4 sm:$0xff]  }
 0xaa1   :  { %9777 = vmatpush1.bf16.msra.mxu1 %v13841_v58  ;;  %v13915_v58 = vld [vmem:[#allocation18 + $0x1c4] ss:$16 sps:$4 sm:$0xff]  }
 0xaa2   :  { %9818 = vmatpush1.bf16.msra.mxu0 %v13844_v44  ;;  %9778 = vmatprep.subr.bf16.mxu1 %v13849_v51  ;;  %v13918_v44 = vld [vmem:[#allocation18 + $0x3c4] ss:$16 sps:$4 sm:$0xff]   ;;  %v13913_v51 = vld [vmem:[#allocation18 + $0x1c0] ss:$16 sps:$4 sm:$0xff]  }
 0xaa3   :  { %9819 = vmatprep.subr.bf16.mxu0 %v13852_v46  ;;  %v13916_v46 = vld [vmem:[#allocation18 + $0x3c0] ss:$16 sps:$4 sm:$0xff]  }
 0xaa5   :  { %9779 = vmatpush1.bf16.msra.mxu1 %v13847_v49  ;;  %v13921_v49 = vld [vmem:[#allocation18 + $0x1e4] ss:$16 sps:$4 sm:$0xff]  }
 0xaa6   :  { %9820 = vmatpush1.bf16.msra.mxu0 %v13850_v33  ;;  %9780 = vmatprep.subr.bf16.mxu1 %v13855_v48  ;;  %v13924_v33 = vld [vmem:[#allocation18 + $0x3e4] ss:$16 sps:$4 sm:$0xff]   ;;  %v13919_v48 = vld [vmem:[#allocation18 + $0x1e0] ss:$16 sps:$4 sm:$0xff]  }
 0xaa7   :  { %9821 = vmatprep.subr.bf16.mxu0 %v13858_v50  ;;  %v13922_v50 = vld [vmem:[#allocation18 + $0x3e0] ss:$16 sps:$4 sm:$0xff]  }
 0xaa9   :  { %9781 = vmatpush1.bf16.msra.mxu1 %v13853_v52  ;;  %v6029_v52 = vmul.f32 %v16606_v3, %v16034_v35 }
 0xaaa   :  { %9822 = vmatpush1.bf16.msra.mxu0 %v13856_v5  ;;  %9782 = vmatprep.subr.bf16.mxu1 %v13861_v19  ;;  %v13927_v5 = vld [vmem:[#allocation18 + $0x404] ss:$16 sps:$4 sm:$0xff]   ;;  %v6031_v19 = vmul.f32 %v16606_v3, %v16040_v34 }
 0xaab   :  { %9823 = vmatprep.subr.bf16.mxu0 %v13864_v31  ;;  %v13930_v31 = vld [vmem:[#allocation18 + $0x604] ss:$16 sps:$4 sm:$0xff]  }
 0xaac   :  { %v16630_v35 = vpack.c.bf16 %v6031_v19, %v6031_v19  ;;  %v13973_v19 = vld [vmem:[#allocation18 + $0x500] ss:$16 sps:$4 sm:$0xff]  }
 0xaad   :  { %9783 = vmatpush1.bf16.msra.mxu1 %v13859_v21  ;;  %v6034_v21 = vmul.f32 %v16606_v3, %v16085_v1 }
 0xaae   :  { %9824 = vmatpush1.bf16.msra.mxu0 %v13862_v43  ;;  %9784 = vmatprep.subr.bf16.mxu1 %v13867_v60  ;;  %v13925_v43 = vld [vmem:[#allocation18 + $0x400] ss:$16 sps:$4 sm:$0xff]   ;;  %v6036_v60 = vmul.f32 %v16606_v3, %v16053_v22 }
 0xaaf   :  { %9825 = vmatprep.subr.bf16.mxu0 %v13870_v29  ;;  %v16628_v29 = vpack.c.bf16 %v6029_v52, %v6029_v52  ;;  %v16633_v34 = vpack.c.bf16 %v6034_v21, %v6034_v21  ;;  %v13931_v22 = vld [vmem:[#allocation18 + $0x420] ss:$16 sps:$4 sm:$0xff]   ;;  %v13975_v52 = vld [vmem:[#allocation18 + $0x504] ss:$16 sps:$4 sm:$0xff]  }
 0xab0   :  { %v16636_v1 = vpack.c.bf16 %v6036_v60, %v6036_v60  ;;  %v13981_v21 = vld [vmem:[#allocation18 + $0x524] ss:$16 sps:$4 sm:$0xff]   ;;  %v13979_v60 = vld [vmem:[#allocation18 + $0x520] ss:$16 sps:$4 sm:$0xff]  }
 0xab1   :  { %9785 = vmatpush1.bf16.msra.mxu1 %v13865_v38  ;;  %v13928_v38 = vld [vmem:[#allocation18 + $0x600] ss:$16 sps:$4 sm:$0xff]  }
 0xab2   :  { %9826 = vmatpush1.bf16.msra.mxu0 %v13868_v54  ;;  %9786 = vmatprep.subr.bf16.mxu1 %v13873_v30  ;;  %v13933_v54 = vld [vmem:[#allocation18 + $0x424] ss:$16 sps:$4 sm:$0xff]  }
 0xab3   :  { %9827 = vmatprep.subr.bf16.mxu0 %v13876_v56  ;;  %v13936_v30 = vld [vmem:[#allocation18 + $0x624] ss:$16 sps:$4 sm:$0xff]   ;;  %v13934_v56 = vld [vmem:[#allocation18 + $0x620] ss:$16 sps:$4 sm:$0xff]  }
 0xab5   :  { %9787 = vmatpush1.bf16.msra.mxu1 %v13871_v7  ;;  %v13939_v7 = vld [vmem:[#allocation18 + $0x444] ss:$16 sps:$4 sm:$0xff]  }
 0xab6   :  { %9828 = vmatpush1.bf16.msra.mxu0 %v13874_v15  ;;  %9788 = vmatprep.subr.bf16.mxu1 %v13879_v16  ;;  %v13942_v15 = vld [vmem:[#allocation18 + $0x644] ss:$16 sps:$4 sm:$0xff]   ;;  %v13937_v16 = vld [vmem:[#allocation18 + $0x440] ss:$16 sps:$4 sm:$0xff]  }
 0xab7   :  { %9829 = vmatprep.subr.bf16.mxu0 %v13882_v9  ;;  %v13940_v9 = vld [vmem:[#allocation18 + $0x640] ss:$16 sps:$4 sm:$0xff]  }
 0xab9   :  { %9789 = vmatpush1.bf16.msra.mxu1 %v13877_v57  ;;  %v13945_v57 = vld [vmem:[#allocation18 + $0x464] ss:$16 sps:$4 sm:$0xff]  }
 0xaba   :  { %9830 = vmatpush1.bf16.msra.mxu0 %v13880_v10  ;;  %9790 = vmatprep.subr.bf16.mxu1 %v13885_v2  ;;  %v13948_v10 = vld [vmem:[#allocation18 + $0x664] ss:$16 sps:$4 sm:$0xff]   ;;  %v13943_v2 = vld [vmem:[#allocation18 + $0x460] ss:$16 sps:$4 sm:$0xff]  }
 0xabb   :  { %9831 = vmatprep.subr.bf16.mxu0 %v13888_v55  ;;  %v13946_v55 = vld [vmem:[#allocation18 + $0x660] ss:$16 sps:$4 sm:$0xff]  }
 0xabd   :  { %9791 = vmatpush1.bf16.msra.mxu1 %v13883_v53  ;;  %v13951_v53 = vld [vmem:[#allocation18 + $0x484] ss:$16 sps:$4 sm:$0xff]  }
 0xabe   :  { %9832 = vmatpush1.bf16.msra.mxu0 %v13886_v6  ;;  %9792 = vmatprep.subr.bf16.mxu1 %v13891_v24  ;;  %v13954_v6 = vld [vmem:[#allocation18 + $0x684] ss:$16 sps:$4 sm:$0xff]   ;;  %v13949_v24 = vld [vmem:[#allocation18 + $0x480] ss:$16 sps:$4 sm:$0xff]  }
 0xabf   :  { %9833 = vmatprep.subr.bf16.mxu0 %v13894_v37  ;;  %v13952_v37 = vld [vmem:[#allocation18 + $0x680] ss:$16 sps:$4 sm:$0xff]  }
 0xac1   :  { %9793 = vmatpush1.bf16.msra.mxu1 %v13889_v28  ;;  %v13957_v28 = vld [vmem:[#allocation18 + $0x4a4] ss:$16 sps:$4 sm:$0xff]  }
 0xac2   :  { %9834 = vmatpush1.bf16.msra.mxu0 %v13892_v20  ;;  %9794 = vmatprep.subr.bf16.mxu1 %v13897_v11  ;;  %v13960_v20 = vld [vmem:[#allocation18 + $0x6a4] ss:$16 sps:$4 sm:$0xff]   ;;  %v13955_v11 = vld [vmem:[#allocation18 + $0x4a0] ss:$16 sps:$4 sm:$0xff]  }
 0xac3   :  { %9835 = vmatprep.subr.bf16.mxu0 %v13900_v32  ;;  %v13958_v32 = vld [vmem:[#allocation18 + $0x6a0] ss:$16 sps:$4 sm:$0xff]  }
 0xac5   :  { %9795 = vmatpush1.bf16.msra.mxu1 %v13895_v40  ;;  %v13963_v40 = vld [vmem:[#allocation18 + $0x4c4] ss:$16 sps:$4 sm:$0xff]  }
 0xac6   :  { %9836 = vmatpush1.bf16.msra.mxu0 %v13898_v0  ;;  %9796 = vmatprep.subr.bf16.mxu1 %v13903_v26 }
 0xac7   :  { %9837 = vmatprep.subr.bf16.mxu0 %v13906_v62  ;;  %v13966_v62 = vld [vmem:[#allocation18 + $0x6c4] ss:$16 sps:$4 sm:$0xff]  }
 0xac9   :  { %9797 = vmatpush1.bf16.msra.mxu1 %v13901_v42 }
 0xaca   :  { %9838 = vmatpush1.bf16.msra.mxu0 %v13904_v18  ;;  %9798 = vmatprep.subr.bf16.mxu1 %v13909_v17 }
 0xacb   :  { %9839 = vmatprep.subr.bf16.mxu0 %v13912_v36 }
 0xacd   :  { %9799 = vmatpush1.bf16.msra.mxu1 %v13907_v61 }
 0xace   :  { %9840 = vmatpush1.bf16.msra.mxu0 %v13910_v27  ;;  %9800 = vmatprep.subr.bf16.mxu1 %v13915_v58  ;;  %v13961_v58 = vld [vmem:[#allocation18 + $0x4c0] ss:$16 sps:$4 sm:$0xff]  }
 0xacf   :  { %9841 = vmatprep.subr.bf16.mxu0 %v13918_v44 }
 0xad1   :  { %9801 = vmatpush1.bf16.msra.mxu1 %v13913_v51 }
 0xad2   :  { %9842 = vmatpush1.bf16.msra.mxu0 %v13916_v46  ;;  %9802 = vmatprep.subr.bf16.mxu1 %v13921_v49  ;;  %v13964_v46 = vld [vmem:[#allocation18 + $0x6c0] ss:$16 sps:$4 sm:$0xff]   ;;  %v13969_v49 = vld [vmem:[#allocation18 + $0x4e4] ss:$16 sps:$4 sm:$0xff]  }
 0xad3   :  { %9843 = vmatprep.subr.bf16.mxu0 %v13924_v33  ;;  %v13972_v33 = vld [vmem:[#allocation18 + $0x6e4] ss:$16 sps:$4 sm:$0xff]  }
 0xad5   :  { %9803 = vmatpush1.bf16.msra.mxu1 %v13919_v48  ;;  %v13967_v48 = vld [vmem:[#allocation18 + $0x4e0] ss:$16 sps:$4 sm:$0xff]  }
 0xad6   :  { %9844 = vmatpush1.bf16.msra.mxu0 %v13922_v50  ;;  %9854 = vmatprep.subr.bf16.mxu1 %v13927_v5  ;;  %v13970_v50 = vld [vmem:[#allocation18 + $0x6e0] ss:$16 sps:$4 sm:$0xff]   ;;  %v13978_v5 = vld [vmem:[#allocation18 + $0x704] ss:$16 sps:$4 sm:$0xff]  }
 0xad7   :  { %9895 = vmatprep.subr.bf16.mxu0 %v13930_v31  ;;  %v13976_v31 = vld [vmem:[#allocation18 + $0x700] ss:$16 sps:$4 sm:$0xff]  }
 0xad8   :  { %9805 = vmatmul.mubr.bf16.vlgmr.msra.gmra.mrb[36].mxu1 %v16628_v29 }
 0xad9   :  { %9846 = vmatmul.mubr.bf16.vlgmr.msra.gmra.mrb[52].mxu0 %v16630_v35  ;;  %9855 = vmatpush1.bf16.msra.mxu1 %v13925_v43  ;;  %v13984_v43 = vld [vmem:[#allocation18 + $0x724] ss:$16 sps:$4 sm:$0xff]  }
 0xada   :  { %9886 = vmatprep.mubr.bf16.mxu1 %v16633_v34  ;;  %9896 = vmatpush1.bf16.msra.mxu0 %v13928_v38  ;;  %v13982_v38 = vld [vmem:[#allocation18 + $0x720] ss:$16 sps:$4 sm:$0xff]  }
 0xadb   :  { %9927 = vmatprep.mubr.bf16.mxu0 %v16636_v1  ;;  %9856 = vmatprep.subr.bf16.mxu1 %v13933_v54  ;;  %v13987_v54 = vld [vmem:[#allocation18 + $0x544] ss:$16 sps:$4 sm:$0xff]  }
 0xadc   :  { %9897 = vmatprep.subr.bf16.mxu0 %v13936_v30  ;;  %v13990_v30 = vld [vmem:[#allocation18 + $0x744] ss:$16 sps:$4 sm:$0xff]  }
 0xadd   :  { %9857 = vmatpush1.bf16.msra.mxu1 %v13931_v22  ;;  %v13985_v22 = vld [vmem:[#allocation18 + $0x540] ss:$16 sps:$4 sm:$0xff]  }
 0xade   :  { %9898 = vmatpush1.bf16.msra.mxu0 %v13934_v56  ;;  %9858 = vmatprep.subr.bf16.mxu1 %v13939_v7  ;;  %v13988_v56 = vld [vmem:[#allocation18 + $0x740] ss:$16 sps:$4 sm:$0xff]   ;;  %v13993_v7 = vld [vmem:[#allocation18 + $0x564] ss:$16 sps:$4 sm:$0xff]  }
 0xadf   :  { %9899 = vmatprep.subr.bf16.mxu0 %v13942_v15  ;;  %v13996_v15 = vld [vmem:[#allocation18 + $0x764] ss:$16 sps:$4 sm:$0xff]  }
 0xae1   :  { %9859 = vmatpush1.bf16.msra.mxu1 %v13937_v16  ;;  %v13991_v16 = vld [vmem:[#allocation18 + $0x560] ss:$16 sps:$4 sm:$0xff]  }
 0xae2   :  { %9900 = vmatpush1.bf16.msra.mxu0 %v13940_v9  ;;  %9860 = vmatprep.subr.bf16.mxu1 %v13945_v57  ;;  %v13994_v9 = vld [vmem:[#allocation18 + $0x760] ss:$16 sps:$4 sm:$0xff]   ;;  %v13999_v57 = vld [vmem:[#allocation18 + $0x584] ss:$16 sps:$4 sm:$0xff]  }
 0xae3   :  { %9901 = vmatprep.subr.bf16.mxu0 %v13948_v10  ;;  %v14002_v10 = vld [vmem:[#allocation18 + $0x784] ss:$16 sps:$4 sm:$0xff]  }
 0xae5   :  { %9861 = vmatpush1.bf16.msra.mxu1 %v13943_v2  ;;  %v13997_v2 = vld [vmem:[#allocation18 + $0x580] ss:$16 sps:$4 sm:$0xff]  }
 0xae6   :  { %9902 = vmatpush1.bf16.msra.mxu0 %v13946_v55  ;;  %9862 = vmatprep.subr.bf16.mxu1 %v13951_v53  ;;  %v14000_v55 = vld [vmem:[#allocation18 + $0x780] ss:$16 sps:$4 sm:$0xff]   ;;  %v14005_v53 = vld [vmem:[#allocation18 + $0x5a4] ss:$16 sps:$4 sm:$0xff]  }
 0xae7   :  { %9903 = vmatprep.subr.bf16.mxu0 %v13954_v6  ;;  %v14008_v6 = vld [vmem:[#allocation18 + $0x7a4] ss:$16 sps:$4 sm:$0xff]  }
 0xae9   :  { %9863 = vmatpush1.bf16.msra.mxu1 %v13949_v24  ;;  %v14003_v24 = vld [vmem:[#allocation18 + $0x5a0] ss:$16 sps:$4 sm:$0xff]  }
 0xaea   :  { %9904 = vmatpush1.bf16.msra.mxu0 %v13952_v37  ;;  %9864 = vmatprep.subr.bf16.mxu1 %v13957_v28  ;;  %v14006_v37 = vld [vmem:[#allocation18 + $0x7a0] ss:$16 sps:$4 sm:$0xff]   ;;  %v14011_v28 = vld [vmem:[#allocation18 + $0x5c4] ss:$16 sps:$4 sm:$0xff]  }
 0xaeb   :  { %v7640_v0 = vpop.f32.mrb[24].mxu1  ;;  %v7681_v26 = vpop.f32.mrb[40].mxu0  ;;  %9905 = vmatprep.subr.bf16.mxu0 %v13960_v20  ;;  %v14014_v20 = vld [vmem:[#allocation18 + $0x7c4] ss:$16 sps:$4 sm:$0xff]  }
 0xaec   :  { %v16640_v42 = vadd.f32 %v7681_v26, %v7640_v0  ;;  %v7642_v18 = vpop.f32.mrb[25].mxu1  ;;  %v7683_v17 = vpop.f32.mrb[41].mxu0  ;;  %v14020_v0 = vld [vmem:[#allocation18 + $0x7e4] ss:$16 sps:$4 sm:$0xff]   ;;  %v14015_v26 = vld [vmem:[#allocation18 + $0x5e0] ss:$16 sps:$4 sm:$0xff]  }
 0xaed   :  { %v16642_v36 = vadd.f32 %v7683_v17, %v7642_v18  ;;  %9865 = vmatpush1.bf16.msra.mxu1 %v13955_v11  ;;  %v7644_v61 = vpop.f32.mrb[26].mxu1  ;;  %v7685_v27 = vpop.f32.mrb[42].mxu0  ;;  %v14009_v11 = vld [vmem:[#allocation18 + $0x5c0] ss:$16 sps:$4 sm:$0xff]   ;;  %v6033_v18 = vmul.f32 %v16606_v3, %v16183_v63  ;;  %v14023_v17 = vld [vmem:[#allocation18 + $0x804] ss:$16 sps:$4 sm:$0xff]  }
 0xaee   :  { %9906 = vmatpush1.bf16.msra.mxu0 %v13958_v32  ;;  %v7645_v44 = vpop.f32.mrb[27].mxu1  ;;  %v7686_v51 = vpop.f32.mrb[43].mxu0  ;;  %9866 = vmatprep.subr.bf16.mxu1 %v13963_v40  ;;  %v14012_v32 = vld [vmem:[#allocation18 + $0x7c0] ss:$16 sps:$4 sm:$0xff]   ;;  %v14017_v40 = vld [vmem:[#allocation18 + $0x5e4] ss:$16 sps:$4 sm:$0xff]   ;;  %v6035_v61 = vmul.f32 %v16606_v3, %v16056_v23 }
 0xaef   :  { %9907 = vmatprep.subr.bf16.mxu0 %v13966_v62  ;;  %v14018_v62 = vld [vmem:[#allocation18 + $0x7e0] ss:$16 sps:$4 sm:$0xff]   ;;  %v14026_v27 = vld [vmem:[#allocation18 + $0xa04] ss:$16 sps:$4 sm:$0xff]   ;;  %v6040_v51 = vmul.f32 %v16606_v3, %v16059_v39 }
 0xaf0   :  { %v14021_v44 = vld [vmem:[#allocation18 + $0x800] ss:$16 sps:$4 sm:$0xff]   ;;  %v16654_v63 = vpack.c.bf16 %v6035_v61, %v6035_v61 }
 0xaf1   :  { %9867 = vmatpush1.bf16.msra.mxu1 %v13961_v58  ;;  %v6038_v58 = vmul.f32 %v16606_v3, %v16191_v25  ;;  %v16660_v25 = vpack.c.bf16 %v6040_v51, %v6040_v51  ;;  %v14027_v39 = vld [vmem:[#allocation18 + $0x820] ss:$16 sps:$4 sm:$0xff]  }
 0xaf2   :  { %9908 = vmatpush1.bf16.msra.mxu0 %v13964_v46  ;;  %9868 = vmatprep.subr.bf16.mxu1 %v13969_v49  ;;  %v16652_v46 = vpack.c.bf16 %v6033_v18, %v6033_v18  ;;  %v14024_v49 = vld [vmem:[#allocation18 + $0xa00] ss:$16 sps:$4 sm:$0xff]  }
 0xaf3   :  { %9909 = vmatprep.subr.bf16.mxu0 %v13972_v33  ;;  %v14029_v33 = vld [vmem:[#allocation18 + $0x824] ss:$16 sps:$4 sm:$0xff]   ;;  %v16657_v23 = vpack.c.bf16 %v6038_v58, %v6038_v58  ;;  %v14066_v18 = vld [vmem:[#allocation18 + $0xae0] ss:$16 sps:$4 sm:$0xff]  }
 0xaf4   :  { %v14069_v61 = vld [vmem:[#allocation18 + $0x900] ss:$16 sps:$4 sm:$0xff]   ;;  %v14077_v58 = vld [vmem:[#allocation18 + $0x924] ss:$16 sps:$4 sm:$0xff]  }
 0xaf5   :  { %9869 = vmatpush1.bf16.msra.mxu1 %v13967_v48  ;;  %v14032_v48 = vld [vmem:[#allocation18 + $0xa24] ss:$16 sps:$4 sm:$0xff]   ;;  %v14075_v51 = vld [vmem:[#allocation18 + $0x920] ss:$16 sps:$4 sm:$0xff]  }
 0xaf6   :  { %9910 = vmatpush1.bf16.msra.mxu0 %v13970_v50  ;;  %9870 = vmatprep.subr.bf16.mxu1 %v13975_v52  ;;  %v14030_v50 = vld [vmem:[#allocation18 + $0xa20] ss:$16 sps:$4 sm:$0xff]   ;;  %v14035_v52 = vld [vmem:[#allocation18 + $0x844] ss:$16 sps:$4 sm:$0xff]  }
 0xaf7   :  { %9911 = vmatprep.subr.bf16.mxu0 %v13978_v5  ;;  %v14038_v5 = vld [vmem:[#allocation18 + $0xa44] ss:$16 sps:$4 sm:$0xff]  }
 0xaf9   :  { %9871 = vmatpush1.bf16.msra.mxu1 %v13973_v19  ;;  %v14033_v19 = vld [vmem:[#allocation18 + $0x840] ss:$16 sps:$4 sm:$0xff]  }
 0xafa   :  { %9912 = vmatpush1.bf16.msra.mxu0 %v13976_v31  ;;  %9872 = vmatprep.subr.bf16.mxu1 %v13981_v21  ;;  %v14036_v31 = vld [vmem:[#allocation18 + $0xa40] ss:$16 sps:$4 sm:$0xff]   ;;  %v14041_v21 = vld [vmem:[#allocation18 + $0x864] ss:$16 sps:$4 sm:$0xff]  }
 0xafb   :  { %9913 = vmatprep.subr.bf16.mxu0 %v13984_v43  ;;  %v14044_v43 = vld [vmem:[#allocation18 + $0xa64] ss:$16 sps:$4 sm:$0xff]  }
 0xafd   :  { %9873 = vmatpush1.bf16.msra.mxu1 %v13979_v60  ;;  %v14039_v60 = vld [vmem:[#allocation18 + $0x860] ss:$16 sps:$4 sm:$0xff]  }
 0xafe   :  { %9914 = vmatpush1.bf16.msra.mxu0 %v13982_v38  ;;  %9874 = vmatprep.subr.bf16.mxu1 %v13987_v54  ;;  %v14042_v38 = vld [vmem:[#allocation18 + $0xa60] ss:$16 sps:$4 sm:$0xff]   ;;  %v14047_v54 = vld [vmem:[#allocation18 + $0x884] ss:$16 sps:$4 sm:$0xff]  }
 0xaff   :  { %9915 = vmatprep.subr.bf16.mxu0 %v13990_v30  ;;  %v14050_v30 = vld [vmem:[#allocation18 + $0xa84] ss:$16 sps:$4 sm:$0xff]  }
 0xb01   :  { %9875 = vmatpush1.bf16.msra.mxu1 %v13985_v22  ;;  %v14045_v22 = vld [vmem:[#allocation18 + $0x880] ss:$16 sps:$4 sm:$0xff]  }
 0xb02   :  { %9916 = vmatpush1.bf16.msra.mxu0 %v13988_v56  ;;  %9876 = vmatprep.subr.bf16.mxu1 %v13993_v7  ;;  %v14048_v56 = vld [vmem:[#allocation18 + $0xa80] ss:$16 sps:$4 sm:$0xff]   ;;  %v14053_v7 = vld [vmem:[#allocation18 + $0x8a4] ss:$16 sps:$4 sm:$0xff]  }
 0xb03   :  { %9917 = vmatprep.subr.bf16.mxu0 %v13996_v15  ;;  %v14056_v15 = vld [vmem:[#allocation18 + $0xaa4] ss:$16 sps:$4 sm:$0xff]  }
 0xb05   :  { %9877 = vmatpush1.bf16.msra.mxu1 %v13991_v16  ;;  %v14051_v16 = vld [vmem:[#allocation18 + $0x8a0] ss:$16 sps:$4 sm:$0xff]  }
 0xb06   :  { %9918 = vmatpush1.bf16.msra.mxu0 %v13994_v9  ;;  %9878 = vmatprep.subr.bf16.mxu1 %v13999_v57  ;;  %v14054_v9 = vld [vmem:[#allocation18 + $0xaa0] ss:$16 sps:$4 sm:$0xff]   ;;  %v14059_v57 = vld [vmem:[#allocation18 + $0x8c4] ss:$16 sps:$4 sm:$0xff]  }
 0xb07   :  { %9919 = vmatprep.subr.bf16.mxu0 %v14002_v10 }
 0xb09   :  { %9879 = vmatpush1.bf16.msra.mxu1 %v13997_v2 }
 0xb0a   :  { %9920 = vmatpush1.bf16.msra.mxu0 %v14000_v55  ;;  %9880 = vmatprep.subr.bf16.mxu1 %v14005_v53  ;;  %v14062_v55 = vld [vmem:[#allocation18 + $0xac4] ss:$16 sps:$4 sm:$0xff]  }
 0xb0b   :  { %9921 = vmatprep.subr.bf16.mxu0 %v14008_v6 }
 0xb0d   :  { %9881 = vmatpush1.bf16.msra.mxu1 %v14003_v24 }
 0xb0e   :  { %9922 = vmatpush1.bf16.msra.mxu0 %v14006_v37  ;;  %9882 = vmatprep.subr.bf16.mxu1 %v14011_v28 }
 0xb0f   :  { %9923 = vmatprep.subr.bf16.mxu0 %v14014_v20 }
 0xb11   :  { %9883 = vmatpush1.bf16.msra.mxu1 %v14009_v11  ;;  %v14057_v11 = vld [vmem:[#allocation18 + $0x8c0] ss:$16 sps:$4 sm:$0xff]  }
 0xb12   :  { %9924 = vmatpush1.bf16.msra.mxu0 %v14012_v32  ;;  %9884 = vmatprep.subr.bf16.mxu1 %v14017_v40 }
 0xb13   :  { %9925 = vmatprep.subr.bf16.mxu0 %v14020_v0  ;;  %v14060_v0 = vld [vmem:[#allocation18 + $0xac0] ss:$16 sps:$4 sm:$0xff]  }
 0xb15   :  { %9885 = vmatpush1.bf16.msra.mxu1 %v14015_v26  ;;  %v14065_v26 = vld [vmem:[#allocation18 + $0x8e4] ss:$16 sps:$4 sm:$0xff]  }
 0xb16   :  { %9926 = vmatpush1.bf16.msra.mxu0 %v14018_v62  ;;  %9936 = vmatprep.subr.bf16.mxu1 %v14023_v17  ;;  %v14068_v62 = vld [vmem:[#allocation18 + $0xae4] ss:$16 sps:$4 sm:$0xff]  }
 0xb17   :  { %9977 = vmatprep.subr.bf16.mxu0 %v14026_v27  ;;  %v14071_v17 = vld [vmem:[#allocation18 + $0x904] ss:$16 sps:$4 sm:$0xff]   ;;  %v14072_v27 = vld [vmem:[#allocation18 + $0xb00] ss:$16 sps:$4 sm:$0xff]  }
 0xb18   :  { %9887 = vmatmul.mubr.bf16.vlgmr.msra.gmra.mrb[40].mxu1 %v16652_v46 }
 0xb19   :  { %9928 = vmatmul.mubr.bf16.vlgmr.msra.gmra.mrb[56].mxu0 %v16654_v63  ;;  %9937 = vmatpush1.bf16.msra.mxu1 %v14021_v44  ;;  %v14080_v44 = vld [vmem:[#allocation18 + $0xb24] ss:$16 sps:$4 sm:$0xff]  }
 0xb1a   :  { %9968 = vmatprep.mubr.bf16.mxu1 %v16657_v23  ;;  %9978 = vmatpush1.bf16.msra.mxu0 %v14024_v49  ;;  %v14078_v49 = vld [vmem:[#allocation18 + $0xb20] ss:$16 sps:$4 sm:$0xff]  }
 0xb1b   :  { %10009 = vmatprep.mubr.bf16.mxu0 %v16660_v25  ;;  %9938 = vmatprep.subr.bf16.mxu1 %v14029_v33  ;;  %v14083_v33 = vld [vmem:[#allocation18 + $0x944] ss:$16 sps:$4 sm:$0xff]  }
 0xb1c   :  { %9979 = vmatprep.subr.bf16.mxu0 %v14032_v48  ;;  %v14086_v48 = vld [vmem:[#allocation18 + $0xb44] ss:$16 sps:$4 sm:$0xff]  }
 0xb1d   :  { %9939 = vmatpush1.bf16.msra.mxu1 %v14027_v39  ;;  %v14081_v39 = vld [vmem:[#allocation18 + $0x940] ss:$16 sps:$4 sm:$0xff]  }
 0xb1e   :  { %9980 = vmatpush1.bf16.msra.mxu0 %v14030_v50  ;;  %9940 = vmatprep.subr.bf16.mxu1 %v14035_v52  ;;  %v14084_v50 = vld [vmem:[#allocation18 + $0xb40] ss:$16 sps:$4 sm:$0xff]   ;;  %v14089_v52 = vld [vmem:[#allocation18 + $0x964] ss:$16 sps:$4 sm:$0xff]  }
 0xb1f   :  { %9981 = vmatprep.subr.bf16.mxu0 %v14038_v5  ;;  %v14092_v5 = vld [vmem:[#allocation18 + $0xb64] ss:$16 sps:$4 sm:$0xff]  }
 0xb21   :  { %9941 = vmatpush1.bf16.msra.mxu1 %v14033_v19  ;;  %v14087_v19 = vld [vmem:[#allocation18 + $0x960] ss:$16 sps:$4 sm:$0xff]  }
 0xb22   :  { %9982 = vmatpush1.bf16.msra.mxu0 %v14036_v31  ;;  %9942 = vmatprep.subr.bf16.mxu1 %v14041_v21  ;;  %v14090_v31 = vld [vmem:[#allocation18 + $0xb60] ss:$16 sps:$4 sm:$0xff]   ;;  %v14095_v21 = vld [vmem:[#allocation18 + $0x984] ss:$16 sps:$4 sm:$0xff]  }
 0xb23   :  { %9983 = vmatprep.subr.bf16.mxu0 %v14044_v43  ;;  %v14098_v43 = vld [vmem:[#allocation18 + $0xb84] ss:$16 sps:$4 sm:$0xff]  }
 0xb25   :  { %9943 = vmatpush1.bf16.msra.mxu1 %v14039_v60  ;;  %v14093_v60 = vld [vmem:[#allocation18 + $0x980] ss:$16 sps:$4 sm:$0xff]  }
 0xb26   :  { %9984 = vmatpush1.bf16.msra.mxu0 %v14042_v38  ;;  %9944 = vmatprep.subr.bf16.mxu1 %v14047_v54  ;;  %v14096_v38 = vld [vmem:[#allocation18 + $0xb80] ss:$16 sps:$4 sm:$0xff]   ;;  %v14101_v54 = vld [vmem:[#allocation18 + $0x9a4] ss:$16 sps:$4 sm:$0xff]  }
 0xb27   :  { %9985 = vmatprep.subr.bf16.mxu0 %v14050_v30  ;;  %v14104_v30 = vld [vmem:[#allocation18 + $0xba4] ss:$16 sps:$4 sm:$0xff]  }
 0xb29   :  { %9945 = vmatpush1.bf16.msra.mxu1 %v14045_v22  ;;  %v14099_v22 = vld [vmem:[#allocation18 + $0x9a0] ss:$16 sps:$4 sm:$0xff]  }
 0xb2a   :  { %9986 = vmatpush1.bf16.msra.mxu0 %v14048_v56  ;;  %9946 = vmatprep.subr.bf16.mxu1 %v14053_v7  ;;  %v14102_v56 = vld [vmem:[#allocation18 + $0xba0] ss:$16 sps:$4 sm:$0xff]   ;;  %v14107_v7 = vld [vmem:[#allocation18 + $0x9c4] ss:$16 sps:$4 sm:$0xff]  }
 0xb2b   :  { %v7722_v10 = vpop.f32.mrb[28].mxu1  ;;  %v16664_v2 = vpop.f32.mrb[44].mxu0  ;;  %9987 = vmatprep.subr.bf16.mxu0 %v14056_v15  ;;  %v14110_v15 = vld [vmem:[#allocation18 + $0xbc4] ss:$16 sps:$4 sm:$0xff]  }
 0xb2c   :  { %v16667_v53 = vadd.f32 %v7722_v10, %v16640_v42  ;;  %v7724_v6 = vpop.f32.mrb[29].mxu1  ;;  %v16669_v24 = vpop.f32.mrb[45].mxu0  ;;  %v14063_v42 = vld [vmem:[#allocation18 + $0x8e0] ss:$16 sps:$4 sm:$0xff]   ;;  %v14116_v10 = vld [vmem:[#allocation18 + $0xbe4] ss:$16 sps:$4 sm:$0xff]  }
 0xb2d   :  { %v16672_v37 = vadd.f32 %v7724_v6, %v16642_v36  ;;  %v7726_v28 = vpop.f32.mrb[30].mxu1  ;;  %v7767_v20 = vpop.f32.mrb[46].mxu0  ;;  %9947 = vmatpush1.bf16.msra.mxu1 %v14051_v16  ;;  %v14074_v36 = vld [vmem:[#allocation18 + $0xb04] ss:$16 sps:$4 sm:$0xff]   ;;  %v14105_v16 = vld [vmem:[#allocation18 + $0x9c0] ss:$16 sps:$4 sm:$0xff]  }
 0xb2e   :  { %9988 = vmatpush1.bf16.msra.mxu0 %v14054_v9  ;;  %v7727_v32 = vpop.f32.mrb[31].mxu1  ;;  %v7768_v40 = vpop.f32.mrb[47].mxu0  ;;  %9948 = vmatprep.subr.bf16.mxu1 %v14059_v57  ;;  %v14108_v9 = vld [vmem:[#allocation18 + $0xbc0] ss:$16 sps:$4 sm:$0xff]   ;;  %v14113_v57 = vld [vmem:[#allocation18 + $0x9e4] ss:$16 sps:$4 sm:$0xff]   ;;  %v6037_v28 = vmul.f32 %v16606_v3, %v16024_v8 }
 0xb2f   :  { %9989 = vmatprep.subr.bf16.mxu0 %v14062_v55  ;;  %v14111_v55 = vld [vmem:[#allocation18 + $0x9e0] ss:$16 sps:$4 sm:$0xff]   ;;  %v14119_v20 = vld [vmem:[#allocation18 + $0xc] ss:$16 sps:$4 sm:$0xff]   ;;  %v14117_v40 = vld [vmem:[#allocation18 + $0x8] ss:$16 sps:$4 sm:$0xff]  }
 0xb30   :  { %v14114_v6 = vld [vmem:[#allocation18 + $0xbe0] ss:$16 sps:$4 sm:$0xff]   ;;  %v14122_v32 = vld [vmem:[#allocation18 + $0x20c] ss:$16 sps:$4 sm:$0xff]  }
 0xb31   :  { %9949 = vmatpush1.bf16.msra.mxu1 %v14057_v11  ;;  %v6039_v11 = vmul.f32 %v16606_v3, %v16062_v45  ;;  %v14128_v8 = vld [vmem:[#allocation18 + $0x22c] ss:$16 sps:$4 sm:$0xff]   ;;  %v14126_v45 = vld [vmem:[#allocation18 + $0x228] ss:$16 sps:$4 sm:$0xff]  }
 0xb32   :  { %9990 = vmatpush1.bf16.msra.mxu0 %v14060_v0  ;;  %9950 = vmatprep.subr.bf16.mxu1 %v14065_v26  ;;  %v16678_v0 = vpack.c.bf16 %v6037_v28, %v6037_v28  ;;  %v14120_v26 = vld [vmem:[#allocation18 + $0x208] ss:$16 sps:$4 sm:$0xff]   ;;  %v14131_v3 = vld [vmem:[#allocation18 + $0x4c] ss:$16 sps:$4 sm:$0xff]  }
 0xb33   :  { %9991 = vmatprep.subr.bf16.mxu0 %v14068_v62  ;;  %v16680_v62 = vpack.c.bf16 %v6039_v11, %v6039_v11  ;;  %v14170_v28 = vld [vmem:[#allocation18 + $0x30c] ss:$16 sps:$4 sm:$0xff]   ;;  %v14168_v11 = vld [vmem:[#allocation18 + $0x308] ss:$16 sps:$4 sm:$0xff]  }
 0xb35   :  { %9951 = vmatpush1.bf16.msra.mxu1 %v14063_v42  ;;  %v14125_v42 = vld [vmem:[#allocation18 + $0x2c] ss:$16 sps:$4 sm:$0xff]  }
 0xb36   :  { %9992 = vmatpush1.bf16.msra.mxu0 %v14066_v18  ;;  %9952 = vmatprep.subr.bf16.mxu1 %v14071_v17  ;;  %v14123_v18 = vld [vmem:[#allocation18 + $0x28] ss:$16 sps:$4 sm:$0xff]   ;;  %v14134_v17 = vld [vmem:[#allocation18 + $0x24c] ss:$16 sps:$4 sm:$0xff]  }
 0xb37   :  { %9993 = vmatprep.subr.bf16.mxu0 %v14074_v36  ;;  %v14129_v36 = vld [vmem:[#allocation18 + $0x48] ss:$16 sps:$4 sm:$0xff]  }
 0xb39   :  { %9953 = vmatpush1.bf16.msra.mxu1 %v14069_v61  ;;  %v14132_v61 = vld [vmem:[#allocation18 + $0x248] ss:$16 sps:$4 sm:$0xff]  }
 0xb3a   :  { %9994 = vmatpush1.bf16.msra.mxu0 %v14072_v27  ;;  %9954 = vmatprep.subr.bf16.mxu1 %v14077_v58  ;;  %v14137_v27 = vld [vmem:[#allocation18 + $0x6c] ss:$16 sps:$4 sm:$0xff]  }
 0xb3b   :  { %9995 = vmatprep.subr.bf16.mxu0 %v14080_v44  ;;  %v14140_v58 = vld [vmem:[#allocation18 + $0x26c] ss:$16 sps:$4 sm:$0xff]   ;;  %v14135_v44 = vld [vmem:[#allocation18 + $0x68] ss:$16 sps:$4 sm:$0xff]  }
 0xb3d   :  { %9955 = vmatpush1.bf16.msra.mxu1 %v14075_v51  ;;  %v14143_v51 = vld [vmem:[#allocation18 + $0x8c] ss:$16 sps:$4 sm:$0xff]  }
 0xb3e   :  { %9996 = vmatpush1.bf16.msra.mxu0 %v14078_v49  ;;  %9956 = vmatprep.subr.bf16.mxu1 %v14083_v33  ;;  %v14146_v49 = vld [vmem:[#allocation18 + $0x28c] ss:$16 sps:$4 sm:$0xff]   ;;  %v14144_v33 = vld [vmem:[#allocation18 + $0x288] ss:$16 sps:$4 sm:$0xff]  }
 0xb3f   :  { %9997 = vmatprep.subr.bf16.mxu0 %v14086_v48  ;;  %v14149_v48 = vld [vmem:[#allocation18 + $0xac] ss:$16 sps:$4 sm:$0xff]  }
 0xb41   :  { %9957 = vmatpush1.bf16.msra.mxu1 %v14081_v39  ;;  %v14152_v39 = vld [vmem:[#allocation18 + $0x2ac] ss:$16 sps:$4 sm:$0xff]  }
 0xb42   :  { %9998 = vmatpush1.bf16.msra.mxu0 %v14084_v50  ;;  %9958 = vmatprep.subr.bf16.mxu1 %v14089_v52  ;;  %v14147_v50 = vld [vmem:[#allocation18 + $0xa8] ss:$16 sps:$4 sm:$0xff]  }
 0xb43   :  { %9999 = vmatprep.subr.bf16.mxu0 %v14092_v5  ;;  %v14150_v52 = vld [vmem:[#allocation18 + $0x2a8] ss:$16 sps:$4 sm:$0xff]   ;;  %v14155_v5 = vld [vmem:[#allocation18 + $0xcc] ss:$16 sps:$4 sm:$0xff]  }
 0xb45   :  { %9959 = vmatpush1.bf16.msra.mxu1 %v14087_v19 }
 0xb46   :  { %10000 = vmatpush1.bf16.msra.mxu0 %v14090_v31  ;;  %9960 = vmatprep.subr.bf16.mxu1 %v14095_v21  ;;  %v14158_v31 = vld [vmem:[#allocation18 + $0x2cc] ss:$16 sps:$4 sm:$0xff]  }
 0xb47   :  { %10001 = vmatprep.subr.bf16.mxu0 %v14098_v43 }
 0xb49   :  { %9961 = vmatpush1.bf16.msra.mxu1 %v14093_v60 }
 0xb4a   :  { %10002 = vmatpush1.bf16.msra.mxu0 %v14096_v38  ;;  %9962 = vmatprep.subr.bf16.mxu1 %v14101_v54 }
 0xb4b   :  { %10003 = vmatprep.subr.bf16.mxu0 %v14104_v30 }
 0xb4d   :  { %9963 = vmatpush1.bf16.msra.mxu1 %v14099_v22  ;;  %v14153_v22 = vld [vmem:[#allocation18 + $0xc8] ss:$16 sps:$4 sm:$0xff]  }
 0xb4e   :  { %10004 = vmatpush1.bf16.msra.mxu0 %v14102_v56  ;;  %9964 = vmatprep.subr.bf16.mxu1 %v14107_v7 }
 0xb4f   :  { %10005 = vmatprep.subr.bf16.mxu0 %v14110_v15 }
 0xb51   :  { %9965 = vmatpush1.bf16.msra.mxu1 %v14105_v16  ;;  %v14156_v16 = vld [vmem:[#allocation18 + $0x2c8] ss:$16 sps:$4 sm:$0xff]  }
 0xb52   :  { %10006 = vmatpush1.bf16.msra.mxu0 %v14108_v9  ;;  %9966 = vmatprep.subr.bf16.mxu1 %v14113_v57  ;;  %v14161_v9 = vld [vmem:[#allocation18 + $0xec] ss:$16 sps:$4 sm:$0xff]  }
 0xb53   :  { %10007 = vmatprep.subr.bf16.mxu0 %v14116_v10 }
 0xb55   :  { %9967 = vmatpush1.bf16.msra.mxu1 %v14111_v55  ;;  %v14159_v55 = vld [vmem:[#allocation18 + $0xe8] ss:$16 sps:$4 sm:$0xff]  }
 0xb56   :  { %10008 = vmatpush1.bf16.msra.mxu0 %v14114_v6  ;;  %10018 = vmatprep.subr.bf16.mxu1 %v14119_v20  ;;  %v14167_v6 = vld [vmem:[#allocation18 + $0x10c] ss:$16 sps:$4 sm:$0xff]   ;;  %v14165_v20 = vld [vmem:[#allocation18 + $0x108] ss:$16 sps:$4 sm:$0xff]  }
 0xb57   :  { %10059 = vmatprep.subr.bf16.mxu0 %v14122_v32  ;;  %v14173_v32 = vld [vmem:[#allocation18 + $0x12c] ss:$16 sps:$4 sm:$0xff]  }
 0xb58   :  { %9969 = vmatmul.mubr.bf16.vlgmr.msra.gmra.mrb[44].mxu1 %v16678_v0 }
 0xb59   :  { %10010 = vmatmul.mubr.bf16.vlgmr.msra.gmra.mrb[60].mxu0 %v16680_v62  ;;  %10019 = vmatpush1.bf16.msra.mxu1 %v14117_v40  ;;  %v14176_v40 = vld [vmem:[#allocation18 + $0x32c] ss:$16 sps:$4 sm:$0xff]  }
 0xb5a   :  { %10050 = vmatprep.mubr.bf16.mxu1 %v16613_v47  ;;  %10060 = vmatpush1.bf16.msra.mxu0 %v14120_v26  ;;  %v14138_v47 = vld [vmem:[#allocation18 + $0x268] ss:$16 sps:$4 sm:$0xff]  }
 0xb5b   :  { %10091 = vmatprep.mubr.bf16.mxu0 %v16616_v59  ;;  %10020 = vmatprep.subr.bf16.mxu1 %v14125_v42  ;;  %v14141_v59 = vld [vmem:[#allocation18 + $0x88] ss:$16 sps:$4 sm:$0xff]  }
 0xb5c   :  { %10061 = vmatprep.subr.bf16.mxu0 %v14128_v8  ;;  %v14171_v26 = vld [vmem:[#allocation18 + $0x128] ss:$16 sps:$4 sm:$0xff]   ;;  %v14179_v8 = vld [vmem:[#allocation18 + $0x14c] ss:$16 sps:$4 sm:$0xff]  }
 0xb5d   :  { %10021 = vmatpush1.bf16.msra.mxu1 %v14123_v18  ;;  %v14174_v42 = vld [vmem:[#allocation18 + $0x328] ss:$16 sps:$4 sm:$0xff]   ;;  %v14182_v18 = vld [vmem:[#allocation18 + $0x34c] ss:$16 sps:$4 sm:$0xff]  }
 0xb5e   :  { %10062 = vmatpush1.bf16.msra.mxu0 %v14126_v45  ;;  %10022 = vmatprep.subr.bf16.mxu1 %v14131_v3  ;;  %v14177_v45 = vld [vmem:[#allocation18 + $0x148] ss:$16 sps:$4 sm:$0xff]  }
 0xb5f   :  { %10063 = vmatprep.subr.bf16.mxu0 %v14134_v17  ;;  %v14180_v3 = vld [vmem:[#allocation18 + $0x348] ss:$16 sps:$4 sm:$0xff]   ;;  %v14185_v17 = vld [vmem:[#allocation18 + $0x16c] ss:$16 sps:$4 sm:$0xff]  }
 0xb61   :  { %10023 = vmatpush1.bf16.msra.mxu1 %v14129_v36  ;;  %v14188_v36 = vld [vmem:[#allocation18 + $0x36c] ss:$16 sps:$4 sm:$0xff]  }
 0xb62   :  { %10064 = vmatpush1.bf16.msra.mxu0 %v14132_v61  ;;  %10024 = vmatprep.subr.bf16.mxu1 %v14137_v27  ;;  %v14183_v61 = vld [vmem:[#allocation18 + $0x168] ss:$16 sps:$4 sm:$0xff]  }
 0xb63   :  { %10065 = vmatprep.subr.bf16.mxu0 %v14140_v58  ;;  %v14186_v27 = vld [vmem:[#allocation18 + $0x368] ss:$16 sps:$4 sm:$0xff]   ;;  %v14191_v58 = vld [vmem:[#allocation18 + $0x18c] ss:$16 sps:$4 sm:$0xff]  }
 0xb65   :  { %10025 = vmatpush1.bf16.msra.mxu1 %v14135_v44  ;;  %v14194_v44 = vld [vmem:[#allocation18 + $0x38c] ss:$16 sps:$4 sm:$0xff]  }
 0xb66   :  { %10066 = vmatpush1.bf16.msra.mxu0 %v14138_v47  ;;  %10026 = vmatprep.subr.bf16.mxu1 %v14143_v51  ;;  %v14189_v47 = vld [vmem:[#allocation18 + $0x188] ss:$16 sps:$4 sm:$0xff]  }
 0xb67   :  { %10067 = vmatprep.subr.bf16.mxu0 %v14146_v49  ;;  %v14192_v51 = vld [vmem:[#allocation18 + $0x388] ss:$16 sps:$4 sm:$0xff]   ;;  %v14197_v49 = vld [vmem:[#allocation18 + $0x1ac] ss:$16 sps:$4 sm:$0xff]  }
 0xb69   :  { %10027 = vmatpush1.bf16.msra.mxu1 %v14141_v59  ;;  %v14200_v59 = vld [vmem:[#allocation18 + $0x3ac] ss:$16 sps:$4 sm:$0xff]  }
 0xb6a   :  { %10068 = vmatpush1.bf16.msra.mxu0 %v14144_v33  ;;  %10028 = vmatprep.subr.bf16.mxu1 %v14149_v48  ;;  %v14195_v33 = vld [vmem:[#allocation18 + $0x1a8] ss:$16 sps:$4 sm:$0xff]  }
 0xb6b   :  { %v7804_v19 = vpop.f32.mrb[32].mxu1  ;;  %10069 = vmatprep.subr.bf16.mxu0 %v14152_v39  ;;  %v14198_v48 = vld [vmem:[#allocation18 + $0x3a8] ss:$16 sps:$4 sm:$0xff]   ;;  %v14203_v39 = vld [vmem:[#allocation18 + $0x1cc] ss:$16 sps:$4 sm:$0xff]  }
 0xb6c   :  { %v7805_v21 = vadd.f32 %v7804_v19, %v16664_v2  ;;  %v7845_v43 = vpop.f32.mrb[48].mxu0  ;;  %v7806_v60 = vpop.f32.mrb[33].mxu1  ;;  %v14164_v2 = vld [vmem:[#allocation18 + $0x2ec] ss:$16 sps:$4 sm:$0xff]  }
 0xb6d   :  { %v7807_v38 = vadd.f32 %v7806_v60, %v16669_v24  ;;  %v7847_v54 = vpop.f32.mrb[49].mxu0  ;;  %v7808_v30 = vpop.f32.mrb[34].mxu1  ;;  %10029 = vmatpush1.bf16.msra.mxu1 %v14147_v50  ;;  %v14162_v24 = vld [vmem:[#allocation18 + $0x2e8] ss:$16 sps:$4 sm:$0xff]   ;;  %v14206_v50 = vld [vmem:[#allocation18 + $0x3cc] ss:$16 sps:$4 sm:$0xff]  }
 0xb6e   :  { %v16688_v56 = vadd.f32 %v7845_v43, %v7805_v21  ;;  %v7849_v7 = vpop.f32.mrb[50].mxu0  ;;  %10070 = vmatpush1.bf16.msra.mxu0 %v14150_v52  ;;  %v7809_v15 = vpop.f32.mrb[35].mxu1  ;;  %10030 = vmatprep.subr.bf16.mxu1 %v14155_v5  ;;  %v14201_v52 = vld [vmem:[#allocation18 + $0x1c8] ss:$16 sps:$4 sm:$0xff]   ;;  %v14209_v19 = vld [vmem:[#allocation18 + $0x1ec] ss:$16 sps:$4 sm:$0xff]  }
 0xb6f   :  { %v16690_v57 = vadd.f32 %v7847_v54, %v7807_v38  ;;  %v7850_v10 = vpop.f32.mrb[51].mxu0  ;;  %10071 = vmatprep.subr.bf16.mxu0 %v14158_v31  ;;  %v14204_v5 = vld [vmem:[#allocation18 + $0x3c8] ss:$16 sps:$4 sm:$0xff]   ;;  %v14212_v31 = vld [vmem:[#allocation18 + $0x3ec] ss:$16 sps:$4 sm:$0xff]  }
 0xb70   :  { %v14207_v21 = vld [vmem:[#allocation18 + $0x1e8] ss:$16 sps:$4 sm:$0xff]   ;;  %v14215_v60 = vld [vmem:[#allocation18 + $0x40c] ss:$16 sps:$4 sm:$0xff]  }
 0xb71   :  { %10031 = vmatpush1.bf16.msra.mxu1 %v14153_v22  ;;  %v14210_v43 = vld [vmem:[#allocation18 + $0x3e8] ss:$16 sps:$4 sm:$0xff]   ;;  %v14218_v38 = vld [vmem:[#allocation18 + $0x60c] ss:$16 sps:$4 sm:$0xff]  }
 0xb72   :  { %10072 = vmatpush1.bf16.msra.mxu0 %v14156_v16  ;;  %10032 = vmatprep.subr.bf16.mxu1 %v14161_v9  ;;  %v14213_v54 = vld [vmem:[#allocation18 + $0x408] ss:$16 sps:$4 sm:$0xff]   ;;  %v14221_v22 = vld [vmem:[#allocation18 + $0x42c] ss:$16 sps:$4 sm:$0xff]  }
 0xb73   :  { %10073 = vmatprep.subr.bf16.mxu0 %v14164_v2  ;;  %v14216_v30 = vld [vmem:[#allocation18 + $0x608] ss:$16 sps:$4 sm:$0xff]   ;;  %v14224_v7 = vld [vmem:[#allocation18 + $0x62c] ss:$16 sps:$4 sm:$0xff]  }
 0xb74   :  { %v14219_v15 = vld [vmem:[#allocation18 + $0x428] ss:$16 sps:$4 sm:$0xff]   ;;  %v14227_v9 = vld [vmem:[#allocation18 + $0x44c] ss:$16 sps:$4 sm:$0xff]  }
 0xb75   :  { %10033 = vmatpush1.bf16.msra.mxu1 %v14159_v55  ;;  %v14222_v16 = vld [vmem:[#allocation18 + $0x628] ss:$16 sps:$4 sm:$0xff]   ;;  %v14230_v10 = vld [vmem:[#allocation18 + $0x64c] ss:$16 sps:$4 sm:$0xff]  }
 0xb76   :  { %10074 = vmatpush1.bf16.msra.mxu0 %v14162_v24  ;;  %10034 = vmatprep.subr.bf16.mxu1 %v14167_v6  ;;  %v14225_v2 = vld [vmem:[#allocation18 + $0x448] ss:$16 sps:$4 sm:$0xff]   ;;  %v14233_v55 = vld [vmem:[#allocation18 + $0x46c] ss:$16 sps:$4 sm:$0xff]  }
 0xb77   :  { %10075 = vmatprep.subr.bf16.mxu0 %v14170_v28  ;;  %v14231_v24 = vld [vmem:[#allocation18 + $0x468] ss:$16 sps:$4 sm:$0xff]   ;;  %v14239_v6 = vld [vmem:[#allocation18 + $0x48c] ss:$16 sps:$4 sm:$0xff]  }
 0xb78   :  { %v14242_v28 = vld [vmem:[#allocation18 + $0x68c] ss:$16 sps:$4 sm:$0xff]  }
 0xb79   :  { %10035 = vmatpush1.bf16.msra.mxu1 %v14165_v20  ;;  %v14240_v20 = vld [vmem:[#allocation18 + $0x688] ss:$16 sps:$4 sm:$0xff]  }
 0xb7a   :  { %10076 = vmatpush1.bf16.msra.mxu0 %v14168_v11  ;;  %10036 = vmatprep.subr.bf16.mxu1 %v14173_v32  ;;  %v14245_v11 = vld [vmem:[#allocation18 + $0x4ac] ss:$16 sps:$4 sm:$0xff]  }
 0xb7b   :  { %10077 = vmatprep.subr.bf16.mxu0 %v14176_v40  ;;  %v14248_v32 = vld [vmem:[#allocation18 + $0x6ac] ss:$16 sps:$4 sm:$0xff]   ;;  %v14243_v40 = vld [vmem:[#allocation18 + $0x4a8] ss:$16 sps:$4 sm:$0xff]  }
 0xb7d   :  { %10037 = vmatpush1.bf16.msra.mxu1 %v14171_v26  ;;  %v14246_v26 = vld [vmem:[#allocation18 + $0x6a8] ss:$16 sps:$4 sm:$0xff]  }
 0xb7e   :  { %10078 = vmatpush1.bf16.msra.mxu0 %v14174_v42  ;;  %10038 = vmatprep.subr.bf16.mxu1 %v14179_v8  ;;  %v14251_v42 = vld [vmem:[#allocation18 + $0x4cc] ss:$16 sps:$4 sm:$0xff]  }
 0xb7f   :  { %10079 = vmatprep.subr.bf16.mxu0 %v14182_v18  ;;  %v14254_v18 = vld [vmem:[#allocation18 + $0x6cc] ss:$16 sps:$4 sm:$0xff]  }
 0xb81   :  { %10039 = vmatpush1.bf16.msra.mxu1 %v14177_v45 }
 0xb82   :  { %10080 = vmatpush1.bf16.msra.mxu0 %v14180_v3  ;;  %10040 = vmatprep.subr.bf16.mxu1 %v14185_v17 }
 0xb83   :  { %10081 = vmatprep.subr.bf16.mxu0 %v14188_v36 }
 0xb85   :  { %10041 = vmatpush1.bf16.msra.mxu1 %v14183_v61 }
 0xb86   :  { %10082 = vmatpush1.bf16.msra.mxu0 %v14186_v27  ;;  %10042 = vmatprep.subr.bf16.mxu1 %v14191_v58  ;;  %v14249_v58 = vld [vmem:[#allocation18 + $0x4c8] ss:$16 sps:$4 sm:$0xff]  }
 0xb87   :  { %10083 = vmatprep.subr.bf16.mxu0 %v14194_v44 }
 0xb89   :  { %10043 = vmatpush1.bf16.msra.mxu1 %v14189_v47 }
 0xb8a   :  { %10084 = vmatpush1.bf16.msra.mxu0 %v14192_v51  ;;  %10044 = vmatprep.subr.bf16.mxu1 %v14197_v49  ;;  %v14252_v49 = vld [vmem:[#allocation18 + $0x6c8] ss:$16 sps:$4 sm:$0xff]  }
 0xb8b   :  { %10085 = vmatprep.subr.bf16.mxu0 %v14200_v59  ;;  %v14257_v59 = vld [vmem:[#allocation18 + $0x4ec] ss:$16 sps:$4 sm:$0xff]  }
 0xb8d   :  { %10045 = vmatpush1.bf16.msra.mxu1 %v14195_v33 }
 0xb8e   :  { %10086 = vmatpush1.bf16.msra.mxu0 %v14198_v48  ;;  %10046 = vmatprep.subr.bf16.mxu1 %v14203_v39  ;;  %v14255_v39 = vld [vmem:[#allocation18 + $0x4e8] ss:$16 sps:$4 sm:$0xff]  }
 0xb8f   :  { %10087 = vmatprep.subr.bf16.mxu0 %v14206_v50  ;;  %v14263_v50 = vld [vmem:[#allocation18 + $0x50c] ss:$16 sps:$4 sm:$0xff]  }
 0xb91   :  { %10047 = vmatpush1.bf16.msra.mxu1 %v14201_v52  ;;  %v14266_v52 = vld [vmem:[#allocation18 + $0x70c] ss:$16 sps:$4 sm:$0xff]  }
 0xb92   :  { %10088 = vmatpush1.bf16.msra.mxu0 %v14204_v5  ;;  %10048 = vmatprep.subr.bf16.mxu1 %v14209_v19  ;;  %v14261_v5 = vld [vmem:[#allocation18 + $0x508] ss:$16 sps:$4 sm:$0xff]  }
 0xb93   :  { %10089 = vmatprep.subr.bf16.mxu0 %v14212_v31  ;;  %v14264_v19 = vld [vmem:[#allocation18 + $0x708] ss:$16 sps:$4 sm:$0xff]   ;;  %v14269_v31 = vld [vmem:[#allocation18 + $0x52c] ss:$16 sps:$4 sm:$0xff]  }
 0xb95   :  { %10049 = vmatpush1.bf16.msra.mxu1 %v14207_v21  ;;  %v14272_v21 = vld [vmem:[#allocation18 + $0x72c] ss:$16 sps:$4 sm:$0xff]  }
 0xb96   :  { %10090 = vmatpush1.bf16.msra.mxu0 %v14210_v43  ;;  %10100 = vmatprep.subr.bf16.mxu1 %v14215_v60  ;;  %v14267_v43 = vld [vmem:[#allocation18 + $0x528] ss:$16 sps:$4 sm:$0xff]  }
 0xb97   :  { %10141 = vmatprep.subr.bf16.mxu0 %v14218_v38  ;;  %v14270_v60 = vld [vmem:[#allocation18 + $0x728] ss:$16 sps:$4 sm:$0xff]   ;;  %v14275_v38 = vld [vmem:[#allocation18 + $0x54c] ss:$16 sps:$4 sm:$0xff]  }
 0xb98   :  { %10051 = vmatmul.mubr.bf16.vlgmr.msra.gmra.mrb[48].mxu1 %v16628_v29  ;;  %v14228_v29 = vld [vmem:[#allocation18 + $0x648] ss:$16 sps:$4 sm:$0xff]  }
 0xb99   :  { %10092 = vmatmul.mubr.bf16.vlgmr.msra.gmra.mrb[64].mxu0 %v16630_v35  ;;  %10101 = vmatpush1.bf16.msra.mxu1 %v14213_v54  ;;  %v14236_v35 = vld [vmem:[#allocation18 + $0x66c] ss:$16 sps:$4 sm:$0xff]  }
 0xb9a   :  { %10132 = vmatprep.mubr.bf16.mxu1 %v16633_v34  ;;  %10142 = vmatpush1.bf16.msra.mxu0 %v14216_v30  ;;  %v14234_v34 = vld [vmem:[#allocation18 + $0x668] ss:$16 sps:$4 sm:$0xff]   ;;  %v14278_v54 = vld [vmem:[#allocation18 + $0x74c] ss:$16 sps:$4 sm:$0xff]  }
 0xb9b   :  { %10173 = vmatprep.mubr.bf16.mxu0 %v16636_v1  ;;  %10102 = vmatprep.subr.bf16.mxu1 %v14221_v22  ;;  %v14237_v1 = vld [vmem:[#allocation18 + $0x488] ss:$16 sps:$4 sm:$0xff]  }
 0xb9c   :  { %10143 = vmatprep.subr.bf16.mxu0 %v14224_v7  ;;  %v14273_v30 = vld [vmem:[#allocation18 + $0x548] ss:$16 sps:$4 sm:$0xff]   ;;  %v14281_v7 = vld [vmem:[#allocation18 + $0x56c] ss:$16 sps:$4 sm:$0xff]  }
 0xb9d   :  { %10103 = vmatpush1.bf16.msra.mxu1 %v14219_v15  ;;  %v14276_v22 = vld [vmem:[#allocation18 + $0x748] ss:$16 sps:$4 sm:$0xff]   ;;  %v14284_v15 = vld [vmem:[#allocation18 + $0x76c] ss:$16 sps:$4 sm:$0xff]  }
 0xb9e   :  { %10144 = vmatpush1.bf16.msra.mxu0 %v14222_v16  ;;  %10104 = vmatprep.subr.bf16.mxu1 %v14227_v9  ;;  %v14279_v16 = vld [vmem:[#allocation18 + $0x568] ss:$16 sps:$4 sm:$0xff]  }
 0xb9f   :  { %10145 = vmatprep.subr.bf16.mxu0 %v14230_v10  ;;  %v14282_v9 = vld [vmem:[#allocation18 + $0x768] ss:$16 sps:$4 sm:$0xff]   ;;  %v14287_v10 = vld [vmem:[#allocation18 + $0x58c] ss:$16 sps:$4 sm:$0xff]  }
 0xba1   :  { %10105 = vmatpush1.bf16.msra.mxu1 %v14225_v2  ;;  %v14290_v2 = vld [vmem:[#allocation18 + $0x78c] ss:$16 sps:$4 sm:$0xff]  }
 0xba2   :  { %10146 = vmatpush1.bf16.msra.mxu0 %v14228_v29  ;;  %10106 = vmatprep.subr.bf16.mxu1 %v14233_v55  ;;  %v14285_v29 = vld [vmem:[#allocation18 + $0x588] ss:$16 sps:$4 sm:$0xff]  }
 0xba3   :  { %10147 = vmatprep.subr.bf16.mxu0 %v14236_v35  ;;  %v14288_v55 = vld [vmem:[#allocation18 + $0x788] ss:$16 sps:$4 sm:$0xff]   ;;  %v14293_v35 = vld [vmem:[#allocation18 + $0x5ac] ss:$16 sps:$4 sm:$0xff]  }
 0xba5   :  { %10107 = vmatpush1.bf16.msra.mxu1 %v14231_v24  ;;  %v14296_v24 = vld [vmem:[#allocation18 + $0x7ac] ss:$16 sps:$4 sm:$0xff]  }
 0xba6   :  { %10148 = vmatpush1.bf16.msra.mxu0 %v14234_v34  ;;  %10108 = vmatprep.subr.bf16.mxu1 %v14239_v6  ;;  %v14291_v34 = vld [vmem:[#allocation18 + $0x5a8] ss:$16 sps:$4 sm:$0xff]  }
 0xba7   :  { %10149 = vmatprep.subr.bf16.mxu0 %v14242_v28  ;;  %v14294_v6 = vld [vmem:[#allocation18 + $0x7a8] ss:$16 sps:$4 sm:$0xff]   ;;  %v14299_v28 = vld [vmem:[#allocation18 + $0x5cc] ss:$16 sps:$4 sm:$0xff]  }
 0xba9   :  { %10109 = vmatpush1.bf16.msra.mxu1 %v14237_v1  ;;  %v14302_v1 = vld [vmem:[#allocation18 + $0x7cc] ss:$16 sps:$4 sm:$0xff]  }
 0xbaa   :  { %10150 = vmatpush1.bf16.msra.mxu0 %v14240_v20  ;;  %10110 = vmatprep.subr.bf16.mxu1 %v14245_v11  ;;  %v14297_v20 = vld [vmem:[#allocation18 + $0x5c8] ss:$16 sps:$4 sm:$0xff]  }
 0xbab   :  { %v9806_v8 = vpop.f32.mrb[36].mxu1  ;;  %10151 = vmatprep.subr.bf16.mxu0 %v14248_v32  ;;  %v14300_v11 = vld [vmem:[#allocation18 + $0x7c8] ss:$16 sps:$4 sm:$0xff]   ;;  %v14305_v32 = vld [vmem:[#allocation18 + $0x5ec] ss:$16 sps:$4 sm:$0xff]  }
 0xbac   :  { %v9807_v45 = vadd.f32 %v9806_v8, %v16667_v53  ;;  %v9847_v3 = vpop.f32.mrb[52].mxu0  ;;  %v9808_v17 = vpop.f32.mrb[37].mxu1  ;;  %v14260_v53 = vld [vmem:[#allocation18 + $0x6ec] ss:$16 sps:$4 sm:$0xff]  }
 0xbad   :  { %v9809_v36 = vadd.f32 %v9808_v17, %v16672_v37  ;;  %v9849_v61 = vpop.f32.mrb[53].mxu0  ;;  %v9810_v27 = vpop.f32.mrb[38].mxu1  ;;  %10111 = vmatpush1.bf16.msra.mxu1 %v14243_v40  ;;  %v14258_v37 = vld [vmem:[#allocation18 + $0x6e8] ss:$16 sps:$4 sm:$0xff]   ;;  %v14308_v40 = vld [vmem:[#allocation18 + $0x7ec] ss:$16 sps:$4 sm:$0xff]  }
 0xbae   :  { %v16698_v44 = vadd.f32 %v9847_v3, %v9807_v45  ;;  %v9851_v47 = vpop.f32.mrb[54].mxu0  ;;  %10152 = vmatpush1.bf16.msra.mxu0 %v14246_v26  ;;  %v9811_v51 = vpop.f32.mrb[39].mxu1  ;;  %10112 = vmatprep.subr.bf16.mxu1 %v14251_v42  ;;  %v14303_v26 = vld [vmem:[#allocation18 + $0x5e8] ss:$16 sps:$4 sm:$0xff]   ;;  %v14311_v8 = vld [vmem:[#allocation18 + $0x80c] ss:$16 sps:$4 sm:$0xff]  }
 0xbaf   :  { %v16700_v33 = vadd.f32 %v9849_v61, %v9809_v36  ;;  %v9852_v48 = vpop.f32.mrb[55].mxu0  ;;  %10153 = vmatprep.subr.bf16.mxu0 %v14254_v18  ;;  %v14306_v42 = vld [vmem:[#allocation18 + $0x7e8] ss:$16 sps:$4 sm:$0xff]   ;;  %v14314_v18 = vld [vmem:[#allocation18 + $0xa0c] ss:$16 sps:$4 sm:$0xff]  }
 0xbb0   :  { %v14309_v45 = vld [vmem:[#allocation18 + $0x808] ss:$16 sps:$4 sm:$0xff]   ;;  %v14317_v17 = vld [vmem:[#allocation18 + $0x82c] ss:$16 sps:$4 sm:$0xff]  }
 0xbb1   :  { %10113 = vmatpush1.bf16.msra.mxu1 %v14249_v58  ;;  %v14312_v3 = vld [vmem:[#allocation18 + $0xa08] ss:$16 sps:$4 sm:$0xff]   ;;  %v14320_v36 = vld [vmem:[#allocation18 + $0xa2c] ss:$16 sps:$4 sm:$0xff]  }
 0xbb2   :  { %10154 = vmatpush1.bf16.msra.mxu0 %v14252_v49  ;;  %10114 = vmatprep.subr.bf16.mxu1 %v14257_v59  ;;  %v14315_v61 = vld [vmem:[#allocation18 + $0x828] ss:$16 sps:$4 sm:$0xff]   ;;  %v14323_v58 = vld [vmem:[#allocation18 + $0x84c] ss:$16 sps:$4 sm:$0xff]  }
 0xbb3   :  { %10155 = vmatprep.subr.bf16.mxu0 %v14260_v53  ;;  %v14318_v27 = vld [vmem:[#allocation18 + $0xa28] ss:$16 sps:$4 sm:$0xff]   ;;  %v14326_v47 = vld [vmem:[#allocation18 + $0xa4c] ss:$16 sps:$4 sm:$0xff]  }
 0xbb4   :  { %v14321_v51 = vld [vmem:[#allocation18 + $0x848] ss:$16 sps:$4 sm:$0xff]   ;;  %v14329_v49 = vld [vmem:[#allocation18 + $0x86c] ss:$16 sps:$4 sm:$0xff]  }
 0xbb5   :  { %10115 = vmatpush1.bf16.msra.mxu1 %v14255_v39  ;;  %v14327_v59 = vld [vmem:[#allocation18 + $0x868] ss:$16 sps:$4 sm:$0xff]   ;;  %v14335_v48 = vld [vmem:[#allocation18 + $0x88c] ss:$16 sps:$4 sm:$0xff]  }
 0xbb6   :  { %10156 = vmatpush1.bf16.msra.mxu0 %v14258_v37  ;;  %10116 = vmatprep.subr.bf16.mxu1 %v14263_v50  ;;  %v14338_v53 = vld [vmem:[#allocation18 + $0xa8c] ss:$16 sps:$4 sm:$0xff]   ;;  %v14336_v39 = vld [vmem:[#allocation18 + $0xa88] ss:$16 sps:$4 sm:$0xff]  }
 0xbb7   :  { %10157 = vmatprep.subr.bf16.mxu0 %v14266_v52  ;;  %v14341_v37 = vld [vmem:[#allocation18 + $0x8ac] ss:$16 sps:$4 sm:$0xff]   ;;  %v14339_v52 = vld [vmem:[#allocation18 + $0x8a8] ss:$16 sps:$4 sm:$0xff]  }
 0xbb8   :  { %v14344_v50 = vld [vmem:[#allocation18 + $0xaac] ss:$16 sps:$4 sm:$0xff]  }
 0xbb9   :  { %10117 = vmatpush1.bf16.msra.mxu1 %v14261_v5  ;;  %v14342_v5 = vld [vmem:[#allocation18 + $0xaa8] ss:$16 sps:$4 sm:$0xff]  }
 0xbba   :  { %10158 = vmatpush1.bf16.msra.mxu0 %v14264_v19  ;;  %10118 = vmatprep.subr.bf16.mxu1 %v14269_v31  ;;  %v14347_v19 = vld [vmem:[#allocation18 + $0x8cc] ss:$16 sps:$4 sm:$0xff]  }
 0xbbb   :  { %10159 = vmatprep.subr.bf16.mxu0 %v14272_v21  ;;  %v14350_v21 = vld [vmem:[#allocation18 + $0xacc] ss:$16 sps:$4 sm:$0xff]  }
 0xbbd   :  { %10119 = vmatpush1.bf16.msra.mxu1 %v14267_v43 }
 0xbbe   :  { %10160 = vmatpush1.bf16.msra.mxu0 %v14270_v60  ;;  %10120 = vmatprep.subr.bf16.mxu1 %v14275_v38 }
 0xbbf   :  { %10161 = vmatprep.subr.bf16.mxu0 %v14278_v54 }
 0xbc1   :  { %10121 = vmatpush1.bf16.msra.mxu1 %v14273_v30 }
 0xbc2   :  { %10162 = vmatpush1.bf16.msra.mxu0 %v14276_v22  ;;  %10122 = vmatprep.subr.bf16.mxu1 %v14281_v7  ;;  %v14345_v7 = vld [vmem:[#allocation18 + $0x8c8] ss:$16 sps:$4 sm:$0xff]  }
 0xbc3   :  { %10163 = vmatprep.subr.bf16.mxu0 %v14284_v15 }
 0xbc5   :  { %10123 = vmatpush1.bf16.msra.mxu1 %v14279_v16 }
 0xbc6   :  { %10164 = vmatpush1.bf16.msra.mxu0 %v14282_v9  ;;  %10124 = vmatprep.subr.bf16.mxu1 %v14287_v10  ;;  %v14348_v10 = vld [vmem:[#allocation18 + $0xac8] ss:$16 sps:$4 sm:$0xff]  }
 0xbc7   :  { %10165 = vmatprep.subr.bf16.mxu0 %v14290_v2  ;;  %v14353_v2 = vld [vmem:[#allocation18 + $0x8ec] ss:$16 sps:$4 sm:$0xff]  }
 0xbc9   :  { %10125 = vmatpush1.bf16.msra.mxu1 %v14285_v29 }
 0xbca   :  { %10166 = vmatpush1.bf16.msra.mxu0 %v14288_v55  ;;  %10126 = vmatprep.subr.bf16.mxu1 %v14293_v35  ;;  %v14351_v35 = vld [vmem:[#allocation18 + $0x8e8] ss:$16 sps:$4 sm:$0xff]  }
 0xbcb   :  { %10167 = vmatprep.subr.bf16.mxu0 %v14296_v24  ;;  %v14359_v24 = vld [vmem:[#allocation18 + $0x90c] ss:$16 sps:$4 sm:$0xff]  }
 0xbcd   :  { %10127 = vmatpush1.bf16.msra.mxu1 %v14291_v34  ;;  %v14362_v34 = vld [vmem:[#allocation18 + $0xb0c] ss:$16 sps:$4 sm:$0xff]  }
 0xbce   :  { %10168 = vmatpush1.bf16.msra.mxu0 %v14294_v6  ;;  %10128 = vmatprep.subr.bf16.mxu1 %v14299_v28  ;;  %v14357_v6 = vld [vmem:[#allocation18 + $0x908] ss:$16 sps:$4 sm:$0xff]  }
 0xbcf   :  { %10169 = vmatprep.subr.bf16.mxu0 %v14302_v1  ;;  %v14360_v28 = vld [vmem:[#allocation18 + $0xb08] ss:$16 sps:$4 sm:$0xff]   ;;  %v14365_v1 = vld [vmem:[#allocation18 + $0x92c] ss:$16 sps:$4 sm:$0xff]  }
 0xbd1   :  { %10129 = vmatpush1.bf16.msra.mxu1 %v14297_v20  ;;  %v14368_v20 = vld [vmem:[#allocation18 + $0xb2c] ss:$16 sps:$4 sm:$0xff]  }
 0xbd2   :  { %10170 = vmatpush1.bf16.msra.mxu0 %v14300_v11  ;;  %10130 = vmatprep.subr.bf16.mxu1 %v14305_v32  ;;  %v14363_v11 = vld [vmem:[#allocation18 + $0x928] ss:$16 sps:$4 sm:$0xff]  }
 0xbd3   :  { %10171 = vmatprep.subr.bf16.mxu0 %v14308_v40  ;;  %v14366_v32 = vld [vmem:[#allocation18 + $0xb28] ss:$16 sps:$4 sm:$0xff]   ;;  %v14371_v40 = vld [vmem:[#allocation18 + $0x94c] ss:$16 sps:$4 sm:$0xff]  }
 0xbd5   :  { %10131 = vmatpush1.bf16.msra.mxu1 %v14303_v26  ;;  %v14374_v26 = vld [vmem:[#allocation18 + $0xb4c] ss:$16 sps:$4 sm:$0xff]  }
 0xbd6   :  { %10172 = vmatpush1.bf16.msra.mxu0 %v14306_v42  ;;  %10182 = vmatprep.subr.bf16.mxu1 %v14311_v8  ;;  %v14369_v42 = vld [vmem:[#allocation18 + $0x948] ss:$16 sps:$4 sm:$0xff]  }
 0xbd7   :  { %10223 = vmatprep.subr.bf16.mxu0 %v14314_v18  ;;  %v14372_v8 = vld [vmem:[#allocation18 + $0xb48] ss:$16 sps:$4 sm:$0xff]   ;;  %v14377_v18 = vld [vmem:[#allocation18 + $0x96c] ss:$16 sps:$4 sm:$0xff]  }
 0xbd8   :  { %10133 = vmatmul.mubr.bf16.vlgmr.msra.gmra.mrb[52].mxu1 %v16652_v46  ;;  %v14324_v46 = vld [vmem:[#allocation18 + $0xa48] ss:$16 sps:$4 sm:$0xff]  }
 0xbd9   :  { %10174 = vmatmul.mubr.bf16.vlgmr.msra.gmra.mrb[68].mxu0 %v16654_v63  ;;  %10183 = vmatpush1.bf16.msra.mxu1 %v14309_v45  ;;  %v14332_v63 = vld [vmem:[#allocation18 + $0xa6c] ss:$16 sps:$4 sm:$0xff]  }
 0xbda   :  { %10214 = vmatprep.mubr.bf16.mxu1 %v16657_v23  ;;  %10224 = vmatpush1.bf16.msra.mxu0 %v14312_v3  ;;  %v14330_v23 = vld [vmem:[#allocation18 + $0xa68] ss:$16 sps:$4 sm:$0xff]   ;;  %v14380_v45 = vld [vmem:[#allocation18 + $0xb6c] ss:$16 sps:$4 sm:$0xff]  }
 0xbdb   :  { %10255 = vmatprep.mubr.bf16.mxu0 %v16660_v25  ;;  %10184 = vmatprep.subr.bf16.mxu1 %v14317_v17  ;;  %v14333_v25 = vld [vmem:[#allocation18 + $0x888] ss:$16 sps:$4 sm:$0xff]  }
 0xbdc   :  { %10225 = vmatprep.subr.bf16.mxu0 %v14320_v36  ;;  %v14375_v3 = vld [vmem:[#allocation18 + $0x968] ss:$16 sps:$4 sm:$0xff]   ;;  %v14383_v36 = vld [vmem:[#allocation18 + $0x98c] ss:$16 sps:$4 sm:$0xff]  }
 0xbdd   :  { %10185 = vmatpush1.bf16.msra.mxu1 %v14315_v61  ;;  %v14378_v17 = vld [vmem:[#allocation18 + $0xb68] ss:$16 sps:$4 sm:$0xff]   ;;  %v14386_v61 = vld [vmem:[#allocation18 + $0xb8c] ss:$16 sps:$4 sm:$0xff]  }
 0xbde   :  { %10226 = vmatpush1.bf16.msra.mxu0 %v14318_v27  ;;  %10186 = vmatprep.subr.bf16.mxu1 %v14323_v58  ;;  %v14381_v27 = vld [vmem:[#allocation18 + $0x988] ss:$16 sps:$4 sm:$0xff]  }
 0xbdf   :  { %10227 = vmatprep.subr.bf16.mxu0 %v14326_v47  ;;  %v14384_v58 = vld [vmem:[#allocation18 + $0xb88] ss:$16 sps:$4 sm:$0xff]   ;;  %v14389_v47 = vld [vmem:[#allocation18 + $0x9ac] ss:$16 sps:$4 sm:$0xff]  }
 0xbe1   :  { %10187 = vmatpush1.bf16.msra.mxu1 %v14321_v51  ;;  %v14392_v51 = vld [vmem:[#allocation18 + $0xbac] ss:$16 sps:$4 sm:$0xff]  }
 0xbe2   :  { %10228 = vmatpush1.bf16.msra.mxu0 %v14324_v46  ;;  %10188 = vmatprep.subr.bf16.mxu1 %v14329_v49  ;;  %v14387_v46 = vld [vmem:[#allocation18 + $0x9a8] ss:$16 sps:$4 sm:$0xff]  }
 0xbe3   :  { %10229 = vmatprep.subr.bf16.mxu0 %v14332_v63  ;;  %v14390_v49 = vld [vmem:[#allocation18 + $0xba8] ss:$16 sps:$4 sm:$0xff]   ;;  %v14395_v63 = vld [vmem:[#allocation18 + $0x9cc] ss:$16 sps:$4 sm:$0xff]  }
 0xbe5   :  { %10189 = vmatpush1.bf16.msra.mxu1 %v14327_v59  ;;  %v14398_v59 = vld [vmem:[#allocation18 + $0xbcc] ss:$16 sps:$4 sm:$0xff]  }
 0xbe6   :  { %10230 = vmatpush1.bf16.msra.mxu0 %v14330_v23  ;;  %10190 = vmatprep.subr.bf16.mxu1 %v14335_v48  ;;  %v14393_v23 = vld [vmem:[#allocation18 + $0x9c8] ss:$16 sps:$4 sm:$0xff]  }
 0xbe7   :  { %10231 = vmatprep.subr.bf16.mxu0 %v14338_v53  ;;  %v14396_v48 = vld [vmem:[#allocation18 + $0xbc8] ss:$16 sps:$4 sm:$0xff]   ;;  %v14401_v53 = vld [vmem:[#allocation18 + $0x9ec] ss:$16 sps:$4 sm:$0xff]  }
 0xbe9   :  { %10191 = vmatpush1.bf16.msra.mxu1 %v14333_v25  ;;  %v14404_v25 = vld [vmem:[#allocation18 + $0xbec] ss:$16 sps:$4 sm:$0xff]  }
 0xbea   :  { %10232 = vmatpush1.bf16.msra.mxu0 %v14336_v39  ;;  %10192 = vmatprep.subr.bf16.mxu1 %v14341_v37  ;;  %v14399_v39 = vld [vmem:[#allocation18 + $0x9e8] ss:$16 sps:$4 sm:$0xff]  }
 0xbeb   :  { %v9888_v31 = vpop.f32.mrb[40].mxu1  ;;  %10233 = vmatprep.subr.bf16.mxu0 %v14344_v50  ;;  %v14402_v37 = vld [vmem:[#allocation18 + $0xbe8] ss:$16 sps:$4 sm:$0xff]  }
 0xbec   :  { %v9889_v43 = vadd.f32 %v9888_v31, %v16698_v44  ;;  %v9929_v60 = vpop.f32.mrb[56].mxu0  ;;  %v9890_v38 = vpop.f32.mrb[41].mxu1  ;;  %v14356_v44 = vld [vmem:[#allocation18 + $0xaec] ss:$16 sps:$4 sm:$0xff]   ;;  %v14407_v50 = vld [vmem:[#allocation26 + $0x4] ss:$8 sps:$4 sm:$0xff]  }
 0xbed   :  { %v9891_v54 = vadd.f32 %v9890_v38, %v16700_v33  ;;  %v9931_v30 = vpop.f32.mrb[57].mxu0  ;;  %v9892_v22 = vpop.f32.mrb[42].mxu1  ;;  %10193 = vmatpush1.bf16.msra.mxu1 %v14339_v52  ;;  %v14354_v33 = vld [vmem:[#allocation18 + $0xae8] ss:$16 sps:$4 sm:$0xff]   ;;  %v14405_v52 = vld [vmem:[#allocation26] ss:$8 sps:$4 sm:$0xff]  }
 0xbee   :  { %v16708_v15 = vadd.f32 %v9929_v60, %v9889_v43  ;;  %v9933_v16 = vpop.f32.mrb[58].mxu0  ;;  %10234 = vmatpush1.bf16.msra.mxu0 %v14342_v5  ;;  %v9893_v9 = vpop.f32.mrb[43].mxu1  ;;  %10194 = vmatprep.subr.bf16.mxu1 %v14347_v19  ;;  %v14410_v5 = vld [vmem:[#allocation26 + $0x14] ss:$8 sps:$4 sm:$0xff]   ;;  %v14408_v19 = vld [vmem:[#allocation26 + $0x10] ss:$8 sps:$4 sm:$0xff]  }
 0xbef   :  { %v16710_v29 = vadd.f32 %v9931_v30, %v9891_v54  ;;  %v9934_v55 = vpop.f32.mrb[59].mxu0  ;;  %10235 = vmatprep.subr.bf16.mxu0 %v14350_v21  ;;  %v14413_v31 = vld [vmem:[#allocation26 + $0x24] ss:$8 sps:$4 sm:$0xff]   ;;  %v14411_v21 = vld [vmem:[#allocation26 + $0x20] ss:$8 sps:$4 sm:$0xff]  }
 0xbf0   :  { %v14416_v43 = vld [vmem:[#allocation26 + $0x34] ss:$8 sps:$4 sm:$0xff]   ;;  %v14414_v60 = vld [vmem:[#allocation26 + $0x30] ss:$8 sps:$4 sm:$0xff]   ;;  %v14419_v38 = vld [vmem:[#allocation26 + $0x44] ss:$8 sps:$4 sm:$0xff]  }
 0xbf1   :  { %10195 = vmatpush1.bf16.msra.mxu1 %v14345_v7  ;;  %v14417_v54 = vld [vmem:[#allocation26 + $0x40] ss:$8 sps:$4 sm:$0xff]   ;;  %v14422_v30 = vld [vmem:[#allocation26 + $0x54] ss:$8 sps:$4 sm:$0xff]  }
 0xbf2   :  { %10236 = vmatpush1.bf16.msra.mxu0 %v14348_v10  ;;  %10196 = vmatprep.subr.bf16.mxu1 %v14353_v2  ;;  %v16714_v22 = vld [vmem:[#allocation21] sm:$0xf]  ;;  %v16717_v10 = vld [vmem:[#allocation23] sm:$0xf] }
 0xbf3   :  { %10237 = vmatprep.subr.bf16.mxu0 %v14356_v44 }
 0xbf5   :  { %10197 = vmatpush1.bf16.msra.mxu1 %v14351_v35  ;;  %v10273_v35 = vrot.slane %v16714_v22, %v15837_v14 }
 0xbf6   :  { %10238 = vmatpush1.bf16.msra.mxu0 %v14354_v33  ;;  %10198 = vmatprep.subr.bf16.mxu1 %v14359_v24  ;;  %v14423_v24 = vld [vmem:[#allocation26 + $0x60] ss:$8 sps:$4 sm:$0xff]  }
 0xbf7   :  { %10239 = vmatprep.subr.bf16.mxu0 %v14362_v34 }
 0xbf9   :  { %10199 = vmatpush1.bf16.msra.mxu1 %v14357_v6  ;;  %v16722_v6 = vld [vmem:[#allocation24] sm:$0xf] }
 0xbfa   :  { %10240 = vmatpush1.bf16.msra.mxu0 %v14360_v28  ;;  %10200 = vmatprep.subr.bf16.mxu1 %v14365_v1 }
 0xbfb   :  { %10241 = vmatprep.subr.bf16.mxu0 %v14368_v20 }
 0xbfd   :  { %10201 = vmatpush1.bf16.msra.mxu1 %v14363_v11  ;;  %v10299_v11 = vrot.slane %v16717_v10, %v15837_v14 }
 0xbfe   :  { %10242 = vmatpush1.bf16.msra.mxu0 %v14366_v32  ;;  %10202 = vmatprep.subr.bf16.mxu1 %v14371_v40  ;;  %v14426_v40 = vld [vmem:[#allocation26 + $0x70] ss:$8 sps:$4 sm:$0xff]  }
 0xbff   :  { %10243 = vmatprep.subr.bf16.mxu0 %v14374_v26  ;;  %v10325_v26 = vrot.slane %v16722_v6, %v15837_v14 }
 0xc01   :  { %10203 = vmatpush1.bf16.msra.mxu1 %v14369_v42  ;;  %v14431_v42 = vld [vmem:[#allocation26 + $0x84] ss:$8 sps:$4 sm:$0xff]  }
 0xc02   :  { %10244 = vmatpush1.bf16.msra.mxu0 %v14372_v8  ;;  %10204 = vmatprep.subr.bf16.mxu1 %v14377_v18  ;;  %v14429_v18 = vld [vmem:[#allocation26 + $0x80] ss:$8 sps:$4 sm:$0xff]  }
 0xc03   :  { %10245 = vmatprep.subr.bf16.mxu0 %v14380_v45 }
 0xc05   :  { %10205 = vmatpush1.bf16.msra.mxu1 %v14375_v3  ;;  %v14434_v3 = vld [vmem:[#allocation26 + $0x94] ss:$8 sps:$4 sm:$0xff]  }
 0xc06   :  { %10246 = vmatpush1.bf16.msra.mxu0 %v14378_v17  ;;  %10206 = vmatprep.subr.bf16.mxu1 %v14383_v36 }
 0xc07   :  { %10247 = vmatprep.subr.bf16.mxu0 %v14386_v61  ;;  %v14432_v61 = vld [vmem:[#allocation26 + $0x90] ss:$8 sps:$4 sm:$0xff]  }
 0xc09   :  { %10207 = vmatpush1.bf16.msra.mxu1 %v14381_v27  ;;  %v14437_v27 = vld [vmem:[#allocation26 + $0xa4] ss:$8 sps:$4 sm:$0xff]  }
 0xc0a   :  { %10248 = vmatpush1.bf16.msra.mxu0 %v14384_v58  ;;  %10208 = vmatprep.subr.bf16.mxu1 %v14389_v47  ;;  %v14435_v58 = vld [vmem:[#allocation26 + $0xa0] ss:$8 sps:$4 sm:$0xff]   ;;  %v14440_v47 = vld [vmem:[#allocation26 + $0xb4] ss:$8 sps:$4 sm:$0xff]  }
 0xc0b   :  { %10249 = vmatprep.subr.bf16.mxu0 %v14392_v51  ;;  %v14438_v51 = vld [vmem:[#allocation26 + $0xb0] ss:$8 sps:$4 sm:$0xff]  }
 0xc0d   :  { %10209 = vmatpush1.bf16.msra.mxu1 %v14387_v46  ;;  %v10269_v46 = vrot.slane %v16714_v22, %v15834_v12 }
 0xc0e   :  { %10250 = vmatpush1.bf16.msra.mxu0 %v14390_v49  ;;  %10210 = vmatprep.subr.bf16.mxu1 %v14395_v63  ;;  %v14443_v49 = vld [vmem:[#allocation26 + $0xc4] ss:$8 sps:$4 sm:$0xff]   ;;  %v14441_v63 = vld [vmem:[#allocation26 + $0xc0] ss:$8 sps:$4 sm:$0xff]  }
 0xc0f   :  { %10251 = vmatprep.subr.bf16.mxu0 %v14398_v59 }
 0xc11   :  { %10211 = vmatpush1.bf16.msra.mxu1 %v14393_v23  ;;  %v10295_v23 = vrot.slane %v16717_v10, %v15834_v12 }
 0xc12   :  { %10252 = vmatpush1.bf16.msra.mxu0 %v14396_v48  ;;  %10212 = vmatprep.subr.bf16.mxu1 %v14401_v53  ;;  %v14446_v48 = vld [vmem:[#allocation26 + $0xd4] ss:$8 sps:$4 sm:$0xff]   ;;  %v14444_v53 = vld [vmem:[#allocation26 + $0xd0] ss:$8 sps:$4 sm:$0xff]  }
 0xc13   :  { %10253 = vmatprep.subr.bf16.mxu0 %v14404_v25 }
 0xc15   :  { %10213 = vmatpush1.bf16.msra.mxu1 %v14399_v39  ;;  %v10321_v39 = vrot.slane %v16722_v6, %v15834_v12 }
 0xc16   :  { %10254 = vmatpush1.bf16.msra.mxu0 %v14402_v37  ;;  %10746 = vmatprep.subr.bf16.mxu1 %v14407_v50  ;;  %v14449_v37 = vld [vmem:[#allocation26 + $0xe4] ss:$8 sps:$4 sm:$0xff]   ;;  %v14447_v50 = vld [vmem:[#allocation26 + $0xe0] ss:$8 sps:$4 sm:$0xff]  }
 0xc18   :  { %10215 = vmatmul.mubr.bf16.vlgmr.msra.gmra.mrb[56].mxu1 %v16678_v0  ;;  %v14420_v0 = vld [vmem:[#allocation26 + $0x50] ss:$8 sps:$4 sm:$0xff]  }
 0xc19   :  { %10256 = vmatmul.mubr.bf16.vlgmr.msra.gmra.mrb[72].mxu0 %v16680_v62  ;;  %10747 = vmatpush1.bf16.msra.mxu1 %v14405_v52  ;;  %v14425_v62 = vld [vmem:[#allocation26 + $0x64] ss:$8 sps:$4 sm:$0xff]  }
 0xc1a   :  { %10748 = vmatprep.subr.bf16.mxu1 %v14410_v5  ;;  %v14452_v5 = vld [vmem:[#allocation26 + $0xf4] ss:$8 sps:$4 sm:$0xff]  }
 0xc1d   :  { %10749 = vmatpush1.bf16.msra.mxu1 %v14408_v19  ;;  %v14450_v19 = vld [vmem:[#allocation26 + $0xf0] ss:$8 sps:$4 sm:$0xff]  }
 0xc1e   :  { %10750 = vmatprep.subr.bf16.mxu1 %v14413_v31 }
 0xc21   :  { %10751 = vmatpush1.bf16.msra.mxu1 %v14411_v21  ;;  %v14455_v21 = vld [vmem:[#allocation26 + $0x104] ss:$8 sps:$4 sm:$0xff]  }
 0xc22   :  { %10752 = vmatprep.subr.bf16.mxu1 %v14416_v43  ;;  %v14453_v43 = vld [vmem:[#allocation26 + $0x100] ss:$8 sps:$4 sm:$0xff]  }
 0xc25   :  { %10753 = vmatpush1.bf16.msra.mxu1 %v14414_v60 }
 0xc26   :  { %10754 = vmatprep.subr.bf16.mxu1 %v14419_v38  ;;  %v14458_v38 = vld [vmem:[#allocation26 + $0x114] ss:$8 sps:$4 sm:$0xff]  }
 0xc29   :  { %10755 = vmatpush1.bf16.msra.mxu1 %v14417_v54  ;;  %v14456_v54 = vld [vmem:[#allocation26 + $0x110] ss:$8 sps:$4 sm:$0xff]  }
 0xc2a   :  { %10756 = vmatprep.subr.bf16.mxu1 %v14422_v30  ;;  %v14461_v30 = vld [vmem:[#allocation26 + $0x124] ss:$8 sps:$4 sm:$0xff]  }
 0xc2b   :  { %v9970_v7 = vpop.f32.mrb[44].mxu1 }
 0xc2c   :  { %v9971_v16 = vadd.f32 %v9970_v7, %v16708_v15  ;;  %v10011_v9 = vpop.f32.mrb[60].mxu0  ;;  %v9972_v2 = vpop.f32.mrb[45].mxu1  ;;  %v14428_v15 = vld [vmem:[#allocation26 + $0x74] ss:$8 sps:$4 sm:$0xff]   ;;  %v14462_v7 = vld [vmem:[#allocation26 + $0x130] ss:$8 sps:$4 sm:$0xff]  }
 0xc2d   :  { %v9973_v55 = vadd.f32 %v9972_v2, %v16710_v29  ;;  %v10013_v44 = vpop.f32.mrb[61].mxu0  ;;  %v9974_v33 = vpop.f32.mrb[46].mxu1  ;;  %10757 = vmatpush1.bf16.msra.mxu1 %v14420_v0  ;;  %v14459_v0 = vld [vmem:[#allocation26 + $0x120] ss:$8 sps:$4 sm:$0xff]   ;;  %v14470_v2 = vld [vmem:[#allocation26 + $0x154] ss:$8 sps:$4 sm:$0xff]  }
 0xc2e   :  { %v10012_v34 = vadd.f32 %v10011_v9, %v9971_v16  ;;  %v10015_v28 = vpop.f32.mrb[62].mxu0  ;;  %v9975_v1 = vpop.f32.mrb[47].mxu1  ;;  %10758 = vmatprep.subr.bf16.mxu1 %v14425_v62  ;;  %v14464_v62 = vld [vmem:[#allocation26 + $0x134] ss:$8 sps:$4 sm:$0xff]   ;;  %v14467_v16 = vld [vmem:[#allocation26 + $0x144] ss:$8 sps:$4 sm:$0xff]  }
 0xc2f   :  { %v10014_v20 = vadd.f32 %v10013_v44, %v9973_v55  ;;  %v10016_v32 = vpop.f32.mrb[63].mxu0  ;;  %v14465_v9 = vld [vmem:[#allocation26 + $0x140] ss:$8 sps:$4 sm:$0xff]   ;;  %v14468_v55 = vld [vmem:[#allocation26 + $0x150] ss:$8 sps:$4 sm:$0xff]  }
 0xc30   :  { %v10286_v59 = vadd.f32 %v10269_v46, %v10012_v34  ;;  %v14473_v44 = vld [vmem:[#allocation26 + $0x164] ss:$8 sps:$4 sm:$0xff]   ;;  %v14486_v46 = vld [vmem:[#allocation26 + $0x1b0] ss:$8 sps:$4 sm:$0xff]  }
 0xc31   :  { %v10287_v29 = vadd.f32 %v10273_v35, %v10014_v20  ;;  %10759 = vmatpush1.bf16.msra.mxu1 %v14423_v24  ;;  %v14471_v20 = vld [vmem:[#allocation26 + $0x160] ss:$8 sps:$4 sm:$0xff]  }
 0xc32   :  { %10760 = vmatprep.subr.bf16.mxu1 %v14428_v15  ;;  %v10312_v25 = vmul.f32 %v10295_v23, %v10286_v59  ;;  %v14507_v59 = vld [vmem:[#allocation32 + $0x58] sm:$0xff]  }
 0xc33   :  { %v10313_v8 = vmul.f32 %v10299_v11, %v10287_v29  ;;  %v14489_v23 = vld [vmem:[#allocation26 + $0x1c0] ss:$8 sps:$4 sm:$0xff]  }
 0xc34   :  { %v10338_v52 = vadd.f32 %v10321_v39, %v10312_v25  ;;  %v14509_v25 = vld [vmem:[#allocation32 + $0x60] sm:$0xff]   ;;  %v14492_v39 = vld [vmem:[#allocation26 + $0x1d0] ss:$8 sps:$4 sm:$0xff]  }
 0xc35   :  { %10761 = vmatpush1.bf16.msra.mxu1 %v14426_v40  ;;  %v10339_v45 = vadd.f32 %v10325_v26, %v10313_v8  ;;  %v14476_v40 = vld [vmem:[#allocation26 + $0x174] ss:$8 sps:$4 sm:$0xff]   ;;  %v14474_v8 = vld [vmem:[#allocation26 + $0x170] ss:$8 sps:$4 sm:$0xff]  }
 0xc36   :  { %10762 = vmatprep.subr.bf16.mxu1 %v14431_v42  ;;  %v10342_v31 = vmax.f32 %v10338_v52, 0.0  ;;  %v14495_v52 = vld [vmem:[#allocation26 + $0x1e0] ss:$8 sps:$4 sm:$0xff]  }
 0xc37   :  { %v10343_v17 = vmax.f32 %v10339_v45, 0.0  ;;  %v14480_v45 = vld [vmem:[#allocation26 + $0x190] ss:$8 sps:$4 sm:$0xff]  }
 0xc38   :  { %v10346_v60 = vpack.c.bf16 %v10342_v31, %v10342_v31 }
 0xc39   :  { %10763 = vmatpush1.bf16.msra.mxu1 %v14429_v18  ;;  %v10347_v36 = vpack.c.bf16 %v10343_v17, %v10343_v17  ;;  %v14477_v18 = vld [vmem:[#allocation26 + $0x180] ss:$8 sps:$4 sm:$0xff]  }
 0xc3a   :  { %10764 = vmatprep.subr.bf16.mxu1 %v14434_v3  ;;  %v14485_v3 = vld [vmem:[#allocation26 + $0x1a4] ss:$8 sps:$4 sm:$0xff]  }
 0xc3b   :  { %10778 = vmatprep.mubr.bf16.mxu1 %v10347_v36  ;;  %v14501_v17 = vld [vmem:[#allocation32 + $0x40] sm:$0xff]  }
 0xc3c   :  { %v14502_v36 = vld [vmem:[#allocation32] sm:$0xff]   ;;  %12712 = vmatprep.subr.bf16.mxu0 %v14501_v17 }
 0xc3d   :  { %10765 = vmatpush1.bf16.msra.mxu1 %v14432_v61  ;;  %v14503_v61 = vld [vmem:[#allocation32 + $0x48] sm:$0xff]   ;;  %12713 = vmatpush3.bf16.msra.mxu0 %v14502_v36 }
 0xc3e   :  { %10766 = vmatprep.subr.bf16.mxu1 %v14437_v27  ;;  %v14483_v27 = vld [vmem:[#allocation26 + $0x1a0] ss:$8 sps:$4 sm:$0xff]   ;;  %12714 = vmatprep.subr.bf16.mxu0 %v14503_v61 }
 0xc41   :  { %10767 = vmatpush1.bf16.msra.mxu1 %v14435_v58  ;;  %v14488_v58 = vld [vmem:[#allocation26 + $0x1b4] ss:$8 sps:$4 sm:$0xff]  }
 0xc42   :  { %10768 = vmatprep.subr.bf16.mxu1 %v14440_v47  ;;  %v14504_v47 = vld [vmem:[#allocation32 + $0x8] sm:$0xff]  }
 0xc43   :  { %12715 = vmatpush3.bf16.msra.mxu0 %v14504_v47  ;;  %v14513_v47 = vld [vmem:[#allocation32 + $0x70] sm:$0xff]  }
 0xc45   :  { %10769 = vmatpush1.bf16.msra.mxu1 %v14438_v51  ;;  %v14505_v51 = vld [vmem:[#allocation32 + $0x50] sm:$0xff]  }
 0xc46   :  { %10770 = vmatprep.subr.bf16.mxu1 %v14443_v49  ;;  %v14491_v49 = vld [vmem:[#allocation26 + $0x1c4] ss:$8 sps:$4 sm:$0xff]   ;;  %12716 = vmatprep.subr.bf16.mxu0 %v14505_v51 }
 0xc47   :  { %v14515_v51 = vld [vmem:[#allocation32 + $0x78] sm:$0xff]  }
 0xc49   :  { %10771 = vmatpush1.bf16.msra.mxu1 %v14441_v63  ;;  %v14506_v63 = vld [vmem:[#allocation32 + $0x10] sm:$0xff]  }
 0xc4a   :  { %10772 = vmatprep.subr.bf16.mxu1 %v14446_v48  ;;  %v14494_v48 = vld [vmem:[#allocation26 + $0x1d4] ss:$8 sps:$4 sm:$0xff]   ;;  %12717 = vmatpush3.bf16.msra.mxu0 %v14506_v63  ;;  %v10842_v63 = vld [vmem:[#allocation30] sm:$0x3] }
 0xc4b   :  { %12718 = vmatprep.subr.bf16.mxu0 %v14507_v59 }
 0xc4d   :  { %10773 = vmatpush1.bf16.msra.mxu1 %v14444_v53  ;;  %v14508_v53 = vld [vmem:[#allocation32 + $0x18] sm:$0xff]  }
 0xc4e   :  { %10774 = vmatprep.subr.bf16.mxu1 %v14449_v37  ;;  %v14497_v37 = vld [vmem:[#allocation26 + $0x1e4] ss:$8 sps:$4 sm:$0xff]   ;;  %12719 = vmatpush3.bf16.msra.mxu0 %v14508_v53 }
 0xc4f   :  { %12720 = vmatprep.subr.bf16.mxu0 %v14509_v25 }
 0xc51   :  { %10775 = vmatpush1.bf16.msra.mxu1 %v14447_v50  ;;  %v14510_v50 = vld [vmem:[#allocation32 + $0x20] sm:$0xff]  }
 0xc52   :  { %10776 = vmatprep.subr.bf16.mxu1 %v14452_v5  ;;  %v14500_v5 = vld [vmem:[#allocation26 + $0x1f4] ss:$8 sps:$4 sm:$0xff]   ;;  %12721 = vmatpush3.bf16.msra.mxu0 %v14510_v50 }
 0xc55   :  { %10777 = vmatpush1.bf16.msra.mxu1 %v14450_v19  ;;  %v14498_v19 = vld [vmem:[#allocation26 + $0x1f0] ss:$8 sps:$4 sm:$0xff]  }
 0xc56   :  { %10787 = vmatprep.subr.bf16.mxu1 %v14455_v21 }
 0xc58   :  { %10779 = vmatmul.mubr.bf16.vlgmr.msra.gmra.mrb[60].mxu1 %v10346_v60 }
 0xc59   :  { %10788 = vmatpush1.bf16.msra.mxu1 %v14453_v43 }
 0xc5a   :  { %10789 = vmatprep.subr.bf16.mxu1 %v14458_v38 }
 0xc5d   :  { %10790 = vmatpush1.bf16.msra.mxu1 %v14456_v54 }
 0xc5e   :  { %10791 = vmatprep.subr.bf16.mxu1 %v14461_v30 }
 0xc61   :  { %10792 = vmatpush1.bf16.msra.mxu1 %v14459_v0 }
 0xc62   :  { %10793 = vmatprep.subr.bf16.mxu1 %v14464_v62 }
 0xc65   :  { %10794 = vmatpush1.bf16.msra.mxu1 %v14462_v7 }
 0xc66   :  { %10795 = vmatprep.subr.bf16.mxu1 %v14467_v16 }
 0xc69   :  { %10796 = vmatpush1.bf16.msra.mxu1 %v14465_v9 }
 0xc6a   :  { %10797 = vmatprep.subr.bf16.mxu1 %v14470_v2 }
 0xc6b   :  { %v10052_v35 = vpop.f32.mrb[48].mxu1 }
 0xc6c   :  { %v10053_v33 = vadd.f32 %v10052_v35, %v16688_v56  ;;  %v10093_v24 = vpop.f32.mrb[64].mxu0  ;;  %v10054_v34 = vpop.f32.mrb[49].mxu1  ;;  %v14479_v56 = vld [vmem:[#allocation26 + $0x184] ss:$8 sps:$4 sm:$0xff]   ;;  %v10277_v35 = vrot.slane %v16714_v22, %v15852_v41 }
 0xc6d   :  { %v10055_v28 = vadd.f32 %v10054_v34, %v16690_v57  ;;  %v10095_v1 = vpop.f32.mrb[65].mxu0  ;;  %v10056_v15 = vpop.f32.mrb[50].mxu1  ;;  %10798 = vmatpush1.bf16.msra.mxu1 %v14468_v55  ;;  %v14482_v57 = vld [vmem:[#allocation26 + $0x194] ss:$8 sps:$4 sm:$0xff]  }
 0xc6e   :  { %v16736_v11 = vadd.f32 %v10093_v24, %v10053_v33  ;;  %v10097_v32 = vpop.f32.mrb[66].mxu0  ;;  %v10057_v29 = vpop.f32.mrb[51].mxu1  ;;  %10799 = vmatprep.subr.bf16.mxu1 %v14473_v44 }
 0xc6f   :  { %v10096_v26 = vadd.f32 %v10095_v1, %v10055_v28  ;;  %v10098_v42 = vpop.f32.mrb[67].mxu0  ;;  %v10281_v28 = vrot.slane %v16714_v22, %v15840_v13  ;;  %v10333_v22 = vrot.slane %v16722_v6, %v15840_v13 }
 0xc71   :  { %10800 = vmatpush1.bf16.msra.mxu1 %v14471_v20  ;;  %v10303_v20 = vrot.slane %v16717_v10, %v15852_v41 }
 0xc72   :  { %10801 = vmatprep.subr.bf16.mxu1 %v14476_v40  ;;  %v10307_v40 = vrot.slane %v16717_v10, %v15840_v13  ;;  %v14511_v10 = vld [vmem:[#allocation32 + $0x68] sm:$0xff]   ;;  %v14516_v13 = vld [vmem:[#allocation32 + $0x38] sm:$0xff]  }
 0xc73   :  { %12722 = vmatprep.subr.bf16.mxu0 %v14511_v10 }
 0xc75   :  { %10802 = vmatpush1.bf16.msra.mxu1 %v14474_v8  ;;  %v10329_v8 = vrot.slane %v16722_v6, %v15852_v41  ;;  %v14514_v41 = vld [vmem:[#allocation32 + $0x30] sm:$0xff]   ;;  %v10414_v6 = vld [vmem:[#allocation27] sm:$0x3] }
 0xc76   :  { %10803 = vmatprep.subr.bf16.mxu1 %v14479_v56  ;;  %v10423_v59 = vrot.slane %v10414_v6, %v15837_v14 }
 0xc79   :  { %10804 = vmatpush1.bf16.msra.mxu1 %v14477_v18 }
 0xc7a   :  { %10805 = vmatprep.subr.bf16.mxu1 %v14482_v57 }
 0xc7d   :  { %10806 = vmatpush1.bf16.msra.mxu1 %v14480_v45 }
 0xc7e   :  { %10807 = vmatprep.subr.bf16.mxu1 %v14485_v3 }
 0xc81   :  { %10808 = vmatpush1.bf16.msra.mxu1 %v14483_v27 }
 0xc82   :  { %10809 = vmatprep.subr.bf16.mxu1 %v14488_v58  ;;  %v14512_v58 = vld [vmem:[#allocation32 + $0x28] sm:$0xff]  }
 0xc83   :  { %12723 = vmatpush3.bf16.msra.mxu0 %v14512_v58 }
 0xc84   :  { %12724 = vmatprep.subr.bf16.mxu0 %v14513_v47 }
 0xc85   :  { %10810 = vmatpush1.bf16.msra.mxu1 %v14486_v46  ;;  %v10828_v46 = vld [vmem:[#allocation29] sm:$0x3] }
 0xc86   :  { %10811 = vmatprep.subr.bf16.mxu1 %v14491_v49  ;;  %v10419_v49 = vrot.slane %v10414_v6, %v15834_v12  ;;  %v10837_v53 = vrot.slane %v10828_v46, %v15837_v14 }
 0xc87   :  { %12725 = vmatpush3.bf16.msra.mxu0 %v14514_v41 }
 0xc88   :  { %12726 = vmatprep.subr.bf16.mxu0 %v14515_v51 }
 0xc89   :  { %10812 = vmatpush1.bf16.msra.mxu1 %v14489_v23  ;;  %v10833_v23 = vrot.slane %v10828_v46, %v15834_v12 }
 0xc8a   :  { %10813 = vmatprep.subr.bf16.mxu1 %v14494_v48 }
 0xc8b   :  { %12727 = vmatpush3.bf16.msra.mxu0 %v14516_v13 }
 0xc8c   :  { %12755 = vmatprep.subr.bf16.mxu0 %v15202_v4 }
 0xc8d   :  { %10814 = vmatpush1.bf16.msra.mxu1 %v14492_v39  ;;  %v10847_v39 = vrot.slane %v10842_v63, %v15834_v12  ;;  %v14519_v12 = vld [vmem:[#allocation38 + $0x10] sm:$0xff]  }
 0xc8e   :  { %10815 = vmatprep.subr.bf16.mxu1 %v14497_v37 }
 0xc91   :  { %10816 = vmatpush1.bf16.msra.mxu1 %v14495_v52  ;;  %v10851_v52 = vrot.slane %v10842_v63, %v15837_v14  ;;  %v14520_v14 = vld [vmem:[#allocation38 + $0x18] sm:$0xff]  }
 0xc92   :  { %10817 = vmatprep.subr.bf16.mxu1 %v14500_v5 }
 0xc95   :  { %10818 = vmatpush1.bf16.msra.mxu1 %v14498_v19 }
 0xcab   :  { %v10134_v31 = vpop.f32.mrb[52].mxu1 }
 0xcac   :  { %v10135_v21 = vadd.f32 %v10134_v31, %v16736_v11  ;;  %v10175_v43 = vpop.f32.mrb[68].mxu0  ;;  %v10136_v60 = vpop.f32.mrb[53].mxu1 }
 0xcad   :  { %v10137_v38 = vadd.f32 %v10136_v60, %v10096_v26  ;;  %v10177_v54 = vpop.f32.mrb[69].mxu0  ;;  %v10138_v30 = vpop.f32.mrb[54].mxu1 }
 0xcae   :  { %v10176_v0 = vadd.f32 %v10175_v43, %v10135_v21  ;;  %v10179_v62 = vpop.f32.mrb[70].mxu0  ;;  %v10139_v7 = vpop.f32.mrb[55].mxu1 }
 0xcaf   :  { %v10178_v16 = vadd.f32 %v10177_v54, %v10137_v38  ;;  %v10180_v9 = vpop.f32.mrb[71].mxu0  ;;  %v14518_v7 = vld [vmem:[#allocation38 + $0x8] sm:$0xff]  }
 0xcb0   :  { %v14522_v9 = vld [vmem:[#allocation38 + $0x28] sm:$0xff]  }
 0xceb   :  { %v10216_v2 = vpop.f32.mrb[56].mxu1 }
 0xcec   :  { %v10217_v55 = vadd.f32 %v10216_v2, %v10176_v0  ;;  %v10257_v44 = vpop.f32.mrb[72].mxu0  ;;  %v10218_v33 = vpop.f32.mrb[57].mxu1  ;;  %v14517_v0 = vld [vmem:[#allocation38] sm:$0xff]   ;;  %v14523_v2 = vld [vmem:[#allocation38 + $0x30] sm:$0xff]  }
 0xced   :  { %v10219_v24 = vadd.f32 %v10218_v33, %v10178_v16  ;;  %v10259_v34 = vpop.f32.mrb[73].mxu0  ;;  %v10220_v1 = vpop.f32.mrb[58].mxu1  ;;  %v14521_v16 = vld [vmem:[#allocation38 + $0x20] sm:$0xff]  }
 0xcee   :  { %v10258_v15 = vadd.f32 %v10257_v44, %v10217_v55  ;;  %v10261_v11 = vpop.f32.mrb[74].mxu0  ;;  %v10221_v32 = vpop.f32.mrb[59].mxu1  ;;  %v14524_v55 = vld [vmem:[#allocation38 + $0x38] sm:$0xff]  }
 0xcef   :  { %v10260_v29 = vadd.f32 %v10259_v34, %v10219_v24  ;;  %v10262_v26 = vpop.f32.mrb[75].mxu0 }
 0xcf0   :  { %v10288_v42 = vadd.f32 %v10277_v35, %v10258_v15  ;;  %v12472_v35 = vld [vmem:[#allocation33] ss:$0 sm:$0xff]  ;;  %v12491_v26 = vld [vmem:[#allocation39] ss:$0 sm:$0xff] }
 0xcf1   :  { %v10289_v56 = vadd.f32 %v10281_v28, %v10260_v29  ;;  %v12489_v28 = vld [vmem:[#allocation35] ss:$0 sm:$0xff] }
 0xcf2   :  { %v10314_v18 = vmul.f32 %v10303_v20, %v10288_v42  ;;  %v12490_v20 = vld [vmem:[#allocation36] ss:$0 sm:$0xff] }
 0xcf3   :  { %v10315_v57 = vmul.f32 %v10307_v40, %v10289_v56 }
 0xcf4   :  { %v10340_v45 = vadd.f32 %v10329_v8, %v10314_v18 }
 0xcf5   :  { %v10341_v3 = vadd.f32 %v10333_v22, %v10315_v57 }
 0xcf6   :  { %v10344_v17 = vmax.f32 %v10340_v45, 0.0 }
 0xcf7   :  { %v10345_v36 = vmax.f32 %v10341_v3, 0.0 }
 0xcf8   :  { %v10348_v27 = vpack.c.bf16 %v10344_v17, %v10344_v17 }
 0xcf9   :  { %v10349_v61 = vpack.c.bf16 %v10345_v36, %v10345_v36 }
 0xcfb   :  { %10819 = vmatprep.mubr.bf16.mxu1 %v10349_v61 }
 0xcfc   :  { %10820 = vmatmul.mubr.bf16.vlgmr.msra.gmra.mrb[60].mxu1 %v10348_v27 }
 0xdcf   :  { %v10821_v48 = vpop.f32.mrb[60].mxu1 }
 0xdd0   :  { %v12781_v25 = vadd.f32 %v10821_v48, %v10419_v49  ;;  %v10823_v37 = vpop.f32.mrb[61].mxu1 }
 0xdd1   :  { %v12782_v50 = vadd.f32 %v10823_v37, %v10423_v59  ;;  %v10825_v5 = vpop.f32.mrb[62].mxu1 }
 0xdd2   :  { %v10840_v19 = vmul.f32 %v12781_v25, %v10833_v23  ;;  %v10826_v31 = vpop.f32.mrb[63].mxu1 }
 0xdd3   :  { %v10841_v21 = vmul.f32 %v12782_v50, %v10837_v53 }
 0xdd4   :  { %v10854_v43 = vadd.f32 %v10847_v39, %v10840_v19 }
 0xdd5   :  { %v10855_v60 = vadd.f32 %v10851_v52, %v10841_v21 }
 0xdd6   :  { %v10856_v38 = vmax.f32 %v10854_v43, 0.0 }
 0xdd7   :  { %v10857_v54 = vmax.f32 %v10855_v60, 0.0 }
 0xdd8   :  { %v10858_v62 = vpack.c.bf16 %v10856_v38, %v10856_v38 }
 0xdd9   :  { %v10859_v30 = vpack.c.bf16 %v10857_v54, %v10857_v54 }
 0xddb   :  { %11027 = vmatprep.mubr.bf16.mxu0 %v10859_v30 }
 0xddc   :  { %11028 = vmatmul.mubr.bf16.vlgmr.msra.gmra.mrb[76].mxu0 %v10858_v62 }
 0xddd   :  { %12756 = vmatpush3.bf16.msra.mxu0 %v14517_v0  ;;  %12771 = vmatprep.mubr.msk.bf16.mxu0 %vm15203_vm0, %v15202_v4 }
 0xdde   :  { %12757 = vmatprep.subr.bf16.mxu0 %v15202_v4 }
 0xde1   :  { %12758 = vmatpush3.bf16.msra.mxu0 %v14518_v7 }
 0xde2   :  { %12759 = vmatprep.subr.bf16.mxu0 %v15202_v4 }
 0xde5   :  { %12760 = vmatpush3.bf16.msra.mxu0 %v14519_v12 }
 0xde6   :  { %12761 = vmatprep.subr.bf16.mxu0 %v15202_v4 }
 0xde9   :  { %12762 = vmatpush3.bf16.msra.mxu0 %v14520_v14 }
 0xdea   :  { %12763 = vmatprep.subr.bf16.mxu0 %v15202_v4 }
 0xded   :  { %12764 = vmatpush3.bf16.msra.mxu0 %v14521_v16 }
 0xdee   :  { %12765 = vmatprep.subr.bf16.mxu0 %v15202_v4 }
 0xdf1   :  { %12766 = vmatpush3.bf16.msra.mxu0 %v14522_v9 }
 0xdf2   :  { %12767 = vmatprep.subr.bf16.mxu0 %v15202_v4 }
 0xdf5   :  { %12768 = vmatpush3.bf16.msra.mxu0 %v14523_v2 }
 0xdf6   :  { %12769 = vmatprep.subr.bf16.mxu0 %v15202_v4 }
 0xdf9   :  { %12770 = vmatpush3.bf16.msra.mxu0 %v14524_v55 }
 0xeaf   :  { %v12728_v44 = vpop.f32.mrb[76].mxu0 }
 0xeb0   :  { %v12729_v33 = vpop.f32.mrb[77].mxu0 }
 0xeb1   :  { %v12730_v24 = vadd.f32 %v12729_v33, %v12728_v44  ;;  %v12731_v34 = vpop.f32.mrb[78].mxu0 }
 0xeb2   :  { %v12732_v1 = vpop.f32.mrb[79].mxu0 }
 0xeb3   :  { %v11030_v15 = vadd.f32 %v12730_v24, %v12472_v35 }
 0xeb5   :  { %v11042_v11 = vmul.f32 %v12489_v28, %v11030_v15 }
 0xeb7   :  { %v11050_v32 = vadd.f32 %v12490_v20, %v11042_v11 }
 0xeb9   :  { %v11051_v29 = vmax.f32 %v11050_v32, 0.0 }
 0xebb   :  { %v11052_v40 = vpack.c.bf16 %v11051_v29, %v11051_v29 }
 0xebd   :  { %12772 = vmatmul.mubr.bf16.vlgmr.msra.gmra.mrb[80].mxu0 %v11052_v40 }
 0xf90   :  { %v11158_v42 = vpop.f32.mrb[80].mxu0 }
 0xf91   :  { %v11159_v4 = vadd.f32 %v12491_v26, %v11158_v42  ;;  %v12773_v8 = vpop.f32.mrb[81].mxu0 }
 0xf92   :  { %v11161_v56 = vpop.f32.mrb[82].mxu0 }
 0xf93   :  { %11164 = vst [vmem:[#allocation41] sm:$0xff] %v11159_v4  ;;  %v12774_v22 = vpop.f32.mrb[83].mxu0 }
 0xf94   :  { %15131 = shalt.err (!%p15128_p0)
}
 0xf95   :  { %s16849_s27 = sld [smem:[#allocation69_spill]] }
 0xf9b   :  { %s15132_s17 = scalar_lea.hbm %s16849_s27, 128 }
 0xf9c   :  { %p15133_p1 = scmp.ne.s32.totalorder %s16849_s27, %s15132_s17  ;;  %p15136_p2 = scmp.lt.u32.totalorder %s15132_s17, %s16849_s27 }
 0xf9e   :  { %p15138_p3 = pnand %p15136_p2, %p15133_p1 }
 0xfa0   :  { %15141 = shalt.err (!%p15138_p3)
}
 0xfa1   :  { %11174 = dma.vmem_to_hbm [thread:$0]  %s11172_s19, 128, %s16849_s27, [#allocation5]  }
 0xfa2   :  { %15168 = dma.done.wait [#allocation5], 128  }
 0xfa3   :  { %15169 = vsyncadd [#allocation5], 4294967168 }
 0xfa4   :  { %11178 = vsyncpa [#allocation4], 1 }
 0xfa5   :  { %11179 = vsyncpa [#allocation7], 1 }
 0xfa6   :  { %11180 = vsyncpa [#allocation10], 1 }
 0xfa7   :  { %11181 = vsyncpa [#allocation13], 1 }
 0xfa8   :  { %11182 = vsyncpa [#allocation16], 1 }
 0xfa9   :  { %11183 = vsyncpa [#allocation19], 1 }
 0xfaa   :  { %11184 = vsyncpa [#allocation22], 1 }
 0xfab   :  { %11185 = vsyncpa [#allocation25], 1 }
 0xfac   :  { %11186 = vsyncpa [#allocation28], 1 }
 0xfad   :  { %11187 = vsyncpa [#allocation31], 1 }
 0xfae   :  { %11188 = vsyncpa [#allocation34], 1 }
 0xfaf   :  { %11189 = vsyncpa [#allocation37], 1 }
 0xfb0   :  { %11190 = vsyncpa [#allocation40], 1 }
 0xfb1   :  { %11191 = vsyncpa [#allocation5], 1 }

</bundles_post_ra>
